<compile_context>
chip_gen: v7x
topology: tpu7x:2x2x1
jax: 0.10.0
libtpu: 0.0.40
codegen_flags: <defaults>
</compile_context>

<pallas_src>
import math

import numpy as np

import jax
import jax.numpy as jnp
from jax import lax
from jax.experimental import pallas as pl
from jax.experimental.pallas import tpu as pltpu


# --------------------------------------------------------------------------
# Static layout constants shared by wrapper and kernel.
# --------------------------------------------------------------------------
N_PAD = 128                 # padded node count for BOTH partitions (lane-dense)
C = 16                      # TransformerConv out_channels (heads=1)
L = 5                       # conv applications in forward order
# fused-projection column layout inside weight / bias slabs:
_Q, _S, _K, _V, _QE = 0, C, 2 * C, 3 * C, 4 * C      # 0, 16, 32, 48, 64
W_TOT = 4 * C + 1                                     # 65
_WE_COL = 80                # we-vector columns inside the (8,128) vec slab
_FC_ROW = 5                 # row holding [wfc | bfc] inside the vec slab


# --------------------------------------------------------------------------
# Pallas kernel: full GNNModel forward (5 TransformerConv apps + fc head).
# --------------------------------------------------------------------------
def _gnn_kernel(x1_ref, x2_ref, mask_ref, attr_ref, w_ref, vec_ref, out_ref):
    inv_sqrt_c = 1.0 / math.sqrt(C)

    mask_w2s = mask_ref[...]                     # (N_PAD, N_PAD)
    attr_w2s = attr_ref[...]
    # Reverse (s2w) direction via in-kernel transpose (XLU) -- no 2nd HBM copy.
    mask_s2w = mask_w2s.T
    attr_s2w = attr_w2s.T

    def conv(l, x_src, x_dst, mask, attr):
        wl = w_ref[l]                                        # (C, 4C+1)
        bl = vec_ref[l:l + 1, 0:W_TOT]                       # (1, 4C+1)
        we = vec_ref[l:l + 1, _WE_COL:_WE_COL + C]           # (1, C)

        # One wide MXU matmul per node set; columns = [q | skip | k | v | q.we]
        dst_all = jnp.dot(x_dst, wl, preferred_element_type=jnp.float32) + bl
        src_all = jnp.dot(x_src, wl, preferred_element_type=jnp.float32) + bl
        q = dst_all[:, _Q:_Q + C]
        skip = dst_all[:, _S:_S + C]
        qe = dst_all[:, _QE:_QE + 1]                         # (N, 1) = q . we
        k = src_all[:, _K:_K + C]
        v = src_all[:, _V:_V + C]

        # score_ij = q_i . (k_j + a_ij * we) / sqrt(C)
        qk = lax.dot_general(q, k, (((1,), (1,)), ((), ())),
                             preferred_element_type=jnp.float32)   # (N, N)
        score = (qk + attr * qe) * inv_sqrt_c

        # Masked softmax over sources; destinations with no incoming edges get
        # alpha == 0 (matches PyG's "no messages -> zero aggregation").
        score = jnp.where(mask > 0.0, score, jnp.float32(-1e30))
        m = jnp.max(score, axis=-1, keepdims=True)
        p = jnp.exp(score - m) * mask
        denom = jnp.sum(p, axis=-1, keepdims=True)
        inv = pl.reciprocal(jnp.where(denom > 0.0, denom, jnp.float32(1.0)),
                            approx=True)                     # EUP slot
        alpha = p * inv

        # out_i = sum_j alpha_ij (v_j + a_ij we) + W_skip x_i + b_skip ; relu
        agg = jnp.dot(alpha, v, preferred_element_type=jnp.float32)
        agg = agg + jnp.sum(alpha * attr, axis=-1, keepdims=True) * we
        return jnp.maximum(agg + skip, 0.0)

    x1 = x1_ref[...]
    x2 = x2_ref[...]

    # Layer 1
    h1 = conv(0, x2, x1, mask_w2s, attr_w2s)     # gconv1_w2s (reverse edges)
    h2 = conv(1, x1, x2, mask_s2w, attr_s2w)     # gconv1_s2w
    x1, x2 = h1, h2
    # Layer 2
    h1 = conv(2, x2, x1, mask_w2s, attr_w2s)     # gconv2_w2s
    h2 = conv(3, x1, x2, mask_s2w, attr_s2w)     # gconv2_s2w
    x1, x2 = h1, h2
    # Layer 3 (only the w2s branch feeds the head)
    h1 = conv(4, x2, x1, mask_w2s, attr_w2s)     # gconv3_w2s

    # fc head, lane-dense (1, N_PAD): W_fc (1,C) contracted with h1 (N_PAD,C).
    wfc = vec_ref[_FC_ROW:_FC_ROW + 1, 0:C]                   # (1, C)
    bfc = vec_ref[_FC_ROW:_FC_ROW + 1, C:C + 1]               # (1, 1)
    out = lax.dot_general(wfc, h1, (((1,), (1,)), ((), ())),
                          preferred_element_type=jnp.float32)  # (1, N_PAD)
    out_ref[...] = out + bfc


# --------------------------------------------------------------------------
# Wrapper: densify + pad the bipartite edge list and call Pallas once.
# --------------------------------------------------------------------------
def gnn_forward(x1, x2, edge_index, edge_attr, w_slab, vec_slab):
    n1 = x1.shape[0]

    def pad_x(x):                              # (n, d_in) -> (N_PAD, C), zeros
        buf = jnp.zeros((N_PAD, C), jnp.float32)
        return buf.at[:x.shape[0], :x.shape[1]].set(x.astype(jnp.float32))

    x1p, x2p = pad_x(x1), pad_x(x2)

    # Dense padded adjacency for the w2s (reverse-edge) direction:
    #   mask_w2s[i, j] = 1  iff edge (x1_i -> x2_j) exists.
    # NOTE: duplicate edges would collapse (set, not add); assumed absent.
    src, dst = edge_index[0], edge_index[1]
    e = edge_attr[:, 0].astype(jnp.float32)
    mask_w2s = jnp.zeros((N_PAD, N_PAD), jnp.float32).at[src, dst].set(1.0)
    attr_w2s = jnp.zeros((N_PAD, N_PAD), jnp.float32).at[src, dst].set(e)

    vmem = pl.BlockSpec(memory_space=pltpu.MemorySpace.VMEM)
    out = pl.pallas_call(
        _gnn_kernel,
        out_shape=jax.ShapeDtypeStruct((1, N_PAD), jnp.float32),
        in_specs=[vmem] * 6,
        out_specs=vmem,
    )(x1p, x2p, mask_w2s, attr_w2s, w_slab, vec_slab)

    return out[0, :n1]                         # (N1,) == fc(new_x1).squeeze()


# --------------------------------------------------------------------------
# Wrapper-side parameter packing into the two slabs.
# --------------------------------------------------------------------------
def pack_params(layers, w_fc, b_fc):
    def pad_w(w):                              # (d_in, C) -> (C, C), zero rows
        return jnp.zeros((C, C), jnp.float32).at[:w.shape[0], :].set(w)

    w_rows = []
    vec_slab = jnp.zeros((8, 128), jnp.float32)
    for li, lp in enumerate(layers):
        wq, ws = pad_w(lp['wq']), pad_w(lp['ws'])
        wk, wv = pad_w(lp['wk']), pad_w(lp['wv'])
        qe_col = (wq @ lp['we']).reshape(C, 1)             # fused q.we column
        w_rows.append(jnp.concatenate([wq, ws, wk, wv, qe_col], axis=1))
        b_fused = jnp.concatenate(
            [lp['bq'], lp['bs'], lp['bk'], lp['bv'],
             jnp.dot(lp['bq'], lp['we']).reshape(1)])
        vec_slab = vec_slab.at[li, 0:W_TOT].set(b_fused)
        vec_slab = vec_slab.at[li, _WE_COL:_WE_COL + C].set(lp['we'])
    w_slab = jnp.stack(w_rows)                             # (L, C, 4C+1)
    vec_slab = vec_slab.at[_FC_ROW, 0:C].set(w_fc[0])
    vec_slab = vec_slab.at[_FC_ROW, C].set(b_fc[0, 0])
    return w_slab, vec_slab


# --------------------------------------------------------------------------
# Pure numpy reference (edge-list form, mirrors PyG TransformerConv).
# --------------------------------------------------------------------------
def _ref_conv(xs, xd, e_src, e_dst, e_attr, p):
    wq, bq = np.asarray(p['wq']), np.asarray(p['bq'])
    wk, bk = np.asarray(p['wk']), np.asarray(p['bk'])
    wv, bv = np.asarray(p['wv']), np.asarray(p['bv'])
    we = np.asarray(p['we'])
    ws, bs = np.asarray(p['ws']), np.asarray(p['bs'])
    Cc = bq.shape[0]
    q = xd @ wq + bq
    k = xs @ wk + bk
    v = xs @ wv + bv
    skip = xd @ ws + bs
    agg = np.zeros((xd.shape[0], Cc), np.float32)
    for i in range(xd.shape[0]):
        eids = np.nonzero(e_dst == i)[0]
        if eids.size == 0:
            continue
        ks, vs = [], []
        for eidx in eids:
            emb = e_attr[eidx, 0] * we
            j = int(e_src[eidx])
            ks.append(k[j] + emb)
            vs.append(v[j] + emb)
        ks = np.stack(ks)
        vs = np.stack(vs)
        scores = (ks @ q[i]) / np.sqrt(Cc)
        scores = scores - scores.max()
        a = np.exp(scores)
        a = a / a.sum()
        agg[i] = a @ vs
    return np.maximum(agg + skip, 0.0)


def _ref_forward(x1, x2, edge_index, edge_attr, layers, w_fc, b_fc):
    x1 = np.asarray(x1, np.float32)
    x2 = np.asarray(x2, np.float32)
    ei = np.asarray(edge_index)
    ea = np.asarray(edge_attr, np.float32)
    src, dst = ei[0], ei[1]
    h1 = _ref_conv(x2, x1, dst, src, ea, layers[0])   # gconv1_w2s (reverse)
    h2 = _ref_conv(x1, x2, src, dst, ea, layers[1])   # gconv1_s2w
    x1, x2 = h1, h2
    h1 = _ref_conv(x2, x1, dst, src, ea, layers[2])   # gconv2_w2s
    h2 = _ref_conv(x1, x2, src, dst, ea, layers[3])   # gconv2_s2w
    x1, x2 = h1, h2
    h1 = _ref_conv(x2, x1, dst, src, ea, layers[4])   # gconv3_w2s
    return h1 @ np.asarray(w_fc)[0] + float(np.asarray(b_fc)[0, 0])


# --------------------------------------------------------------------------
if __name__ == "__main__":
    N1, N2 = 16, 32          # bipartite node counts (x1, x2)
    DEG = 3

    key = jax.random.PRNGKey(0)
    ks = iter(jax.random.split(key, 64))

    def nrm(shape, scale):
        return scale * jax.random.normal(next(ks), shape, dtype=jnp.float32)

    # Per-layer params in application order:
    #   0: gconv1_w2s, 1: gconv1_s2w, 2: gconv2_w2s, 3: gconv2_s2w, 4: gconv3_w2s
    in_dims = [1, 1, C, C, C]
    layers = []
    for d_in in in_dims:
        layers.append(dict(
            wq=nrm((d_in, C), 0.25), bq=nrm((C,), 0.1),
            wk=nrm((d_in, C), 0.25), bk=nrm((C,), 0.1),
            wv=nrm((d_in, C), 0.25), bv=nrm((C,), 0.1),
            we=nrm((C,), 0.25),
            ws=nrm((d_in, C), 0.25), bs=nrm((C,), 0.1),
        ))
    w_fc = nrm((1, C), 0.25)
    b_fc = nrm((1, 1), 0.1)

    # Node features (dim 1) and a deterministic bipartite edge set
    # (x1 node i -> x2 nodes {i, i+5, i+11} mod N2; x2 nodes 27..31 isolated;
    #  no duplicate edges).
    x1 = jax.random.normal(next(ks), (N1, 1), jnp.float32)
    x2 = jax.random.normal(next(ks), (N2, 1), jnp.float32)
    src = jnp.array([i for i in range(N1) for _ in range(DEG)], jnp.int32)
    dst = jnp.array([(i + o) % N2 for i in range(N1) for o in (0, 5, 11)],
                    jnp.int32)
    edge_index = jnp.stack([src, dst])                    # (2, E)
    E = src.shape[0]
    edge_attr = jax.random.normal(next(ks), (E, 1), jnp.float32)

    w_slab, vec_slab = pack_params(layers, w_fc, b_fc)

    out = gnn_forward(x1, x2, edge_index, edge_attr, w_slab, vec_slab)
    out = jax.block_until_ready(out)

    ref = _ref_forward(x1, x2, edge_index, edge_attr, layers, w_fc, b_fc)

    assert out.shape == (N1,), out.shape
    # Tolerance slightly looser than pure-f32: the softmax denominator uses
    # the EUP approximate reciprocal (pl.reciprocal(approx=True)) across 5
    # stacked conv layers.
    assert np.allclose(np.asarray(out), ref, rtol=2e-2, atol=2e-3), \
        (np.asarray(out), ref)

    print("KERNEL_OK")
</pallas_src>

<mosaic_0001>
module attributes {stable_mosaic.version = 11 : i64} {
  func.func @_gnn_kernel(%arg0: memref<128x16xf32, #tpu.memory_space<vmem>>, %arg1: memref<128x16xf32, #tpu.memory_space<vmem>>, %arg2: memref<128x128xf32, #tpu.memory_space<vmem>>, %arg3: memref<128x128xf32, #tpu.memory_space<vmem>>, %arg4: memref<5x16x65xf32, #tpu.memory_space<vmem>>, %arg5: memref<8x128xf32, #tpu.memory_space<vmem>>, %arg6: memref<1x128xf32, #tpu.memory_space<vmem>>) attributes {dimension_semantics = [], scalar_prefetch = 0 : i64, scratch_operands = 0 : i64, tpu.core_type = #tpu.core_type<tc>} {
    %c0 = arith.constant 0 : index
    %c0_0 = arith.constant 0 : index
    %0 = vector.load %arg2[%c0, %c0_0] : memref<128x128xf32, #tpu.memory_space<vmem>>, vector<128x128xf32>
    %c0_1 = arith.constant 0 : index
    %c0_2 = arith.constant 0 : index
    %1 = vector.load %arg3[%c0_1, %c0_2] : memref<128x128xf32, #tpu.memory_space<vmem>>, vector<128x128xf32>
    %2 = tpu.transpose %0, [1, 0] : vector<128x128xf32> -> vector<128x128xf32>
    %3 = tpu.transpose %1, [1, 0] : vector<128x128xf32> -> vector<128x128xf32>
    %c0_3 = arith.constant 0 : index
    %c0_4 = arith.constant 0 : index
    %4 = vector.load %arg0[%c0_3, %c0_4] : memref<128x16xf32, #tpu.memory_space<vmem>>, vector<128x16xf32>
    %c0_5 = arith.constant 0 : index
    %c0_6 = arith.constant 0 : index
    %5 = vector.load %arg1[%c0_5, %c0_6] : memref<128x16xf32, #tpu.memory_space<vmem>>, vector<128x16xf32>
    %c0_7 = arith.constant 0 : index
    %c0_8 = arith.constant 0 : index
    %c0_9 = arith.constant 0 : index
    %6 = vector.load %arg4[%c0_7, %c0_8, %c0_9] : memref<5x16x65xf32, #tpu.memory_space<vmem>>, vector<1x16x65xf32>
    %7 = vector.shape_cast %6 : vector<1x16x65xf32> to vector<16x65xf32>
    %c0_10 = arith.constant 0 : index
    %c0_11 = arith.constant 0 : index
    %8 = vector.load %arg5[%c0_10, %c0_11] : memref<8x128xf32, #tpu.memory_space<vmem>>, vector<1x65xf32>
    %c0_12 = arith.constant 0 : index
    %c80 = arith.constant 80 : index
    %9 = vector.load %arg5[%c0_12, %c80] : memref<8x128xf32, #tpu.memory_space<vmem>>, vector<1x16xf32>
    %cst = arith.constant dense<0.000000e+00> : vector<128x65xf32>
    %10 = tpu.matmul %4, %7, %cst {dimension_numbers = #tpu.dot_dimension_numbers<[1], [0], [0], [1], [0, 0, 1, 1], [], []>} : vector<128x16xf32>, vector<16x65xf32>, vector<128x65xf32> -> vector<128x65xf32>
    %11 = vector.broadcast %8 : vector<1x65xf32> to vector<128x65xf32>
    %12 = arith.addf %10, %11 : vector<128x65xf32>
    %cst_13 = arith.constant dense<0.000000e+00> : vector<128x65xf32>
    %13 = tpu.matmul %5, %7, %cst_13 {dimension_numbers = #tpu.dot_dimension_numbers<[1], [0], [0], [1], [0, 0, 1, 1], [], []>} : vector<128x16xf32>, vector<16x65xf32>, vector<128x65xf32> -> vector<128x65xf32>
    %14 = vector.broadcast %8 : vector<1x65xf32> to vector<128x65xf32>
    %15 = arith.addf %13, %14 : vector<128x65xf32>
    %16 = vector.extract_strided_slice %12 {offsets = [0, 0], sizes = [128, 16], strides = [1, 1]} : vector<128x65xf32> to vector<128x16xf32>
    %17 = vector.extract_strided_slice %12 {offsets = [0, 16], sizes = [128, 16], strides = [1, 1]} : vector<128x65xf32> to vector<128x16xf32>
    %18 = vector.extract_strided_slice %12 {offsets = [0, 64], sizes = [128, 1], strides = [1, 1]} : vector<128x65xf32> to vector<128x1xf32>
    %19 = vector.extract_strided_slice %15 {offsets = [0, 32], sizes = [128, 16], strides = [1, 1]} : vector<128x65xf32> to vector<128x16xf32>
    %20 = vector.extract_strided_slice %15 {offsets = [0, 48], sizes = [128, 16], strides = [1, 1]} : vector<128x65xf32> to vector<128x16xf32>
    %cst_14 = arith.constant dense<0.000000e+00> : vector<128x128xf32>
    %21 = tpu.matmul %16, %19, %cst_14 {dimension_numbers = #tpu.dot_dimension_numbers<[1], [1], [0], [0], [0, 0, 1, 0], [], []>} : vector<128x16xf32>, vector<128x16xf32>, vector<128x128xf32> -> vector<128x128xf32>
    %22 = vector.broadcast %18 : vector<128x1xf32> to vector<128x128xf32>
    %23 = arith.mulf %1, %22 : vector<128x128xf32>
    %24 = arith.addf %21, %23 : vector<128x128xf32>
    %cst_15 = arith.constant 2.500000e-01 : f32
    %25 = vector.broadcast %cst_15 : f32 to vector<128x128xf32>
    %26 = arith.mulf %24, %25 : vector<128x128xf32>
    %cst_16 = arith.constant 0.000000e+00 : f32
    %27 = vector.broadcast %cst_16 : f32 to vector<128x128xf32>
    %28 = arith.cmpf ogt, %0, %27 : vector<128x128xf32>
    %cst_17 = arith.constant -1.000000e+30 : f32
    %29 = vector.broadcast %cst_17 : f32 to vector<128x128xf32>
    %30 = arith.select %28, %26, %29 : vector<128x128xi1>, vector<128x128xf32>
    %cst_18 = arith.constant dense<0xFF800000> : vector<128xf32>
    %31 = vector.multi_reduction <maximumf>, %30, %cst_18 [1] : vector<128x128xf32> to vector<128xf32>
    %32 = vector.shape_cast %31 : vector<128xf32> to vector<128x1xf32>
    %33 = vector.broadcast %32 : vector<128x1xf32> to vector<128x128xf32>
    %34 = arith.subf %30, %33 : vector<128x128xf32>
    %35 = math.exp %34 : vector<128x128xf32>
    %36 = arith.mulf %35, %0 : vector<128x128xf32>
    %cst_19 = arith.constant dense<0.000000e+00> : vector<128xf32>
    %37 = vector.multi_reduction <add>, %36, %cst_19 [1] : vector<128x128xf32> to vector<128xf32>
    %38 = vector.shape_cast %37 : vector<128xf32> to vector<128x1xf32>
    %cst_20 = arith.constant 0.000000e+00 : f32
    %39 = vector.broadcast %cst_20 : f32 to vector<128x1xf32>
    %40 = arith.cmpf ogt, %38, %39 : vector<128x1xf32>
    %cst_21 = arith.constant 1.000000e+00 : f32
    %41 = vector.broadcast %cst_21 : f32 to vector<128x1xf32>
    %42 = arith.select %40, %38, %41 : vector<128x1xi1>, vector<128x1xf32>
    %43 = tpu.reciprocal %42 {approx = true} : vector<128x1xf32> -> vector<128x1xf32>
    %44 = vector.broadcast %43 : vector<128x1xf32> to vector<128x128xf32>
    %45 = arith.mulf %36, %44 : vector<128x128xf32>
    %cst_22 = arith.constant dense<0.000000e+00> : vector<128x16xf32>
    %46 = tpu.matmul %45, %20, %cst_22 {dimension_numbers = #tpu.dot_dimension_numbers<[1], [0], [0], [1], [0, 0, 1, 1], [], []>} : vector<128x128xf32>, vector<128x16xf32>, vector<128x16xf32> -> vector<128x16xf32>
    %47 = arith.mulf %45, %1 : vector<128x128xf32>
    %cst_23 = arith.constant dense<0.000000e+00> : vector<128xf32>
    %48 = vector.multi_reduction <add>, %47, %cst_23 [1] : vector<128x128xf32> to vector<128xf32>
    %49 = vector.shape_cast %48 : vector<128xf32> to vector<128x1xf32>
    %50 = vector.broadcast %49 : vector<128x1xf32> to vector<128x16xf32>
    %51 = vector.broadcast %9 : vector<1x16xf32> to vector<128x16xf32>
    %52 = arith.mulf %50, %51 : vector<128x16xf32>
    %53 = arith.addf %46, %52 : vector<128x16xf32>
    %54 = arith.addf %53, %17 : vector<128x16xf32>
    %cst_24 = arith.constant 0.000000e+00 : f32
    %55 = vector.broadcast %cst_24 : f32 to vector<128x16xf32>
    %56 = arith.maximumf %54, %55 : vector<128x16xf32>
    %c1 = arith.constant 1 : index
    %c0_25 = arith.constant 0 : index
    %c0_26 = arith.constant 0 : index
    %57 = vector.load %arg4[%c1, %c0_25, %c0_26] : memref<5x16x65xf32, #tpu.memory_space<vmem>>, vector<1x16x65xf32>
    %58 = vector.shape_cast %57 : vector<1x16x65xf32> to vector<16x65xf32>
    %c1_27 = arith.constant 1 : index
    %c0_28 = arith.constant 0 : index
    %59 = vector.load %arg5[%c1_27, %c0_28] : memref<8x128xf32, #tpu.memory_space<vmem>>, vector<1x65xf32>
    %c1_29 = arith.constant 1 : index
    %c80_30 = arith.constant 80 : index
    %60 = vector.load %arg5[%c1_29, %c80_30] : memref<8x128xf32, #tpu.memory_space<vmem>>, vector<1x16xf32>
    %cst_31 = arith.constant dense<0.000000e+00> : vector<128x65xf32>
    %61 = tpu.matmul %5, %58, %cst_31 {dimension_numbers = #tpu.dot_dimension_numbers<[1], [0], [0], [1], [0, 0, 1, 1], [], []>} : vector<128x16xf32>, vector<16x65xf32>, vector<128x65xf32> -> vector<128x65xf32>
    %62 = vector.broadcast %59 : vector<1x65xf32> to vector<128x65xf32>
    %63 = arith.addf %61, %62 : vector<128x65xf32>
    %cst_32 = arith.constant dense<0.000000e+00> : vector<128x65xf32>
    %64 = tpu.matmul %4, %58, %cst_32 {dimension_numbers = #tpu.dot_dimension_numbers<[1], [0], [0], [1], [0, 0, 1, 1], [], []>} : vector<128x16xf32>, vector<16x65xf32>, vector<128x65xf32> -> vector<128x65xf32>
    %65 = vector.broadcast %59 : vector<1x65xf32> to vector<128x65xf32>
    %66 = arith.addf %64, %65 : vector<128x65xf32>
    %67 = vector.extract_strided_slice %63 {offsets = [0, 0], sizes = [128, 16], strides = [1, 1]} : vector<128x65xf32> to vector<128x16xf32>
    %68 = vector.extract_strided_slice %63 {offsets = [0, 16], sizes = [128, 16], strides = [1, 1]} : vector<128x65xf32> to vector<128x16xf32>
    %69 = vector.extract_strided_slice %63 {offsets = [0, 64], sizes = [128, 1], strides = [1, 1]} : vector<128x65xf32> to vector<128x1xf32>
    %70 = vector.extract_strided_slice %66 {offsets = [0, 32], sizes = [128, 16], strides = [1, 1]} : vector<128x65xf32> to vector<128x16xf32>
    %71 = vector.extract_strided_slice %66 {offsets = [0, 48], sizes = [128, 16], strides = [1, 1]} : vector<128x65xf32> to vector<128x16xf32>
    %cst_33 = arith.constant dense<0.000000e+00> : vector<128x128xf32>
    %72 = tpu.matmul %67, %70, %cst_33 {dimension_numbers = #tpu.dot_dimension_numbers<[1], [1], [0], [0], [0, 0, 1, 0], [], []>} : vector<128x16xf32>, vector<128x16xf32>, vector<128x128xf32> -> vector<128x128xf32>
    %73 = vector.broadcast %69 : vector<128x1xf32> to vector<128x128xf32>
    %74 = arith.mulf %3, %73 : vector<128x128xf32>
    %75 = arith.addf %72, %74 : vector<128x128xf32>
    %cst_34 = arith.constant 2.500000e-01 : f32
    %76 = vector.broadcast %cst_34 : f32 to vector<128x128xf32>
    %77 = arith.mulf %75, %76 : vector<128x128xf32>
    %cst_35 = arith.constant 0.000000e+00 : f32
    %78 = vector.broadcast %cst_35 : f32 to vector<128x128xf32>
    %79 = arith.cmpf ogt, %2, %78 : vector<128x128xf32>
    %cst_36 = arith.constant -1.000000e+30 : f32
    %80 = vector.broadcast %cst_36 : f32 to vector<128x128xf32>
    %81 = arith.select %79, %77, %80 : vector<128x128xi1>, vector<128x128xf32>
    %cst_37 = arith.constant dense<0xFF800000> : vector<128xf32>
    %82 = vector.multi_reduction <maximumf>, %81, %cst_37 [1] : vector<128x128xf32> to vector<128xf32>
    %83 = vector.shape_cast %82 : vector<128xf32> to vector<128x1xf32>
    %84 = vector.broadcast %83 : vector<128x1xf32> to vector<128x128xf32>
    %85 = arith.subf %81, %84 : vector<128x128xf32>
    %86 = math.exp %85 : vector<128x128xf32>
    %87 = arith.mulf %86, %2 : vector<128x128xf32>
    %cst_38 = arith.constant dense<0.000000e+00> : vector<128xf32>
    %88 = vector.multi_reduction <add>, %87, %cst_38 [1] : vector<128x128xf32> to vector<128xf32>
    %89 = vector.shape_cast %88 : vector<128xf32> to vector<128x1xf32>
    %cst_39 = arith.constant 0.000000e+00 : f32
    %90 = vector.broadcast %cst_39 : f32 to vector<128x1xf32>
    %91 = arith.cmpf ogt, %89, %90 : vector<128x1xf32>
    %cst_40 = arith.constant 1.000000e+00 : f32
    %92 = vector.broadcast %cst_40 : f32 to vector<128x1xf32>
    %93 = arith.select %91, %89, %92 : vector<128x1xi1>, vector<128x1xf32>
    %94 = tpu.reciprocal %93 {approx = true} : vector<128x1xf32> -> vector<128x1xf32>
    %95 = vector.broadcast %94 : vector<128x1xf32> to vector<128x128xf32>
    %96 = arith.mulf %87, %95 : vector<128x128xf32>
    %cst_41 = arith.constant dense<0.000000e+00> : vector<128x16xf32>
    %97 = tpu.matmul %96, %71, %cst_41 {dimension_numbers = #tpu.dot_dimension_numbers<[1], [0], [0], [1], [0, 0, 1, 1], [], []>} : vector<128x128xf32>, vector<128x16xf32>, vector<128x16xf32> -> vector<128x16xf32>
    %98 = arith.mulf %96, %3 : vector<128x128xf32>
    %cst_42 = arith.constant dense<0.000000e+00> : vector<128xf32>
    %99 = vector.multi_reduction <add>, %98, %cst_42 [1] : vector<128x128xf32> to vector<128xf32>
    %100 = vector.shape_cast %99 : vector<128xf32> to vector<128x1xf32>
    %101 = vector.broadcast %100 : vector<128x1xf32> to vector<128x16xf32>
    %102 = vector.broadcast %60 : vector<1x16xf32> to vector<128x16xf32>
    %103 = arith.mulf %101, %102 : vector<128x16xf32>
    %104 = arith.addf %97, %103 : vector<128x16xf32>
    %105 = arith.addf %104, %68 : vector<128x16xf32>
    %cst_43 = arith.constant 0.000000e+00 : f32
    %106 = vector.broadcast %cst_43 : f32 to vector<128x16xf32>
    %107 = arith.maximumf %105, %106 : vector<128x16xf32>
    %c2 = arith.constant 2 : index
    %c0_44 = arith.constant 0 : index
    %c0_45 = arith.constant 0 : index
    %108 = vector.load %arg4[%c2, %c0_44, %c0_45] : memref<5x16x65xf32, #tpu.memory_space<vmem>>, vector<1x16x65xf32>
    %109 = vector.shape_cast %108 : vector<1x16x65xf32> to vector<16x65xf32>
    %c2_46 = arith.constant 2 : index
    %c0_47 = arith.constant 0 : index
    %110 = vector.load %arg5[%c2_46, %c0_47] : memref<8x128xf32, #tpu.memory_space<vmem>>, vector<1x65xf32>
    %c2_48 = arith.constant 2 : index
    %c80_49 = arith.constant 80 : index
    %111 = vector.load %arg5[%c2_48, %c80_49] : memref<8x128xf32, #tpu.memory_space<vmem>>, vector<1x16xf32>
    %cst_50 = arith.constant dense<0.000000e+00> : vector<128x65xf32>
    %112 = tpu.matmul %56, %109, %cst_50 {dimension_numbers = #tpu.dot_dimension_numbers<[1], [0], [0], [1], [0, 0, 1, 1], [], []>} : vector<128x16xf32>, vector<16x65xf32>, vector<128x65xf32> -> vector<128x65xf32>
    %113 = vector.broadcast %110 : vector<1x65xf32> to vector<128x65xf32>
    %114 = arith.addf %112, %113 : vector<128x65xf32>
    %cst_51 = arith.constant dense<0.000000e+00> : vector<128x65xf32>
    %115 = tpu.matmul %107, %109, %cst_51 {dimension_numbers = #tpu.dot_dimension_numbers<[1], [0], [0], [1], [0, 0, 1, 1], [], []>} : vector<128x16xf32>, vector<16x65xf32>, vector<128x65xf32> -> vector<128x65xf32>
    %116 = vector.broadcast %110 : vector<1x65xf32> to vector<128x65xf32>
    %117 = arith.addf %115, %116 : vector<128x65xf32>
    %118 = vector.extract_strided_slice %114 {offsets = [0, 0], sizes = [128, 16], strides = [1, 1]} : vector<128x65xf32> to vector<128x16xf32>
    %119 = vector.extract_strided_slice %114 {offsets = [0, 16], sizes = [128, 16], strides = [1, 1]} : vector<128x65xf32> to vector<128x16xf32>
    %120 = vector.extract_strided_slice %114 {offsets = [0, 64], sizes = [128, 1], strides = [1, 1]} : vector<128x65xf32> to vector<128x1xf32>
    %121 = vector.extract_strided_slice %117 {offsets = [0, 32], sizes = [128, 16], strides = [1, 1]} : vector<128x65xf32> to vector<128x16xf32>
    %122 = vector.extract_strided_slice %117 {offsets = [0, 48], sizes = [128, 16], strides = [1, 1]} : vector<128x65xf32> to vector<128x16xf32>
    %cst_52 = arith.constant dense<0.000000e+00> : vector<128x128xf32>
    %123 = tpu.matmul %118, %121, %cst_52 {dimension_numbers = #tpu.dot_dimension_numbers<[1], [1], [0], [0], [0, 0, 1, 0], [], []>} : vector<128x16xf32>, vector<128x16xf32>, vector<128x128xf32> -> vector<128x128xf32>
    %124 = vector.broadcast %120 : vector<128x1xf32> to vector<128x128xf32>
    %125 = arith.mulf %1, %124 : vector<128x128xf32>
    %126 = arith.addf %123, %125 : vector<128x128xf32>
    %cst_53 = arith.constant 2.500000e-01 : f32
    %127 = vector.broadcast %cst_53 : f32 to vector<128x128xf32>
    %128 = arith.mulf %126, %127 : vector<128x128xf32>
    %cst_54 = arith.constant 0.000000e+00 : f32
    %129 = vector.broadcast %cst_54 : f32 to vector<128x128xf32>
    %130 = arith.cmpf ogt, %0, %129 : vector<128x128xf32>
    %cst_55 = arith.constant -1.000000e+30 : f32
    %131 = vector.broadcast %cst_55 : f32 to vector<128x128xf32>
    %132 = arith.select %130, %128, %131 : vector<128x128xi1>, vector<128x128xf32>
    %cst_56 = arith.constant dense<0xFF800000> : vector<128xf32>
    %133 = vector.multi_reduction <maximumf>, %132, %cst_56 [1] : vector<128x128xf32> to vector<128xf32>
    %134 = vector.shape_cast %133 : vector<128xf32> to vector<128x1xf32>
    %135 = vector.broadcast %134 : vector<128x1xf32> to vector<128x128xf32>
    %136 = arith.subf %132, %135 : vector<128x128xf32>
    %137 = math.exp %136 : vector<128x128xf32>
    %138 = arith.mulf %137, %0 : vector<128x128xf32>
    %cst_57 = arith.constant dense<0.000000e+00> : vector<128xf32>
    %139 = vector.multi_reduction <add>, %138, %cst_57 [1] : vector<128x128xf32> to vector<128xf32>
    %140 = vector.shape_cast %139 : vector<128xf32> to vector<128x1xf32>
    %cst_58 = arith.constant 0.000000e+00 : f32
    %141 = vector.broadcast %cst_58 : f32 to vector<128x1xf32>
    %142 = arith.cmpf ogt, %140, %141 : vector<128x1xf32>
    %cst_59 = arith.constant 1.000000e+00 : f32
    %143 = vector.broadcast %cst_59 : f32 to vector<128x1xf32>
    %144 = arith.select %142, %140, %143 : vector<128x1xi1>, vector<128x1xf32>
    %145 = tpu.reciprocal %144 {approx = true} : vector<128x1xf32> -> vector<128x1xf32>
    %146 = vector.broadcast %145 : vector<128x1xf32> to vector<128x128xf32>
    %147 = arith.mulf %138, %146 : vector<128x128xf32>
    %cst_60 = arith.constant dense<0.000000e+00> : vector<128x16xf32>
    %148 = tpu.matmul %147, %122, %cst_60 {dimension_numbers = #tpu.dot_dimension_numbers<[1], [0], [0], [1], [0, 0, 1, 1], [], []>} : vector<128x128xf32>, vector<128x16xf32>, vector<128x16xf32> -> vector<128x16xf32>
    %149 = arith.mulf %147, %1 : vector<128x128xf32>
    %cst_61 = arith.constant dense<0.000000e+00> : vector<128xf32>
    %150 = vector.multi_reduction <add>, %149, %cst_61 [1] : vector<128x128xf32> to vector<128xf32>
    %151 = vector.shape_cast %150 : vector<128xf32> to vector<128x1xf32>
    %152 = vector.broadcast %151 : vector<128x1xf32> to vector<128x16xf32>
    %153 = vector.broadcast %111 : vector<1x16xf32> to vector<128x16xf32>
    %154 = arith.mulf %152, %153 : vector<128x16xf32>
    %155 = arith.addf %148, %154 : vector<128x16xf32>
    %156 = arith.addf %155, %119 : vector<128x16xf32>
    %cst_62 = arith.constant 0.000000e+00 : f32
    %157 = vector.broadcast %cst_62 : f32 to vector<128x16xf32>
    %158 = arith.maximumf %156, %157 : vector<128x16xf32>
    %c3 = arith.constant 3 : index
    %c0_63 = arith.constant 0 : index
    %c0_64 = arith.constant 0 : index
    %159 = vector.load %arg4[%c3, %c0_63, %c0_64] : memref<5x16x65xf32, #tpu.memory_space<vmem>>, vector<1x16x65xf32>
    %160 = vector.shape_cast %159 : vector<1x16x65xf32> to vector<16x65xf32>
    %c3_65 = arith.constant 3 : index
    %c0_66 = arith.constant 0 : index
    %161 = vector.load %arg5[%c3_65, %c0_66] : memref<8x128xf32, #tpu.memory_space<vmem>>, vector<1x65xf32>
    %c3_67 = arith.constant 3 : index
    %c80_68 = arith.constant 80 : index
    %162 = vector.load %arg5[%c3_67, %c80_68] : memref<8x128xf32, #tpu.memory_space<vmem>>, vector<1x16xf32>
    %cst_69 = arith.constant dense<0.000000e+00> : vector<128x65xf32>
    %163 = tpu.matmul %107, %160, %cst_69 {dimension_numbers = #tpu.dot_dimension_numbers<[1], [0], [0], [1], [0, 0, 1, 1], [], []>} : vector<128x16xf32>, vector<16x65xf32>, vector<128x65xf32> -> vector<128x65xf32>
    %164 = vector.broadcast %161 : vector<1x65xf32> to vector<128x65xf32>
    %165 = arith.addf %163, %164 : vector<128x65xf32>
    %cst_70 = arith.constant dense<0.000000e+00> : vector<128x65xf32>
    %166 = tpu.matmul %56, %160, %cst_70 {dimension_numbers = #tpu.dot_dimension_numbers<[1], [0], [0], [1], [0, 0, 1, 1], [], []>} : vector<128x16xf32>, vector<16x65xf32>, vector<128x65xf32> -> vector<128x65xf32>
    %167 = vector.broadcast %161 : vector<1x65xf32> to vector<128x65xf32>
    %168 = arith.addf %166, %167 : vector<128x65xf32>
    %169 = vector.extract_strided_slice %165 {offsets = [0, 0], sizes = [128, 16], strides = [1, 1]} : vector<128x65xf32> to vector<128x16xf32>
    %170 = vector.extract_strided_slice %165 {offsets = [0, 16], sizes = [128, 16], strides = [1, 1]} : vector<128x65xf32> to vector<128x16xf32>
    %171 = vector.extract_strided_slice %165 {offsets = [0, 64], sizes = [128, 1], strides = [1, 1]} : vector<128x65xf32> to vector<128x1xf32>
    %172 = vector.extract_strided_slice %168 {offsets = [0, 32], sizes = [128, 16], strides = [1, 1]} : vector<128x65xf32> to vector<128x16xf32>
    %173 = vector.extract_strided_slice %168 {offsets = [0, 48], sizes = [128, 16], strides = [1, 1]} : vector<128x65xf32> to vector<128x16xf32>
    %cst_71 = arith.constant dense<0.000000e+00> : vector<128x128xf32>
    %174 = tpu.matmul %169, %172, %cst_71 {dimension_numbers = #tpu.dot_dimension_numbers<[1], [1], [0], [0], [0, 0, 1, 0], [], []>} : vector<128x16xf32>, vector<128x16xf32>, vector<128x128xf32> -> vector<128x128xf32>
    %175 = vector.broadcast %171 : vector<128x1xf32> to vector<128x128xf32>
    %176 = arith.mulf %3, %175 : vector<128x128xf32>
    %177 = arith.addf %174, %176 : vector<128x128xf32>
    %cst_72 = arith.constant 2.500000e-01 : f32
    %178 = vector.broadcast %cst_72 : f32 to vector<128x128xf32>
    %179 = arith.mulf %177, %178 : vector<128x128xf32>
    %cst_73 = arith.constant 0.000000e+00 : f32
    %180 = vector.broadcast %cst_73 : f32 to vector<128x128xf32>
    %181 = arith.cmpf ogt, %2, %180 : vector<128x128xf32>
    %cst_74 = arith.constant -1.000000e+30 : f32
    %182 = vector.broadcast %cst_74 : f32 to vector<128x128xf32>
    %183 = arith.select %181, %179, %182 : vector<128x128xi1>, vector<128x128xf32>
    %cst_75 = arith.constant dense<0xFF800000> : vector<128xf32>
    %184 = vector.multi_reduction <maximumf>, %183, %cst_75 [1] : vector<128x128xf32> to vector<128xf32>
    %185 = vector.shape_cast %184 : vector<128xf32> to vector<128x1xf32>
    %186 = vector.broadcast %185 : vector<128x1xf32> to vector<128x128xf32>
    %187 = arith.subf %183, %186 : vector<128x128xf32>
    %188 = math.exp %187 : vector<128x128xf32>
    %189 = arith.mulf %188, %2 : vector<128x128xf32>
    %cst_76 = arith.constant dense<0.000000e+00> : vector<128xf32>
    %190 = vector.multi_reduction <add>, %189, %cst_76 [1] : vector<128x128xf32> to vector<128xf32>
    %191 = vector.shape_cast %190 : vector<128xf32> to vector<128x1xf32>
    %cst_77 = arith.constant 0.000000e+00 : f32
    %192 = vector.broadcast %cst_77 : f32 to vector<128x1xf32>
    %193 = arith.cmpf ogt, %191, %192 : vector<128x1xf32>
    %cst_78 = arith.constant 1.000000e+00 : f32
    %194 = vector.broadcast %cst_78 : f32 to vector<128x1xf32>
    %195 = arith.select %193, %191, %194 : vector<128x1xi1>, vector<128x1xf32>
    %196 = tpu.reciprocal %195 {approx = true} : vector<128x1xf32> -> vector<128x1xf32>
    %197 = vector.broadcast %196 : vector<128x1xf32> to vector<128x128xf32>
    %198 = arith.mulf %189, %197 : vector<128x128xf32>
    %cst_79 = arith.constant dense<0.000000e+00> : vector<128x16xf32>
    %199 = tpu.matmul %198, %173, %cst_79 {dimension_numbers = #tpu.dot_dimension_numbers<[1], [0], [0], [1], [0, 0, 1, 1], [], []>} : vector<128x128xf32>, vector<128x16xf32>, vector<128x16xf32> -> vector<128x16xf32>
    %200 = arith.mulf %198, %3 : vector<128x128xf32>
    %cst_80 = arith.constant dense<0.000000e+00> : vector<128xf32>
    %201 = vector.multi_reduction <add>, %200, %cst_80 [1] : vector<128x128xf32> to vector<128xf32>
    %202 = vector.shape_cast %201 : vector<128xf32> to vector<128x1xf32>
    %203 = vector.broadcast %202 : vector<128x1xf32> to vector<128x16xf32>
    %204 = vector.broadcast %162 : vector<1x16xf32> to vector<128x16xf32>
    %205 = arith.mulf %203, %204 : vector<128x16xf32>
    %206 = arith.addf %199, %205 : vector<128x16xf32>
    %207 = arith.addf %206, %170 : vector<128x16xf32>
    %cst_81 = arith.constant 0.000000e+00 : f32
    %208 = vector.broadcast %cst_81 : f32 to vector<128x16xf32>
    %209 = arith.maximumf %207, %208 : vector<128x16xf32>
    %c4 = arith.constant 4 : index
    %c0_82 = arith.constant 0 : index
    %c0_83 = arith.constant 0 : index
    %210 = vector.load %arg4[%c4, %c0_82, %c0_83] : memref<5x16x65xf32, #tpu.memory_space<vmem>>, vector<1x16x65xf32>
    %211 = vector.shape_cast %210 : vector<1x16x65xf32> to vector<16x65xf32>
    %c4_84 = arith.constant 4 : index
    %c0_85 = arith.constant 0 : index
    %212 = vector.load %arg5[%c4_84, %c0_85] : memref<8x128xf32, #tpu.memory_space<vmem>>, vector<1x65xf32>
    %c4_86 = arith.constant 4 : index
    %c80_87 = arith.constant 80 : index
    %213 = vector.load %arg5[%c4_86, %c80_87] : memref<8x128xf32, #tpu.memory_space<vmem>>, vector<1x16xf32>
    %cst_88 = arith.constant dense<0.000000e+00> : vector<128x65xf32>
    %214 = tpu.matmul %158, %211, %cst_88 {dimension_numbers = #tpu.dot_dimension_numbers<[1], [0], [0], [1], [0, 0, 1, 1], [], []>} : vector<128x16xf32>, vector<16x65xf32>, vector<128x65xf32> -> vector<128x65xf32>
    %215 = vector.broadcast %212 : vector<1x65xf32> to vector<128x65xf32>
    %216 = arith.addf %214, %215 : vector<128x65xf32>
    %cst_89 = arith.constant dense<0.000000e+00> : vector<128x65xf32>
    %217 = tpu.matmul %209, %211, %cst_89 {dimension_numbers = #tpu.dot_dimension_numbers<[1], [0], [0], [1], [0, 0, 1, 1], [], []>} : vector<128x16xf32>, vector<16x65xf32>, vector<128x65xf32> -> vector<128x65xf32>
    %218 = vector.broadcast %212 : vector<1x65xf32> to vector<128x65xf32>
    %219 = arith.addf %217, %218 : vector<128x65xf32>
    %220 = vector.extract_strided_slice %216 {offsets = [0, 0], sizes = [128, 16], strides = [1, 1]} : vector<128x65xf32> to vector<128x16xf32>
    %221 = vector.extract_strided_slice %216 {offsets = [0, 16], sizes = [128, 16], strides = [1, 1]} : vector<128x65xf32> to vector<128x16xf32>
    %222 = vector.extract_strided_slice %216 {offsets = [0, 64], sizes = [128, 1], strides = [1, 1]} : vector<128x65xf32> to vector<128x1xf32>
    %223 = vector.extract_strided_slice %219 {offsets = [0, 32], sizes = [128, 16], strides = [1, 1]} : vector<128x65xf32> to vector<128x16xf32>
    %224 = vector.extract_strided_slice %219 {offsets = [0, 48], sizes = [128, 16], strides = [1, 1]} : vector<128x65xf32> to vector<128x16xf32>
    %cst_90 = arith.constant dense<0.000000e+00> : vector<128x128xf32>
    %225 = tpu.matmul %220, %223, %cst_90 {dimension_numbers = #tpu.dot_dimension_numbers<[1], [1], [0], [0], [0, 0, 1, 0], [], []>} : vector<128x16xf32>, vector<128x16xf32>, vector<128x128xf32> -> vector<128x128xf32>
    %226 = vector.broadcast %222 : vector<128x1xf32> to vector<128x128xf32>
    %227 = arith.mulf %1, %226 : vector<128x128xf32>
    %228 = arith.addf %225, %227 : vector<128x128xf32>
    %cst_91 = arith.constant 2.500000e-01 : f32
    %229 = vector.broadcast %cst_91 : f32 to vector<128x128xf32>
    %230 = arith.mulf %228, %229 : vector<128x128xf32>
    %cst_92 = arith.constant 0.000000e+00 : f32
    %231 = vector.broadcast %cst_92 : f32 to vector<128x128xf32>
    %232 = arith.cmpf ogt, %0, %231 : vector<128x128xf32>
    %cst_93 = arith.constant -1.000000e+30 : f32
    %233 = vector.broadcast %cst_93 : f32 to vector<128x128xf32>
    %234 = arith.select %232, %230, %233 : vector<128x128xi1>, vector<128x128xf32>
    %cst_94 = arith.constant dense<0xFF800000> : vector<128xf32>
    %235 = vector.multi_reduction <maximumf>, %234, %cst_94 [1] : vector<128x128xf32> to vector<128xf32>
    %236 = vector.shape_cast %235 : vector<128xf32> to vector<128x1xf32>
    %237 = vector.broadcast %236 : vector<128x1xf32> to vector<128x128xf32>
    %238 = arith.subf %234, %237 : vector<128x128xf32>
    %239 = math.exp %238 : vector<128x128xf32>
    %240 = arith.mulf %239, %0 : vector<128x128xf32>
    %cst_95 = arith.constant dense<0.000000e+00> : vector<128xf32>
    %241 = vector.multi_reduction <add>, %240, %cst_95 [1] : vector<128x128xf32> to vector<128xf32>
    %242 = vector.shape_cast %241 : vector<128xf32> to vector<128x1xf32>
    %cst_96 = arith.constant 0.000000e+00 : f32
    %243 = vector.broadcast %cst_96 : f32 to vector<128x1xf32>
    %244 = arith.cmpf ogt, %242, %243 : vector<128x1xf32>
    %cst_97 = arith.constant 1.000000e+00 : f32
    %245 = vector.broadcast %cst_97 : f32 to vector<128x1xf32>
    %246 = arith.select %244, %242, %245 : vector<128x1xi1>, vector<128x1xf32>
    %247 = tpu.reciprocal %246 {approx = true} : vector<128x1xf32> -> vector<128x1xf32>
    %248 = vector.broadcast %247 : vector<128x1xf32> to vector<128x128xf32>
    %249 = arith.mulf %240, %248 : vector<128x128xf32>
    %cst_98 = arith.constant dense<0.000000e+00> : vector<128x16xf32>
    %250 = tpu.matmul %249, %224, %cst_98 {dimension_numbers = #tpu.dot_dimension_numbers<[1], [0], [0], [1], [0, 0, 1, 1], [], []>} : vector<128x128xf32>, vector<128x16xf32>, vector<128x16xf32> -> vector<128x16xf32>
    %251 = arith.mulf %249, %1 : vector<128x128xf32>
    %cst_99 = arith.constant dense<0.000000e+00> : vector<128xf32>
    %252 = vector.multi_reduction <add>, %251, %cst_99 [1] : vector<128x128xf32> to vector<128xf32>
    %253 = vector.shape_cast %252 : vector<128xf32> to vector<128x1xf32>
    %254 = vector.broadcast %253 : vector<128x1xf32> to vector<128x16xf32>
    %255 = vector.broadcast %213 : vector<1x16xf32> to vector<128x16xf32>
    %256 = arith.mulf %254, %255 : vector<128x16xf32>
    %257 = arith.addf %250, %256 : vector<128x16xf32>
    %258 = arith.addf %257, %221 : vector<128x16xf32>
    %cst_100 = arith.constant 0.000000e+00 : f32
    %259 = vector.broadcast %cst_100 : f32 to vector<128x16xf32>
    %260 = arith.maximumf %258, %259 : vector<128x16xf32>
    %c5 = arith.constant 5 : index
    %c0_101 = arith.constant 0 : index
    %261 = vector.load %arg5[%c5, %c0_101] : memref<8x128xf32, #tpu.memory_space<vmem>>, vector<1x16xf32>
    %c5_102 = arith.constant 5 : index
    %c16 = arith.constant 16 : index
    %262 = vector.load %arg5[%c5_102, %c16] : memref<8x128xf32, #tpu.memory_space<vmem>>, vector<1x1xf32>
    %cst_103 = arith.constant dense<0.000000e+00> : vector<1x128xf32>
    %263 = tpu.matmul %261, %260, %cst_103 {dimension_numbers = #tpu.dot_dimension_numbers<[1], [1], [0], [0], [0, 0, 1, 0], [], []>} : vector<1x16xf32>, vector<128x16xf32>, vector<1x128xf32> -> vector<1x128xf32>
    %264 = vector.broadcast %262 : vector<1x1xf32> to vector<1x128xf32>
    %265 = arith.addf %263, %264 : vector<1x128xf32>
    %c0_104 = arith.constant 0 : index
    %c0_105 = arith.constant 0 : index
    %266 = vector.load %arg6[%c0_104, %c0_105] : memref<1x128xf32, #tpu.memory_space<vmem>>, vector<1x128xf32>
    tpu.vector_store %arg6[%c0_104, %c0_105], %265 {strides = array<i32>} : memref<1x128xf32, #tpu.memory_space<vmem>>, vector<1x128xf32>,
    return
  }
}

</mosaic_0001>

<bundles_post_ra>
// kernel: tpu_custom_call.1
= control target key start
LH: loop header
LB: loop body
LE: loop exit
PB: predicated region body
PF: predicated region fallthrough
CT: control target
= control target key end

     0   :  { %11 = vsyncpa [#allocation3], 0  ;;  %s14219_s0 = inlined_call_operand.vmem [shape: f32[128,16], index: 0, kind: input, shape index: {}]   ;;  %s14220_s1 = inlined_call_operand.vmem [shape: f32[128,16], index: 1, kind: input, shape index: {}]   ;;  %s14221_s2 = inlined_call_operand.vmem [shape: f32[128,128], index: 2, kind: input, shape index: {}]   ;;  %s14222_s3 = inlined_call_operand.vmem [shape: f32[128,128], index: 3, kind: input, shape index: {}]   ;;  %s14223_s4 = inlined_call_operand.hbm [shape: f32[5,16,65], index: 4, kind: input, shape index: {}]   ;;  %s14224_s5 = inlined_call_operand.vmem [shape: f32[8,128], index: 5, kind: input, shape index: {}]   ;;  %s14225_s6 = inlined_call_operand.hbm [shape: f32[1,128], index: 6, kind: output, shape index: {}]  }
   0x1   :  { %12 = vsyncpa [#allocation4], 0  ;;  %s10117_s21 = smov [#allocation2]   ;;  %s10069_s25 = scalar_lea.hbm %s14223_s4, 1280 }
   0x2   :  { %s26_s22 = sshll.u32 %s10117_s21, 4  ;;  %p10070_p0 = scmp.ne.s32.totalorder %s14223_s4, %s10069_s25  ;;  %s27_s22 = int_to_ptr.vmem [resolvable:$true] %s26_s22 }
   0x3   :  { %p10073_p1 = scmp.lt.u32.totalorder %s10069_s25, %s14223_s4 }
   0x5   :  { %p10075_p2 = pnand %p10073_p1, %p10070_p0 }
   0x7   :  { %10078 = shalt.err (!%p10075_p2)
}
   0x8   :  { %s10079_s30 = scalar_lea.vmem %s27_s22, 1280  ;;  %p10084_p4 = scmp.lt.s32.totalorder %s27_s22, %s27_s22 }
   0x9   :  { %p10080_p3 = scmp.ne.s32.totalorder %s27_s22, %s10079_s30  ;;  %p10085_p5 = scmp.lt.s32.totalorder %s10079_s30, %s10079_s30 }
   0xb   :  { %p10086_p6 = por %p10085_p5, %p10084_p4 }
   0xd   :  { %p10087_p7 = pnand %p10086_p6, %p10080_p3 }
   0xf   :  { %10090 = shalt.err (!%p10087_p7)
}
  0x10   :  { %s10118_s7 = smov 128   ;;  %s10119_s8 = smov 8  }
  0x11   :  { %32 = dma.hbm_to_vmem [thread:$0]  %s14223_s4, 1280, %s27_s22, [#allocation3], %s10118_s7, %s10118_s7, %s10119_s8  }
  0x12   :  { %10113 = dma.done.wait [#allocation3], 1280  }
  0x13   :  { %10114 = vsyncadd [#allocation3], 4294966016  ;;  %vm173_vm0 = vcmask 130048   ;;  %v166_v0 = vld [vmem:[#allocation2] sm:$0xff]  ;;  %v167_v1 = vld [vmem:[#allocation2 + $0x8] sm:$0xff]  ;;  %v10120_v35 = vmov 64  }
  0x14   :  { %v150_v2 = vld [vmem:[%s14220_s1] sm:$0xff]  ;;  %v8742_v3 = vpack.c.bf16 %v167_v1, %v166_v0  ;;  %v151_v4 = vld [vmem:[%s14220_s1 + $0x8] sm:$0xff]  ;;  %v152_v5 = vld [vmem:[%s14220_s1 + $0x10] sm:$0xff]  ;;  %9267 = vset.pattern.permute.xlu0 %v10120_v35  ;;  %9268 = vset.pattern.permute.xlu1 %v10120_v35  ;;  %s10122_s26 = smov 80   ;;  %s10123_s30 = smov 112  }
  0x15   :  { %7899 = vmatprep.mubr.msk.f32.mxu1 %vm173_vm0, %v150_v2  ;;  %v10190_v6 = vld [vmem:[%s14219_s0] sm:$0xff]  ;;  %v10195_v7 = vld [vmem:[%s14219_s0 + $0x8] sm:$0xff]  ;;  %v10200_v8 = vld [vmem:[%s14219_s0 + $0x10] sm:$0xff]  ;;  %s10124_s9 = smov 48  }
  0x16   :  { %8747 = vmatprep.subr.bf16.mxu1 %v8742_v3  ;;  %8743 = vmatprep.subr.bf16.mxu0 %v8742_v3  ;;  %v153_v9 = vld [vmem:[%s14220_s1 + $0x18] sm:$0xff]  ;;  %v154_v10 = vld [vmem:[%s14220_s1 + $0x20] sm:$0xff]  ;;  %v155_v13 = vld [vmem:[%s14220_s1 + $0x28] sm:$0xff] }
  0x17   :  { %8749 = vmatpush3.bf16.msra.mxu1 %v8742_v3  ;;  %8745 = vmatpush3.bf16.msra.mxu0 %v8742_v3  ;;  %v10219_v11 = vld [vmem:[%s14219_s0 + $0x18] sm:$0xff]  ;;  %v10224_v12 = vld [vmem:[%s14219_s0 + $0x20] sm:$0xff]  ;;  %v156_v14 = vld [vmem:[%s14220_s1 + $0x30] sm:$0xff] }
  0x18   :  { %7871 = vmatprep.mubr.msk.f32.mxu0 %vm173_vm0, %v10190_v6  ;;  %v10241_v15 = vld [vmem:[%s14219_s0 + $0x28] sm:$0xff]  ;;  %v10246_v16 = vld [vmem:[%s14219_s0 + $0x30] sm:$0xff]  ;;  %v157_v17 = vld [vmem:[%s14220_s1 + $0x38] sm:$0xff] }
  0x19   :  { %v158_v18 = vld [vmem:[%s14220_s1 + $0x40] sm:$0xff]  ;;  %v10263_v19 = vld [vmem:[%s14219_s0 + $0x38] sm:$0xff]  ;;  %v159_v21 = vld [vmem:[%s14220_s1 + $0x48] sm:$0xff] }
  0x1a   :  { %7900 = vmatmul.mubr.msk.f32.vlgmr.msra.gmra.mrb[0].mxu1 %vm173_vm0, %v151_v4  ;;  %7872 = vmatmul.mubr.msk.f32.vlgmr.msra.gmra.mrb[0].mxu0 %vm173_vm0, %v10195_v7  ;;  %v10268_v20 = vld [vmem:[%s14219_s0 + $0x40] sm:$0xff]  ;;  %v160_v22 = vld [vmem:[%s14220_s1 + $0x50] sm:$0xff]  ;;  %v10285_v23 = vld [vmem:[%s14219_s0 + $0x48] sm:$0xff] }
  0x1b   :  { %7902 = vmatprep.mubr.msk.f32.mxu1 %vm173_vm0, %v152_v5  ;;  %7874 = vmatprep.mubr.msk.f32.mxu0 %vm173_vm0, %v10200_v8  ;;  %v10290_v24 = vld [vmem:[%s14219_s0 + $0x50] sm:$0xff]  ;;  %v161_v25 = vld [vmem:[%s14220_s1 + $0x58] sm:$0xff]  ;;  %v162_v26 = vld [vmem:[%s14220_s1 + $0x60] sm:$0xff] }
  0x1c   :  { %v10307_v27 = vld [vmem:[%s14219_s0 + $0x58] sm:$0xff]  ;;  %v10312_v28 = vld [vmem:[%s14219_s0 + $0x60] sm:$0xff]  ;;  %v163_v29 = vld [vmem:[%s14220_s1 + $0x68] sm:$0xff] }
  0x1d   :  { %v164_v30 = vld [vmem:[%s14220_s1 + $0x70] sm:$0xff]  ;;  %v10329_v31 = vld [vmem:[%s14219_s0 + $0x68] sm:$0xff]  ;;  %v165_v33 = vld [vmem:[%s14220_s1 + $0x78] sm:$0xff] }
  0x1e   :  { %7903 = vmatmul.mubr.msk.f32.gmra.mrb[2].mxu1 %vm173_vm0, %v153_v9  ;;  %7875 = vmatmul.mubr.msk.f32.gmra.mrb[2].mxu0 %vm173_vm0, %v10219_v11  ;;  %v10334_v32 = vld [vmem:[%s14219_s0 + $0x70] sm:$0xff]  ;;  %v10348_v34 = vld [vmem:[%s14219_s0 + $0x78] sm:$0xff]  ;;  %v10356_v36 = vld [vmem:[%s14224_s5] ss:$0 sm:$0xff]  ;;  %s10121_s0 = smov 96  }
  0x1f   :  { %7905 = vmatprep.mubr.msk.f32.mxu1 %vm173_vm0, %v154_v10  ;;  %7877 = vmatprep.mubr.msk.f32.mxu0 %vm173_vm0, %v10224_v12  ;;  %vm10482_vm1 = vmpackc.low %vm173_vm0, %vm173_vm0 }
  0x22   :  { %7906 = vmatmul.mubr.msk.f32.gmra.mrb[4].mxu1 %vm173_vm0, %v155_v13  ;;  %7878 = vmatmul.mubr.msk.f32.gmra.mrb[4].mxu0 %vm173_vm0, %v10241_v15 }
  0x23   :  { %7908 = vmatprep.mubr.msk.f32.mxu1 %vm173_vm0, %v156_v14  ;;  %7880 = vmatprep.mubr.msk.f32.mxu0 %vm173_vm0, %v10246_v16 }
  0x26   :  { %7909 = vmatmul.mubr.msk.f32.gmra.mrb[6].mxu1 %vm173_vm0, %v157_v17  ;;  %7881 = vmatmul.mubr.msk.f32.gmra.mrb[6].mxu0 %vm173_vm0, %v10263_v19 }
  0x27   :  { %7911 = vmatprep.mubr.msk.f32.mxu1 %vm173_vm0, %v158_v18  ;;  %7883 = vmatprep.mubr.msk.f32.mxu0 %vm173_vm0, %v10268_v20 }
  0x2a   :  { %7912 = vmatmul.mubr.msk.f32.gmra.mrb[8].mxu1 %vm173_vm0, %v159_v21  ;;  %7884 = vmatmul.mubr.msk.f32.gmra.mrb[8].mxu0 %vm173_vm0, %v10285_v23 }
  0x2b   :  { %7914 = vmatprep.mubr.msk.f32.mxu1 %vm173_vm0, %v160_v22  ;;  %7886 = vmatprep.mubr.msk.f32.mxu0 %vm173_vm0, %v10290_v24 }
  0x2e   :  { %7915 = vmatmul.mubr.msk.f32.gmra.mrb[10].mxu1 %vm173_vm0, %v161_v25  ;;  %7887 = vmatmul.mubr.msk.f32.gmra.mrb[10].mxu0 %vm173_vm0, %v10307_v27 }
  0x2f   :  { %7917 = vmatprep.mubr.msk.f32.mxu1 %vm173_vm0, %v162_v26  ;;  %7889 = vmatprep.mubr.msk.f32.mxu0 %vm173_vm0, %v10312_v28 }
  0x32   :  { %7918 = vmatmul.mubr.msk.f32.gmra.mrb[12].mxu1 %vm173_vm0, %v163_v29  ;;  %7890 = vmatmul.mubr.msk.f32.gmra.mrb[12].mxu0 %vm173_vm0, %v10329_v31 }
  0x33   :  { %7920 = vmatprep.mubr.msk.f32.mxu1 %vm173_vm0, %v164_v30  ;;  %7892 = vmatprep.mubr.msk.f32.mxu0 %vm173_vm0, %v10334_v32 }
  0x36   :  { %7921 = vmatmul.mubr.msk.f32.gmra.mrb[14].mxu1 %vm173_vm0, %v165_v33  ;;  %7893 = vmatmul.mubr.msk.f32.gmra.mrb[14].mxu0 %vm173_vm0, %v10348_v34 }
  0xed   :  { %v7901_v37 = vpop.f32.mrb[0].mxu1  ;;  %v7873_v40 = vpop.f32.mrb[0].mxu0 }
  0xee   :  { %v487_v38 = vadd.f32 %v7901_v37, %v10356_v36  ;;  %v481_v39 = vpop.f32.mrb[1].mxu1  ;;  %v288_v42 = vpop.f32.mrb[1].mxu0 }
  0xef   :  { %v482_v41 = vadd.f32 %v10356_v36, %v481_v39  ;;  %v10361_v43 = vadd.f32 %v10356_v36, %v288_v42 }
  0xf1   :  { %14460 = vst [vmem:[#allocation8_spill] sm:$0xff] %v10361_v43  ;;  %v10363_v44 = vpack.i.bf16 %v487_v38, %v482_v41  ;;  %v7904_v45 = vpop.f32.mrb[2].mxu1  ;;  %v7876_v48 = vpop.f32.mrb[2].mxu0  ;;  %7955 = vmatprep.mubr.msk.f32.mxu0 %vm173_vm0, %v10361_v43 }
  0xf2   :  { %v497_v46 = vadd.f32 %v7904_v45, %v10356_v36  ;;  %v491_v47 = vpop.f32.mrb[3].mxu1  ;;  %v298_v50 = vpop.f32.mrb[3].mxu0 }
  0xf3   :  { %9228 = vrot.lane.b32.xlu0 %v10363_v44, %s10121_s0  ;;  %v492_v49 = vadd.f32 %v10356_v36, %v491_v47 }
  0xf5   :  { %v10371_v51 = vpack.i.bf16 %v497_v46, %v492_v49  ;;  %v7907_v52 = vpop.f32.mrb[4].mxu1  ;;  %v7879_v55 = vpop.f32.mrb[4].mxu0 }
  0xf6   :  { %v507_v53 = vadd.f32 %v7907_v52, %v10356_v36  ;;  %v501_v54 = vpop.f32.mrb[5].mxu1  ;;  %v308_v57 = vpop.f32.mrb[5].mxu0  ;;  %v10410_v52 = vadd.f32 %v7873_v40, %v10356_v36 }
  0xf7   :  { %9233 = vrot.lane.b32.xlu0 %v10371_v51, %s10121_s0  ;;  %v502_v56 = vadd.f32 %v10356_v36, %v501_v54  ;;  %v10420_v54 = vadd.f32 %v10356_v36, %v298_v50  ;;  %v10427_v40 = vadd.f32 %v10356_v36, %v308_v57 }
  0xf8   :  { %14461 = vst [vmem:[#allocation9_spill] sm:$0xff] %v10410_v52 }
  0xf9   :  { %v10377_v58 = vpack.i.bf16 %v507_v53, %v502_v56  ;;  %v7910_v59 = vpop.f32.mrb[6].mxu1  ;;  %v7882_v62 = vpop.f32.mrb[6].mxu0  ;;  %v10416_v53 = vadd.f32 %v7876_v48, %v10356_v36  ;;  %14463 = vst [vmem:[#allocation11_spill] sm:$0xff] %v10420_v54  ;;  %v10424_v56 = vadd.f32 %v7879_v55, %v10356_v36  ;;  %14465 = vst [vmem:[#allocation13_spill] sm:$0xff] %v10427_v40 }
  0xfa   :  { %v517_v60 = vadd.f32 %v7910_v59, %v10356_v36  ;;  %v511_v61 = vpop.f32.mrb[7].mxu1  ;;  %v318_v0 = vpop.f32.mrb[7].mxu0  ;;  %v10432_v48 = vadd.f32 %v7882_v62, %v10356_v36 }
  0xfb   :  { %v512_v63 = vadd.f32 %v10356_v36, %v511_v61  ;;  %9238 = vrot.lane.b32.xlu1 %v10377_v58, %s10121_s0  ;;  %14462 = vst [vmem:[#allocation10_spill] sm:$0xff] %v10416_v53  ;;  %14464 = vst [vmem:[#allocation12_spill] sm:$0xff] %v10424_v56  ;;  %v10435_v59 = vadd.f32 %v10356_v36, %v318_v0 }
  0xfc   :  { %14466 = vst [vmem:[#allocation14_spill] sm:$0xff] %v10432_v48 }
  0xfd   :  { %v10383_v1 = vpack.i.bf16 %v517_v60, %v512_v63  ;;  %v7913_v2 = vpop.f32.mrb[8].mxu1  ;;  %v7885_v5 = vpop.f32.mrb[8].mxu0  ;;  %14467 = vst [vmem:[#allocation15_spill] sm:$0xff] %v10435_v59 }
  0xfe   :  { %v527_v3 = vadd.f32 %v7913_v2, %v10356_v36  ;;  %v521_v4 = vpop.f32.mrb[9].mxu1  ;;  %v328_v10 = vpop.f32.mrb[9].mxu0  ;;  %v10440_v50 = vadd.f32 %v7885_v5, %v10356_v36 }
  0xff   :  { %v522_v9 = vadd.f32 %v10356_v36, %v521_v4  ;;  %9243 = vrot.lane.b32.xlu1 %v10383_v1, %s10121_s0  ;;  %v10443_v55 = vadd.f32 %v10356_v36, %v328_v10 }
 0x100   :  { %14468 = vst [vmem:[#allocation16_spill] sm:$0xff] %v10440_v50 }
 0x101   :  { %v10389_v13 = vpack.i.bf16 %v527_v3, %v522_v9  ;;  %v7916_v14 = vpop.f32.mrb[10].mxu1  ;;  %v7888_v21 = vpop.f32.mrb[10].mxu0  ;;  %14469 = vst [vmem:[#allocation17_spill] sm:$0xff] %v10443_v55 }
 0x102   :  { %v537_v17 = vadd.f32 %v7916_v14, %v10356_v36  ;;  %v531_v18 = vpop.f32.mrb[11].mxu1  ;;  %v338_v25 = vpop.f32.mrb[11].mxu0  ;;  %v10448_v57 = vadd.f32 %v7888_v21, %v10356_v36 }
 0x103   :  { %v532_v22 = vadd.f32 %v10356_v36, %v531_v18  ;;  %9248 = vrot.lane.b32.xlu0 %v10389_v13, %s10121_s0  ;;  %v10451_v60 = vadd.f32 %v10356_v36, %v338_v25 }
 0x104   :  { %14470 = vst [vmem:[#allocation18_spill] sm:$0xff] %v10448_v57 }
 0x105   :  { %v10395_v26 = vpack.i.bf16 %v537_v17, %v532_v22  ;;  %v7919_v29 = vpop.f32.mrb[12].mxu1  ;;  %v7891_v35 = vpop.f32.mrb[12].mxu0  ;;  %14471 = vst [vmem:[#allocation19_spill] sm:$0xff] %v10451_v60 }
 0x106   :  { %v547_v30 = vadd.f32 %v7919_v29, %v10356_v36  ;;  %v541_v33 = vpop.f32.mrb[13].mxu1  ;;  %v348_v38 = vpop.f32.mrb[13].mxu0  ;;  %v10456_v61 = vadd.f32 %v7891_v35, %v10356_v36 }
 0x107   :  { %v542_v37 = vadd.f32 %v10356_v36, %v541_v33  ;;  %9253 = vrot.lane.b32.xlu1 %v10395_v26, %s10121_s0  ;;  %v10459_v62 = vadd.f32 %v10356_v36, %v348_v38 }
 0x108   :  { %14472 = vst [vmem:[#allocation20_spill] sm:$0xff] %v10456_v61 }
 0x109   :  { %v10401_v39 = vpack.i.bf16 %v547_v30, %v542_v37  ;;  %v7922_v41 = vpop.f32.mrb[14].mxu1  ;;  %v7894_v46 = vpop.f32.mrb[14].mxu0  ;;  %14473 = vst [vmem:[#allocation21_spill] sm:$0xff] %v10459_v62 }
 0x10a   :  { %v557_v42 = vadd.f32 %v7922_v41, %v10356_v36  ;;  %v551_v45 = vpop.f32.mrb[15].mxu1  ;;  %v10464_v63 = vadd.f32 %v7894_v46, %v10356_v36  ;;  %v358_v0 = vpop.f32.mrb[15].mxu0 }
 0x10b   :  { %v552_v47 = vadd.f32 %v10356_v36, %v551_v45  ;;  %9258 = vrot.lane.b32.xlu0 %v10401_v39, %s10121_s0  ;;  %v10477_v2 = vadd.f32 %v10356_v36, %v358_v0 }
 0x10c   :  { %14474 = vst [vmem:[#allocation22_spill] sm:$0xff] %v10464_v63 }
 0x10d   :  { %v10407_v49 = vpack.i.bf16 %v557_v42, %v552_v47  ;;  %14475 = vst [vmem:[#allocation23_spill] sm:$0xff] %v10477_v2 }
 0x10f   :  { %9263 = vrot.lane.b32.xlu1 %v10407_v49, %s10121_s0  ;;  %562 = vperm.xlu0 %9267, %v10361_v43  }
 0x113   :  { %567 = vperm.xlu1 %9268, %v10410_v52   ;;  %577 = vperm.xlu0 %9267, %v10416_v53  }
 0x117   :  { %572 = vperm.xlu1 %9268, %v10420_v54   ;;  %587 = vperm.xlu0 %9267, %v10424_v56  }
 0x11b   :  { %582 = vperm.xlu1 %9268, %v10427_v40   ;;  %597 = vperm.xlu0 %9267, %v10432_v48  }
 0x11f   :  { %592 = vperm.xlu1 %9268, %v10435_v59   ;;  %607 = vperm.xlu0 %9267, %v10440_v50  }
 0x123   :  { %602 = vperm.xlu1 %9268, %v10443_v55   ;;  %617 = vperm.xlu0 %9267, %v10448_v57  }
 0x127   :  { %612 = vperm.xlu1 %9268, %v10451_v60   ;;  %627 = vperm.xlu0 %9267, %v10456_v61  }
 0x12b   :  { %622 = vperm.xlu1 %9268, %v10459_v62   ;;  %637 = vperm.xlu0 %9267, %v10464_v63  }
 0x12f   :  { %9275 = vrot.lane.b32.xlu1 %v10371_v51, %s10122_s26  ;;  %9270 = vrot.lane.b32.xlu0 %v10363_v44, %s10122_s26  ;;  %v14476_v51 = vmov 0 }
 0x130   :  { %v14477_v51 = vsel %vm10482_vm1, 4294967295, %v14476_v51 }
 0x131   :  { %14478 = vst [vmem:[#allocation24_spill] sm:$0xff] %v14477_v51 }
 0x133   :  { %9285 = vrot.lane.b32.xlu1 %v10383_v1, %s10122_s26  ;;  %9280 = vrot.lane.b32.xlu0 %v10377_v58, %s10122_s26 }
 0x137   :  { %632 = vperm.xlu1 %9268, %v10477_v2  }
 0x165   :  { %v9229_v3 = vpop.permute.xlu0 %9228 }
 0x166   :  { %v9231_v4 = vunpack.i.h.bf16 %v9229_v3  ;;  %v9230_v5 = vunpack.i.l.bf16 %v9229_v3 }
 0x168   :  { %v8750_v44 = vpack.c.bf16 %v9231_v4, %v9230_v5 }
 0x169   :  { %v9234_v1 = vpop.permute.xlu0 %9233 }
 0x16a   :  { %8752 = vmatprep.subr.msk.bf16.mxu0 %vm10482_vm1, %v8750_v44  ;;  %v9236_v58 = vunpack.i.h.bf16 %v9234_v1  ;;  %v9235_v9 = vunpack.i.l.bf16 %v9234_v1 }
 0x16b   :  { %8755 = vmatpush3.bf16.xpose.msk.msra.mxu0 %vm10482_vm1, %v8750_v44 }
 0x16c   :  { %v8756_v36 = vpack.c.bf16 %v9236_v58, %v9235_v9 }
 0x16d   :  { %v9239_v10 = vpop.permute.xlu1 %9238 }
 0x16e   :  { %8758 = vmatprep.subr.msk.bf16.mxu0 %vm10482_vm1, %v8756_v36  ;;  %v9241_v14 = vunpack.i.h.bf16 %v9239_v10  ;;  %v9240_v17 = vunpack.i.l.bf16 %v9239_v10 }
 0x170   :  { %v8762_v18 = vpack.c.bf16 %v9241_v14, %v9240_v17 }
 0x171   :  { %v9244_v21 = vpop.permute.xlu1 %9243 }
 0x172   :  { %v9246_v22 = vunpack.i.h.bf16 %v9244_v21  ;;  %v9245_v25 = vunpack.i.l.bf16 %v9244_v21 }
 0x173   :  { %8761 = vmatpush3.bf16.xpose.msk.msra.mxu0 %vm10482_vm1, %v8756_v36 }
 0x174   :  { %8764 = vmatprep.subr.msk.bf16.mxu0 %vm10482_vm1, %v8762_v18  ;;  %v8768_v29 = vpack.c.bf16 %v9246_v22, %v9245_v25 }
 0x175   :  { %v9249_v30 = vpop.permute.xlu0 %9248 }
 0x176   :  { %v9251_v33 = vunpack.i.h.bf16 %v9249_v30  ;;  %v9250_v35 = vunpack.i.l.bf16 %v9249_v30 }
 0x178   :  { %v8774_v37 = vpack.c.bf16 %v9251_v33, %v9250_v35 }
 0x179   :  { %v9254_v38 = vpop.permute.xlu1 %9253 }
 0x17a   :  { %v9256_v41 = vunpack.i.h.bf16 %v9254_v38  ;;  %v9255_v42 = vunpack.i.l.bf16 %v9254_v38 }
 0x17b   :  { %8767 = vmatpush3.bf16.xpose.msk.msra.mxu0 %vm10482_vm1, %v8762_v18 }
 0x17c   :  { %8770 = vmatprep.subr.msk.bf16.mxu0 %vm10482_vm1, %v8768_v29  ;;  %v8780_v45 = vpack.c.bf16 %v9256_v41, %v9255_v42 }
 0x17d   :  { %v9259_v46 = vpop.permute.xlu0 %9258 }
 0x17e   :  { %v9261_v47 = vunpack.i.h.bf16 %v9259_v46  ;;  %v9260_v0 = vunpack.i.l.bf16 %v9259_v46 }
 0x180   :  { %v8786_v5 = vpack.c.bf16 %v9261_v47, %v9260_v0 }
 0x181   :  { %v9264_v3 = vpop.permute.xlu1 %9263 }
 0x182   :  { %v9266_v58 = vunpack.i.h.bf16 %v9264_v3  ;;  %v9265_v9 = vunpack.i.l.bf16 %v9264_v3 }
 0x183   :  { %8773 = vmatpush3.bf16.xpose.msk.msra.mxu0 %vm10482_vm1, %v8768_v29 }
 0x184   :  { %8776 = vmatprep.subr.msk.bf16.mxu0 %vm10482_vm1, %v8774_v37  ;;  %v8792_v14 = vpack.c.bf16 %v9266_v58, %v9265_v9 }
 0x18b   :  { %8779 = vmatpush3.bf16.xpose.msk.msra.mxu0 %vm10482_vm1, %v8774_v37 }
 0x18c   :  { %8782 = vmatprep.subr.msk.bf16.mxu0 %vm10482_vm1, %v8780_v45 }
 0x18e   :  { %v10508_v4 = vpop.permute.xlu0 %562 }
 0x192   :  { %v10510_v44 = vpop.permute.xlu1 %567  ;;  %v10512_v1 = vpop.permute.xlu0 %577 }
 0x193   :  { %8785 = vmatpush3.bf16.xpose.msk.msra.mxu0 %vm10482_vm1, %v8780_v45 }
 0x194   :  { %8788 = vmatprep.subr.msk.bf16.mxu0 %vm10482_vm1, %v8786_v5 }
 0x196   :  { %v10518_v36 = vpop.permute.xlu1 %572  ;;  %v10520_v10 = vpop.permute.xlu0 %587 }
 0x19a   :  { %v10522_v17 = vpop.permute.xlu1 %582  ;;  %v10524_v18 = vpop.permute.xlu0 %597 }
 0x19b   :  { %8791 = vmatpush3.bf16.xpose.msk.msra.mxu0 %vm10482_vm1, %v8786_v5 }
 0x19c   :  { %8794 = vmatprep.subr.msk.bf16.mxu0 %vm10482_vm1, %v8792_v14 }
 0x19e   :  { %v10530_v21 = vpop.permute.xlu1 %592  ;;  %v10532_v22 = vpop.permute.xlu0 %607 }
 0x1a2   :  { %v10534_v25 = vpop.permute.xlu1 %602  ;;  %v10536_v29 = vpop.permute.xlu0 %617 }
 0x1a3   :  { %8797 = vmatpush3.bf16.xpose.msk.msra.mxu0 %vm10482_vm1, %v8792_v14 }
 0x1a6   :  { %v10540_v30 = vpop.permute.xlu1 %612  ;;  %v10542_v33 = vpop.permute.xlu0 %627 }
 0x1aa   :  { %v10544_v35 = vpop.permute.xlu1 %622  ;;  %v10546_v37 = vpop.permute.xlu0 %637  ;;  %7956 = vmatmul.mubr.msk.f32.vlgmr.msra.gmra.mrb[16].mxu0 %vm173_vm0, %v10410_v52 }
 0x1ab   :  { %7958 = vmatprep.mubr.msk.f32.mxu0 %vm173_vm0, %v10420_v54 }
 0x1ae   :  { %v9276_v38 = vpop.permute.xlu1 %9275  ;;  %v9271_v41 = vpop.permute.xlu0 %9270  ;;  %7959 = vmatmul.mubr.msk.f32.gmra.mrb[18].mxu0 %vm173_vm0, %v10416_v53 }
 0x1af   :  { %v9278_v42 = vunpack.i.h.bf16 %v9276_v38  ;;  %v9277_v45 = vunpack.i.l.bf16 %v9276_v38  ;;  %v9273_v46 = vunpack.i.h.bf16 %v9271_v41  ;;  %v9272_v47 = vunpack.i.l.bf16 %v9271_v41  ;;  %7961 = vmatprep.mubr.msk.f32.mxu0 %vm173_vm0, %v10427_v40 }
 0x1b1   :  { %v8798_v0 = vpack.c.bf16 %v9273_v46, %v9272_v47  ;;  %v8802_v9 = vpack.c.bf16 %v9278_v42, %v9277_v45  ;;  %v1555_v45 = vld [vmem:[#allocation2 + $0x10] sm:$0xff]  ;;  %v1556_v47 = vld [vmem:[#allocation2 + $0x18] sm:$0xff] }
 0x1b2   :  { %v9281_v3 = vpop.permute.xlu0 %9280  ;;  %7962 = vmatmul.mubr.msk.f32.gmra.mrb[20].mxu0 %vm173_vm0, %v10424_v56  ;;  %v9286_v14 = vpop.permute.xlu1 %9285 }
 0x1b3   :  { %v9283_v5 = vunpack.i.h.bf16 %v9281_v3  ;;  %v9282_v58 = vunpack.i.l.bf16 %v9281_v3  ;;  %8799 = vmatprep.subr.bf16.mxu1 %v8798_v0  ;;  %7964 = vmatprep.mubr.msk.f32.mxu0 %vm173_vm0, %v10435_v59  ;;  %v9288_v38 = vunpack.i.h.bf16 %v9286_v14  ;;  %v9287_v41 = vunpack.i.l.bf16 %v9286_v14 }
 0x1b4   :  { %8801 = vmatpush3.bf16.msra.mxu1 %v8798_v0  ;;  %v10580_v0 = vpack.c.bf16 %v1556_v47, %v1555_v45  ;;  %v10698_v47 = vld [vmem:[%s14222_s3 + $0x38] sm:$0xff] }
 0x1b5   :  { %8803 = vmatprep.subr.bf16.mxu1 %v8802_v9  ;;  %v8806_v46 = vpack.c.bf16 %v9283_v5, %v9282_v58  ;;  %v8810_v42 = vpack.c.bf16 %v9288_v38, %v9287_v41  ;;  %v10672_v5 = vld [vmem:[%s14222_s3 + $0x20] sm:$0xff] }
 0x1b6   :  { %7965 = vmatmul.mubr.msk.f32.gmra.mrb[22].mxu0 %vm173_vm0, %v10432_v48  ;;  %14479 = vst [vmem:[#allocation25_spill] sm:$0xff] %v10580_v0  ;;  %8835 = vmatprep.subr.bf16.mxu0 %v10580_v0  ;;  %v644_v45 = vmul.f32 %v10522_v17, %v10672_v5 }
 0x1b7   :  { %7967 = vmatprep.mubr.msk.f32.mxu0 %vm173_vm0, %v10443_v55  ;;  %8837 = vmatpush3.bf16.msra.mxu0 %v10580_v0 }
 0x1b8   :  { %8805 = vmatpush3.bf16.msra.mxu1 %v8802_v9 }
 0x1b9   :  { %8807 = vmatprep.subr.bf16.mxu1 %v8806_v46 }
 0x1ba   :  { %7968 = vmatmul.mubr.msk.f32.gmra.mrb[24].mxu0 %vm173_vm0, %v10440_v50 }
 0x1bb   :  { %7970 = vmatprep.mubr.msk.f32.mxu0 %vm173_vm0, %v10451_v60 }
 0x1bc   :  { %8809 = vmatpush3.bf16.msra.mxu1 %v8806_v46 }
 0x1bd   :  { %8811 = vmatprep.subr.bf16.mxu1 %v8810_v42 }
 0x1be   :  { %7971 = vmatmul.mubr.msk.f32.gmra.mrb[26].mxu0 %vm173_vm0, %v10448_v57 }
 0x1bf   :  { %7973 = vmatprep.mubr.msk.f32.mxu0 %vm173_vm0, %v10459_v62 }
 0x1c0   :  { %8813 = vmatpush3.bf16.msra.mxu1 %v8810_v42  ;;  %v10691_v42 = vld [vmem:[%s14221_s2 + $0x28] sm:$0xff] }
 0x1c1   :  { %14484 = vst [vmem:[#allocation30_spill] sm:$0xff] %v10691_v42  ;;  %vm14439_vm6 = vcmp.gt.f32.partialorder %v10691_v42, 0.0 }
 0x1c2   :  { %7974 = vmatmul.mubr.msk.f32.gmra.mrb[28].mxu0 %vm173_vm0, %v10456_v61 }
 0x1c3   :  { %7976 = vmatprep.mubr.msk.f32.mxu0 %vm173_vm0, %v10477_v2 }
 0x1c6   :  { %7977 = vmatmul.mubr.msk.f32.gmra.mrb[30].mxu0 %vm173_vm0, %v10464_v63 }
 0x1c7   :  { %8067 = vmatprep.mubr.msk.f32.mxu0 %vm173_vm0, %v10190_v6  ;;  %v10617_v6 = vld [vmem:[%s14222_s3 + $0x8] sm:$0xff] }
 0x1ca   :  { %8068 = vmatmul.mubr.msk.f32.vlgmr.msra.gmra.mrb[32].mxu0 %vm173_vm0, %v10195_v7  ;;  %v10622_v7 = vld [vmem:[%s14222_s3] sm:$0xff] }
 0x1cb   :  { %8070 = vmatprep.mubr.msk.f32.mxu0 %vm173_vm0, %v10200_v8  ;;  %v641_v8 = vmul.f32 %v10510_v44, %v10617_v6 }
 0x1ce   :  { %8071 = vmatmul.mubr.msk.f32.gmra.mrb[34].mxu0 %vm173_vm0, %v10219_v11  ;;  %v10629_v11 = vld [vmem:[%s14221_s2 + $0x8] sm:$0xff] }
 0x1cf   :  { %8073 = vmatprep.mubr.msk.f32.mxu0 %vm173_vm0, %v10224_v12  ;;  %14480 = vst [vmem:[#allocation26_spill] sm:$0xff] %v10629_v11  ;;  %v640_v12 = vmul.f32 %v10508_v4, %v10622_v7  ;;  %vm930_vm2 = vcmp.gt.f32.partialorder %v10629_v11, 0.0  ;;  %v10662_v4 = vld [vmem:[%s14222_s3 + $0x28] sm:$0xff] }
 0x1d0   :  { %v645_v41 = vmul.f32 %v10520_v10, %v10662_v4 }
 0x1d2   :  { %8074 = vmatmul.mubr.msk.f32.gmra.mrb[36].mxu0 %vm173_vm0, %v10241_v15  ;;  %v10636_v15 = vld [vmem:[%s14222_s3 + $0x18] sm:$0xff] }
 0x1d3   :  { %8076 = vmatprep.mubr.msk.f32.mxu0 %vm173_vm0, %v10246_v16 }
 0x1d6   :  { %8077 = vmatmul.mubr.msk.f32.gmra.mrb[38].mxu0 %vm173_vm0, %v10263_v19  ;;  %v10641_v19 = vld [vmem:[%s14221_s2] sm:$0xff] }
 0x1d7   :  { %8079 = vmatprep.mubr.msk.f32.mxu0 %vm173_vm0, %v10268_v20  ;;  %14481 = vst [vmem:[#allocation27_spill] sm:$0xff] %v10641_v19  ;;  %v10646_v20 = vld [vmem:[%s14222_s3 + $0x10] sm:$0xff]  ;;  %vm929_vm3 = vcmp.gt.f32.partialorder %v10641_v19, 0.0 }
 0x1da   :  { %8080 = vmatmul.mubr.msk.f32.gmra.mrb[40].mxu0 %vm173_vm0, %v10285_v23 }
 0x1db   :  { %8082 = vmatprep.mubr.msk.f32.mxu0 %vm173_vm0, %v10290_v24 }
 0x1de   :  { %8083 = vmatmul.mubr.msk.f32.gmra.mrb[42].mxu0 %vm173_vm0, %v10307_v27 }
 0x1df   :  { %8085 = vmatprep.mubr.msk.f32.mxu0 %vm173_vm0, %v10312_v28  ;;  %v643_v28 = vmul.f32 %v10512_v1, %v10636_v15  ;;  %v10667_v1 = vld [vmem:[%s14221_s2 + $0x10] sm:$0xff] }
 0x1e0   :  { %14483 = vst [vmem:[#allocation29_spill] sm:$0xff] %v10667_v1  ;;  %vm931_vm5 = vcmp.gt.f32.partialorder %v10667_v1, 0.0 }
 0x1e2   :  { %8086 = vmatmul.mubr.msk.f32.gmra.mrb[44].mxu0 %vm173_vm0, %v10329_v31 }
 0x1e3   :  { %8088 = vmatprep.mubr.msk.f32.mxu0 %vm173_vm0, %v10334_v32  ;;  %v10655_v32 = vld [vmem:[%s14221_s2 + $0x18] sm:$0xff] }
 0x1e4   :  { %14482 = vst [vmem:[#allocation28_spill] sm:$0xff] %v10655_v32  ;;  %vm932_vm4 = vcmp.gt.f32.partialorder %v10655_v32, 0.0 }
 0x1e6   :  { %8089 = vmatmul.mubr.msk.f32.gmra.mrb[46].mxu0 %vm173_vm0, %v10348_v34  ;;  %v642_v34 = vmul.f32 %v10518_v36, %v10646_v20 }
 0x27d   :  { %v7957_v16 = vpop.f32.mrb[16].mxu0 }
 0x27e   :  { %v840_v23 = vadd.f32 %v7957_v16, %v641_v8  ;;  %v834_v24 = vpop.f32.mrb[17].mxu0  ;;  %v10708_v16 = vld [vmem:[%s14222_s3 + $0x30] sm:$0xff] }
 0x27f   :  { %v835_v27 = vadd.f32 %v834_v24, %v640_v12  ;;  %v10703_v12 = vld [vmem:[%s14221_s2 + $0x20] sm:$0xff] }
 0x280   :  { %v914_v31 = vmul.f32 0.25, %v840_v23  ;;  %14485 = vst [vmem:[#allocation31_spill] sm:$0xff] %v10703_v12  ;;  %vm14438_vm7 = vcmp.gt.f32.partialorder %v10703_v12, 0.0 }
 0x281   :  { %v913_v44 = vmul.f32 0.25, %v835_v27  ;;  %v7960_v3 = vpop.f32.mrb[18].mxu0 }
 0x282   :  { %v850_v58 = vadd.f32 %v7960_v3, %v643_v28  ;;  %v844_v9 = vpop.f32.mrb[19].mxu0  ;;  %v10676_v36 = vsel %vm930_vm2, %v914_v31, -1e+30  ;;  %v647_v31 = vmul.f32 %v10524_v18, %v10698_v47  ;;  %v646_v3 = vmul.f32 %v10530_v21, %v10708_v16 }
 0x283   :  { %v845_v14 = vadd.f32 %v844_v9, %v642_v34  ;;  %963 = vmax.xlane.f32.xlu0 %v10676_v36  ;;  %v10681_v38 = vsel %vm929_vm3, %v913_v44, -1e+30  ;;  %v10727_v44 = vld [vmem:[%s14221_s2 + $0x38] sm:$0xff] }
 0x284   :  { %v916_v46 = vmul.f32 0.25, %v850_v58  ;;  %961 = vmax.xlane.f32.xlu1 %v10681_v38  ;;  %14486 = vst [vmem:[#allocation32_spill] sm:$0xff] %v10727_v44  ;;  %v10734_v58 = vld [vmem:[%s14222_s3 + $0x48] sm:$0xff]  ;;  %vm14437_vm8 = vcmp.gt.f32.partialorder %v10727_v44, 0.0 }
 0x285   :  { %v915_v8 = vmul.f32 0.25, %v845_v14  ;;  %v7963_v10 = vpop.f32.mrb[20].mxu0  ;;  %14487 = vst [vmem:[#allocation33_spill] sm:$0xff] %v10734_v58  ;;  %v10739_v14 = vld [vmem:[%s14221_s2 + $0x30] sm:$0xff] }
 0x286   :  { %v860_v23 = vadd.f32 %v7963_v10, %v645_v41  ;;  %v854_v24 = vpop.f32.mrb[21].mxu0  ;;  %v10712_v17 = vsel %vm932_vm4, %v916_v46, -1e+30  ;;  %14488 = vst [vmem:[#allocation34_spill] sm:$0xff] %v10739_v14  ;;  %v10744_v41 = vld [vmem:[%s14222_s3 + $0x40] sm:$0xff]  ;;  %vm14436_vm9 = vcmp.gt.f32.partialorder %v10739_v14, 0.0 }
 0x287   :  { %v855_v27 = vadd.f32 %v854_v24, %v644_v45  ;;  %v10716_v28 = vsel %vm931_vm5, %v915_v8, -1e+30  ;;  %14489 = vst [vmem:[#allocation35_spill] sm:$0xff] %v10744_v41 }
 0x288   :  { %v918_v34 = vmul.f32 0.25, %v860_v23  ;;  %965 = vmax.xlane.f32.xlu0 %v10716_v28  ;;  %967 = vmax.xlane.f32.xlu1 %v10712_v17  ;;  %v649_v23 = vmul.f32 %v10532_v22, %v10734_v58 }
 0x289   :  { %v917_v18 = vmul.f32 0.25, %v855_v27  ;;  %v7966_v9 = vpop.f32.mrb[22].mxu0  ;;  %v10763_v27 = vld [vmem:[%s14221_s2 + $0x48] sm:$0xff] }
 0x28a   :  { %v870_v46 = vadd.f32 %v7966_v9, %v647_v31  ;;  %v864_v45 = vpop.f32.mrb[23].mxu0  ;;  %v10748_v21 = vsel %vm14439_vm6, %v918_v34, -1e+30  ;;  %14490 = vst [vmem:[#allocation36_spill] sm:$0xff] %v10763_v27  ;;  %v648_v31 = vmul.f32 %v10534_v25, %v10744_v41  ;;  %v10770_v34 = vld [vmem:[%s14222_s3 + $0x58] sm:$0xff]  ;;  %v10780_v9 = vld [vmem:[%s14222_s3 + $0x50] sm:$0xff] }
 0x28b   :  { %v865_v8 = vadd.f32 %v864_v45, %v646_v3  ;;  %v10752_v10 = vsel %vm14438_vm7, %v917_v18, -1e+30  ;;  %14491 = vst [vmem:[#allocation37_spill] sm:$0xff] %v10770_v34  ;;  %v10775_v18 = vld [vmem:[%s14221_s2 + $0x40] sm:$0xff]  ;;  %14493 = vst [vmem:[#allocation39_spill] sm:$0xff] %v10780_v9  ;;  %vm14266_vm10 = vcmp.gt.f32.partialorder %v10763_v27, 0.0  ;;  %v651_v2 = vmul.f32 %v10536_v29, %v10770_v34 }
 0x28c   :  { %v920_v24 = vmul.f32 0.25, %v870_v46  ;;  %969 = vmax.xlane.f32.xlu0 %v10752_v10  ;;  %971 = vmax.xlane.f32.xlu1 %v10748_v21  ;;  %14492 = vst [vmem:[#allocation38_spill] sm:$0xff] %v10775_v18  ;;  %vm14265_vm11 = vcmp.gt.f32.partialorder %v10775_v18, 0.0 }
 0x28d   :  { %v919_v22 = vmul.f32 0.25, %v865_v8  ;;  %v7969_v3 = vpop.f32.mrb[24].mxu0 }
 0x28e   :  { %v880_v46 = vadd.f32 %v7969_v3, %v649_v23  ;;  %v874_v45 = vpop.f32.mrb[25].mxu0  ;;  %v10784_v25 = vsel %vm14437_vm8, %v920_v24, -1e+30  ;;  %v10799_v23 = vld [vmem:[%s14221_s2 + $0x58] sm:$0xff]  ;;  %v650_v24 = vmul.f32 %v10540_v30, %v10780_v9  ;;  %v10811_v3 = vld [vmem:[%s14221_s2 + $0x50] sm:$0xff] }
 0x28f   :  { %v875_v63 = vadd.f32 %v874_v45, %v648_v31  ;;  %v10788_v8 = vsel %vm14436_vm9, %v919_v22, -1e+30  ;;  %14494 = vst [vmem:[#allocation40_spill] sm:$0xff] %v10799_v23  ;;  %v10806_v31 = vld [vmem:[%s14222_s3 + $0x68] sm:$0xff]  ;;  %14496 = vst [vmem:[#allocation42_spill] sm:$0xff] %v10811_v3  ;;  %vm14241_vm12 = vcmp.gt.f32.partialorder %v10799_v23, 0.0 }
 0x290   :  { %v922_v61 = vmul.f32 0.25, %v880_v46  ;;  %973 = vmax.xlane.f32.xlu0 %v10788_v8  ;;  %975 = vmax.xlane.f32.xlu1 %v10784_v25  ;;  %14495 = vst [vmem:[#allocation41_spill] sm:$0xff] %v10806_v31  ;;  %v10816_v46 = vld [vmem:[%s14222_s3 + $0x60] sm:$0xff]  ;;  %v653_v55 = vmul.f32 %v10542_v33, %v10806_v31  ;;  %vm14240_vm13 = vcmp.gt.f32.partialorder %v10811_v3, 0.0 }
 0x291   :  { %v921_v29 = vmul.f32 0.25, %v875_v63  ;;  %v7972_v22 = vpop.f32.mrb[26].mxu0  ;;  %14497 = vst [vmem:[#allocation43_spill] sm:$0xff] %v10816_v46 }
 0x292   :  { %v890_v45 = vadd.f32 %v7972_v22, %v651_v2  ;;  %v884_v62 = vpop.f32.mrb[27].mxu0  ;;  %v10820_v30 = vsel %vm14266_vm10, %v922_v61, -1e+30  ;;  %v10835_v61 = vld [vmem:[%s14221_s2 + $0x68] sm:$0xff]  ;;  %v10842_v2 = vld [vmem:[%s14222_s3 + $0x78] sm:$0xff]  ;;  %v633_v22 = vpop.permute.xlu1 %632 }
 0x293   :  { %v885_v60 = vadd.f32 %v884_v62, %v650_v24  ;;  %v10824_v63 = vsel %vm14265_vm11, %v921_v29, -1e+30  ;;  %14498 = vst [vmem:[#allocation44_spill] sm:$0xff] %v10835_v61  ;;  %v652_v62 = vmul.f32 %v10544_v35, %v10816_v46  ;;  %14499 = vst [vmem:[#allocation45_spill] sm:$0xff] %v10842_v2  ;;  %v10847_v29 = vld [vmem:[%s14221_s2 + $0x60] sm:$0xff]  ;;  %vm14264_vm14 = vcmp.gt.f32.partialorder %v10835_v61, 0.0 }
 0x294   :  { %v924_v57 = vmul.f32 0.25, %v890_v45  ;;  %977 = vmax.xlane.f32.xlu0 %v10824_v63  ;;  %979 = vmax.xlane.f32.xlu1 %v10820_v30  ;;  %14500 = vst [vmem:[#allocation46_spill] sm:$0xff] %v10847_v29  ;;  %v10852_v45 = vld [vmem:[%s14222_s3 + $0x70] sm:$0xff]  ;;  %v655_v48 = vmul.f32 %v10546_v37, %v10842_v2  ;;  %vm14263_vm15 = vcmp.gt.f32.partialorder %v10847_v29, 0.0 }
 0x295   :  { %v923_v33 = vmul.f32 0.25, %v885_v60  ;;  %v7975_v24 = vpop.f32.mrb[28].mxu0  ;;  %14501 = vst [vmem:[#allocation47_spill] sm:$0xff] %v10852_v45  ;;  %v10877_v37 = vld [vmem:[%s14221_s2 + $0x70] sm:$0xff] }
 0x296   :  { %v900_v59 = vadd.f32 %v7975_v24, %v653_v55  ;;  %v894_v35 = vpop.f32.mrb[29].mxu0  ;;  %v10856_v50 = vsel %vm14241_vm12, %v924_v57, -1e+30  ;;  %v10871_v55 = vld [vmem:[%s14221_s2 + $0x78] sm:$0xff]  ;;  %v654_v57 = vmul.f32 %v633_v22, %v10852_v45  ;;  %14503 = vst [vmem:[#allocation49_spill] sm:$0xff] %v10877_v37  ;;  %vm14261_vm12 = vcmp.gt.f32.partialorder %v10877_v37, 0.0 }
 0x297   :  { %v895_v40 = vadd.f32 %v894_v35, %v652_v62  ;;  %v10860_v60 = vsel %vm14240_vm13, %v923_v33, -1e+30  ;;  %14502 = vst [vmem:[#allocation48_spill] sm:$0xff] %v10871_v55  ;;  %vm14262_vm13 = vcmp.gt.f32.partialorder %v10871_v55, 0.0 }
 0x298   :  { %v926_v54 = vmul.f32 0.25, %v900_v59  ;;  %981 = vmax.xlane.f32.xlu0 %v10860_v60  ;;  %983 = vmax.xlane.f32.xlu1 %v10856_v50 }
 0x299   :  { %v925_v62 = vmul.f32 0.25, %v895_v40  ;;  %v7978_v33 = vpop.f32.mrb[30].mxu0 }
 0x29a   :  { %v910_v59 = vadd.f32 %v7978_v33, %v655_v48  ;;  %v904_v24 = vpop.f32.mrb[31].mxu0  ;;  %v10881_v35 = vsel %vm14264_vm14, %v926_v54, -1e+30 }
 0x29b   :  { %v905_v56 = vadd.f32 %v904_v24, %v654_v57  ;;  %v10885_v43 = vsel %vm14263_vm15, %v925_v62, -1e+30 }
 0x29c   :  { %v928_v40 = vmul.f32 0.25, %v910_v59  ;;  %985 = vmax.xlane.f32.xlu0 %v10885_v43  ;;  %987 = vmax.xlane.f32.xlu1 %v10881_v35 }
 0x29d   :  { %v927_v48 = vmul.f32 0.25, %v905_v56  ;;  %v10908_v56 = vld [vmem:[%s14224_s5 + $0x1] ss:$0 sm:$0xff]  ;;  %v8069_v62 = vpop.f32.mrb[32].mxu0 }
 0x29e   :  { %v10893_v22 = vsel %vm14262_vm13, %v928_v40, -1e+30  ;;  %v1779_v24 = vadd.f32 %v8069_v62, %v10908_v56  ;;  %v1773_v40 = vpop.f32.mrb[33].mxu0 }
 0x29f   :  { %v10897_v54 = vsel %vm14261_vm12, %v927_v48, -1e+30 }
 0x2a0   :  { %989 = vmax.xlane.f32.xlu0 %v10897_v54  ;;  %991 = vmax.xlane.f32.xlu1 %v10893_v22 }
 0x2a1   :  { %v8072_v51 = vpop.f32.mrb[34].mxu0 }
 0x2a2   :  { %v1789_v31 = vadd.f32 %v8072_v51, %v10908_v56  ;;  %v1783_v62 = vpop.f32.mrb[35].mxu0 }
 0x2b1   :  { %9295 = vrot.lane.b32.xlu1 %v10395_v26, %s10122_s26  ;;  %v1774_v26 = vadd.f32 %v10908_v56, %v1773_v40  ;;  %v8075_v40 = vpop.f32.mrb[36].mxu0 }
 0x2b2   :  { %v1793_v51 = vpop.f32.mrb[37].mxu0 }
 0x2b6   :  { %9290 = vrot.lane.b32.xlu0 %v10389_v13, %s10122_s26  ;;  %v10914_v13 = vpack.i.bf16 %v1779_v24, %v1774_v26 }
 0x310   :  { %v964_v57 = vpop.xlane.xlu0 %963 }
 0x311   :  { %v994_v33 = vsub.f32 %v10676_v36, %v964_v57  ;;  %v962_v59 = vpop.xlane.xlu1 %961 }
 0x312   :  { %v993_v48 = vsub.f32 %v10681_v38, %v962_v59  ;;  %v1784_v38 = vadd.f32 %v10908_v56, %v1783_v62 }
 0x313   :  { %v1011_v53 = vmul.f32 1.442695, %v994_v33 }
 0x314   :  { %v1009_v52 = vmul.f32 1.442695, %v993_v48  ;;  %v10920_v26 = vpack.i.bf16 %v1789_v31, %v1784_v38 }
 0x315   :  { %9631 = vpow2.f32 %v1011_v53  ;;  %v966_v2 = vpop.xlane.xlu0 %965  ;;  %v968_v45 = vpop.xlane.xlu1 %967  ;;  %v1799_v53 = vadd.f32 %v8075_v40, %v10908_v56 }
 0x316   :  { %9633 = vpow2.f32 %v1009_v52  ;;  %v995_v36 = vsub.f32 %v10716_v28, %v966_v2  ;;  %v996_v57 = vsub.f32 %v10712_v17, %v968_v45  ;;  %v1794_v17 = vadd.f32 %v10908_v56, %v1793_v51  ;;  %v8078_v45 = vpop.f32.mrb[38].mxu0 }
 0x317   :  { %v1809_v31 = vadd.f32 %v8078_v45, %v10908_v56  ;;  %v1803_v40 = vpop.f32.mrb[39].mxu0 }
 0x318   :  { %v1015_v59 = vmul.f32 1.442695, %v996_v57  ;;  %v1013_v33 = vmul.f32 1.442695, %v995_v36  ;;  %v10926_v62 = vpack.i.bf16 %v1799_v53, %v1794_v17 }
 0x319   :  { %v970_v48 = vpop.xlane.xlu0 %969  ;;  %v972_v24 = vpop.xlane.xlu1 %971 }
 0x31a   :  { %v997_v46 = vsub.f32 %v10752_v10, %v970_v48  ;;  %v998_v52 = vsub.f32 %v10748_v21, %v972_v24  ;;  %9635 = vpow2.f32 %v1015_v59  ;;  %v1804_v21 = vadd.f32 %v10908_v56, %v1803_v40  ;;  %v8081_v24 = vpop.f32.mrb[40].mxu0 }
 0x31b   :  { %9637 = vpow2.f32 %v1013_v33  ;;  %v1819_v17 = vadd.f32 %v8081_v24, %v10908_v56 }
 0x31c   :  { %v1017_v28 = vmul.f32 1.442695, %v997_v46  ;;  %v1019_v2 = vmul.f32 1.442695, %v998_v52 }
 0x31d   :  { %v974_v57 = vpop.xlane.xlu0 %973  ;;  %v976_v36 = vpop.xlane.xlu1 %975 }
 0x31e   :  { %v1000_v38 = vsub.f32 %v10784_v25, %v976_v36  ;;  %9639 = vpow2.f32 %v1019_v2  ;;  %v999_v46 = vsub.f32 %v10788_v8, %v974_v57  ;;  %v10940_v25 = vpack.i.bf16 %v1809_v31, %v1804_v21 }
 0x31f   :  { %v9632_v10 = vpop.eup %9631  ;;  %9641 = vpow2.f32 %v1017_v28  ;;  %v1813_v28 = vpop.f32.mrb[41].mxu0 }
 0x320   :  { %v9634_v59 = vpop.eup %9633  ;;  %v1023_v48 = vmul.f32 1.442695, %v1000_v38  ;;  %v10933_v33 = vmul.f32 %v9632_v10, %v10629_v11  ;;  %v1814_v8 = vadd.f32 %v10908_v56, %v1813_v28  ;;  %v1021_v2 = vmul.f32 1.442695, %v999_v46  ;;  %v8084_v45 = vpop.f32.mrb[42].mxu0 }
 0x321   :  { %v978_v53 = vpop.xlane.xlu0 %977  ;;  %v10935_v52 = vpop.xlane.xlu1 %979  ;;  %v10938_v51 = vmul.f32 %v9634_v59, %v10641_v19  ;;  %v1829_v9 = vadd.f32 %v8084_v45, %v10908_v56 }
 0x322   :  { %14504 = vst [vmem:[#allocation50_spill] sm:$0xff] %v10933_v33  ;;  %1059 = vadd.xlane.f32.xlu0 %v10933_v33  ;;  %9643 = vpow2.f32 %v1023_v48  ;;  %v1001_v36 = vsub.f32 %v10824_v63, %v978_v53  ;;  %v10947_v10 = vpack.i.bf16 %v1819_v17, %v1814_v8 }
 0x323   :  { %1057 = vadd.xlane.f32.xlu1 %v10938_v51  ;;  %9645 = vpow2.f32 %v1021_v2 }
 0x324   :  { %v9636_v57 = vpop.eup %9635  ;;  %v1025_v24 = vmul.f32 1.442695, %v1001_v36 }
 0x325   :  { %v982_v38 = vpop.xlane.xlu0 %981  ;;  %v984_v40 = vpop.xlane.xlu1 %983  ;;  %v10950_v31 = vmul.f32 %v9636_v57, %v10655_v32 }
 0x326   :  { %v9638_v21 = vpop.eup %9637  ;;  %v1004_v46 = vsub.f32 %v10856_v50, %v984_v40  ;;  %9647 = vpow2.f32 %v1025_v24  ;;  %v1003_v8 = vsub.f32 %v10860_v60, %v982_v38  ;;  %v1823_v38 = vpop.f32.mrb[43].mxu0 }
 0x327   :  { %14505 = vst [vmem:[#allocation51_spill] sm:$0xff] %v10950_v31  ;;  %1063 = vadd.xlane.f32.xlu1 %v10950_v31  ;;  %v10959_v53 = vmul.f32 %v9638_v21, %v10667_v1  ;;  %v8087_v0 = vpop.f32.mrb[44].mxu0 }
 0x328   :  { %v9640_v59 = vpop.eup %9639  ;;  %v1031_v2 = vmul.f32 1.442695, %v1004_v46  ;;  %v1029_v21 = vmul.f32 1.442695, %v1003_v8 }
 0x329   :  { %v10954_v28 = vpop.xlane.xlu0 %985  ;;  %v10956_v48 = vpop.xlane.xlu1 %987  ;;  %14506 = vst [vmem:[#allocation52_spill] sm:$0xff] %v10959_v53  ;;  %v10962_v17 = vmul.f32 %v9640_v59, %v10691_v42 }
 0x32a   :  { %v9642_v63 = vpop.eup %9641  ;;  %9649 = vpow2.f32 %v1031_v2  ;;  %v1839_v2 = vadd.f32 %v8087_v0, %v10908_v56 }
 0x32b   :  { %14507 = vst [vmem:[#allocation53_spill] sm:$0xff] %v10962_v17  ;;  %1061 = vadd.xlane.f32.xlu1 %v10959_v53  ;;  %1067 = vadd.xlane.f32.xlu0 %v10962_v17  ;;  %v10968_v36 = vmul.f32 %v9642_v63, %v10703_v12  ;;  %v1824_v63 = vadd.f32 %v10908_v56, %v1823_v38  ;;  %9651 = vpow2.f32 %v1029_v21 }
 0x32c   :  { %v9644_v40 = vpop.eup %9643 }
 0x32d   :  { %v990_v50 = vpop.xlane.xlu0 %989  ;;  %v992_v57 = vpop.xlane.xlu1 %991  ;;  %14508 = vst [vmem:[#allocation54_spill] sm:$0xff] %v10968_v36  ;;  %v10973_v60 = vmul.f32 %v9644_v40, %v10727_v44  ;;  %v10978_v45 = vpack.i.bf16 %v1829_v9, %v1824_v63 }
 0x32e   :  { %v9646_v46 = vpop.eup %9645  ;;  %v1007_v63 = vsub.f32 %v10897_v54, %v990_v50 }
 0x32f   :  { %1065 = vadd.xlane.f32.xlu1 %v10968_v36  ;;  %v1833_v36 = vpop.f32.mrb[45].mxu0  ;;  %v10981_v40 = vmul.f32 %v9646_v46, %v10739_v14 }
 0x330   :  { %v9648_v41 = vpop.eup %9647 }
 0x331   :  { %v9291_v59 = vpop.permute.xlu0 %9290  ;;  %v9296_v34 = vpop.permute.xlu1 %9295 }
 0x332   :  { %v9293_v31 = vunpack.i.h.bf16 %v9291_v59  ;;  %v9292_v17 = vunpack.i.l.bf16 %v9291_v59  ;;  %v9298_v24 = vunpack.i.h.bf16 %v9296_v34  ;;  %v9297_v53 = vunpack.i.l.bf16 %v9296_v34  ;;  %v8090_v59 = vpop.f32.mrb[46].mxu0 }
 0x333   :  { %1071 = vadd.xlane.f32.xlu1 %v10973_v60  ;;  %v1834_v34 = vadd.f32 %v10908_v56, %v1833_v36  ;;  %v1849_v38 = vadd.f32 %v8090_v59, %v10908_v56  ;;  %v1843_v58 = vpop.f32.mrb[47].mxu0 }
 0x334   :  { %v8814_v8 = vpack.c.bf16 %v9293_v31, %v9292_v17  ;;  %v8818_v33 = vpack.c.bf16 %v9298_v24, %v9297_v53  ;;  %v1844_v31 = vadd.f32 %v10908_v56, %v1843_v58  ;;  %v10992_v17 = vmul.f32 %v9648_v41, %v10775_v18  ;;  %v9650_v53 = vpop.eup %9649 }
 0x335   :  { %v10987_v0 = vpack.i.bf16 %v1839_v2, %v1834_v34  ;;  %v10996_v36 = vmul.f32 %v9650_v53, %v10799_v23  ;;  %v9652_v21 = vpop.eup %9651  ;;  %v1002_v41 = vsub.f32 %v10820_v30, %v10935_v52  ;;  %v1005_v24 = vsub.f32 %v10885_v43, %v10954_v28 }
 0x336   :  { %8815 = vmatprep.subr.bf16.mxu1 %v8814_v8  ;;  %v10989_v9 = vpack.i.bf16 %v1849_v38, %v1844_v31  ;;  %v11002_v58 = vmul.f32 %v9652_v21, %v10811_v3  ;;  %v1006_v43 = vsub.f32 %v10881_v35, %v10956_v48 }
 0x337   :  { %8817 = vmatpush3.bf16.msra.mxu1 %v8814_v8  ;;  %1069 = vadd.xlane.f32.xlu1 %v10981_v40  ;;  %v1033_v46 = vmul.f32 1.442695, %v1005_v24  ;;  %v1008_v8 = vsub.f32 %v10893_v22, %v992_v57 }
 0x338   :  { %8819 = vmatprep.subr.bf16.mxu1 %v8818_v33  ;;  %v1035_v22 = vmul.f32 1.442695, %v1006_v43 }
 0x339   :  { %v1039_v2 = vmul.f32 1.442695, %v1008_v8 }
 0x33b   :  { %8821 = vmatpush3.bf16.msra.mxu1 %v8818_v33  ;;  %1073 = vadd.xlane.f32.xlu1 %v10992_v17  ;;  %v1027_v33 = vmul.f32 1.442695, %v1002_v41 }
 0x33d   :  { %9653 = vpow2.f32 %v1027_v33 }
 0x33e   :  { %9655 = vpow2.f32 %v1033_v46 }
 0x33f   :  { %1079 = vadd.xlane.f32.xlu1 %v10996_v36 }
 0x341   :  { %9300 = vrot.lane.b32.xlu0 %v10401_v39, %s10122_s26  ;;  %v1037_v39 = vmul.f32 1.442695, %v1007_v63 }
 0x343   :  { %1077 = vadd.xlane.f32.xlu1 %v11002_v58  ;;  %9657 = vpow2.f32 %v1037_v39 }
 0x344   :  { %9659 = vpow2.f32 %v1039_v2 }
 0x345   :  { %9661 = vpow2.f32 %v1035_v22 }
 0x347   :  { %v9654_v59 = vpop.eup %9653 }
 0x348   :  { %v11014_v30 = vmul.f32 %v9654_v59, %v10763_v27  ;;  %v9656_v52 = vpop.eup %9655 }
 0x349   :  { %v11020_v54 = vmul.f32 %v9656_v52, %v10847_v29 }
 0x354   :  { %9305 = vrot.lane.b32.xlu1 %v10407_v49, %s10122_s26  ;;  %v9658_v49 = vpop.eup %9657 }
 0x355   :  { %v11024_v28 = vmul.f32 %v9658_v49, %v10877_v37  ;;  %v9660_v50 = vpop.eup %9659 }
 0x356   :  { %v11028_v57 = vmul.f32 %v9660_v50, %v10871_v55  ;;  %v9662_v35 = vpop.eup %9661 }
 0x357   :  { %v11032_v48 = vmul.f32 %v9662_v35, %v10835_v61  ;;  %v14509_v35 = vld [vmem:[#allocation35_spill] sm:$0xff] }
 0x360   :  { %1075 = vadd.xlane.f32.xlu0 %v11014_v30 }
 0x364   :  { %1081 = vadd.xlane.f32.xlu0 %v11020_v54 }
 0x368   :  { %1085 = vadd.xlane.f32.xlu0 %v11024_v28 }
 0x36c   :  { %1087 = vadd.xlane.f32.xlu0 %v11028_v57 }
 0x378   :  { %1083 = vadd.xlane.f32.xlu1 %v11032_v48 }
 0x382   :  { %9310 = vrot.lane.b32.xlu0 %v10914_v13, %s10121_s0 }
 0x386   :  { %9320 = vrot.lane.b32.xlu0 %v10926_v62, %s10121_s0 }
 0x389   :  { %9315 = vrot.lane.b32.xlu1 %v10920_v26, %s10121_s0 }
 0x38a   :  { %9325 = vrot.lane.b32.xlu0 %v10940_v25, %s10121_s0 }
 0x38d   :  { %9340 = vrot.lane.b32.xlu1 %v10987_v0, %s10121_s0 }
 0x38e   :  { %9330 = vrot.lane.b32.xlu0 %v10947_v10, %s10121_s0 }
 0x392   :  { %9335 = vrot.lane.b32.xlu0 %v10978_v45, %s10121_s0 }
 0x396   :  { %9345 = vrot.lane.b32.xlu0 %v10989_v9, %s10121_s0 }
 0x3af   :  { %v1060_v31 = vpop.xlane.xlu0 %1059 }
 0x3b0   :  { %v1058_v34 = vpop.xlane.xlu1 %1057 }
 0x3b1   :  { %vm1089_vm12 = vcmp.gt.f32.partialorder %v1058_v34, 0.0 }
 0x3b2   :  { %v1105_v38 = vsel %vm1089_vm12, %v1058_v34, 1.0  ;;  %vm1090_vm12 = vcmp.gt.f32.partialorder %v1060_v31, 0.0 }
 0x3b3   :  { %9663 = vrcp.f32 %v1105_v38 }
 0x3b4   :  { %v1064_v53 = vpop.xlane.xlu1 %1063  ;;  %70 = vxpose.xlu0.b32.start [1/16] %v10641_v19, 128 }
 0x3b5   :  { %vm1092_vm15 = vcmp.gt.f32.partialorder %v1064_v53, 0.0 }
 0x3b6   :  { %102 = vxpose.xlu1.b32.start [1/16] %v10622_v7, 128 }
 0x3b8   :  { %v1068_v21 = vpop.xlane.xlu0 %1067  ;;  %v1062_v41 = vpop.xlane.xlu1 %1061  ;;  %71 = vxpose.xlu0.b32.cont [2/16] %v10629_v11, 128 }
 0x3b9   :  { %vm1091_vm13 = vcmp.gt.f32.partialorder %v1062_v41, 0.0  ;;  %vm1094_vm11 = vcmp.gt.f32.partialorder %v1068_v21, 0.0 }
 0x3ba   :  { %103 = vxpose.xlu1.b32.cont [2/16] %v10617_v6, 128  ;;  %v1107_v59 = vsel %vm1091_vm13, %v1062_v41, 1.0  ;;  %v14511_v41 = vld [vmem:[#allocation50_spill] sm:$0xff] }
 0x3bc   :  { %v9301_v24 = vpop.permute.xlu0 %9300  ;;  %v1066_v46 = vpop.xlane.xlu1 %1065  ;;  %72 = vxpose.xlu0.b32.cont [3/16] %v10667_v1, 128 }
 0x3bd   :  { %v9664_v33 = vpop.eup %9663  ;;  %v9303_v63 = vunpack.i.h.bf16 %v9301_v24  ;;  %v9302_v39 = vunpack.i.l.bf16 %v9301_v24  ;;  %vm1093_vm14 = vcmp.gt.f32.partialorder %v1066_v46, 0.0  ;;  %v14512_v24 = vld [vmem:[#allocation25_spill] sm:$0xff] }
 0x3be   :  { %v11057_v8 = vmul.f32 %v9664_v33, %v10938_v51  ;;  %104 = vxpose.xlu1.b32.cont [3/16] %v10646_v20, 128  ;;  %v1106_v20 = vsel %vm1090_vm12, %v1060_v31, 1.0 }
 0x3bf   :  { %v8822_v7 = vpack.c.bf16 %v9303_v63, %v9302_v39  ;;  %9665 = vrcp.f32 %v1106_v20  ;;  %v14513_v63 = vld [vmem:[#allocation52_spill] sm:$0xff] }
 0x3c0   :  { %8011 = vmatprep.mubr.f32.mxu1 %v11057_v8  ;;  %v1072_v2 = vpop.xlane.xlu1 %1071  ;;  %73 = vxpose.xlu0.b32.cont [4/16] %v10655_v32, 128  ;;  %9667 = vrcp.f32 %v1107_v59  ;;  %v14517_v59 = vld [vmem:[#allocation54_spill] sm:$0xff] }
 0x3c1   :  { %8823 = vmatprep.subr.bf16.mxu1 %v8822_v7  ;;  %vm1096_vm13 = vcmp.gt.f32.partialorder %v1072_v2, 0.0 }
 0x3c2   :  { %8825 = vmatpush3.bf16.msra.mxu1 %v8822_v7  ;;  %105 = vxpose.xlu1.b32.cont [4/16] %v10636_v15, 128  ;;  %v1108_v15 = vsel %vm1092_vm15, %v1064_v53, 1.0  ;;  %v1112_v34 = vsel %vm1096_vm13, %v1072_v2, 1.0  ;;  %v14515_v2 = vld [vmem:[#allocation51_spill] sm:$0xff] }
 0x3c3   :  { %9669 = vrcp.f32 %v1108_v15 }
 0x3c4   :  { %v1070_v6 = vpop.xlane.xlu1 %1069  ;;  %74 = vxpose.xlu0.b32.cont [5/16] %v10703_v12, 128 }
 0x3c5   :  { %vm1095_vm10 = vcmp.gt.f32.partialorder %v1070_v6, 0.0 }
 0x3c6   :  { %106 = vxpose.xlu1.b32.cont [5/16] %v10672_v5, 128  ;;  %v1109_v5 = vsel %vm1093_vm14, %v1066_v46, 1.0  ;;  %v1111_v49 = vsel %vm1095_vm10, %v1070_v6, 1.0 }
 0x3c7   :  { %9671 = vrcp.f32 %v1109_v5 }
 0x3c8   :  { %v1074_v51 = vpop.xlane.xlu1 %1073  ;;  %75 = vxpose.xlu0.b32.cont [6/16] %v10691_v42, 128 }
 0x3c9   :  { %vm1097_vm12 = vcmp.gt.f32.partialorder %v1074_v51, 0.0  ;;  %v9666_v31 = vpop.eup %9665 }
 0x3ca   :  { %107 = vxpose.xlu1.b32.cont [6/16] %v10662_v4, 128  ;;  %v1110_v4 = vsel %vm1094_vm11, %v1068_v21, 1.0  ;;  %v1113_v53 = vsel %vm1097_vm12, %v1074_v51, 1.0  ;;  %v14510_v21 = vld [vmem:[#allocation33_spill] sm:$0xff]  ;;  %v11078_v33 = vmul.f32 %v9666_v31, %v14511_v41  ;;  %v14516_v51 = vld [vmem:[#allocation39_spill] sm:$0xff] }
 0x3cb   :  { %9673 = vrcp.f32 %v1110_v4  ;;  %v14518_v4 = vld [vmem:[#allocation53_spill] sm:$0xff] }
 0x3cc   :  { %v11067_v52 = vpop.xlane.xlu1 %1079  ;;  %76 = vxpose.xlu0.b32.cont [7/16] %v10739_v14, 128  ;;  %9675 = vrcp.f32 %v1111_v49 }
 0x3cd   :  { %9677 = vrcp.f32 %v1112_v34  ;;  %vm1100_vm11 = vcmp.gt.f32.partialorder %v11067_v52, 0.0 }
 0x3ce   :  { %108 = vxpose.xlu1.b32.cont [7/16] %v10708_v16, 128  ;;  %9679 = vrcp.f32 %v1113_v53 }
 0x3d0   :  { %v1078_v43 = vpop.xlane.xlu1 %1077  ;;  %77 = vxpose.xlu0.b32.cont [8/16] %v10727_v44, 128 }
 0x3d1   :  { %vm1099_vm10 = vcmp.gt.f32.partialorder %v1078_v43, 0.0 }
 0x3d2   :  { %109 = vxpose.xlu1.b32.cont [8/16] %v10698_v47, 128  ;;  %v9668_v47 = vpop.eup %9667  ;;  %v1115_v53 = vsel %vm1099_vm10, %v1078_v43, 1.0 }
 0x3d3   :  { %v9670_v46 = vpop.eup %9669  ;;  %v11082_v39 = vmul.f32 %v9668_v47, %v14513_v63  ;;  %v1116_v47 = vsel %vm1100_vm11, %v11067_v52, 1.0  ;;  %9681 = vrcp.f32 %v1115_v53 }
 0x3d4   :  { %v9306_v22 = vpop.permute.xlu1 %9305  ;;  %78 = vxpose.xlu0.b32.cont [9/16] %v10775_v18, 128  ;;  %v9672_v7 = vpop.eup %9671  ;;  %v11089_v6 = vmul.f32 %v9670_v46, %v14515_v2  ;;  %v14527_v46 = vld [vmem:[#allocation45_spill] sm:$0xff] }
 0x3d5   :  { %v9308_v16 = vunpack.i.h.bf16 %v9306_v22  ;;  %v9307_v50 = vunpack.i.l.bf16 %v9306_v22  ;;  %14514 = vst [vmem:[#allocation35_spill] sm:$0xff] %v11082_v39  ;;  %v9674_v20 = vpop.eup %9673  ;;  %v11093_v15 = vmul.f32 %v9672_v7, %v14517_v59  ;;  %v14520_v22 = vld [vmem:[#allocation37_spill] sm:$0xff] }
 0x3d6   :  { %110 = vxpose.xlu1.b32.cont [9/16] %v14509_v35, 128  ;;  %v9676_v5 = vpop.eup %9675  ;;  %v11099_v49 = vmul.f32 %v9674_v20, %v14518_v4 }
 0x3d7   :  { %v8826_v38 = vpack.c.bf16 %v9308_v16, %v9307_v50  ;;  %v9678_v16 = vpop.eup %9677  ;;  %v11103_v50 = vmul.f32 %v9676_v5, %v10981_v40  ;;  %v14525_v40 = vld [vmem:[#allocation41_spill] sm:$0xff] }
 0x3d8   :  { %79 = vxpose.xlu0.b32.cont [10/16] %v10763_v27, 128  ;;  %14519 = vst [vmem:[#allocation33_spill] sm:$0xff] %v11099_v49  ;;  %v9680_v35 = vpop.eup %9679  ;;  %v11109_v34 = vmul.f32 %v9678_v16, %v10973_v60 }
 0x3d9   :  { %8827 = vmatprep.subr.bf16.mxu1 %v8826_v38  ;;  %14521 = vst [vmem:[#allocation50_spill] sm:$0xff] %v11103_v50  ;;  %v11113_v31 = vmul.f32 %v9680_v35, %v10992_v17 }
 0x3da   :  { %8829 = vmatpush3.bf16.msra.mxu1 %v8826_v38  ;;  %111 = vxpose.xlu1.b32.cont [10/16] %v14510_v21, 128  ;;  %14522 = vst [vmem:[#allocation25_spill] sm:$0xff] %v11109_v34  ;;  %v14523_v38 = vld [vmem:[#allocation43_spill] sm:$0xff] }
 0x3db   :  { %8831 = vmatprep.subr.bf16.mxu1 %v14512_v24  ;;  %14524 = vst [vmem:[#allocation52_spill] sm:$0xff] %v11113_v31  ;;  %v14526_v21 = vld [vmem:[#allocation47_spill] sm:$0xff] }
 0x3dc   :  { %80 = vxpose.xlu0.b32.cont [11/16] %v10811_v3, 128 }
 0x3dd   :  { %8012 = vmatmul.mubr.f32.vlgmr.msra.gmra.mrb[16].mxu1 %v11078_v33  ;;  %v9682_v63 = vpop.eup %9681 }
 0x3de   :  { %8014 = vmatprep.mubr.f32.mxu1 %v11082_v39  ;;  %8833 = vmatpush3.bf16.msra.mxu1 %v14512_v24  ;;  %v11129_v20 = vmul.f32 %v9682_v63, %v11002_v58 }
 0x3df   :  { %112 = vxpose.xlu1.b32.cont [11/16] %v14516_v51, 128 }
 0x3e0   :  { %81 = vxpose.xlu0.b32.cont [12/16] %v10799_v23, 128  ;;  %14529 = vst [vmem:[#allocation39_spill] sm:$0xff] %v11129_v20 }
 0x3e1   :  { %8015 = vmatmul.mubr.f32.gmra.mrb[18].mxu1 %v11089_v6 }
 0x3e2   :  { %8017 = vmatprep.mubr.f32.mxu1 %v11093_v15 }
 0x3e3   :  { %113 = vxpose.xlu1.b32.cont [12/16] %v14520_v22, 128 }
 0x3e4   :  { %82 = vxpose.xlu0.b32.cont [13/16] %v10847_v29, 128 }
 0x3e5   :  { %8018 = vmatmul.mubr.f32.gmra.mrb[20].mxu1 %v11099_v49 }
 0x3e6   :  { %8020 = vmatprep.mubr.f32.mxu1 %v11103_v50 }
 0x3e7   :  { %114 = vxpose.xlu1.b32.cont [13/16] %v14523_v38, 128 }
 0x3e8   :  { %83 = vxpose.xlu0.b32.cont [14/16] %v10835_v61, 128 }
 0x3e9   :  { %8021 = vmatmul.mubr.f32.gmra.mrb[22].mxu1 %v11109_v34 }
 0x3ea   :  { %8023 = vmatprep.mubr.f32.mxu1 %v11113_v31 }
 0x3eb   :  { %115 = vxpose.xlu1.b32.cont [14/16] %v14525_v40, 128 }
 0x3ec   :  { %84 = vxpose.xlu0.b32.cont [15/16] %v10877_v37, 128 }
 0x3ed   :  { %v1076_v60 = vpop.xlane.xlu0 %1075 }
 0x3ee   :  { %vm1098_vm14 = vcmp.gt.f32.partialorder %v1076_v60, 0.0 }
 0x3ef   :  { %v1114_v17 = vsel %vm1098_vm14, %v1076_v60, 1.0  ;;  %116 = vxpose.xlu1.b32.cont [15/16] %v14526_v21, 128 }
 0x3f0   :  { %9683 = vrcp.f32 %v1114_v17  ;;  %85 = vxpose.xlu0.b32.end [16/16] %v10871_v55, 128 }
 0x3f1   :  { %v1082_v41 = vpop.xlane.xlu0 %1081  ;;  %9685 = vrcp.f32 %v1116_v47 }
 0x3f2   :  { %vm1101_vm15 = vcmp.gt.f32.partialorder %v1082_v41, 0.0 }
 0x3f3   :  { %v1117_v24 = vsel %vm1101_vm15, %v1082_v41, 1.0  ;;  %117 = vxpose.xlu1.b32.end [16/16] %v14527_v46, 128 }
 0x3f4   :  { %9687 = vrcp.f32 %v1117_v24 }
 0x3f5   :  { %v1086_v43 = vpop.xlane.xlu0 %1085 }
 0x3f6   :  { %vm1103_vm13 = vcmp.gt.f32.partialorder %v1086_v43, 0.0 }
 0x3f7   :  { %v1119_v38 = vsel %vm1103_vm13, %v1086_v43, 1.0 }
 0x3f8   :  { %9689 = vrcp.f32 %v1119_v38  ;;  %v9958_v38 = vld [vmem:[%s14220_s1 + $0x38] sm:$0xff] }
 0x3f9   :  { %v1088_v7 = vpop.xlane.xlu0 %1087 }
 0x3fa   :  { %v9684_v2 = vpop.eup %9683  ;;  %vm1104_vm12 = vcmp.gt.f32.partialorder %v1088_v7, 0.0 }
 0x3fb   :  { %v11126_v52 = vmul.f32 %v9684_v2, %v11014_v30  ;;  %v9686_v51 = vpop.eup %9685  ;;  %v1120_v53 = vsel %vm1104_vm12, %v1088_v7, 1.0  ;;  %v9954_v7 = vld [vmem:[%s14220_s1 + $0x18] sm:$0xff] }
 0x3fc   :  { %v11134_v16 = vmul.f32 %v9686_v51, %v10996_v36 }
 0x3fd   :  { %14528 = vst [vmem:[#allocation51_spill] sm:$0xff] %v11126_v52  ;;  %8024 = vmatmul.mubr.f32.gmra.mrb[24].mxu1 %v11126_v52  ;;  %v9311_v59 = vpop.permute.xlu0 %9310 }
 0x3fe   :  { %v9688_v5 = vpop.eup %9687  ;;  %8026 = vmatprep.mubr.f32.mxu1 %v11129_v20  ;;  %v9313_v4 = vunpack.i.h.bf16 %v9311_v59  ;;  %v9312_v22 = vunpack.i.l.bf16 %v9311_v59  ;;  %14530 = vst [vmem:[#allocation54_spill] sm:$0xff] %v11134_v16  ;;  %v9956_v59 = vld [vmem:[%s14220_s1 + $0x28] sm:$0xff] }
 0x3ff   :  { %v11137_v35 = vmul.f32 %v9688_v5, %v11020_v54  ;;  %v9957_v5 = vld [vmem:[%s14220_s1 + $0x30] sm:$0xff] }
 0x400   :  { %v8838_v30 = vpack.c.bf16 %v9313_v4, %v9312_v22 }
 0x401   :  { %14531 = vst [vmem:[#allocation53_spill] sm:$0xff] %v11137_v35  ;;  %8027 = vmatmul.mubr.f32.gmra.mrb[26].mxu1 %v11134_v16  ;;  %v9321_v41 = vpop.permute.xlu0 %9320 }
 0x402   :  { %8029 = vmatprep.mubr.f32.mxu1 %v11137_v35  ;;  %8840 = vmatprep.subr.msk.bf16.mxu1 %vm10482_vm1, %v8838_v30  ;;  %v9690_v54 = vpop.eup %9689  ;;  %v9322_v63 = vunpack.i.l.bf16 %v9321_v41 }
 0x403   :  { %v11149_v21 = vmul.f32 %v9690_v54, %v11024_v28  ;;  %v9951_v28 = vld [vmem:[%s14220_s1] sm:$0xff]  ;;  %v9961_v54 = vld [vmem:[%s14220_s1 + $0x50] sm:$0xff] }
 0x405   :  { %v1084_v40 = vpop.xlane.xlu1 %1083  ;;  %14534 = vst [vmem:[#allocation43_spill] sm:$0xff] %v11149_v21 }
 0x406   :  { %vm1102_vm10 = vcmp.gt.f32.partialorder %v1084_v40, 0.0 }
 0x407   :  { %v1118_v36 = vsel %vm1102_vm10, %v1084_v40, 1.0  ;;  %v9959_v40 = vld [vmem:[%s14220_s1 + $0x40] sm:$0xff] }
 0x408   :  { %9691 = vrcp.f32 %v1118_v36  ;;  %v9960_v36 = vld [vmem:[%s14220_s1 + $0x48] sm:$0xff] }
 0x409   :  { %9693 = vrcp.f32 %v1120_v53  ;;  %v9316_v24 = vpop.permute.xlu1 %9315 }
 0x40a   :  { %v9317_v43 = vunpack.i.l.bf16 %v9316_v24 }
 0x411   :  { %9355 = vrot.lane.b32.xlu1 %v10920_v26, %s10122_s26  ;;  %v9318_v26 = vunpack.i.h.bf16 %v9316_v24  ;;  %v9962_v24 = vld [vmem:[%s14220_s1 + $0x58] sm:$0xff] }
 0x412   :  { %v9692_v60 = vpop.eup %9691 }
 0x413   :  { %v11146_v47 = vmul.f32 %v9692_v60, %v11032_v48  ;;  %v9694_v17 = vpop.eup %9693  ;;  %v9326_v48 = vpop.permute.xlu0 %9325 }
 0x414   :  { %v11156_v46 = vmul.f32 %v9694_v17, %v11028_v57  ;;  %v9952_v57 = vld [vmem:[%s14220_s1 + $0x8] sm:$0xff]  ;;  %v9328_v4 = vunpack.i.h.bf16 %v9326_v48  ;;  %v9327_v22 = vunpack.i.l.bf16 %v9326_v48 }
 0x415   :  { %14533 = vst [vmem:[#allocation37_spill] sm:$0xff] %v11146_v47  ;;  %8030 = vmatmul.mubr.f32.gmra.mrb[28].mxu1 %v11146_v47  ;;  %9360 = vrot.lane.b32.xlu1 %v10926_v62, %s10122_s26  ;;  %v8844_v62 = vpack.c.bf16 %v9318_v26, %v9317_v43  ;;  %v9341_v26 = vpop.permute.xlu1 %9340  ;;  %v9963_v43 = vld [vmem:[%s14220_s1 + $0x60] sm:$0xff]  ;;  %v9964_v48 = vld [vmem:[%s14220_s1 + $0x68] sm:$0xff] }
 0x416   :  { %8032 = vmatprep.mubr.f32.mxu1 %v11149_v21  ;;  %14535 = vst [vmem:[#allocation41_spill] sm:$0xff] %v11156_v46  ;;  %v8856_v53 = vpack.c.bf16 %v9328_v4, %v9327_v22  ;;  %v9342_v4 = vunpack.i.l.bf16 %v9341_v26 }
 0x417   :  { %v9331_v2 = vpop.permute.xlu0 %9330 }
 0x418   :  { %v9333_v17 = vunpack.i.h.bf16 %v9331_v2 }
 0x419   :  { %8033 = vmatmul.mubr.f32.gmra.mrb[30].mxu1 %v11156_v46  ;;  %9350 = vrot.lane.b32.xlu0 %v10914_v13, %s10122_s26  ;;  %v9953_v13 = vld [vmem:[%s14220_s1 + $0x10] sm:$0xff] }
 0x41a   :  { %8039 = vmatprep.mubr.msk.f32.mxu1 %vm173_vm0, %v9951_v28  ;;  %9370 = vrot.lane.b32.xlu1 %v10947_v10, %s10122_s26  ;;  %v9323_v10 = vunpack.i.h.bf16 %v9321_v41  ;;  %v9332_v41 = vunpack.i.l.bf16 %v9331_v2 }
 0x41c   :  { %v8850_v51 = vpack.c.bf16 %v9323_v10, %v9322_v63  ;;  %v8862_v28 = vpack.c.bf16 %v9333_v17, %v9332_v41 }
 0x41d   :  { %8040 = vmatmul.mubr.msk.f32.vlgmr.msra.gmra.mrb[32].mxu1 %vm173_vm0, %v9952_v57  ;;  %9365 = vrot.lane.b32.xlu0 %v10940_v25, %s10122_s26  ;;  %v9955_v25 = vld [vmem:[%s14220_s1 + $0x20] sm:$0xff]  ;;  %v9965_v57 = vld [vmem:[%s14220_s1 + $0x70] sm:$0xff] }
 0x41e   :  { %8042 = vmatprep.mubr.msk.f32.mxu1 %vm173_vm0, %v9953_v13  ;;  %8843 = vmatpush3.bf16.xpose.msk.msra.mxu1 %vm10482_vm1, %v8838_v30  ;;  %v9336_v30 = vpop.permute.xlu0 %9335 }
 0x41f   :  { %8846 = vmatprep.subr.msk.bf16.mxu1 %vm10482_vm1, %v8844_v62  ;;  %v9338_v13 = vunpack.i.h.bf16 %v9336_v30  ;;  %v9337_v10 = vunpack.i.l.bf16 %v9336_v30 }
 0x421   :  { %8043 = vmatmul.mubr.msk.f32.gmra.mrb[34].mxu1 %vm173_vm0, %v9954_v7  ;;  %v8868_v2 = vpack.c.bf16 %v9338_v13, %v9337_v10 }
 0x422   :  { %8045 = vmatprep.mubr.msk.f32.mxu1 %vm173_vm0, %v9955_v25  ;;  %v9346_v60 = vpop.permute.xlu0 %9345  ;;  %v9966_v25 = vld [vmem:[%s14220_s1 + $0x78] sm:$0xff] }
 0x425   :  { %8046 = vmatmul.mubr.msk.f32.gmra.mrb[36].mxu1 %vm173_vm0, %v9956_v59 }
 0x426   :  { %8048 = vmatprep.mubr.msk.f32.mxu1 %vm173_vm0, %v9957_v5  ;;  %8849 = vmatpush3.bf16.xpose.msk.msra.mxu1 %vm10482_vm1, %v8844_v62  ;;  %v9343_v5 = vunpack.i.h.bf16 %v9341_v26 }
 0x427   :  { %8852 = vmatprep.subr.msk.bf16.mxu1 %vm10482_vm1, %v8850_v51 }
 0x429   :  { %8049 = vmatmul.mubr.msk.f32.gmra.mrb[38].mxu1 %vm173_vm0, %v9958_v38  ;;  %v8874_v38 = vpack.c.bf16 %v9343_v5, %v9342_v4 }
 0x42a   :  { %8051 = vmatprep.mubr.msk.f32.mxu1 %vm173_vm0, %v9959_v40 }
 0x42d   :  { %8052 = vmatmul.mubr.msk.f32.gmra.mrb[40].mxu1 %vm173_vm0, %v9960_v36  ;;  %v9348_v36 = vunpack.i.h.bf16 %v9346_v60 }
 0x42e   :  { %8054 = vmatprep.mubr.msk.f32.mxu1 %vm173_vm0, %v9961_v54  ;;  %8855 = vmatpush3.bf16.xpose.msk.msra.mxu1 %vm10482_vm1, %v8850_v51  ;;  %v9347_v54 = vunpack.i.l.bf16 %v9346_v60 }
 0x42f   :  { %8858 = vmatprep.subr.msk.bf16.mxu1 %vm10482_vm1, %v8856_v53 }
 0x431   :  { %8055 = vmatmul.mubr.msk.f32.gmra.mrb[42].mxu1 %vm173_vm0, %v9962_v24  ;;  %v8880_v24 = vpack.c.bf16 %v9348_v36, %v9347_v54 }
 0x432   :  { %8057 = vmatprep.mubr.msk.f32.mxu1 %vm173_vm0, %v9963_v43 }
 0x434   :  { %v11229_v62 = vpop.trf.xlu0 }
 0x435   :  { %14536 = vst [vmem:[#allocation47_spill] sm:$0xff] %v11229_v62  ;;  %8058 = vmatmul.mubr.msk.f32.gmra.mrb[44].mxu1 %vm173_vm0, %v9964_v48  ;;  %vm2221_vm14 = vcmp.gt.f32.partialorder %v11229_v62, 0.0 }
 0x436   :  { %8060 = vmatprep.mubr.msk.f32.mxu1 %vm173_vm0, %v9965_v57  ;;  %8861 = vmatpush3.bf16.xpose.msk.msra.mxu1 %vm10482_vm1, %v8856_v53 }
 0x437   :  { %v11241_v63 = vpop.trf.xlu1  ;;  %8864 = vmatprep.subr.msk.bf16.mxu1 %vm10482_vm1, %v8862_v28 }
 0x438   :  { %14537 = vst [vmem:[#allocation45_spill] sm:$0xff] %v11241_v63  ;;  %v11245_v7 = vpop.trf.xlu0 }
 0x439   :  { %14538 = vst [vmem:[#allocation55_spill] sm:$0xff] %v11245_v7  ;;  %8061 = vmatmul.mubr.msk.f32.gmra.mrb[46].mxu1 %vm173_vm0, %v9966_v25  ;;  %vm2222_vm11 = vcmp.gt.f32.partialorder %v11245_v7, 0.0 }
 0x43b   :  { %v11251_v51 = vpop.trf.xlu1 }
 0x43c   :  { %14539 = vst [vmem:[#allocation56_spill] sm:$0xff] %v11251_v51  ;;  %v11253_v59 = vpop.trf.xlu0 }
 0x43d   :  { %14540 = vst [vmem:[#allocation57_spill] sm:$0xff] %v11253_v59  ;;  %vm14315_vm13 = vcmp.gt.f32.partialorder %v11253_v59, 0.0 }
 0x43e   :  { %8867 = vmatpush3.bf16.xpose.msk.msra.mxu1 %vm10482_vm1, %v8862_v28 }
 0x43f   :  { %v11257_v22 = vpop.trf.xlu1  ;;  %8870 = vmatprep.subr.msk.bf16.mxu1 %vm10482_vm1, %v8868_v2 }
 0x440   :  { %14541 = vst [vmem:[#allocation58_spill] sm:$0xff] %v11257_v22  ;;  %v11261_v30 = vpop.trf.xlu0 }
 0x441   :  { %14542 = vst [vmem:[#allocation59_spill] sm:$0xff] %v11261_v30  ;;  %vm14329_vm15 = vcmp.gt.f32.partialorder %v11261_v30, 0.0 }
 0x443   :  { %v11263_v40 = vpop.trf.xlu1 }
 0x444   :  { %14543 = vst [vmem:[#allocation60_spill] sm:$0xff] %v11263_v40  ;;  %v11265_v53 = vpop.trf.xlu0 }
 0x445   :  { %14544 = vst [vmem:[#allocation61_spill] sm:$0xff] %v11265_v53  ;;  %vm14324_vm10 = vcmp.gt.f32.partialorder %v11265_v53, 0.0 }
 0x446   :  { %8873 = vmatpush3.bf16.xpose.msk.msra.mxu1 %vm10482_vm1, %v8868_v2 }
 0x447   :  { %v11269_v17 = vpop.trf.xlu1  ;;  %8876 = vmatprep.subr.msk.bf16.mxu1 %vm10482_vm1, %v8874_v38 }
 0x448   :  { %14545 = vst [vmem:[#allocation62_spill] sm:$0xff] %v11269_v17  ;;  %v11273_v41 = vpop.trf.xlu0 }
 0x449   :  { %14546 = vst [vmem:[#allocation63_spill] sm:$0xff] %v11273_v41  ;;  %vm14314_vm12 = vcmp.gt.f32.partialorder %v11273_v41, 0.0 }
 0x44b   :  { %v11275_v26 = vpop.trf.xlu1 }
 0x44c   :  { %14547 = vst [vmem:[#allocation64_spill] sm:$0xff] %v11275_v26  ;;  %v11279_v43 = vpop.trf.xlu0 }
 0x44d   :  { %14548 = vst [vmem:[#allocation65_spill] sm:$0xff] %v11279_v43 }
 0x44e   :  { %8879 = vmatpush3.bf16.xpose.msk.msra.mxu1 %vm10482_vm1, %v8874_v38 }
 0x44f   :  { %v11281_v28 = vpop.trf.xlu1  ;;  %8882 = vmatprep.subr.msk.bf16.mxu1 %vm10482_vm1, %v8880_v24 }
 0x450   :  { %14549 = vst [vmem:[#allocation66_spill] sm:$0xff] %v11281_v28  ;;  %v11287_v48 = vpop.trf.xlu0 }
 0x451   :  { %14551 = vst [vmem:[#allocation68_spill] sm:$0xff] %v11287_v48 }
 0x453   :  { %v11285_v60 = vpop.trf.xlu1 }
 0x454   :  { %14550 = vst [vmem:[#allocation67_spill] sm:$0xff] %v11285_v60  ;;  %v11293_v13 = vpop.trf.xlu0 }
 0x455   :  { %14553 = vst [vmem:[#allocation70_spill] sm:$0xff] %v11293_v13 }
 0x456   :  { %8885 = vmatpush3.bf16.xpose.msk.msra.mxu1 %vm10482_vm1, %v8880_v24 }
 0x457   :  { %v11291_v57 = vpop.trf.xlu1 }
 0x458   :  { %14552 = vst [vmem:[#allocation69_spill] sm:$0xff] %v11291_v57  ;;  %v11297_v25 = vpop.trf.xlu0 }
 0x459   :  { %14555 = vst [vmem:[#allocation72_spill] sm:$0xff] %v11297_v25 }
 0x45b   :  { %v11295_v10 = vpop.trf.xlu1 }
 0x45c   :  { %14554 = vst [vmem:[#allocation71_spill] sm:$0xff] %v11295_v10  ;;  %v11301_v5 = vpop.trf.xlu0 }
 0x45d   :  { %14557 = vst [vmem:[#allocation74_spill] sm:$0xff] %v11301_v5 }
 0x45f   :  { %v11299_v2 = vpop.trf.xlu1 }
 0x460   :  { %14556 = vst [vmem:[#allocation73_spill] sm:$0xff] %v11299_v2  ;;  %v11305_v38 = vpop.trf.xlu0 }
 0x461   :  { %14559 = vst [vmem:[#allocation76_spill] sm:$0xff] %v11305_v38 }
 0x463   :  { %v11303_v4 = vpop.trf.xlu1 }
 0x464   :  { %14558 = vst [vmem:[#allocation75_spill] sm:$0xff] %v11303_v4  ;;  %v11309_v54 = vpop.trf.xlu0 }
 0x465   :  { %14561 = vst [vmem:[#allocation78_spill] sm:$0xff] %v11309_v54 }
 0x467   :  { %v11307_v36 = vpop.trf.xlu1 }
 0x468   :  { %14560 = vst [vmem:[#allocation77_spill] sm:$0xff] %v11307_v36  ;;  %v11313_v37 = vpop.trf.xlu0 }
 0x469   :  { %14563 = vst [vmem:[#allocation80_spill] sm:$0xff] %v11313_v37 }
 0x46b   :  { %v11311_v24 = vpop.trf.xlu1 }
 0x46c   :  { %14562 = vst [vmem:[#allocation79_spill] sm:$0xff] %v11311_v24  ;;  %v11317_v29 = vpop.trf.xlu0 }
 0x46d   :  { %14565 = vst [vmem:[#allocation82_spill] sm:$0xff] %v11317_v29 }
 0x46f   :  { %v11315_v55 = vpop.trf.xlu1 }
 0x470   :  { %14564 = vst [vmem:[#allocation81_spill] sm:$0xff] %v11315_v55  ;;  %v11321_v3 = vpop.trf.xlu0 }
 0x471   :  { %14567 = vst [vmem:[#allocation84_spill] sm:$0xff] %v11321_v3 }
 0x473   :  { %v11319_v61 = vpop.trf.xlu1 }
 0x474   :  { %14566 = vst [vmem:[#allocation83_spill] sm:$0xff] %v11319_v61 }
 0x483   :  { %v9356_v23 = vpop.permute.xlu1 %9355 }
 0x484   :  { %v9358_v18 = vunpack.i.h.bf16 %v9356_v23  ;;  %v9357_v27 = vunpack.i.l.bf16 %v9356_v23 }
 0x486   :  { %v8890_v32 = vpack.c.bf16 %v9358_v18, %v9357_v27 }
 0x487   :  { %v9361_v44 = vpop.permute.xlu1 %9360 }
 0x488   :  { %v9363_v19 = vunpack.i.h.bf16 %v9361_v44  ;;  %v9362_v11 = vunpack.i.l.bf16 %v9361_v44 }
 0x48a   :  { %v8894_v46 = vpack.c.bf16 %v9363_v19, %v9362_v11 }
 0x48b   :  { %v9351_v14 = vpop.permute.xlu0 %9350 }
 0x48c   :  { %v9353_v12 = vunpack.i.h.bf16 %v9351_v14  ;;  %v9352_v42 = vunpack.i.l.bf16 %v9351_v14  ;;  %v9371_v35 = vpop.permute.xlu1 %9370 }
 0x48d   :  { %v9373_v23 = vunpack.i.h.bf16 %v9371_v35  ;;  %v9372_v20 = vunpack.i.l.bf16 %v9371_v35 }
 0x48e   :  { %v8886_v1 = vpack.c.bf16 %v9353_v12, %v9352_v42 }
 0x48f   :  { %v9366_v58 = vpop.permute.xlu0 %9365  ;;  %v8902_v14 = vpack.c.bf16 %v9373_v23, %v9372_v20 }
 0x490   :  { %8887 = vmatprep.subr.bf16.mxu0 %v8886_v1  ;;  %v9368_v21 = vunpack.i.h.bf16 %v9366_v58  ;;  %v9367_v47 = vunpack.i.l.bf16 %v9366_v58 }
 0x491   :  { %8889 = vmatpush3.bf16.msra.mxu0 %v8886_v1 }
 0x492   :  { %8891 = vmatprep.subr.bf16.mxu0 %v8890_v32  ;;  %v8898_v16 = vpack.c.bf16 %v9368_v21, %v9367_v47 }
 0x495   :  { %8893 = vmatpush3.bf16.msra.mxu0 %v8890_v32 }
 0x496   :  { %8895 = vmatprep.subr.bf16.mxu0 %v8894_v46 }
 0x499   :  { %8897 = vmatpush3.bf16.msra.mxu0 %v8894_v46 }
 0x49a   :  { %8899 = vmatprep.subr.bf16.mxu0 %v8898_v16 }
 0x49d   :  { %8901 = vmatpush3.bf16.msra.mxu0 %v8898_v16 }
 0x49e   :  { %8903 = vmatprep.subr.bf16.mxu0 %v8902_v14 }
 0x4a1   :  { %8905 = vmatpush3.bf16.msra.mxu0 %v8902_v14 }
 0x4b0   :  { %v11323_v42 = vpop.f32.mrb[16].mxu1 }
 0x4b1   :  { %14568 = vst [vmem:[#allocation85_spill] sm:$0xff] %v11323_v42  ;;  %v11325_v12 = vpop.f32.mrb[17].mxu1 }
 0x4b2   :  { %14569 = vst [vmem:[#allocation86_spill] sm:$0xff] %v11325_v12 }
 0x4b4   :  { %v11327_v1 = vpop.f32.mrb[18].mxu1 }
 0x4b5   :  { %14570 = vst [vmem:[#allocation87_spill] sm:$0xff] %v11327_v1  ;;  %v11329_v11 = vpop.f32.mrb[19].mxu1 }
 0x4b6   :  { %14571 = vst [vmem:[#allocation88_spill] sm:$0xff] %v11329_v11 }
 0x4b8   :  { %v11331_v19 = vpop.f32.mrb[20].mxu1 }
 0x4b9   :  { %14572 = vst [vmem:[#allocation89_spill] sm:$0xff] %v11331_v19  ;;  %v11333_v32 = vpop.f32.mrb[21].mxu1 }
 0x4ba   :  { %14573 = vst [vmem:[#allocation90_spill] sm:$0xff] %v11333_v32 }
 0x4bc   :  { %v11335_v44 = vpop.f32.mrb[22].mxu1 }
 0x4bd   :  { %14574 = vst [vmem:[#allocation91_spill] sm:$0xff] %v11335_v44  ;;  %v11337_v27 = vpop.f32.mrb[23].mxu1 }
 0x4be   :  { %14575 = vst [vmem:[#allocation92_spill] sm:$0xff] %v11337_v27 }
 0x4d0   :  { %v11339_v18 = vpop.f32.mrb[24].mxu1 }
 0x4d1   :  { %14576 = vst [vmem:[#allocation93_spill] sm:$0xff] %v11339_v18  ;;  %v11341_v20 = vpop.f32.mrb[25].mxu1 }
 0x4d2   :  { %14577 = vst [vmem:[#allocation94_spill] sm:$0xff] %v11341_v20 }
 0x4d4   :  { %v11343_v16 = vpop.f32.mrb[26].mxu1 }
 0x4d5   :  { %14578 = vst [vmem:[#allocation95_spill] sm:$0xff] %v11343_v16  ;;  %v11345_v35 = vpop.f32.mrb[27].mxu1 }
 0x4d6   :  { %14579 = vst [vmem:[#allocation96_spill] sm:$0xff] %v11345_v35 }
 0x4e8   :  { %v11347_v58 = vpop.f32.mrb[28].mxu1 }
 0x4e9   :  { %14580 = vst [vmem:[#allocation97_spill] sm:$0xff] %v11347_v58  ;;  %v11349_v47 = vpop.f32.mrb[29].mxu1 }
 0x4ea   :  { %14581 = vst [vmem:[#allocation98_spill] sm:$0xff] %v11349_v47 }
 0x4ec   :  { %v11351_v21 = vpop.f32.mrb[30].mxu1 }
 0x4ed   :  { %14582 = vst [vmem:[#allocation99_spill] sm:$0xff] %v11351_v21  ;;  %v11353_v46 = vpop.f32.mrb[31].mxu1 }
 0x4ee   :  { %14583 = vst [vmem:[#allocation100_spill] sm:$0xff] %v11353_v46 }
 0x4f0   :  { %v8041_v23 = vpop.f32.mrb[32].mxu1 }
 0x4f1   :  { %v1634_v14 = vadd.f32 %v8041_v23, %v10908_v56  ;;  %v1628_v27 = vpop.f32.mrb[33].mxu1 }
 0x4f2   :  { %v1629_v18 = vadd.f32 %v10908_v56, %v1628_v27 }
 0x4f3   :  { %1859 = vperm.xlu0 %9267, %v1634_v14  }
 0x4f4   :  { %v8044_v20 = vpop.f32.mrb[34].mxu1  ;;  %1854 = vperm.xlu1 %9268, %v1629_v18   ;;  %8123 = vmatprep.mubr.msk.f32.mxu1 %vm173_vm0, %v1629_v18 }
 0x4f5   :  { %v1638_v35 = vpop.f32.mrb[35].mxu1  ;;  %8124 = vmatmul.mubr.msk.f32.vlgmr.msra.gmra.mrb[48].mxu1 %vm173_vm0, %v1634_v14  ;;  %v1644_v21 = vadd.f32 %v8044_v20, %v10908_v56 }
 0x4f6   :  { %v1639_v47 = vadd.f32 %v10908_v56, %v1638_v35 }
 0x4f7   :  { %9380 = vrot.lane.b32.xlu0 %v10987_v0, %s10122_s26  ;;  %v9967_v0 = vld [vmem:[%s14224_s5 + $0x1] ss:$0 sm:$0xff] }
 0x4f8   :  { %v8047_v46 = vpop.f32.mrb[36].mxu1  ;;  %9375 = vrot.lane.b32.xlu1 %v10978_v45, %s10122_s26  ;;  %8126 = vmatprep.mubr.msk.f32.mxu1 %vm173_vm0, %v1639_v47 }
 0x4f9   :  { %v1648_v27 = vpop.f32.mrb[37].mxu1  ;;  %8127 = vmatmul.mubr.msk.f32.gmra.mrb[50].mxu1 %vm173_vm0, %v1644_v21  ;;  %v1654_v58 = vadd.f32 %v8047_v46, %v10908_v56 }
 0x4fa   :  { %v1649_v23 = vadd.f32 %v10908_v56, %v1648_v27 }
 0x4fb   :  { %1869 = vperm.xlu0 %9267, %v1644_v21  }
 0x4fc   :  { %v8050_v35 = vpop.f32.mrb[38].mxu1  ;;  %1864 = vperm.xlu1 %9268, %v1639_v47   ;;  %8129 = vmatprep.mubr.msk.f32.mxu1 %vm173_vm0, %v1649_v23 }
 0x4fd   :  { %v1664_v20 = vadd.f32 %v9967_v0, %v8050_v35  ;;  %v1658_v45 = vpop.f32.mrb[39].mxu1  ;;  %8130 = vmatmul.mubr.msk.f32.gmra.mrb[52].mxu1 %vm173_vm0, %v1654_v58 }
 0x4fe   :  { %v1659_v16 = vadd.f32 %v9967_v0, %v1658_v45 }
 0x4ff   :  { %1879 = vperm.xlu0 %9267, %v1654_v58  }
 0x500   :  { %v8053_v44 = vpop.f32.mrb[40].mxu1  ;;  %9385 = vrot.lane.b32.xlu1 %v10989_v9, %s10122_s26  ;;  %8132 = vmatprep.mubr.msk.f32.mxu1 %vm173_vm0, %v1659_v16 }
 0x501   :  { %v11377_v56 = vadd.f32 %v9967_v0, %v8053_v44  ;;  %v1668_v46 = vpop.f32.mrb[41].mxu1  ;;  %8133 = vmatmul.mubr.msk.f32.gmra.mrb[54].mxu1 %vm173_vm0, %v1664_v20 }
 0x502   :  { %v1669_v27 = vadd.f32 %v9967_v0, %v1668_v46 }
 0x503   :  { %2768 = vrot.lane.b32.xlu0 %v1634_v14, %s10123_s30 }
 0x504   :  { %v8056_v35 = vpop.f32.mrb[42].mxu1  ;;  %1874 = vperm.xlu1 %9268, %v1649_v23   ;;  %8135 = vmatprep.mubr.msk.f32.mxu1 %vm173_vm0, %v1669_v27 }
 0x505   :  { %v11382_v45 = vadd.f32 %v9967_v0, %v8056_v35  ;;  %v1678_v32 = vpop.f32.mrb[43].mxu1  ;;  %8136 = vmatmul.mubr.msk.f32.gmra.mrb[56].mxu1 %vm173_vm0, %v11377_v56 }
 0x506   :  { %v11386_v9 = vadd.f32 %v9967_v0, %v1678_v32 }
 0x507   :  { %1889 = vperm.xlu0 %9267, %v1664_v20  }
 0x508   :  { %v8059_v44 = vpop.f32.mrb[44].mxu1  ;;  %2766 = vrot.lane.b32.xlu1 %v1629_v18, %s10123_s30  ;;  %8138 = vmatprep.mubr.msk.f32.mxu1 %vm173_vm0, %v11386_v9 }
 0x509   :  { %v11391_v14 = vadd.f32 %v9967_v0, %v8059_v44  ;;  %v1688_v46 = vpop.f32.mrb[45].mxu1  ;;  %8139 = vmatmul.mubr.msk.f32.gmra.mrb[58].mxu1 %vm173_vm0, %v11382_v45 }
 0x50a   :  { %v11395_v35 = vadd.f32 %v9967_v0, %v1688_v46 }
 0x50b   :  { %2772 = vrot.lane.b32.xlu0 %v1644_v21, %s10123_s30 }
 0x50c   :  { %14584 = vst [vmem:[#allocation101_spill] sm:$0xff] %v11395_v35  ;;  %v8062_v19 = vpop.f32.mrb[46].mxu1  ;;  %1884 = vperm.xlu1 %9268, %v1659_v16   ;;  %8141 = vmatprep.mubr.msk.f32.mxu1 %vm173_vm0, %v11395_v35 }
 0x50d   :  { %v11400_v32 = vadd.f32 %v9967_v0, %v8062_v19  ;;  %v1698_v18 = vpop.f32.mrb[47].mxu1  ;;  %8142 = vmatmul.mubr.msk.f32.gmra.mrb[60].mxu1 %vm173_vm0, %v11391_v14 }
 0x50e   :  { %v11404_v44 = vadd.f32 %v9967_v0, %v1698_v18 }
 0x50f   :  { %14585 = vst [vmem:[#allocation102_spill] sm:$0xff] %v11400_v32  ;;  %2776 = vrot.lane.b32.xlu0 %v1654_v58, %s10123_s30 }
 0x510   :  { %2770 = vrot.lane.b32.xlu1 %v1639_v47, %s10123_s30  ;;  %8144 = vmatprep.mubr.msk.f32.mxu1 %vm173_vm0, %v11404_v44 }
 0x511   :  { %8145 = vmatmul.mubr.msk.f32.gmra.mrb[62].mxu1 %vm173_vm0, %v11400_v32 }
 0x513   :  { %1899 = vperm.xlu0 %9267, %v11377_v56  }
 0x514   :  { %2774 = vrot.lane.b32.xlu1 %v1649_v23, %s10123_s30 }
 0x517   :  { %1894 = vperm.xlu0 %9267, %v1669_v27  }
 0x518   :  { %2778 = vrot.lane.b32.xlu1 %v1659_v16, %s10123_s30 }
 0x51b   :  { %2780 = vrot.lane.b32.xlu0 %v1664_v20, %s10123_s30 }
 0x51c   :  { %1904 = vperm.xlu1 %9268, %v11386_v9  }
 0x51f   :  { %1909 = vperm.xlu0 %9267, %v11382_v45  }
 0x520   :  { %1919 = vperm.xlu1 %9268, %v11391_v14  }
 0x523   :  { %1929 = vperm.xlu0 %9267, %v11400_v32  }
 0x524   :  { %1914 = vperm.xlu1 %9268, %v11395_v35  }
 0x528   :  { %2782 = vrot.lane.b32.xlu1 %v1669_v27, %s10123_s30 }
 0x52c   :  { %1924 = vperm.xlu1 %9268, %v11404_v44  }
 0x572   :  { %v1860_v19 = vpop.permute.xlu0 %1859 }
 0x573   :  { %v1855_v58 = vpop.permute.xlu1 %1854 }
 0x576   :  { %v9381_v47 = vpop.permute.xlu0 %9380 }
 0x577   :  { %v9376_v16 = vpop.permute.xlu1 %9375  ;;  %v9383_v21 = vunpack.i.h.bf16 %v9381_v47  ;;  %v9382_v23 = vunpack.i.l.bf16 %v9381_v47 }
 0x578   :  { %v9378_v0 = vunpack.i.h.bf16 %v9376_v16  ;;  %v9377_v20 = vunpack.i.l.bf16 %v9376_v16 }
 0x579   :  { %v8910_v11 = vpack.c.bf16 %v9383_v21, %v9382_v23 }
 0x57a   :  { %v8906_v46 = vpack.c.bf16 %v9378_v0, %v9377_v20  ;;  %v1870_v52 = vpop.permute.xlu0 %1869 }
 0x57b   :  { %v1865_v18 = vpop.permute.xlu1 %1864 }
 0x57c   :  { %8907 = vmatprep.subr.bf16.mxu0 %v8906_v46 }
 0x57d   :  { %8909 = vmatpush3.bf16.msra.mxu0 %v8906_v46  ;;  %v1932_v46 = vmul.f32 %v1855_v58, %v11241_v63 }
 0x57e   :  { %8911 = vmatprep.subr.bf16.mxu0 %v8910_v11  ;;  %v1880_v34 = vpop.permute.xlu0 %1879 }
 0x57f   :  { %v9386_v1 = vpop.permute.xlu1 %9385 }
 0x580   :  { %v9388_v12 = vunpack.i.h.bf16 %v9386_v1  ;;  %v9387_v42 = vunpack.i.l.bf16 %v9386_v1 }
 0x581   :  { %8913 = vmatpush3.bf16.msra.mxu0 %v8910_v11  ;;  %v1933_v11 = vmul.f32 %v1860_v19, %v11251_v51 }
 0x582   :  { %v8914_v27 = vpack.c.bf16 %v9388_v12, %v9387_v42  ;;  %v11425_v47 = vpop.permute.xlu0 %2768 }
 0x583   :  { %v1875_v31 = vpop.permute.xlu1 %1874  ;;  %14587 = vst [vmem:[#allocation104_spill] sm:$0xff] %v11425_v47 }
 0x584   :  { %8915 = vmatprep.subr.bf16.mxu0 %v8914_v27 }
 0x585   :  { %8917 = vmatpush3.bf16.msra.mxu0 %v8914_v27 }
 0x586   :  { %v1890_v0 = vpop.permute.xlu0 %1889 }
 0x587   :  { %v11423_v50 = vpop.permute.xlu1 %2766 }
 0x588   :  { %14586 = vst [vmem:[#allocation103_spill] sm:$0xff] %v11423_v50 }
 0x58a   :  { %v11429_v21 = vpop.permute.xlu0 %2772 }
 0x58b   :  { %v1885_v16 = vpop.permute.xlu1 %1884  ;;  %14589 = vst [vmem:[#allocation106_spill] sm:$0xff] %v11429_v21 }
 0x58e   :  { %v11433_v1 = vpop.permute.xlu0 %2776 }
 0x58f   :  { %v11427_v20 = vpop.permute.xlu1 %2770  ;;  %14591 = vst [vmem:[#allocation108_spill] sm:$0xff] %v11433_v1 }
 0x590   :  { %14588 = vst [vmem:[#allocation105_spill] sm:$0xff] %v11427_v20  ;;  %v1935_v20 = vmul.f32 %v1870_v52, %v11263_v40 }
 0x592   :  { %v1900_v12 = vpop.permute.xlu0 %1899 }
 0x593   :  { %v11431_v23 = vpop.permute.xlu1 %2774 }
 0x594   :  { %14590 = vst [vmem:[#allocation107_spill] sm:$0xff] %v11431_v23  ;;  %v1934_v23 = vmul.f32 %v1865_v18, %v11257_v22 }
 0x596   :  { %v1895_v35 = vpop.permute.xlu0 %1894 }
 0x597   :  { %v11435_v42 = vpop.permute.xlu1 %2778 }
 0x598   :  { %14592 = vst [vmem:[#allocation109_spill] sm:$0xff] %v11435_v42 }
 0x59b   :  { %v11439_v50 = vpop.permute.xlu1 %1904 }
 0x59f   :  { %v1920_v52 = vpop.permute.xlu1 %1919 }
 0x5c8   :  { %v8125_v27 = vpop.f32.mrb[48].mxu1 }
 0x5c9   :  { %v2132_v47 = vadd.f32 %v8125_v27, %v1933_v11  ;;  %v2126_v49 = vpop.f32.mrb[49].mxu1 }
 0x5ca   :  { %v2127_v39 = vadd.f32 %v2126_v49, %v1932_v46  ;;  %v11463_v46 = vpop.permute.xlu0 %2780 }
 0x5cb   :  { %v2206_v21 = vmul.f32 0.25, %v2132_v47  ;;  %14593 = vst [vmem:[#allocation110_spill] sm:$0xff] %v11463_v46 }
 0x5cc   :  { %v2205_v1 = vmul.f32 0.25, %v2127_v39  ;;  %v8128_v32 = vpop.f32.mrb[50].mxu1  ;;  %v1937_v39 = vmul.f32 %v1880_v34, %v11275_v26 }
 0x5cd   :  { %v2142_v42 = vadd.f32 %v8128_v32, %v1935_v20  ;;  %v2136_v19 = vpop.f32.mrb[51].mxu1  ;;  %v11446_v58 = vsel %vm2222_vm11, %v2206_v21, -1e+30  ;;  %v1936_v32 = vmul.f32 %v1875_v31, %v11269_v17  ;;  %v1939_v31 = vmul.f32 %v1890_v0, %v11285_v60 }
 0x5ce   :  { %v2137_v11 = vadd.f32 %v2136_v19, %v1934_v23  ;;  %2255 = vmax.xlane.f32.xlu0 %v11446_v58  ;;  %v11452_v49 = vsel %vm2221_vm14, %v2205_v1, -1e+30  ;;  %v1938_v19 = vmul.f32 %v1885_v16, %v11281_v28  ;;  %v1941_v16 = vmul.f32 %v1900_v12, %v11295_v10 }
 0x5cf   :  { %v2208_v18 = vmul.f32 0.25, %v2142_v42  ;;  %2253 = vmax.xlane.f32.xlu1 %v11452_v49 }
 0x5d0   :  { %v2207_v47 = vmul.f32 0.25, %v2137_v11  ;;  %v8131_v20 = vpop.f32.mrb[52].mxu1 }
 0x5d1   :  { %v2152_v21 = vadd.f32 %v8131_v20, %v1937_v39  ;;  %v2146_v23 = vpop.f32.mrb[53].mxu1  ;;  %v11461_v1 = vsel %vm14329_vm15, %v2208_v18, -1e+30  ;;  %v1915_v18 = vpop.permute.xlu1 %1914  ;;  %vm14337_vm15 = vcmp.gt.f32.partialorder %v11317_v29, 0.0 }
 0x5d2   :  { %v2147_v34 = vadd.f32 %v2146_v23, %v1936_v32  ;;  %v11467_v42 = vsel %vm14315_vm13, %v2207_v47, -1e+30  ;;  %vm14317_vm13 = vcmp.gt.f32.partialorder %v11279_v43, 0.0 }
 0x5d3   :  { %v2210_v27 = vmul.f32 0.25, %v2152_v21  ;;  %2257 = vmax.xlane.f32.xlu0 %v11467_v42  ;;  %2259 = vmax.xlane.f32.xlu1 %v11461_v1 }
 0x5d4   :  { %v2209_v11 = vmul.f32 0.25, %v2147_v34  ;;  %v8134_v39 = vpop.f32.mrb[54].mxu1  ;;  %v1940_v34 = vmul.f32 %v1895_v35, %v11291_v57 }
 0x5d5   :  { %v2162_v20 = vadd.f32 %v8134_v39, %v1939_v31  ;;  %v2156_v32 = vpop.f32.mrb[55].mxu1  ;;  %v11477_v47 = vsel %vm14314_vm12, %v2210_v27, -1e+30  ;;  %v1910_v31 = vpop.permute.xlu0 %1909  ;;  %vm14316_vm12 = vcmp.gt.f32.partialorder %v11287_v48, 0.0 }
 0x5d6   :  { %v2157_v0 = vadd.f32 %v2156_v32, %v1938_v19  ;;  %v11481_v21 = vsel %vm14324_vm10, %v2209_v11, -1e+30  ;;  %v1943_v35 = vmul.f32 %v1910_v31, %v11303_v4  ;;  %v11498_v32 = vpop.permute.xlu1 %2782  ;;  %vm14339_vm10 = vcmp.gt.f32.partialorder %v11313_v37, 0.0 }
 0x5d7   :  { %v2212_v23 = vmul.f32 0.25, %v2162_v20  ;;  %2261 = vmax.xlane.f32.xlu0 %v11481_v21  ;;  %2263 = vmax.xlane.f32.xlu1 %v11477_v47  ;;  %14594 = vst [vmem:[#allocation111_spill] sm:$0xff] %v11498_v32  ;;  %v1945_v32 = vmul.f32 %v1920_v52, %v11311_v24 }
 0x5d8   :  { %v2211_v39 = vmul.f32 0.25, %v2157_v0  ;;  %v8137_v46 = vpop.f32.mrb[56].mxu1 }
 0x5d9   :  { %v2172_v27 = vadd.f32 %v8137_v46, %v1941_v16  ;;  %v2166_v19 = vpop.f32.mrb[57].mxu1  ;;  %v11491_v11 = vsel %vm14316_vm12, %v2212_v23, -1e+30  ;;  %v1942_v46 = vmul.f32 %v11439_v50, %v11299_v2  ;;  %vm14320_vm12 = vcmp.gt.f32.partialorder %v11297_v25, 0.0 }
 0x5da   :  { %v2167_v12 = vadd.f32 %v2166_v19, %v1940_v34  ;;  %v11495_v20 = vsel %vm14317_vm13, %v2211_v39, -1e+30  ;;  %vm14321_vm13 = vcmp.gt.f32.partialorder %v11293_v13, 0.0 }
 0x5db   :  { %v2214_v0 = vmul.f32 0.25, %v2172_v27  ;;  %2265 = vmax.xlane.f32.xlu0 %v11495_v20  ;;  %2267 = vmax.xlane.f32.xlu1 %v11491_v11 }
 0x5dc   :  { %v2213_v16 = vmul.f32 0.25, %v2167_v12  ;;  %v8140_v23 = vpop.f32.mrb[58].mxu1  ;;  %v1930_v12 = vpop.permute.xlu0 %1929 }
 0x5dd   :  { %v2182_v34 = vadd.f32 %v8140_v23, %v1943_v35  ;;  %v2176_v19 = vpop.f32.mrb[59].mxu1  ;;  %v11508_v31 = vsel %vm14320_vm12, %v2214_v0, -1e+30  ;;  %v1944_v35 = vmul.f32 %v1915_v18, %v11307_v36  ;;  %vm14327_vm12 = vcmp.gt.f32.partialorder %v11305_v38, 0.0  ;;  %v1925_v0 = vpop.permute.xlu1 %1924 }
 0x5de   :  { %v2177_v39 = vadd.f32 %v2176_v19, %v1942_v46  ;;  %v11512_v27 = vsel %vm14321_vm13, %v2213_v16, -1e+30  ;;  %vm14328_vm13 = vcmp.gt.f32.partialorder %v11301_v5, 0.0  ;;  %v1947_v18 = vmul.f32 %v1930_v12, %v11319_v61 }
 0x5df   :  { %v2216_v50 = vmul.f32 0.25, %v2182_v34  ;;  %2269 = vmax.xlane.f32.xlu0 %v11512_v27  ;;  %2271 = vmax.xlane.f32.xlu1 %v11508_v31 }
 0x5e0   :  { %v2215_v23 = vmul.f32 0.25, %v2177_v39  ;;  %v8143_v2 = vpop.f32.mrb[60].mxu1 }
 0x5e1   :  { %v2192_v46 = vadd.f32 %v8143_v2, %v1945_v32  ;;  %v2186_v19 = vpop.f32.mrb[61].mxu1  ;;  %v11522_v52 = vsel %vm14327_vm12, %v2216_v50, -1e+30  ;;  %v1946_v2 = vmul.f32 %v1925_v0, %v11315_v55  ;;  %vm14338_vm12 = vcmp.gt.f32.partialorder %v11309_v54, 0.0 }
 0x5e2   :  { %v2187_v16 = vadd.f32 %v2186_v19, %v1944_v35  ;;  %v11526_v34 = vsel %vm14328_vm13, %v2215_v23, -1e+30  ;;  %vm14336_vm13 = vcmp.gt.f32.partialorder %v11321_v3, 0.0 }
 0x5e3   :  { %v2218_v39 = vmul.f32 0.25, %v2192_v46  ;;  %2273 = vmax.xlane.f32.xlu0 %v11526_v34  ;;  %2275 = vmax.xlane.f32.xlu1 %v11522_v52 }
 0x5e4   :  { %v2217_v32 = vmul.f32 0.25, %v2187_v16  ;;  %v8146_v36 = vpop.f32.mrb[62].mxu1 }
 0x5e5   :  { %v2202_v50 = vadd.f32 %v8146_v36, %v1947_v18  ;;  %v2196_v24 = vpop.f32.mrb[63].mxu1  ;;  %v11536_v35 = vsel %vm14339_vm10, %v2218_v39, -1e+30 }
 0x5e6   :  { %v2197_v12 = vadd.f32 %v2196_v24, %v1946_v2  ;;  %v11540_v23 = vsel %vm14338_vm12, %v2217_v32, -1e+30 }
 0x5e7   :  { %v2220_v46 = vmul.f32 0.25, %v2202_v50  ;;  %2277 = vmax.xlane.f32.xlu0 %v11540_v23  ;;  %2279 = vmax.xlane.f32.xlu1 %v11536_v35 }
 0x5e8   :  { %v2219_v0 = vmul.f32 0.25, %v2197_v12 }
 0x5e9   :  { %v11548_v36 = vsel %vm14336_vm13, %v2220_v46, -1e+30 }
 0x5ea   :  { %v11552_v24 = vsel %vm14337_vm15, %v2219_v0, -1e+30 }
 0x5eb   :  { %2281 = vmax.xlane.f32.xlu0 %v11552_v24  ;;  %2283 = vmax.xlane.f32.xlu1 %v11548_v36 }
 0x5fc   :  { %2786 = vrot.lane.b32.xlu1 %v11386_v9, %s10123_s30 }
 0x601   :  { %2784 = vrot.lane.b32.xlu0 %v11377_v56, %s10123_s30 }
 0x65b   :  { %v2256_v19 = vpop.xlane.xlu0 %2255 }
 0x65c   :  { %v2286_v16 = vsub.f32 %v11446_v58, %v2256_v19  ;;  %v2254_v18 = vpop.xlane.xlu1 %2253 }
 0x65d   :  { %v2285_v39 = vsub.f32 %v11452_v49, %v2254_v18 }
 0x65e   :  { %v2303_v2 = vmul.f32 1.442695, %v2286_v16 }
 0x65f   :  { %v2301_v32 = vmul.f32 1.442695, %v2285_v39 }
 0x660   :  { %9695 = vpow2.f32 %v2303_v2  ;;  %v2258_v50 = vpop.xlane.xlu0 %2257  ;;  %v2260_v12 = vpop.xlane.xlu1 %2259 }
 0x661   :  { %9697 = vpow2.f32 %v2301_v32  ;;  %v2287_v46 = vsub.f32 %v11467_v42, %v2258_v50  ;;  %v2288_v0 = vsub.f32 %v11461_v1, %v2260_v12 }
 0x663   :  { %v2307_v9 = vmul.f32 1.442695, %v2288_v0  ;;  %v2305_v55 = vmul.f32 1.442695, %v2287_v46 }
 0x664   :  { %v2262_v61 = vpop.xlane.xlu0 %2261  ;;  %v2264_v56 = vpop.xlane.xlu1 %2263 }
 0x665   :  { %v2289_v57 = vsub.f32 %v11481_v21, %v2262_v61  ;;  %v2290_v58 = vsub.f32 %v11477_v47, %v2264_v56  ;;  %9699 = vpow2.f32 %v2307_v9 }
 0x666   :  { %9701 = vpow2.f32 %v2305_v55 }
 0x667   :  { %v2309_v49 = vmul.f32 1.442695, %v2289_v57  ;;  %v2311_v19 = vmul.f32 1.442695, %v2290_v58 }
 0x668   :  { %v2266_v16 = vpop.xlane.xlu0 %2265  ;;  %v2268_v18 = vpop.xlane.xlu1 %2267 }
 0x669   :  { %9703 = vpow2.f32 %v2309_v49  ;;  %v2291_v39 = vsub.f32 %v11495_v20, %v2266_v16  ;;  %v2292_v42 = vsub.f32 %v11491_v11, %v2268_v18 }
 0x66a   :  { %v9696_v1 = vpop.eup %9695  ;;  %9705 = vpow2.f32 %v2311_v19 }
 0x66b   :  { %v9698_v2 = vpop.eup %9697  ;;  %v2315_v32 = vmul.f32 1.442695, %v2292_v42  ;;  %v11569_v50 = vmul.f32 %v9696_v1, %v11245_v7  ;;  %v2313_v61 = vmul.f32 1.442695, %v2291_v39 }
 0x66c   :  { %v2270_v47 = vpop.xlane.xlu0 %2269  ;;  %v2272_v21 = vpop.xlane.xlu1 %2271  ;;  %v11572_v55 = vmul.f32 %v9698_v2, %v11229_v62 }
 0x66d   :  { %v2293_v57 = vsub.f32 %v11512_v27, %v2270_v47  ;;  %v2294_v12 = vsub.f32 %v11508_v31, %v2272_v21  ;;  %2351 = vadd.xlane.f32.xlu0 %v11569_v50  ;;  %9707 = vpow2.f32 %v2315_v32 }
 0x66e   :  { %2349 = vadd.xlane.f32.xlu1 %v11572_v55  ;;  %9709 = vpow2.f32 %v2313_v61 }
 0x66f   :  { %v2319_v11 = vmul.f32 1.442695, %v2294_v12  ;;  %v9700_v20 = vpop.eup %9699  ;;  %v2317_v46 = vmul.f32 1.442695, %v2293_v57 }
 0x670   :  { %v2274_v0 = vpop.xlane.xlu0 %2273  ;;  %v2276_v9 = vpop.xlane.xlu1 %2275  ;;  %v11581_v49 = vmul.f32 %v9700_v20, %v11261_v30 }
 0x671   :  { %v2295_v56 = vsub.f32 %v11526_v34, %v2274_v0  ;;  %v2296_v58 = vsub.f32 %v11522_v52, %v2276_v9  ;;  %v9702_v27 = vpop.eup %9701  ;;  %9711 = vpow2.f32 %v2319_v11 }
 0x672   :  { %2355 = vadd.xlane.f32.xlu1 %v11581_v49  ;;  %9713 = vpow2.f32 %v2317_v46  ;;  %v11589_v52 = vmul.f32 %v9702_v27, %v11253_v59 }
 0x673   :  { %v9704_v31 = vpop.eup %9703  ;;  %v2323_v19 = vmul.f32 1.442695, %v2296_v58  ;;  %v2321_v16 = vmul.f32 1.442695, %v2295_v56 }
 0x674   :  { %v2278_v18 = vpop.xlane.xlu0 %2277  ;;  %v2280_v39 = vpop.xlane.xlu1 %2279  ;;  %v11585_v42 = vmul.f32 %v9704_v31, %v11265_v53  ;;  %v14618_v53 = vld [vmem:[#allocation105_spill] sm:$0xff] }
 0x675   :  { %v2298_v34 = vsub.f32 %v11536_v35, %v2280_v39  ;;  %v9706_v1 = vpop.eup %9705  ;;  %9715 = vpow2.f32 %v2323_v19  ;;  %v2297_v32 = vsub.f32 %v11540_v23, %v2278_v18 }
 0x676   :  { %2357 = vadd.xlane.f32.xlu0 %v11585_v42  ;;  %2353 = vadd.xlane.f32.xlu1 %v11589_v52  ;;  %9717 = vpow2.f32 %v2321_v16  ;;  %v11596_v35 = vmul.f32 %v9706_v1, %v11273_v41 }
 0x677   :  { %v9708_v2 = vpop.eup %9707  ;;  %v2327_v61 = vmul.f32 1.442695, %v2298_v34  ;;  %v2325_v0 = vmul.f32 1.442695, %v2297_v32 }
 0x678   :  { %v2284_v47 = vpop.xlane.xlu1 %2283  ;;  %v2282_v21 = vpop.xlane.xlu0 %2281  ;;  %v11599_v12 = vmul.f32 %v9708_v2, %v11287_v48  ;;  %v14616_v48 = vld [vmem:[#allocation103_spill] sm:$0xff] }
 0x679   :  { %v2300_v57 = vsub.f32 %v11548_v36, %v2284_v47  ;;  %v9710_v11 = vpop.eup %9709  ;;  %9719 = vpow2.f32 %v2327_v61  ;;  %v2299_v23 = vsub.f32 %v11552_v24, %v2282_v21  ;;  %v9968_v61 = vld [vmem:[%s14222_s3 + $0x8] sm:$0xff] }
 0x67a   :  { %2359 = vadd.xlane.f32.xlu1 %v11596_v35  ;;  %2363 = vadd.xlane.f32.xlu0 %v11599_v12  ;;  %v11605_v9 = vmul.f32 %v9710_v11, %v11279_v43  ;;  %v1154_v47 = vmul.f32 %v9968_v61, %v11078_v33  ;;  %v9969_v11 = vld [vmem:[%s14222_s3 + $0x18] sm:$0xff] }
 0x67b   :  { %v2331_v20 = vmul.f32 1.442695, %v2300_v57  ;;  %v9712_v46 = vpop.eup %9711  ;;  %v2329_v27 = vmul.f32 1.442695, %v2299_v23  ;;  %v1156_v33 = vmul.f32 %v9969_v11, %v11089_v6  ;;  %v14595_v6 = vld [vmem:[#allocation102_spill] sm:$0xff] }
 0x67c   :  { %v11608_v36 = vmul.f32 %v9712_v46, %v11297_v25  ;;  %v9714_v56 = vpop.eup %9713  ;;  %v11666_v23 = vpop.permute.xlu0 %2784  ;;  %v14614_v25 = vld [vmem:[#allocation41_spill] sm:$0xff] }
 0x67d   :  { %9721 = vpow2.f32 %v2331_v20  ;;  %v11613_v31 = vmul.f32 %v9714_v56, %v11293_v13  ;;  %v9970_v20 = vld [vmem:[%s14222_s3] sm:$0xff] }
 0x67e   :  { %2361 = vadd.xlane.f32.xlu1 %v11605_v9  ;;  %2367 = vadd.xlane.f32.xlu0 %v11608_v36  ;;  %9723 = vpow2.f32 %v2325_v0  ;;  %v1153_v46 = vmul.f32 %v9970_v20, %v11057_v8  ;;  %v11668_v8 = vpop.permute.xlu1 %2786 }
 0x67f   :  { %v9716_v58 = vpop.eup %9715  ;;  %9725 = vpow2.f32 %v2329_v27  ;;  %v14597_v27 = vld [vmem:[#allocation35_spill] sm:$0xff] }
 0x680   :  { %v11616_v24 = vmul.f32 %v9716_v58, %v11305_v38  ;;  %v9718_v19 = vpop.eup %9717  ;;  %v14613_v38 = vld [vmem:[#allocation43_spill] sm:$0xff] }
 0x681   :  { %v11621_v16 = vmul.f32 %v9718_v19, %v11301_v5 }
 0x682   :  { %2365 = vadd.xlane.f32.xlu1 %v11613_v31  ;;  %2371 = vadd.xlane.f32.xlu0 %v11616_v24 }
 0x683   :  { %v9720_v18 = vpop.eup %9719 }
 0x684   :  { %v11625_v34 = vmul.f32 %v9720_v18, %v11313_v37 }
 0x686   :  { %2369 = vadd.xlane.f32.xlu0 %v11621_v16 }
 0x687   :  { %v9722_v39 = vpop.eup %9721 }
 0x688   :  { %v11628_v1 = vmul.f32 %v9722_v39, %v11321_v3  ;;  %v9724_v2 = vpop.eup %9723  ;;  %v9973_v39 = vld [vmem:[%s14222_s3 + $0x28] sm:$0xff] }
 0x689   :  { %v11633_v32 = vmul.f32 %v9724_v2, %v11309_v54  ;;  %v9726_v21 = vpop.eup %9725  ;;  %v14598_v2 = vld [vmem:[#allocation33_spill] sm:$0xff] }
 0x68a   :  { %2375 = vadd.xlane.f32.xlu0 %v11625_v34  ;;  %2379 = vadd.xlane.f32.xlu1 %v11628_v1  ;;  %v11641_v57 = vmul.f32 %v9726_v21, %v11317_v29  ;;  %v1158_v61 = vmul.f32 %v9973_v39, %v14598_v2  ;;  %v14599_v21 = vld [vmem:[#allocation50_spill] sm:$0xff] }
 0x68e   :  { %2373 = vadd.xlane.f32.xlu0 %v11633_v32  ;;  %1171 = vadd.xlane.f32.xlu1 %v1154_v47  ;;  %v9974_v47 = vld [vmem:[%s14222_s3 + $0x30] sm:$0xff] }
 0x68f   :  { %v1159_v11 = vmul.f32 %v9974_v47, %v14599_v21 }
 0x692   :  { %2377 = vadd.xlane.f32.xlu0 %v11641_v57 }
 0x69f   :  { %2792 = vrot.lane.b32.xlu1 %v11391_v14, %s10123_s30  ;;  %v9971_v14 = vld [vmem:[%s14222_s3 + $0x20] sm:$0xff] }
 0x6a0   :  { %v1157_v0 = vmul.f32 %v9971_v14, %v11093_v15  ;;  %v9972_v15 = vld [vmem:[%s14222_s3 + $0x10] sm:$0xff]  ;;  %v9975_v14 = vld [vmem:[%s14222_s3 + $0x38] sm:$0xff] }
 0x6a1   :  { %v1155_v19 = vmul.f32 %v9972_v15, %v14597_v27  ;;  %v9976_v27 = vld [vmem:[%s14222_s3 + $0x40] sm:$0xff] }
 0x6a8   :  { %2788 = vrot.lane.b32.xlu0 %v11382_v45, %s10123_s30  ;;  %v14596_v45 = vld [vmem:[#allocation101_spill] sm:$0xff] }
 0x6c3   :  { %1175 = vadd.xlane.f32.xlu1 %v1156_v33 }
 0x6c7   :  { %1169 = vadd.xlane.f32.xlu0 %v1153_v46  ;;  %1177 = vadd.xlane.f32.xlu1 %v1157_v0  ;;  %v14600_v0 = vld [vmem:[#allocation25_spill] sm:$0xff] }
 0x6d8   :  { %2794 = vrot.lane.b32.xlu1 %v11404_v44, %s10123_s30 }
 0x6dc   :  { %2796 = vrot.lane.b32.xlu1 %v14595_v6, %s10123_s30  ;;  %v1160_v6 = vmul.f32 %v9975_v14, %v14600_v0 }
 0x6dd   :  { %2790 = vrot.lane.b32.xlu0 %v14596_v45, %s10123_s30 }
 0x6fa   :  { %v2352_v56 = vpop.xlane.xlu0 %2351 }
 0x6fb   :  { %vm2382_vm13 = vcmp.gt.f32.partialorder %v2352_v56, 0.0  ;;  %v2350_v58 = vpop.xlane.xlu1 %2349 }
 0x6fc   :  { %v2398_v44 = vsel %vm2382_vm13, %v2352_v56, 1.0  ;;  %vm2381_vm15 = vcmp.gt.f32.partialorder %v2350_v58, 0.0  ;;  %1173 = vadd.xlane.f32.xlu0 %v1155_v19  ;;  %v14601_v19 = vld [vmem:[#allocation52_spill] sm:$0xff] }
 0x6fd   :  { %9727 = vrcp.f32 %v2398_v44  ;;  %v2397_v18 = vsel %vm2381_vm15, %v2350_v58, 1.0  ;;  %v1161_v44 = vmul.f32 %v9976_v27, %v14601_v19 }
 0x6fe   :  { %9729 = vrcp.f32 %v2397_v18 }
 0x6ff   :  { %v2356_v33 = vpop.xlane.xlu1 %2355 }
 0x700   :  { %vm2384_vm12 = vcmp.gt.f32.partialorder %v2356_v33, 0.0  ;;  %1179 = vadd.xlane.f32.xlu0 %v1158_v61  ;;  %1181 = vadd.xlane.f32.xlu1 %v1159_v11 }
 0x701   :  { %v2400_v20 = vsel %vm2384_vm12, %v2356_v33, 1.0 }
 0x702   :  { %9731 = vrcp.f32 %v2400_v20  ;;  %v9977_v20 = vld [vmem:[%s14222_s3 + $0x48] sm:$0xff] }
 0x703   :  { %v2358_v46 = vpop.xlane.xlu0 %2357  ;;  %v2354_v45 = vpop.xlane.xlu1 %2353 }
 0x704   :  { %vm2385_vm15 = vcmp.gt.f32.partialorder %v2358_v46, 0.0  ;;  %vm2383_vm13 = vcmp.gt.f32.partialorder %v2354_v45, 0.0  ;;  %1183 = vadd.xlane.f32.xlu0 %v1160_v6 }
 0x705   :  { %v2401_v56 = vsel %vm2385_vm15, %v2358_v46, 1.0  ;;  %v2399_v58 = vsel %vm2383_vm13, %v2354_v45, 1.0  ;;  %v14602_v46 = vld [vmem:[#allocation51_spill] sm:$0xff] }
 0x706   :  { %9733 = vrcp.f32 %v2401_v56  ;;  %v1162_v14 = vmul.f32 %v9977_v20, %v14602_v46 }
 0x707   :  { %v9728_v15 = vpop.eup %9727  ;;  %9735 = vrcp.f32 %v2399_v58  ;;  %v2364_v39 = vpop.xlane.xlu0 %2363  ;;  %v9978_v58 = vld [vmem:[%s14222_s3 + $0x50] sm:$0xff] }
 0x708   :  { %v9730_v18 = vpop.eup %9729  ;;  %v2360_v2 = vpop.xlane.xlu1 %2359  ;;  %v2430_v61 = vmul.f32 %v9728_v15, %v11569_v50  ;;  %vm2388_vm12 = vcmp.gt.f32.partialorder %v2364_v39, 0.0  ;;  %1185 = vadd.xlane.f32.xlu0 %v1161_v44  ;;  %v14603_v15 = vld [vmem:[#allocation39_spill] sm:$0xff] }
 0x709   :  { %vm2386_vm10 = vcmp.gt.f32.partialorder %v2360_v2, 0.0  ;;  %v2429_v47 = vmul.f32 %v9730_v18, %v11572_v55  ;;  %v2404_v21 = vsel %vm2388_vm12, %v2364_v39, 1.0  ;;  %v1163_v27 = vmul.f32 %v9978_v58, %v14603_v15 }
 0x70a   :  { %v2402_v11 = vsel %vm2386_vm10, %v2360_v2, 1.0  ;;  %v2446_v33 = vmul.f32 %v2430_v61, %v11251_v51  ;;  %9737 = vrcp.f32 %v2404_v21 }
 0x70b   :  { %8179 = vmatprep.mubr.f32.mxu0 %v2429_v47  ;;  %9739 = vrcp.f32 %v2402_v11  ;;  %v2368_v0 = vpop.xlane.xlu0 %2367  ;;  %v9979_v11 = vld [vmem:[%s14222_s3 + $0x58] sm:$0xff] }
 0x70c   :  { %v2362_v50 = vpop.xlane.xlu1 %2361  ;;  %2463 = vadd.xlane.f32.xlu1 %v2446_v33  ;;  %8180 = vmatmul.mubr.f32.vlgmr.msra.gmra.mrb[48].mxu0 %v2430_v61  ;;  %v9732_v6 = vpop.eup %9731  ;;  %vm2390_vm15 = vcmp.gt.f32.partialorder %v2368_v0, 0.0  ;;  %v14604_v33 = vld [vmem:[#allocation54_spill] sm:$0xff] }
 0x70d   :  { %vm2387_vm13 = vcmp.gt.f32.partialorder %v2362_v50, 0.0  ;;  %1187 = vadd.xlane.f32.xlu0 %v1162_v14  ;;  %v2406_v55 = vsel %vm2390_vm15, %v2368_v0, 1.0  ;;  %v2432_v56 = vmul.f32 %v9732_v6, %v11581_v49  ;;  %v1164_v20 = vmul.f32 %v9979_v11, %v14604_v33 }
 0x70e   :  { %v2403_v45 = vsel %vm2387_vm13, %v2362_v50, 1.0  ;;  %9741 = vrcp.f32 %v2406_v55 }
 0x70f   :  { %9743 = vrcp.f32 %v2403_v45  ;;  %v2372_v44 = vpop.xlane.xlu0 %2371  ;;  %v2448_v39 = vmul.f32 %v2432_v56, %v11263_v40 }
 0x710   :  { %v9734_v19 = vpop.eup %9733  ;;  %v2366_v18 = vpop.xlane.xlu1 %2365  ;;  %vm2392_vm10 = vcmp.gt.f32.partialorder %v2372_v44, 0.0 }
 0x711   :  { %v9736_v2 = vpop.eup %9735  ;;  %vm2389_vm12 = vcmp.gt.f32.partialorder %v2366_v18, 0.0  ;;  %1189 = vadd.xlane.f32.xlu0 %v1163_v27  ;;  %v2408_v61 = vsel %vm2392_vm10, %v2372_v44, 1.0  ;;  %2467 = vadd.xlane.f32.xlu1 %v2448_v39  ;;  %v2433_v14 = vmul.f32 %v9734_v19, %v11585_v42 }
 0x712   :  { %v2405_v21 = vsel %vm2389_vm12, %v2366_v18, 1.0  ;;  %v2431_v49 = vmul.f32 %v9736_v2, %v11589_v52  ;;  %9745 = vrcp.f32 %v2408_v61  ;;  %v2445_v52 = vmul.f32 %v2429_v47, %v11241_v63 }
 0x713   :  { %9747 = vrcp.f32 %v2405_v21  ;;  %v2370_v46 = vpop.xlane.xlu0 %2369 }
 0x714   :  { %8182 = vmatprep.mubr.f32.mxu0 %v2431_v49  ;;  %v9738_v0 = vpop.eup %9737  ;;  %vm2391_vm15 = vcmp.gt.f32.partialorder %v2370_v46, 0.0 }
 0x715   :  { %1191 = vadd.xlane.f32.xlu0 %v1164_v20  ;;  %8183 = vmatmul.mubr.f32.gmra.mrb[50].mxu0 %v2432_v56  ;;  %v9740_v50 = vpop.eup %9739  ;;  %v2407_v6 = vsel %vm2391_vm15, %v2370_v46, 1.0  ;;  %v2436_v27 = vmul.f32 %v9738_v0, %v11599_v12 }
 0x716   :  { %8185 = vmatprep.mubr.f32.mxu0 %v2433_v14  ;;  %9749 = vrcp.f32 %v2407_v6  ;;  %v2434_v55 = vmul.f32 %v9740_v50, %v11596_v35  ;;  %v2447_v35 = vmul.f32 %v2431_v49, %v11257_v22 }
 0x717   :  { %v2376_v45 = vpop.xlane.xlu0 %2375  ;;  %v2380_v58 = vpop.xlane.xlu1 %2379  ;;  %v2452_v2 = vmul.f32 %v2436_v27, %v11285_v60 }
 0x718   :  { %v9742_v15 = vpop.eup %9741  ;;  %vm2394_vm13 = vcmp.gt.f32.partialorder %v2376_v45, 0.0  ;;  %vm2396_vm10 = vcmp.gt.f32.partialorder %v2380_v58, 0.0  ;;  %v2450_v42 = vmul.f32 %v2434_v55, %v11275_v26 }
 0x719   :  { %2461 = vadd.xlane.f32.xlu0 %v2445_v52  ;;  %8186 = vmatmul.mubr.f32.gmra.mrb[52].mxu0 %v2434_v55  ;;  %v9744_v56 = vpop.eup %9743  ;;  %v2410_v19 = vsel %vm2394_vm13, %v2376_v45, 1.0  ;;  %v2412_v44 = vsel %vm2396_vm10, %v2380_v58, 1.0  ;;  %v2438_v61 = vmul.f32 %v9742_v15, %v11608_v36  ;;  %v14605_v55 = vld [vmem:[#allocation69_spill] sm:$0xff]  ;;  %v14606_v45 = vld [vmem:[#allocation79_spill] sm:$0xff] }
 0x71a   :  { %9751 = vrcp.f32 %v2410_v19  ;;  %2471 = vadd.xlane.f32.xlu1 %v2450_v42  ;;  %v2435_v47 = vmul.f32 %v9744_v56, %v11605_v9  ;;  %v2449_v9 = vmul.f32 %v2433_v14, %v11269_v17 }
 0x71b   :  { %9753 = vrcp.f32 %v2412_v44  ;;  %v2374_v18 = vpop.xlane.xlu0 %2373  ;;  %v2454_v20 = vmul.f32 %v2438_v61, %v11295_v10  ;;  %v14608_v44 = vld [vmem:[#allocation83_spill] sm:$0xff] }
 0x71c   :  { %v9746_v39 = vpop.eup %9745  ;;  %vm2393_vm12 = vcmp.gt.f32.partialorder %v2374_v18, 0.0  ;;  %8188 = vmatprep.mubr.f32.mxu0 %v2435_v47  ;;  %v2451_v50 = vmul.f32 %v2435_v47, %v11281_v28  ;;  %v14768_v28 = vld [vmem:[#allocation45_spill] sm:$0xff] }
 0x71d   :  { %2465 = vadd.xlane.f32.xlu0 %v2447_v35  ;;  %v9748_v12 = vpop.eup %9747  ;;  %v2409_v21 = vsel %vm2393_vm12, %v2374_v18, 1.0  ;;  %8189 = vmatmul.mubr.f32.gmra.mrb[54].mxu0 %v2436_v27  ;;  %v2440_v46 = vmul.f32 %v9746_v39, %v11616_v24  ;;  %v14607_v27 = vld [vmem:[#allocation73_spill] sm:$0xff] }
 0x71e   :  { %9755 = vrcp.f32 %v2409_v21  ;;  %2475 = vadd.xlane.f32.xlu1 %v2452_v2  ;;  %v2437_v11 = vmul.f32 %v9748_v12, %v11613_v31  ;;  %v14609_v35 = vld [vmem:[#allocation77_spill] sm:$0xff] }
 0x71f   :  { %v2378_v49 = vpop.xlane.xlu0 %2377  ;;  %v2456_v14 = vmul.f32 %v2440_v46, %v11303_v4  ;;  %v14615_v4 = vld [vmem:[#allocation104_spill] sm:$0xff] }
 0x720   :  { %v9750_v33 = vpop.eup %9749  ;;  %vm2395_vm15 = vcmp.gt.f32.partialorder %v2378_v49, 0.0  ;;  %8191 = vmatprep.mubr.f32.mxu0 %v2437_v11  ;;  %v2453_v24 = vmul.f32 %v2437_v11, %v14605_v55 }
 0x721   :  { %2469 = vadd.xlane.f32.xlu0 %v2449_v9  ;;  %v2411_v0 = vsel %vm2395_vm15, %v2378_v49, 1.0  ;;  %8192 = vmatmul.mubr.f32.gmra.mrb[56].mxu0 %v2438_v61  ;;  %v2439_v36 = vmul.f32 %v9750_v33, %v11621_v16 }
 0x722   :  { %9757 = vrcp.f32 %v2411_v0  ;;  %2479 = vadd.xlane.f32.xlu1 %v2454_v20 }
 0x723   :  { %8194 = vmatprep.mubr.f32.mxu0 %v2439_v36  ;;  %v2455_v56 = vmul.f32 %v2439_v36, %v14607_v27  ;;  %v11738_v61 = vpop.permute.xlu0 %2788 }
 0x724   :  { %v9752_v31 = vpop.eup %9751 }
 0x725   :  { %2473 = vadd.xlane.f32.xlu0 %v2451_v50  ;;  %v9754_v6 = vpop.eup %9753  ;;  %8195 = vmatmul.mubr.f32.gmra.mrb[58].mxu0 %v2440_v46  ;;  %v2442_v52 = vmul.f32 %v9752_v31, %v11625_v34 }
 0x726   :  { %2483 = vadd.xlane.f32.xlu1 %v2456_v14  ;;  %v2444_v16 = vmul.f32 %v9754_v6, %v11628_v1  ;;  %v14610_v1 = vld [vmem:[#allocation81_spill] sm:$0xff] }
 0x727   :  { %v2458_v58 = vmul.f32 %v2442_v52, %v14606_v45  ;;  %v11767_v14 = vld [vmem:[%s14224_s5 + $0x1] ss:$0 sm:$0xff] }
 0x728   :  { %v9756_v15 = vpop.eup %9755  ;;  %v2460_v34 = vmul.f32 %v2444_v16, %v14608_v44 }
 0x729   :  { %2477 = vadd.xlane.f32.xlu0 %v2453_v24  ;;  %v2441_v42 = vmul.f32 %v9756_v15, %v11633_v32  ;;  %v11734_v32 = vpop.xlane.xlu1 %1171  ;;  %v2848_v24 = vld [vmem:[#allocation2 + $0x28] sm:$0xff] }
 0x72a   :  { %2487 = vadd.xlane.f32.xlu1 %v2458_v58 }
 0x72b   :  { %8197 = vmatprep.mubr.f32.mxu0 %v2441_v42  ;;  %v2457_v18 = vmul.f32 %v2441_v42, %v14609_v35 }
 0x72c   :  { %v9758_v19 = vpop.eup %9757  ;;  %8198 = vmatmul.mubr.f32.gmra.mrb[60].mxu0 %v2442_v52  ;;  %v2847_v52 = vld [vmem:[#allocation2 + $0x20] sm:$0xff] }
 0x72d   :  { %2481 = vadd.xlane.f32.xlu0 %v2455_v56  ;;  %v2443_v47 = vmul.f32 %v9758_v19, %v11641_v57  ;;  %v11736_v2 = vpop.permute.xlu1 %2792  ;;  %v8918_v15 = vpack.c.bf16 %v2848_v24, %v2847_v52 }
 0x72e   :  { %2491 = vadd.xlane.f32.xlu1 %v2460_v34 }
 0x72f   :  { %8200 = vmatprep.mubr.f32.mxu0 %v2443_v47  ;;  %v2459_v39 = vmul.f32 %v2443_v47, %v14610_v1  ;;  %8923 = vmatprep.subr.bf16.mxu1 %v8918_v15 }
 0x730   :  { %8201 = vmatmul.mubr.f32.gmra.mrb[62].mxu0 %v2444_v16  ;;  %8919 = vmatprep.subr.bf16.mxu0 %v8918_v15 }
 0x731   :  { %2485 = vadd.xlane.f32.xlu0 %v2457_v18  ;;  %8925 = vmatpush3.bf16.msra.mxu1 %v8918_v15 }
 0x732   :  { %8921 = vmatpush3.bf16.msra.mxu0 %v8918_v15 }
 0x735   :  { %2489 = vadd.xlane.f32.xlu0 %v2459_v39 }
 0x750   :  { %v11740_v12 = vpop.xlane.xlu1 %1175 }
 0x754   :  { %v11742_v21 = vpop.xlane.xlu0 %1169  ;;  %v11744_v57 = vpop.xlane.xlu1 %1177 }
 0x758   :  { %v11746_v11 = vpop.permute.xlu0 %2790  ;;  %v11750_v49 = vpop.permute.xlu1 %2794 }
 0x75c   :  { %v11754_v20 = vpop.permute.xlu1 %2796 }
 0x789   :  { %v11748_v9 = vpop.xlane.xlu0 %1173 }
 0x78d   :  { %v11752_v33 = vpop.xlane.xlu0 %1179  ;;  %v11758_v0 = vpop.xlane.xlu1 %1181 }
 0x791   :  { %v11756_v46 = vpop.xlane.xlu0 %1183 }
 0x795   :  { %v11760_v36 = vpop.xlane.xlu0 %1185 }
 0x799   :  { %v2464_v50 = vpop.xlane.xlu1 %2463 }
 0x79a   :  { %v11762_v31 = vpop.xlane.xlu0 %1187  ;;  %v2494_v6 = vmul.f32 %v11767_v14, %v2464_v50 }
 0x79c   :  { %2575 = vrot.lane.b32.xlu1 %v2494_v6, %s10124_s9 }
 0x79e   :  { %v11771_v58 = vpop.xlane.xlu0 %1189  ;;  %v2468_v42 = vpop.xlane.xlu1 %2467 }
 0x79f   :  { %v2496_v18 = vmul.f32 %v11767_v14, %v2468_v42  ;;  %v9981_v42 = vld [vmem:[%s14222_s3 + $0x60] sm:$0xff] }
 0x7a2   :  { %v11773_v16 = vpop.xlane.xlu0 %1191 }
 0x7a6   :  { %v2462_v56 = vpop.xlane.xlu0 %2461 }
 0x7a7   :  { %v2493_v19 = vmul.f32 %v11767_v14, %v2462_v56  ;;  %v2472_v34 = vpop.xlane.xlu1 %2471  ;;  %v14611_v56 = vld [vmem:[#allocation53_spill] sm:$0xff] }
 0x7a8   :  { %v2498_v6 = vmul.f32 %v11767_v14, %v2472_v34  ;;  %v9982_v34 = vld [vmem:[%s14222_s3 + $0x68] sm:$0xff] }
 0x7a9   :  { %2573 = vrot.lane.b32.xlu0 %v2493_v19, %s10124_s9  ;;  %v1165_v19 = vmul.f32 %v9981_v42, %v14611_v56 }
 0x7aa   :  { %v2466_v47 = vpop.xlane.xlu0 %2465 }
 0x7ab   :  { %v2495_v39 = vmul.f32 %v11767_v14, %v2466_v47  ;;  %v2476_v24 = vpop.xlane.xlu1 %2475  ;;  %v14612_v47 = vld [vmem:[#allocation37_spill] sm:$0xff] }
 0x7ac   :  { %v2500_v15 = vmul.f32 %v11767_v14, %v2476_v24 }
 0x7ad   :  { %2577 = vrot.lane.b32.xlu1 %v2495_v39, %s10124_s9  ;;  %2579 = vrot.lane.b32.xlu0 %v2496_v18, %s10124_s9  ;;  %v1166_v18 = vmul.f32 %v9982_v34, %v14612_v47 }
 0x7ae   :  { %v2470_v50 = vpop.xlane.xlu0 %2469 }
 0x7af   :  { %v2497_v52 = vmul.f32 %v11767_v14, %v2470_v50 }
 0x7b1   :  { %2581 = vrot.lane.b32.xlu1 %v2497_v52, %s10124_s9  ;;  %2583 = vrot.lane.b32.xlu0 %v2498_v6, %s10124_s9  ;;  %v2480_v52 = vpop.xlane.xlu1 %2479 }
 0x7b2   :  { %v2474_v39 = vpop.xlane.xlu0 %2473  ;;  %v2502_v56 = vmul.f32 %v11767_v14, %v2480_v52 }
 0x7b3   :  { %v2499_v3 = vmul.f32 %v11767_v14, %v2474_v39 }
 0x7b5   :  { %2587 = vrot.lane.b32.xlu0 %v2500_v15, %s10124_s9  ;;  %v2484_v29 = vpop.xlane.xlu1 %2483 }
 0x7b6   :  { %v2478_v50 = vpop.xlane.xlu0 %2477 }
 0x7b7   :  { %v2501_v1 = vmul.f32 %v11767_v14, %v2478_v50 }
 0x7b9   :  { %v2488_v47 = vpop.xlane.xlu1 %2487 }
 0x7ba   :  { %v2482_v15 = vpop.xlane.xlu0 %2481 }
 0x7be   :  { %v2486_v42 = vpop.xlane.xlu0 %2485 }
 0x7c2   :  { %v2490_v54 = vpop.xlane.xlu0 %2489 }
 0x7c3   :  { %v2507_v50 = vmul.f32 %v11767_v14, %v2490_v54 }
 0x7d4   :  { %1193 = vadd.xlane.f32.xlu0 %v1165_v19  ;;  %v2504_v19 = vmul.f32 %v11767_v14, %v2484_v29  ;;  %v2505_v29 = vmul.f32 %v11767_v14, %v2486_v42 }
 0x7d5   :  { %1195 = vadd.xlane.f32.xlu1 %v1166_v18  ;;  %v2503_v18 = vmul.f32 %v11767_v14, %v2482_v15  ;;  %v2492_v15 = vpop.xlane.xlu1 %2491 }
 0x7df   :  { %v8181_v6 = vpop.f32.mrb[48].mxu0 }
 0x7e0   :  { %v2687_v24 = vpop.f32.mrb[49].mxu0 }
 0x7e6   :  { %2585 = vrot.lane.b32.xlu1 %v2499_v3, %s10124_s9  ;;  %v2506_v3 = vmul.f32 %v11767_v14, %v2488_v47 }
 0x7e8   :  { %v8184_v44 = vpop.f32.mrb[50].mxu0 }
 0x7e9   :  { %v2697_v34 = vpop.f32.mrb[51].mxu0 }
 0x7ea   :  { %2589 = vrot.lane.b32.xlu1 %v2501_v1, %s10124_s9  ;;  %2591 = vrot.lane.b32.xlu0 %v2502_v56, %s10124_s9 }
 0x7ec   :  { %v8187_v39 = vpop.f32.mrb[52].mxu0 }
 0x7ed   :  { %v2707_v37 = vpop.f32.mrb[53].mxu0 }
 0x7ee   :  { %2593 = vrot.lane.b32.xlu1 %v2503_v18, %s10124_s9  ;;  %2595 = vrot.lane.b32.xlu0 %v2504_v19, %s10124_s9  ;;  %v2508_v19 = vmul.f32 %v11767_v14, %v2492_v15 }
 0x7f0   :  { %v11807_v52 = vpop.f32.mrb[54].mxu0 }
 0x7f1   :  { %v11809_v1 = vpop.f32.mrb[55].mxu0 }
 0x7f2   :  { %2601 = vrot.lane.b32.xlu0 %v2507_v50, %s10124_s9  ;;  %2599 = vrot.lane.b32.xlu1 %v2506_v3, %s10124_s9 }
 0x7f4   :  { %v11814_v56 = vpop.f32.mrb[56].mxu0 }
 0x7f5   :  { %v11816_v18 = vpop.f32.mrb[57].mxu0 }
 0x7f6   :  { %2597 = vrot.lane.b32.xlu1 %v2505_v29, %s10124_s9  ;;  %v9983_v29 = vld [vmem:[%s14222_s3 + $0x70] sm:$0xff] }
 0x7f7   :  { %v1167_v14 = vmul.f32 %v9983_v29, %v14613_v38 }
 0x7f8   :  { %v11820_v54 = vpop.f32.mrb[58].mxu0 }
 0x7f9   :  { %v11822_v47 = vpop.f32.mrb[59].mxu0 }
 0x7fa   :  { %2603 = vrot.lane.b32.xlu1 %v2508_v19, %s10124_s9  ;;  %v9984_v19 = vld [vmem:[%s14222_s3 + $0x78] sm:$0xff] }
 0x7fb   :  { %v1168_v27 = vmul.f32 %v9984_v19, %v14614_v25 }
 0x7ff   :  { %v11825_v50 = vpop.f32.mrb[60].mxu0 }
 0x800   :  { %v11827_v3 = vpop.f32.mrb[61].mxu0 }
 0x803   :  { %v11829_v42 = vpop.f32.mrb[62].mxu0 }
 0x804   :  { %v11831_v5 = vpop.f32.mrb[63].mxu0 }
 0x80e   :  { %v2576_v15 = vpop.permute.xlu1 %2575 }
 0x80f   :  { %v2693_v35 = vadd.f32 %v8181_v6, %v2576_v15 }
 0x811   :  { %1197 = vadd.xlane.f32.xlu0 %v1167_v14  ;;  %v11842_v43 = vadd.f32 %v14615_v4, %v2693_v35 }
 0x81b   :  { %v2574_v45 = vpop.permute.xlu0 %2573 }
 0x81c   :  { %v2688_v13 = vadd.f32 %v2687_v24, %v2574_v45  ;;  %v14380_v45 = vmax.f32 %v11842_v43, 0.0  ;;  %v14617_v24 = vld [vmem:[#allocation106_spill] sm:$0xff] }
 0x81e   :  { %v11845_v55 = vadd.f32 %v14616_v48, %v2688_v13  ;;  %1199 = vadd.xlane.f32.xlu1 %v1168_v27 }
 0x81f   :  { %v2580_v10 = vpop.permute.xlu0 %2579  ;;  %v2578_v38 = vpop.permute.xlu1 %2577 }
 0x820   :  { %v14381_v29 = vmax.f32 %v11845_v55, 0.0  ;;  %v2703_v6 = vadd.f32 %v8184_v44, %v2580_v10  ;;  %v2698_v14 = vadd.f32 %v2697_v34, %v2578_v38  ;;  %v14619_v34 = vld [vmem:[#allocation108_spill] sm:$0xff]  ;;  %v14620_v38 = vld [vmem:[#allocation107_spill] sm:$0xff] }
 0x822   :  { %v11850_v15 = vadd.f32 %v14617_v24, %v2703_v6  ;;  %v11853_v25 = vadd.f32 %v14618_v53, %v2698_v14  ;;  %8235 = vmatprep.mubr.msk.f32.mxu1 %vm173_vm0, %v14381_v29  ;;  %v11866_v53 = vld [vmem:[%s14224_s5] ss:$0 sm:$0xff] }
 0x823   :  { %v2584_v48 = vpop.permute.xlu0 %2583  ;;  %8236 = vmatmul.mubr.msk.f32.vlgmr.msra.gmra.mrb[64].mxu1 %vm173_vm0, %v14380_v45  ;;  %v2582_v13 = vpop.permute.xlu1 %2581  ;;  %v1201_v35 = vmul.f32 %v11866_v53, %v11742_v21  ;;  %v1202_v14 = vmul.f32 %v11866_v53, %v11734_v32  ;;  %v1204_v24 = vmul.f32 %v11866_v53, %v11740_v12  ;;  %v14624_v32 = vld [vmem:[#allocation12_spill] sm:$0xff]  ;;  %v14625_v12 = vld [vmem:[#allocation11_spill] sm:$0xff] }
 0x824   :  { %v14378_v10 = vmax.f32 %v11850_v15, 0.0  ;;  %v14379_v4 = vmax.f32 %v11853_v25, 0.0  ;;  %v2713_v27 = vadd.f32 %v8187_v39, %v2584_v48  ;;  %v2708_v44 = vadd.f32 %v2707_v37, %v2582_v13  ;;  %v14621_v39 = vld [vmem:[#allocation9_spill] sm:$0xff]  ;;  %v14622_v48 = vld [vmem:[#allocation10_spill] sm:$0xff]  ;;  %v14623_v13 = vld [vmem:[#allocation8_spill] sm:$0xff] }
 0x826   :  { %v11871_v19 = vadd.f32 %v14619_v34, %v2713_v27  ;;  %v11874_v6 = vadd.f32 %v14620_v38, %v2708_v44  ;;  %8238 = vmatprep.mubr.msk.f32.mxu1 %vm173_vm0, %v14379_v4  ;;  %v1203_v27 = vmul.f32 %v11866_v53, %v11748_v9  ;;  %v1206_v44 = vmul.f32 %v11866_v53, %v11752_v33  ;;  %v14626_v9 = vld [vmem:[#allocation14_spill] sm:$0xff]  ;;  %v14627_v33 = vld [vmem:[#allocation13_spill] sm:$0xff] }
 0x827   :  { %1281 = vrot.lane.b32.xlu0 %v1201_v35, %s10124_s9  ;;  %8239 = vmatmul.mubr.msk.f32.gmra.mrb[66].mxu1 %vm173_vm0, %v14378_v10  ;;  %v1205_v35 = vmul.f32 %v11866_v53, %v11744_v57  ;;  %v1208_v34 = vmul.f32 %v11866_v53, %v11756_v46  ;;  %v1207_v38 = vmul.f32 %v11866_v53, %v11758_v0  ;;  %v14628_v57 = vld [vmem:[#allocation16_spill] sm:$0xff]  ;;  %v14629_v46 = vld [vmem:[#allocation15_spill] sm:$0xff]  ;;  %v14630_v0 = vld [vmem:[#allocation18_spill] sm:$0xff] }
 0x828   :  { %v14376_v37 = vmax.f32 %v11871_v19, 0.0  ;;  %v14377_v21 = vmax.f32 %v11874_v6, 0.0 }
 0x82a   :  { %8241 = vmatprep.mubr.msk.f32.mxu1 %vm173_vm0, %v14377_v21 }
 0x82b   :  { %1476 = vrot.lane.b32.xlu0 %v14621_v39, %s10123_s30  ;;  %8242 = vmatmul.mubr.msk.f32.gmra.mrb[68].mxu1 %vm173_vm0, %v14376_v37  ;;  %v1210_v39 = vmul.f32 %v11866_v53, %v11762_v31  ;;  %v14631_v31 = vld [vmem:[#allocation17_spill] sm:$0xff] }
 0x82f   :  { %1287 = vrot.lane.b32.xlu0 %v1204_v24, %s10124_s9  ;;  %1283 = vrot.lane.b32.xlu1 %v1202_v14, %s10124_s9  ;;  %v1209_v14 = vmul.f32 %v11866_v53, %v11760_v36  ;;  %v1212_v24 = vmul.f32 %v11866_v53, %v11773_v16  ;;  %v14632_v36 = vld [vmem:[#allocation19_spill] sm:$0xff] }
 0x833   :  { %1480 = vrot.lane.b32.xlu0 %v14622_v48, %s10123_s30  ;;  %1474 = vrot.lane.b32.xlu1 %v14623_v13, %s10123_s30  ;;  %v1211_v48 = vmul.f32 %v11866_v53, %v11771_v58  ;;  %v2588_v13 = vpop.permute.xlu0 %2587 }
 0x837   :  { %1291 = vrot.lane.b32.xlu0 %v1206_v44, %s10124_s9  ;;  %1285 = vrot.lane.b32.xlu1 %v1203_v27, %s10124_s9 }
 0x83b   :  { %1484 = vrot.lane.b32.xlu0 %v14624_v32, %s10123_s30  ;;  %1478 = vrot.lane.b32.xlu1 %v14625_v12, %s10123_s30  ;;  %v2723_v12 = vadd.f32 %v11807_v52, %v2588_v13 }
 0x83f   :  { %1295 = vrot.lane.b32.xlu0 %v1208_v34, %s10124_s9  ;;  %1289 = vrot.lane.b32.xlu1 %v1205_v35, %s10124_s9 }
 0x843   :  { %1488 = vrot.lane.b32.xlu0 %v14626_v9, %s10123_s30  ;;  %1482 = vrot.lane.b32.xlu1 %v14627_v33, %s10123_s30  ;;  %v14633_v9 = vld [vmem:[#allocation110_spill] sm:$0xff] }
 0x844   :  { %v11955_v33 = vadd.f32 %v14633_v9, %v2723_v12 }
 0x847   :  { %1299 = vrot.lane.b32.xlu0 %v1210_v39, %s10124_s9  ;;  %1293 = vrot.lane.b32.xlu1 %v1207_v38, %s10124_s9  ;;  %v14634_v39 = vld [vmem:[#allocation21_spill] sm:$0xff] }
 0x84b   :  { %1492 = vrot.lane.b32.xlu0 %v14628_v57, %s10123_s30  ;;  %1486 = vrot.lane.b32.xlu1 %v14629_v46, %s10123_s30  ;;  %v14635_v57 = vld [vmem:[#allocation109_spill] sm:$0xff] }
 0x84f   :  { %1303 = vrot.lane.b32.xlu0 %v1212_v24, %s10124_s9  ;;  %1297 = vrot.lane.b32.xlu1 %v1209_v14, %s10124_s9  ;;  %v14636_v14 = vld [vmem:[#allocation20_spill] sm:$0xff] }
 0x853   :  { %1496 = vrot.lane.b32.xlu0 %v14630_v0, %s10123_s30  ;;  %1490 = vrot.lane.b32.xlu1 %v14631_v31, %s10123_s30  ;;  %v14374_v31 = vmax.f32 %v11955_v33, 0.0 }
 0x857   :  { %1301 = vrot.lane.b32.xlu1 %v1211_v48, %s10124_s9 }
 0x85b   :  { %1494 = vrot.lane.b32.xlu1 %v14632_v36, %s10123_s30  ;;  %v14637_v36 = vld [vmem:[#allocation111_spill] sm:$0xff] }
 0x861   :  { %v1194_v16 = vpop.xlane.xlu0 %1193 }
 0x862   :  { %v1213_v27 = vmul.f32 %v11866_v53, %v1194_v16  ;;  %v1196_v44 = vpop.xlane.xlu1 %1195 }
 0x863   :  { %v1214_v32 = vmul.f32 %v11866_v53, %v1196_v44 }
 0x864   :  { %1305 = vrot.lane.b32.xlu1 %v1213_v27, %s10124_s9 }
 0x865   :  { %v2592_v35 = vpop.permute.xlu0 %2591  ;;  %1307 = vrot.lane.b32.xlu0 %v1214_v32, %s10124_s9 }
 0x866   :  { %v2586_v58 = vpop.permute.xlu1 %2585  ;;  %v2733_v38 = vadd.f32 %v11814_v56, %v2592_v35 }
 0x867   :  { %v2718_v34 = vadd.f32 %v11809_v1, %v2586_v58 }
 0x868   :  { %1498 = vrot.lane.b32.xlu1 %v14634_v39, %s10123_s30  ;;  %v11969_v48 = vadd.f32 %v11666_v23, %v2733_v38 }
 0x869   :  { %v11961_v46 = vadd.f32 %v14635_v57, %v2718_v34  ;;  %v2596_v52 = vpop.permute.xlu0 %2595  ;;  %1500 = vrot.lane.b32.xlu0 %v14636_v14, %s10123_s30 }
 0x86a   :  { %v2590_v24 = vpop.permute.xlu1 %2589  ;;  %v2743_v56 = vadd.f32 %v11820_v54, %v2596_v52  ;;  %v14372_v23 = vmax.f32 %v11969_v48, 0.0 }
 0x86b   :  { %v14375_v0 = vmax.f32 %v11961_v46, 0.0  ;;  %v2728_v1 = vadd.f32 %v11816_v18, %v2590_v24 }
 0x86c   :  { %v11985_v54 = vadd.f32 %v11738_v61, %v2743_v56 }
 0x86d   :  { %v11973_v13 = vadd.f32 %v14637_v36, %v2728_v1  ;;  %8244 = vmatprep.mubr.msk.f32.mxu1 %vm173_vm0, %v14375_v0  ;;  %v2602_v32 = vpop.permute.xlu0 %2601 }
 0x86e   :  { %8245 = vmatmul.mubr.msk.f32.gmra.mrb[70].mxu1 %vm173_vm0, %v14374_v31  ;;  %v2594_v16 = vpop.permute.xlu1 %2593  ;;  %v14370_v35 = vmax.f32 %v11985_v54, 0.0  ;;  %v2758_v58 = vadd.f32 %v11831_v5, %v2602_v32  ;;  %v14641_v32 = vld [vmem:[#allocation85_spill] sm:$0xff] }
 0x86f   :  { %v14373_v18 = vmax.f32 %v11973_v13, 0.0  ;;  %v2738_v27 = vadd.f32 %v11822_v47, %v2594_v16 }
 0x870   :  { %v12011_v38 = vadd.f32 %v11750_v49, %v2758_v58 }
 0x871   :  { %v11988_v44 = vadd.f32 %v11668_v8, %v2738_v27  ;;  %8247 = vmatprep.mubr.msk.f32.mxu1 %vm173_vm0, %v14373_v18 }
 0x872   :  { %8248 = vmatmul.mubr.msk.f32.gmra.mrb[72].mxu1 %vm173_vm0, %v14372_v23  ;;  %v2600_v12 = vpop.permute.xlu1 %2599  ;;  %14638 = vst [vmem:[#allocation102_spill] sm:$0xff] %v12011_v38  ;;  %v14367_v14 = vmax.f32 %v12011_v38, 0.0 }
 0x873   :  { %v14371_v47 = vmax.f32 %v11988_v44, 0.0  ;;  %v2753_v61 = vadd.f32 %v11825_v50, %v2600_v12 }
 0x875   :  { %8250 = vmatprep.mubr.msk.f32.mxu1 %vm173_vm0, %v14371_v47  ;;  %v12008_v9 = vadd.f32 %v11736_v2, %v2753_v61  ;;  %v14642_v61 = vld [vmem:[#allocation86_spill] sm:$0xff] }
 0x876   :  { %8251 = vmatmul.mubr.msk.f32.gmra.mrb[74].mxu1 %vm173_vm0, %v14370_v35  ;;  %v2598_v8 = vpop.permute.xlu1 %2597 }
 0x877   :  { %v2748_v34 = vadd.f32 %v11827_v3, %v2598_v8  ;;  %v14368_v52 = vmax.f32 %v12008_v9, 0.0 }
 0x879   :  { %v12014_v50 = vadd.f32 %v11746_v11, %v2748_v34  ;;  %v14643_v34 = vld [vmem:[#allocation22_spill] sm:$0xff] }
 0x87a   :  { %v2604_v5 = vpop.permute.xlu1 %2603 }
 0x87b   :  { %v14369_v39 = vmax.f32 %v12014_v50, 0.0  ;;  %v2763_v57 = vadd.f32 %v11829_v42, %v2604_v5  ;;  %v14640_v42 = vld [vmem:[#allocation23_spill] sm:$0xff] }
 0x87d   :  { %v12021_v3 = vadd.f32 %v11754_v20, %v2763_v57  ;;  %8253 = vmatprep.mubr.msk.f32.mxu1 %vm173_vm0, %v14369_v39 }
 0x87e   :  { %8254 = vmatmul.mubr.msk.f32.gmra.mrb[76].mxu1 %vm173_vm0, %v14368_v52 }
 0x87f   :  { %14639 = vst [vmem:[#allocation101_spill] sm:$0xff] %v12021_v3  ;;  %v14366_v2 = vmax.f32 %v12021_v3, 0.0  ;;  %8256 = vmatprep.mubr.msk.f32.mxu1 %vm173_vm0, %v14367_v14 }
 0x882   :  { %8257 = vmatmul.mubr.msk.f32.gmra.mrb[78].mxu1 %vm173_vm0, %v14366_v2 }
 0x89e   :  { %v1198_v11 = vpop.xlane.xlu0 %1197 }
 0x89f   :  { %v1215_v49 = vmul.f32 %v11866_v53, %v1198_v11 }
 0x8a1   :  { %1309 = vrot.lane.b32.xlu1 %v1215_v49, %s10124_s9 }
 0x8a2   :  { %v1282_v20 = vpop.permute.xlu0 %1281 }
 0x8a3   :  { %v1396_v58 = vadd.f32 %v14642_v61, %v1282_v20  ;;  %v14644_v20 = vld [vmem:[#allocation87_spill] sm:$0xff] }
 0x8a5   :  { %1502 = vrot.lane.b32.xlu1 %v14640_v42, %s10123_s30 }
 0x8a6   :  { %v1477_v24 = vpop.permute.xlu0 %1476 }
 0x8aa   :  { %v1288_v1 = vpop.permute.xlu0 %1287 }
 0x8ab   :  { %v1200_v56 = vpop.xlane.xlu1 %1199 }
 0x8ac   :  { %v1216_v36 = vmul.f32 %v11866_v53, %v1200_v56 }
 0x8ae   :  { %v1481_v16 = vpop.permute.xlu0 %1480  ;;  %1311 = vrot.lane.b32.xlu0 %v1216_v36, %s10124_s9  ;;  %v1411_v36 = vadd.f32 %v14644_v20, %v1288_v1  ;;  %v14646_v1 = vld [vmem:[#allocation89_spill] sm:$0xff] }
 0x8af   :  { %v1284_v27 = vpop.permute.xlu1 %1283 }
 0x8b0   :  { %v1401_v12 = vadd.f32 %v14641_v32, %v1284_v27 }
 0x8b2   :  { %v1292_v8 = vpop.permute.xlu0 %1291  ;;  %1504 = vrot.lane.b32.xlu0 %v14643_v34, %s10123_s30  ;;  %v12046_v5 = vadd.f32 %v1477_v24, %v1401_v12  ;;  %v14645_v24 = vld [vmem:[#allocation88_spill] sm:$0xff]  ;;  %v12060_v12 = vadd.f32 %v1481_v16, %v1411_v36  ;;  %v14647_v16 = vld [vmem:[#allocation90_spill] sm:$0xff] }
 0x8b3   :  { %v1475_v57 = vpop.permute.xlu1 %1474  ;;  %v1421_v20 = vadd.f32 %v14646_v1, %v1292_v8  ;;  %v14648_v8 = vld [vmem:[#allocation91_spill] sm:$0xff] }
 0x8b4   :  { %v12048_v11 = vadd.f32 %v1475_v57, %v1396_v58  ;;  %v14396_v42 = vmax.f32 %v12046_v5, 0.0  ;;  %v14394_v2 = vmax.f32 %v12060_v12, 0.0 }
 0x8b6   :  { %v14397_v49 = vmax.f32 %v12048_v11, 0.0  ;;  %v1485_v53 = vpop.permute.xlu0 %1484 }
 0x8b7   :  { %v1286_v56 = vpop.permute.xlu1 %1285  ;;  %v12074_v36 = vadd.f32 %v1485_v53, %v1421_v20  ;;  %v14649_v53 = vld [vmem:[#allocation92_spill] sm:$0xff] }
 0x8b8   :  { %8207 = vmatprep.mubr.msk.f32.mxu0 %vm173_vm0, %v14397_v49  ;;  %v1406_v27 = vadd.f32 %v14645_v24, %v1286_v56 }
 0x8b9   :  { %8208 = vmatmul.mubr.msk.f32.vlgmr.msra.gmra.mrb[64].mxu0 %vm173_vm0, %v14396_v42  ;;  %v14390_v39 = vmax.f32 %v12074_v36, 0.0 }
 0x8ba   :  { %v1296_v32 = vpop.permute.xlu0 %1295 }
 0x8bb   :  { %v1479_v61 = vpop.permute.xlu1 %1478  ;;  %v1431_v1 = vadd.f32 %v14648_v8, %v1296_v32  ;;  %v14650_v32 = vld [vmem:[#allocation93_spill] sm:$0xff] }
 0x8bc   :  { %v12062_v58 = vadd.f32 %v1479_v61, %v1406_v27 }
 0x8be   :  { %v14395_v34 = vmax.f32 %v12062_v58, 0.0  ;;  %v1489_v57 = vpop.permute.xlu0 %1488 }
 0x8bf   :  { %v1290_v14 = vpop.permute.xlu1 %1289 }
 0x8c0   :  { %8210 = vmatprep.mubr.msk.f32.mxu0 %vm173_vm0, %v14395_v34  ;;  %v1416_v56 = vadd.f32 %v14647_v16, %v1290_v14  ;;  %v12088_v16 = vadd.f32 %v1489_v57, %v1431_v1 }
 0x8c1   :  { %8211 = vmatmul.mubr.msk.f32.gmra.mrb[66].mxu0 %vm173_vm0, %v14394_v2 }
 0x8c2   :  { %v1300_v27 = vpop.permute.xlu0 %1299  ;;  %v14388_v23 = vmax.f32 %v12088_v16, 0.0 }
 0x8c3   :  { %v1483_v24 = vpop.permute.xlu1 %1482  ;;  %v1441_v8 = vadd.f32 %v14650_v32, %v1300_v27  ;;  %v14652_v27 = vld [vmem:[#allocation95_spill] sm:$0xff] }
 0x8c4   :  { %v12076_v61 = vadd.f32 %v1483_v24, %v1416_v56 }
 0x8c6   :  { %v14391_v52 = vmax.f32 %v12076_v61, 0.0  ;;  %v1493_v14 = vpop.permute.xlu0 %1492 }
 0x8c7   :  { %v1294_v35 = vpop.permute.xlu1 %1293  ;;  %v12102_v1 = vadd.f32 %v1493_v14, %v1441_v8  ;;  %v14653_v14 = vld [vmem:[#allocation96_spill] sm:$0xff] }
 0x8c8   :  { %8213 = vmatprep.mubr.msk.f32.mxu0 %vm173_vm0, %v14391_v52  ;;  %v1426_v20 = vadd.f32 %v14649_v53, %v1294_v35  ;;  %v14651_v35 = vld [vmem:[#allocation94_spill] sm:$0xff] }
 0x8c9   :  { %8214 = vmatmul.mubr.msk.f32.gmra.mrb[68].mxu0 %vm173_vm0, %v14390_v39  ;;  %v14382_v37 = vmax.f32 %v12102_v1, 0.0 }
 0x8ca   :  { %v1304_v31 = vpop.permute.xlu0 %1303 }
 0x8cb   :  { %v1487_v56 = vpop.permute.xlu1 %1486  ;;  %v1451_v32 = vadd.f32 %v14652_v27, %v1304_v31  ;;  %v14654_v31 = vld [vmem:[#allocation97_spill] sm:$0xff] }
 0x8cc   :  { %v12090_v24 = vadd.f32 %v1487_v56, %v1426_v20 }
 0x8ce   :  { %v14389_v47 = vmax.f32 %v12090_v24, 0.0  ;;  %v1497_v56 = vpop.permute.xlu0 %1496 }
 0x8cf   :  { %v1298_v18 = vpop.permute.xlu1 %1297 }
 0x8d0   :  { %8216 = vmatprep.mubr.msk.f32.mxu0 %vm173_vm0, %v14389_v47  ;;  %v1436_v57 = vadd.f32 %v14651_v35, %v1298_v18  ;;  %v12116_v35 = vadd.f32 %v1497_v56, %v1451_v32 }
 0x8d1   :  { %8217 = vmatmul.mubr.msk.f32.gmra.mrb[70].mxu0 %vm173_vm0, %v14388_v23 }
 0x8d2   :  { %v14384_v4 = vmax.f32 %v12116_v35, 0.0 }
 0x8d3   :  { %v1491_v53 = vpop.permute.xlu1 %1490 }
 0x8d4   :  { %v12104_v20 = vadd.f32 %v1491_v53, %v1436_v57 }
 0x8d6   :  { %v14387_v0 = vmax.f32 %v12104_v20, 0.0 }
 0x8d7   :  { %v1302_v21 = vpop.permute.xlu1 %1301  ;;  %v1308_v18 = vpop.permute.xlu0 %1307 }
 0x8d8   :  { %8219 = vmatprep.mubr.msk.f32.mxu0 %vm173_vm0, %v14387_v0  ;;  %v1446_v8 = vadd.f32 %v14653_v14, %v1302_v21  ;;  %v1461_v27 = vadd.f32 %v14654_v31, %v1308_v18  ;;  %v14655_v21 = vld [vmem:[#allocation98_spill] sm:$0xff] }
 0x8d9   :  { %8220 = vmatmul.mubr.msk.f32.gmra.mrb[72].mxu0 %vm173_vm0, %v14382_v37 }
 0x8db   :  { %v1495_v57 = vpop.permute.xlu1 %1494  ;;  %v1501_v29 = vpop.permute.xlu0 %1500 }
 0x8dc   :  { %v12118_v53 = vadd.f32 %v1495_v57, %v1446_v8  ;;  %v12130_v32 = vadd.f32 %v1501_v29, %v1461_v27  ;;  %v12145_v29 = vld [vmem:[%s14224_s5 + $0x2] ss:$0 sm:$0xff] }
 0x8de   :  { %v14386_v10 = vmax.f32 %v12118_v53, 0.0  ;;  %v14385_v37 = vmax.f32 %v12130_v32, 0.0 }
 0x8df   :  { %v1306_v45 = vpop.permute.xlu1 %1305 }
 0x8e0   :  { %8222 = vmatprep.mubr.msk.f32.mxu0 %vm173_vm0, %v14386_v10  ;;  %v1456_v56 = vadd.f32 %v14655_v21, %v1306_v45 }
 0x8e1   :  { %8223 = vmatmul.mubr.msk.f32.gmra.mrb[74].mxu0 %vm173_vm0, %v14384_v4 }
 0x8e3   :  { %v1499_v14 = vpop.permute.xlu1 %1498 }
 0x8e4   :  { %v12132_v8 = vadd.f32 %v1499_v14, %v1456_v56 }
 0x8e6   :  { %v14383_v57 = vmax.f32 %v12132_v8, 0.0 }
 0x8e8   :  { %8225 = vmatprep.mubr.msk.f32.mxu0 %vm173_vm0, %v14383_v57 }
 0x8e9   :  { %8226 = vmatmul.mubr.msk.f32.gmra.mrb[76].mxu0 %vm173_vm0, %v14385_v37 }
 0x8f6   :  { %v8237_v45 = vpop.f32.mrb[64].mxu1 }
 0x8f7   :  { %v3167_v18 = vadd.f32 %v8237_v45, %v12145_v29  ;;  %v3161_v31 = vpop.f32.mrb[65].mxu1 }
 0x8f8   :  { %v3162_v27 = vadd.f32 %v12145_v29, %v3161_v31  ;;  %v14656_v31 = vld [vmem:[#allocation100_spill] sm:$0xff] }
 0x8fa   :  { %v12149_v21 = vpack.i.bf16 %v3167_v18, %v3162_v27  ;;  %v8240_v56 = vpop.f32.mrb[66].mxu1 }
 0x8fb   :  { %v3177_v14 = vadd.f32 %v8240_v56, %v12145_v29  ;;  %v3171_v57 = vpop.f32.mrb[67].mxu1 }
 0x8fc   :  { %v3172_v4 = vadd.f32 %v12145_v29, %v3171_v57  ;;  %9390 = vrot.lane.b32.xlu1 %v12149_v21, %s10121_s0 }
 0x8fe   :  { %v12155_v37 = vpack.i.bf16 %v3177_v14, %v3172_v4  ;;  %v8243_v10 = vpop.f32.mrb[68].mxu1 }
 0x8ff   :  { %v3187_v0 = vadd.f32 %v8243_v10, %v12145_v29  ;;  %v3181_v45 = vpop.f32.mrb[69].mxu1 }
 0x900   :  { %v3182_v23 = vadd.f32 %v12145_v29, %v3181_v45  ;;  %9395 = vrot.lane.b32.xlu0 %v12155_v37, %s10121_s0  ;;  %v14657_v45 = vld [vmem:[#allocation99_spill] sm:$0xff] }
 0x902   :  { %v12161_v18 = vpack.i.bf16 %v3187_v0, %v3182_v23 }
 0x904   :  { %9400 = vrot.lane.b32.xlu1 %v12161_v18, %s10121_s0 }
 0x913   :  { %v1310_v57 = vpop.permute.xlu1 %1309 }
 0x914   :  { %v1466_v27 = vadd.f32 %v14656_v31, %v1310_v57 }
 0x917   :  { %v1503_v56 = vpop.permute.xlu1 %1502 }
 0x918   :  { %v12166_v4 = vadd.f32 %v1503_v56, %v1466_v27 }
 0x91a   :  { %v14392_v14 = vmax.f32 %v12166_v4, 0.0 }
 0x91c   :  { %8228 = vmatprep.mubr.msk.f32.mxu0 %vm173_vm0, %v14392_v14 }
 0x920   :  { %v1312_v10 = vpop.permute.xlu0 %1311 }
 0x921   :  { %v1471_v47 = vadd.f32 %v14657_v45, %v1312_v10 }
 0x924   :  { %v1505_v0 = vpop.permute.xlu0 %1504 }
 0x925   :  { %v12173_v23 = vadd.f32 %v1505_v0, %v1471_v47 }
 0x927   :  { %v14393_v39 = vmax.f32 %v12173_v23, 0.0 }
 0x929   :  { %8229 = vmatmul.mubr.msk.f32.gmra.mrb[78].mxu0 %vm173_vm0, %v14393_v39 }
 0x941   :  { %v8246_v57 = vpop.f32.mrb[70].mxu1 }
 0x942   :  { %v3197_v31 = vadd.f32 %v8246_v57, %v12145_v29  ;;  %v3191_v27 = vpop.f32.mrb[71].mxu1 }
 0x943   :  { %v3192_v56 = vadd.f32 %v12145_v29, %v3191_v27 }
 0x945   :  { %v12181_v52 = vpack.i.bf16 %v3197_v31, %v3192_v56  ;;  %v8249_v14 = vpop.f32.mrb[72].mxu1 }
 0x946   :  { %v3207_v10 = vadd.f32 %v8249_v14, %v12145_v29  ;;  %v3201_v45 = vpop.f32.mrb[73].mxu1 }
 0x947   :  { %v3202_v47 = vadd.f32 %v12145_v29, %v3201_v45  ;;  %9405 = vrot.lane.b32.xlu0 %v12181_v52, %s10121_s0 }
 0x949   :  { %v12187_v0 = vpack.i.bf16 %v3207_v10, %v3202_v47  ;;  %v8252_v39 = vpop.f32.mrb[74].mxu1 }
 0x94a   :  { %v3217_v2 = vadd.f32 %v8252_v39, %v12145_v29  ;;  %v3211_v57 = vpop.f32.mrb[75].mxu1 }
 0x94b   :  { %v3212_v34 = vadd.f32 %v12145_v29, %v3211_v57  ;;  %9410 = vrot.lane.b32.xlu1 %v12187_v0, %s10121_s0 }
 0x94d   :  { %v12193_v31 = vpack.i.bf16 %v3217_v2, %v3212_v34 }
 0x94f   :  { %9415 = vrot.lane.b32.xlu0 %v12193_v31, %s10121_s0 }
 0x951   :  { %v8255_v14 = vpop.f32.mrb[76].mxu1 }
 0x952   :  { %v3227_v27 = vadd.f32 %v8255_v14, %v12145_v29  ;;  %v3221_v56 = vpop.f32.mrb[77].mxu1 }
 0x953   :  { %v3222_v10 = vadd.f32 %v12145_v29, %v3221_v56 }
 0x955   :  { %v12199_v45 = vpack.i.bf16 %v3227_v27, %v3222_v10  ;;  %v8258_v39 = vpop.f32.mrb[78].mxu1 }
 0x956   :  { %v3237_v47 = vadd.f32 %v8258_v39, %v12145_v29  ;;  %v3231_v57 = vpop.f32.mrb[79].mxu1 }
 0x957   :  { %v3232_v42 = vadd.f32 %v12145_v29, %v3231_v57  ;;  %9420 = vrot.lane.b32.xlu1 %v12199_v45, %s10121_s0 }
 0x959   :  { %v12205_v2 = vpack.i.bf16 %v3237_v47, %v3232_v42 }
 0x95b   :  { %9425 = vrot.lane.b32.xlu0 %v12205_v2, %s10121_s0 }
 0x96e   :  { %v9391_v34 = vpop.permute.xlu1 %9390 }
 0x96f   :  { %v9393_v14 = vunpack.i.h.bf16 %v9391_v34  ;;  %v9392_v49 = vunpack.i.l.bf16 %v9391_v34 }
 0x971   :  { %v8926_v56 = vpack.c.bf16 %v9393_v14, %v9392_v49 }
 0x972   :  { %v9396_v27 = vpop.permute.xlu0 %9395 }
 0x973   :  { %v9398_v10 = vunpack.i.h.bf16 %v9396_v27  ;;  %v9397_v41 = vunpack.i.l.bf16 %v9396_v27  ;;  %8928 = vmatprep.subr.msk.bf16.mxu0 %vm10482_vm1, %v8926_v56 }
 0x974   :  { %8931 = vmatpush3.bf16.xpose.msk.msra.mxu0 %vm10482_vm1, %v8926_v56 }
 0x975   :  { %v8932_v39 = vpack.c.bf16 %v9398_v10, %v9397_v41 }
 0x976   :  { %v9401_v57 = vpop.permute.xlu1 %9400 }
 0x977   :  { %v9403_v42 = vunpack.i.h.bf16 %v9401_v57  ;;  %v9402_v47 = vunpack.i.l.bf16 %v9401_v57  ;;  %8934 = vmatprep.subr.msk.bf16.mxu0 %vm10482_vm1, %v8932_v39 }
 0x979   :  { %v8938_v60 = vpack.c.bf16 %v9403_v42, %v9402_v47 }
 0x97c   :  { %8937 = vmatpush3.bf16.xpose.msk.msra.mxu0 %vm10482_vm1, %v8932_v39 }
 0x97d   :  { %8940 = vmatprep.subr.msk.bf16.mxu0 %vm10482_vm1, %v8938_v60 }
 0x984   :  { %8943 = vmatpush3.bf16.xpose.msk.msra.mxu0 %vm10482_vm1, %v8938_v60 }
 0x98c   :  { %v8209_v49 = vpop.f32.mrb[64].mxu0 }
 0x98d   :  { %v12222_v34 = vadd.f32 %v8209_v49, %v12145_v29  ;;  %v2968_v41 = vpop.f32.mrb[65].mxu0 }
 0x98e   :  { %v12225_v14 = vadd.f32 %v12145_v29, %v2968_v41 }
 0x98f   :  { %14659 = vst [vmem:[#allocation35_spill] sm:$0xff] %v12222_v34  ;;  %3247 = vperm.xlu0 %9267, %v12222_v34  }
 0x990   :  { %14660 = vst [vmem:[#allocation33_spill] sm:$0xff] %v12225_v14  ;;  %3242 = vperm.xlu1 %9268, %v12225_v14   ;;  %8291 = vmatprep.mubr.msk.f32.mxu0 %vm173_vm0, %v12225_v14 }
 0x994   :  { %v8212_v56 = vpop.f32.mrb[66].mxu0 }
 0x995   :  { %v12232_v27 = vadd.f32 %v8212_v56, %v12145_v29  ;;  %v2978_v60 = vpop.f32.mrb[67].mxu0 }
 0x996   :  { %v12235_v10 = vadd.f32 %v12145_v29, %v2978_v60 }
 0x997   :  { %14661 = vst [vmem:[#allocation50_spill] sm:$0xff] %v12232_v27  ;;  %3257 = vperm.xlu0 %9267, %v12232_v27  }
 0x998   :  { %14662 = vst [vmem:[#allocation25_spill] sm:$0xff] %v12235_v10  ;;  %3252 = vperm.xlu1 %9268, %v12235_v10  }
 0x99c   :  { %v8215_v39 = vpop.f32.mrb[68].mxu0 }
 0x99d   :  { %v12240_v57 = vadd.f32 %v8215_v39, %v12145_v29  ;;  %v2988_v42 = vpop.f32.mrb[69].mxu0 }
 0x99e   :  { %v12243_v47 = vadd.f32 %v12145_v29, %v2988_v42 }
 0x99f   :  { %14663 = vst [vmem:[#allocation52_spill] sm:$0xff] %v12240_v57  ;;  %3267 = vperm.xlu0 %9267, %v12240_v57  }
 0x9a0   :  { %14664 = vst [vmem:[#allocation51_spill] sm:$0xff] %v12243_v47  ;;  %3262 = vperm.xlu1 %9268, %v12243_v47  }
 0x9a4   :  { %v8218_v49 = vpop.f32.mrb[70].mxu0 }
 0x9a5   :  { %v12248_v41 = vadd.f32 %v8218_v49, %v12145_v29  ;;  %v2998_v56 = vpop.f32.mrb[71].mxu0 }
 0x9a6   :  { %v12251_v60 = vadd.f32 %v12145_v29, %v2998_v56 }
 0x9a7   :  { %14665 = vst [vmem:[#allocation39_spill] sm:$0xff] %v12248_v41  ;;  %3277 = vperm.xlu0 %9267, %v12248_v41  }
 0x9a8   :  { %14666 = vst [vmem:[#allocation54_spill] sm:$0xff] %v12251_v60  ;;  %3272 = vperm.xlu1 %9268, %v12251_v60  }
 0x9ac   :  { %v8221_v39 = vpop.f32.mrb[72].mxu0 }
 0x9ad   :  { %v12256_v42 = vadd.f32 %v8221_v39, %v12145_v29  ;;  %v3008_v14 = vpop.f32.mrb[73].mxu0 }
 0x9ae   :  { %v12259_v59 = vadd.f32 %v12145_v29, %v3008_v14 }
 0x9af   :  { %14667 = vst [vmem:[#allocation53_spill] sm:$0xff] %v12256_v42  ;;  %3287 = vperm.xlu0 %9267, %v12256_v42  }
 0x9b0   :  { %14668 = vst [vmem:[#allocation37_spill] sm:$0xff] %v12259_v59  ;;  %3282 = vperm.xlu1 %9268, %v12259_v59  }
 0x9b4   :  { %v8224_v49 = vpop.f32.mrb[74].mxu0 }
 0x9b5   :  { %v12264_v56 = vadd.f32 %v8224_v49, %v12145_v29  ;;  %v3018_v30 = vpop.f32.mrb[75].mxu0 }
 0x9b6   :  { %v12267_v17 = vadd.f32 %v12145_v29, %v3018_v30 }
 0x9b7   :  { %14669 = vst [vmem:[#allocation43_spill] sm:$0xff] %v12264_v56  ;;  %3297 = vperm.xlu0 %9267, %v12264_v56  }
 0x9b8   :  { %14670 = vst [vmem:[#allocation41_spill] sm:$0xff] %v12267_v17  ;;  %3292 = vperm.xlu1 %9268, %v12267_v17  }
 0x9b9   :  { %v9406_v39 = vpop.permute.xlu0 %9405 }
 0x9ba   :  { %v9408_v26 = vunpack.i.h.bf16 %v9406_v39  ;;  %v9407_v14 = vunpack.i.l.bf16 %v9406_v39 }
 0x9bc   :  { %v8944_v62 = vpack.c.bf16 %v9408_v26, %v9407_v14  ;;  %v8227_v7 = vpop.f32.mrb[76].mxu0 }
 0x9bd   :  { %v12272_v22 = vadd.f32 %v8227_v7, %v12145_v29  ;;  %v3028_v40 = vpop.f32.mrb[77].mxu0  ;;  %v9411_v63 = vpop.permute.xlu1 %9410 }
 0x9be   :  { %v12275_v49 = vadd.f32 %v12145_v29, %v3028_v40  ;;  %v9413_v51 = vunpack.i.h.bf16 %v9411_v63  ;;  %v9412_v30 = vunpack.i.l.bf16 %v9411_v63  ;;  %8946 = vmatprep.subr.msk.bf16.mxu0 %vm10482_vm1, %v8944_v62 }
 0x9bf   :  { %14671 = vst [vmem:[#allocation104_spill] sm:$0xff] %v12272_v22  ;;  %3307 = vperm.xlu0 %9267, %v12272_v22   ;;  %8949 = vmatpush3.bf16.xpose.msk.msra.mxu0 %vm10482_vm1, %v8944_v62 }
 0x9c0   :  { %14672 = vst [vmem:[#allocation103_spill] sm:$0xff] %v12275_v49  ;;  %v8950_v26 = vpack.c.bf16 %v9413_v51, %v9412_v30  ;;  %3302 = vperm.xlu1 %9268, %v12275_v49  }
 0x9c1   :  { %v9416_v7 = vpop.permute.xlu0 %9415 }
 0x9c2   :  { %v9418_v39 = vunpack.i.h.bf16 %v9416_v7  ;;  %v9417_v14 = vunpack.i.l.bf16 %v9416_v7  ;;  %8952 = vmatprep.subr.msk.bf16.mxu0 %vm10482_vm1, %v8950_v26 }
 0x9c4   :  { %v8956_v40 = vpack.c.bf16 %v9418_v39, %v9417_v14  ;;  %v4220_v14 = vld [vmem:[#allocation2 + $0x38] sm:$0xff] }
 0x9c7   :  { %8955 = vmatpush3.bf16.xpose.msk.msra.mxu0 %vm10482_vm1, %v8950_v26  ;;  %v4219_v26 = vld [vmem:[#allocation2 + $0x30] sm:$0xff] }
 0x9c8   :  { %8958 = vmatprep.subr.msk.bf16.mxu0 %vm10482_vm1, %v8956_v40 }
 0x9c9   :  { %v9421_v63 = vpop.permute.xlu1 %9420 }
 0x9ca   :  { %v9423_v3 = vunpack.i.h.bf16 %v9421_v63  ;;  %v9422_v38 = vunpack.i.l.bf16 %v9421_v63  ;;  %v12297_v63 = vpack.c.bf16 %v4220_v14, %v4219_v26 }
 0x9cc   :  { %v8962_v62 = vpack.c.bf16 %v9423_v3, %v9422_v38 }
 0x9cd   :  { %v9426_v51 = vpop.permute.xlu0 %9425 }
 0x9ce   :  { %v9428_v30 = vunpack.i.h.bf16 %v9426_v51  ;;  %v9427_v7 = vunpack.i.l.bf16 %v9426_v51  ;;  %v14675_v51 = vmax.f32 %v12048_v11, 0.0  ;;  %v14678_v11 = vmax.f32 %v12060_v12, 0.0 }
 0x9cf   :  { %8961 = vmatpush3.bf16.xpose.msk.msra.mxu0 %vm10482_vm1, %v8956_v40  ;;  %v14684_v12 = vmax.f32 %v12102_v1, 0.0  ;;  %v14689_v1 = vmax.f32 %v12166_v4, 0.0 }
 0x9d0   :  { %8964 = vmatprep.subr.msk.bf16.mxu0 %vm10482_vm1, %v8962_v62  ;;  %v8968_v39 = vpack.c.bf16 %v9428_v30, %v9427_v7  ;;  %v14677_v30 = vmax.f32 %v12062_v58, 0.0  ;;  %v14682_v58 = vmax.f32 %v12088_v16, 0.0  ;;  %v14687_v16 = vmax.f32 %v12132_v8, 0.0 }
 0x9d7   :  { %8967 = vmatpush3.bf16.xpose.msk.msra.mxu0 %vm10482_vm1, %v8962_v62 }
 0x9d8   :  { %8970 = vmatprep.subr.msk.bf16.mxu0 %vm10482_vm1, %v8968_v39 }
 0x9df   :  { %8973 = vmatpush3.bf16.xpose.msk.msra.mxu0 %vm10482_vm1, %v8968_v39 }
 0x9e0   :  { %9011 = vmatprep.subr.bf16.mxu0 %v12297_v63 }
 0x9e6   :  { %8292 = vmatmul.mubr.msk.f32.vlgmr.msra.gmra.mrb[80].mxu0 %vm173_vm0, %v12222_v34 }
 0x9e7   :  { %8294 = vmatprep.mubr.msk.f32.mxu0 %vm173_vm0, %v12235_v10  ;;  %9013 = vmatpush3.bf16.msra.mxu0 %v12297_v63 }
 0x9ea   :  { %8295 = vmatmul.mubr.msk.f32.gmra.mrb[82].mxu0 %vm173_vm0, %v12232_v27 }
 0x9eb   :  { %8297 = vmatprep.mubr.msk.f32.mxu0 %vm173_vm0, %v12243_v47 }
 0x9ee   :  { %8298 = vmatmul.mubr.msk.f32.gmra.mrb[84].mxu0 %vm173_vm0, %v12240_v57 }
 0x9ef   :  { %8300 = vmatprep.mubr.msk.f32.mxu0 %vm173_vm0, %v12251_v60 }
 0x9f2   :  { %8301 = vmatmul.mubr.msk.f32.gmra.mrb[86].mxu0 %vm173_vm0, %v12248_v41 }
 0x9f3   :  { %8303 = vmatprep.mubr.msk.f32.mxu0 %vm173_vm0, %v12259_v59 }
 0x9f6   :  { %8304 = vmatmul.mubr.msk.f32.gmra.mrb[88].mxu0 %vm173_vm0, %v12256_v42 }
 0x9f7   :  { %8306 = vmatprep.mubr.msk.f32.mxu0 %vm173_vm0, %v12267_v17 }
 0x9fa   :  { %8307 = vmatmul.mubr.msk.f32.gmra.mrb[90].mxu0 %vm173_vm0, %v12264_v56 }
 0x9fb   :  { %8309 = vmatprep.mubr.msk.f32.mxu0 %vm173_vm0, %v12275_v49 }
 0x9fc   :  { %v8230_v38 = vpop.f32.mrb[78].mxu0 }
 0x9fd   :  { %v12328_v3 = vadd.f32 %v8230_v38, %v12145_v29  ;;  %v3038_v40 = vpop.f32.mrb[79].mxu0 }
 0x9fe   :  { %v12331_v62 = vadd.f32 %v12145_v29, %v3038_v40  ;;  %8310 = vmatmul.mubr.msk.f32.gmra.mrb[92].mxu0 %vm173_vm0, %v12272_v22  ;;  %v14676_v29 = vmax.f32 %v12046_v5, 0.0  ;;  %v14680_v5 = vmax.f32 %v12074_v36, 0.0  ;;  %v14685_v36 = vmax.f32 %v12118_v53, 0.0 }
 0x9ff   :  { %14673 = vst [vmem:[#allocation106_spill] sm:$0xff] %v12328_v3  ;;  %3317 = vperm.xlu0 %9267, %v12328_v3  }
 0xa00   :  { %14674 = vst [vmem:[#allocation105_spill] sm:$0xff] %v12331_v62  ;;  %3312 = vperm.xlu1 %9268, %v12331_v62   ;;  %8312 = vmatprep.mubr.msk.f32.mxu0 %vm173_vm0, %v12331_v62 }
 0xa02   :  { %8313 = vmatmul.mubr.msk.f32.gmra.mrb[94].mxu0 %vm173_vm0, %v12328_v3 }
 0xa03   :  { %9430 = vrot.lane.b32.xlu0 %v12149_v21, %s10122_s26  ;;  %8403 = vmatprep.mubr.msk.f32.mxu0 %vm173_vm0, %v14675_v51  ;;  %v14681_v21 = vmax.f32 %v12090_v24, 0.0  ;;  %v14688_v24 = vmax.f32 %v12130_v32, 0.0 }
 0xa04   :  { %9435 = vrot.lane.b32.xlu1 %v12155_v37, %s10122_s26  ;;  %v14679_v37 = vmax.f32 %v12076_v61, 0.0  ;;  %v14686_v61 = vmax.f32 %v12116_v35, 0.0 }
 0xa06   :  { %8404 = vmatmul.mubr.msk.f32.vlgmr.msra.gmra.mrb[96].mxu0 %vm173_vm0, %v14676_v29 }
 0xa07   :  { %9440 = vrot.lane.b32.xlu0 %v12161_v18, %s10122_s26  ;;  %8406 = vmatprep.mubr.msk.f32.mxu0 %vm173_vm0, %v14677_v30 }
 0xa08   :  { %9445 = vrot.lane.b32.xlu1 %v12181_v52, %s10122_s26  ;;  %v14683_v52 = vmax.f32 %v12104_v20, 0.0  ;;  %v14690_v20 = vmax.f32 %v12173_v23, 0.0 }
 0xa0a   :  { %8407 = vmatmul.mubr.msk.f32.gmra.mrb[98].mxu0 %vm173_vm0, %v14678_v11 }
 0xa0b   :  { %8409 = vmatprep.mubr.msk.f32.mxu0 %vm173_vm0, %v14679_v37 }
 0xa0e   :  { %8410 = vmatmul.mubr.msk.f32.gmra.mrb[100].mxu0 %vm173_vm0, %v14680_v5  ;;  %v3248_v53 = vpop.permute.xlu0 %3247 }
 0xa0f   :  { %8412 = vmatprep.mubr.msk.f32.mxu0 %vm173_vm0, %v14681_v21  ;;  %v3243_v35 = vpop.permute.xlu1 %3242 }
 0xa12   :  { %8413 = vmatmul.mubr.msk.f32.gmra.mrb[102].mxu0 %vm173_vm0, %v14682_v58 }
 0xa13   :  { %8415 = vmatprep.mubr.msk.f32.mxu0 %vm173_vm0, %v14683_v52 }
 0xa16   :  { %8416 = vmatmul.mubr.msk.f32.gmra.mrb[104].mxu0 %vm173_vm0, %v14684_v12  ;;  %v3258_v18 = vpop.permute.xlu0 %3257 }
 0xa17   :  { %8418 = vmatprep.mubr.msk.f32.mxu0 %vm173_vm0, %v14685_v36  ;;  %v3253_v7 = vpop.permute.xlu1 %3252 }
 0xa1a   :  { %8419 = vmatmul.mubr.msk.f32.gmra.mrb[106].mxu0 %vm173_vm0, %v14686_v61 }
 0xa1b   :  { %8421 = vmatprep.mubr.msk.f32.mxu0 %vm173_vm0, %v14687_v16 }
 0xa1e   :  { %8422 = vmatmul.mubr.msk.f32.gmra.mrb[108].mxu0 %vm173_vm0, %v14688_v24  ;;  %v3268_v39 = vpop.permute.xlu0 %3267 }
 0xa1f   :  { %8424 = vmatprep.mubr.msk.f32.mxu0 %vm173_vm0, %v14689_v1  ;;  %v3263_v8 = vpop.permute.xlu1 %3262 }
 0xa22   :  { %8425 = vmatmul.mubr.msk.f32.gmra.mrb[110].mxu0 %vm173_vm0, %v14690_v20 }
 0xa26   :  { %v12397_v26 = vpop.permute.xlu0 %3277 }
 0xa27   :  { %v12399_v14 = vpop.permute.xlu1 %3272 }
 0xa2e   :  { %v12401_v32 = vpop.permute.xlu0 %3287 }
 0xa2f   :  { %v12403_v38 = vpop.permute.xlu1 %3282 }
 0xa36   :  { %v12405_v4 = vpop.permute.xlu0 %3297 }
 0xa37   :  { %v12407_v40 = vpop.permute.xlu1 %3292 }
 0xa3e   :  { %v12409_v23 = vpop.permute.xlu0 %3307 }
 0xa3f   :  { %v12411_v51 = vpop.permute.xlu1 %3302 }
 0xa7e   :  { %v12413_v29 = vpop.permute.xlu0 %3317 }
 0xa7f   :  { %v12415_v30 = vpop.permute.xlu1 %3312 }
 0xa82   :  { %v9431_v11 = vpop.permute.xlu0 %9430 }
 0xa83   :  { %v9433_v37 = vunpack.i.h.bf16 %v9431_v11  ;;  %v9432_v5 = vunpack.i.l.bf16 %v9431_v11  ;;  %v9436_v21 = vpop.permute.xlu1 %9435  ;;  %v9986_v11 = vld [vmem:[%s14222_s3 + $0x8] sm:$0xff] }
 0xa84   :  { %v9438_v58 = vunpack.i.h.bf16 %v9436_v21  ;;  %v9437_v52 = vunpack.i.l.bf16 %v9436_v21 }
 0xa85   :  { %v8974_v12 = vpack.c.bf16 %v9433_v37, %v9432_v5  ;;  %v3321_v37 = vmul.f32 %v9986_v11, %v3248_v53  ;;  %v9987_v5 = vld [vmem:[%s14222_s3] sm:$0xff] }
 0xa86   :  { %v9441_v36 = vpop.permute.xlu0 %9440  ;;  %v8978_v61 = vpack.c.bf16 %v9438_v58, %v9437_v52  ;;  %v3320_v21 = vmul.f32 %v9987_v5, %v3243_v35 }
 0xa87   :  { %v9443_v16 = vunpack.i.h.bf16 %v9441_v36  ;;  %v9442_v24 = vunpack.i.l.bf16 %v9441_v36  ;;  %8975 = vmatprep.subr.bf16.mxu1 %v8974_v12  ;;  %v9446_v1 = vpop.permute.xlu1 %9445 }
 0xa88   :  { %8977 = vmatpush3.bf16.msra.mxu1 %v8974_v12  ;;  %v9448_v20 = vunpack.i.h.bf16 %v9446_v1  ;;  %v9447_v3 = vunpack.i.l.bf16 %v9446_v1 }
 0xa89   :  { %8979 = vmatprep.subr.bf16.mxu1 %v8978_v61  ;;  %v8982_v22 = vpack.c.bf16 %v9443_v16, %v9442_v24 }
 0xa8a   :  { %v8986_v62 = vpack.c.bf16 %v9448_v20, %v9447_v3 }
 0xa8c   :  { %8981 = vmatpush3.bf16.msra.mxu1 %v8978_v61  ;;  %v9989_v61 = vld [vmem:[%s14222_s3 + $0x10] sm:$0xff] }
 0xa8d   :  { %8983 = vmatprep.subr.bf16.mxu1 %v8982_v22  ;;  %v3322_v53 = vmul.f32 %v9989_v61, %v3253_v7 }
 0xa90   :  { %8985 = vmatpush3.bf16.msra.mxu1 %v8982_v22  ;;  %v9988_v22 = vld [vmem:[%s14222_s3 + $0x18] sm:$0xff] }
 0xa91   :  { %8987 = vmatprep.subr.bf16.mxu1 %v8986_v62  ;;  %v3323_v3 = vmul.f32 %v9988_v22, %v3258_v18 }
 0xa94   :  { %8989 = vmatpush3.bf16.msra.mxu1 %v8986_v62 }
 0xab9   :  { %v8293_v58 = vpop.f32.mrb[80].mxu0 }
 0xaba   :  { %v3520_v52 = vadd.f32 %v8293_v58, %v3321_v37  ;;  %v3514_v12 = vpop.f32.mrb[81].mxu0 }
 0xabb   :  { %v3515_v36 = vadd.f32 %v3514_v12, %v3320_v21  ;;  %v9990_v21 = vld [vmem:[%s14222_s3 + $0x28] sm:$0xff] }
 0xabc   :  { %v3594_v62 = vmul.f32 0.25, %v3520_v52  ;;  %v3325_v7 = vmul.f32 %v9990_v21, %v3268_v39  ;;  %v9991_v52 = vld [vmem:[%s14222_s3 + $0x20] sm:$0xff] }
 0xabd   :  { %v3593_v16 = vmul.f32 0.25, %v3515_v36  ;;  %v8296_v24 = vpop.f32.mrb[82].mxu0  ;;  %v3324_v12 = vmul.f32 %v9991_v52, %v3263_v8 }
 0xabe   :  { %v3530_v1 = vadd.f32 %v8296_v24, %v3323_v3  ;;  %v3524_v20 = vpop.f32.mrb[83].mxu0  ;;  %v12431_v11 = vsel %vm930_vm2, %v3594_v62, -1e+30 }
 0xabf   :  { %v3525_v37 = vadd.f32 %v3524_v20, %v3322_v53  ;;  %3627 = vmax.xlane.f32.xlu0 %v12431_v11  ;;  %v12436_v18 = vsel %vm929_vm3, %v3593_v16, -1e+30 }
 0xac0   :  { %v3596_v58 = vmul.f32 0.25, %v3530_v1  ;;  %3625 = vmax.xlane.f32.xlu1 %v12436_v18  ;;  %v9992_v1 = vld [vmem:[%s14222_s3 + $0x38] sm:$0xff] }
 0xac1   :  { %v3595_v36 = vmul.f32 0.25, %v3525_v37  ;;  %v8299_v22 = vpop.f32.mrb[84].mxu0  ;;  %v3327_v20 = vmul.f32 %v9992_v1, %v12397_v26  ;;  %v9993_v37 = vld [vmem:[%s14222_s3 + $0x30] sm:$0xff]  ;;  %v9994_v1 = vld [vmem:[%s14222_s3 + $0x48] sm:$0xff] }
 0xac2   :  { %v3540_v3 = vadd.f32 %v8299_v22, %v3325_v7  ;;  %v3534_v62 = vpop.f32.mrb[85].mxu0  ;;  %v12447_v53 = vsel %vm932_vm4, %v3596_v58, -1e+30  ;;  %v3326_v21 = vmul.f32 %v9993_v37, %v12399_v14  ;;  %v3329_v24 = vmul.f32 %v9994_v1, %v12401_v32 }
 0xac3   :  { %v3535_v16 = vadd.f32 %v3534_v62, %v3324_v12  ;;  %v12451_v39 = vsel %vm931_vm5, %v3595_v36, -1e+30 }
 0xac4   :  { %v3598_v8 = vmul.f32 0.25, %v3540_v3  ;;  %3629 = vmax.xlane.f32.xlu0 %v12451_v39  ;;  %3631 = vmax.xlane.f32.xlu1 %v12447_v53  ;;  %v9996_v3 = vld [vmem:[%s14222_s3 + $0x58] sm:$0xff] }
 0xac5   :  { %v3597_v7 = vmul.f32 0.25, %v3535_v16  ;;  %v8302_v58 = vpop.f32.mrb[86].mxu0  ;;  %v9995_v16 = vld [vmem:[%s14222_s3 + $0x40] sm:$0xff]  ;;  %v3331_v36 = vmul.f32 %v9996_v3, %v12405_v4 }
 0xac6   :  { %v3550_v52 = vadd.f32 %v8302_v58, %v3327_v20  ;;  %v3544_v12 = vpop.f32.mrb[87].mxu0  ;;  %v12465_v22 = vsel %vm14439_vm6, %v3598_v8, -1e+30  ;;  %v3328_v20 = vmul.f32 %v9995_v16, %v12403_v38  ;;  %v14701_v3 = vld [vmem:[#allocation38_spill] sm:$0xff] }
 0xac7   :  { %v3545_v26 = vadd.f32 %v3544_v12, %v3326_v21  ;;  %v12469_v62 = vsel %vm14438_vm7, %v3597_v7, -1e+30  ;;  %vm14702_vm10 = vcmp.gt.f32.partialorder %v14701_v3, 0.0  ;;  %v10000_v3 = vld [vmem:[%s14222_s3 + $0x78] sm:$0xff] }
 0xac8   :  { %v3600_v14 = vmul.f32 0.25, %v3550_v52  ;;  %3633 = vmax.xlane.f32.xlu0 %v12469_v62  ;;  %3635 = vmax.xlane.f32.xlu1 %v12465_v22  ;;  %v9998_v52 = vld [vmem:[%s14222_s3 + $0x68] sm:$0xff] }
 0xac9   :  { %v3599_v8 = vmul.f32 0.25, %v3545_v26  ;;  %v8305_v37 = vpop.f32.mrb[88].mxu0  ;;  %v3333_v58 = vmul.f32 %v9998_v52, %v12409_v23  ;;  %v14705_v52 = vld [vmem:[#allocation42_spill] sm:$0xff] }
 0xaca   :  { %v3560_v21 = vadd.f32 %v8305_v37, %v3329_v24  ;;  %v3554_v7 = vpop.f32.mrb[89].mxu0  ;;  %v12483_v12 = vsel %vm14437_vm8, %v3600_v14, -1e+30  ;;  %v9997_v24 = vld [vmem:[%s14222_s3 + $0x50] sm:$0xff]  ;;  %vm14706_vm15 = vcmp.gt.f32.partialorder %v14705_v52, 0.0 }
 0xacb   :  { %v3555_v32 = vadd.f32 %v3554_v7, %v3328_v20  ;;  %v12487_v1 = vsel %vm14436_vm9, %v3599_v8, -1e+30  ;;  %v3330_v26 = vmul.f32 %v9997_v24, %v12407_v40  ;;  %v14699_v37 = vld [vmem:[#allocation36_spill] sm:$0xff]  ;;  %v12546_v52 = vld [vmem:[%s14224_s5 + $0x3] ss:$0 sm:$0xff] }
 0xacc   :  { %v3602_v38 = vmul.f32 0.25, %v3560_v21  ;;  %3637 = vmax.xlane.f32.xlu0 %v12487_v1  ;;  %3639 = vmax.xlane.f32.xlu1 %v12483_v12  ;;  %vm14700_vm13 = vcmp.gt.f32.partialorder %v14699_v37, 0.0  ;;  %v3335_v37 = vmul.f32 %v10000_v3, %v12413_v29  ;;  %v14709_v3 = vld [vmem:[#allocation46_spill] sm:$0xff] }
 0xacd   :  { %v3601_v14 = vmul.f32 0.25, %v3555_v32  ;;  %v8308_v16 = vpop.f32.mrb[90].mxu0 }
 0xace   :  { %v3570_v20 = vadd.f32 %v8308_v16, %v3331_v36  ;;  %v3564_v8 = vpop.f32.mrb[91].mxu0  ;;  %v12501_v7 = vsel %vm14700_vm13, %v3602_v38, -1e+30  ;;  %v9999_v36 = vld [vmem:[%s14222_s3 + $0x60] sm:$0xff]  ;;  %v14703_v16 = vld [vmem:[#allocation40_spill] sm:$0xff] }
 0xacf   :  { %v3565_v4 = vadd.f32 %v3564_v8, %v3330_v26  ;;  %v12505_v21 = vsel %vm14702_vm10, %v3601_v14, -1e+30  ;;  %v3332_v32 = vmul.f32 %v9999_v36, %v12411_v51  ;;  %vm14704_vm12 = vcmp.gt.f32.partialorder %v14703_v16, 0.0 }
 0xad0   :  { %v3604_v40 = vmul.f32 0.25, %v3570_v20  ;;  %3641 = vmax.xlane.f32.xlu0 %v12505_v21  ;;  %3643 = vmax.xlane.f32.xlu1 %v12501_v7  ;;  %vm14710_vm10 = vcmp.gt.f32.partialorder %v14709_v3, 0.0 }
 0xad1   :  { %v3603_v38 = vmul.f32 0.25, %v3565_v4  ;;  %v8311_v24 = vpop.f32.mrb[92].mxu0 }
 0xad2   :  { %v3580_v26 = vadd.f32 %v8311_v24, %v3333_v58  ;;  %v3574_v14 = vpop.f32.mrb[93].mxu0  ;;  %v12519_v8 = vsel %vm14704_vm12, %v3604_v40, -1e+30  ;;  %v10001_v58 = vld [vmem:[%s14222_s3 + $0x70] sm:$0xff] }
 0xad3   :  { %v3575_v23 = vadd.f32 %v3574_v14, %v3332_v32  ;;  %v12523_v20 = vsel %vm14706_vm15, %v3603_v38, -1e+30  ;;  %v3334_v4 = vmul.f32 %v10001_v58, %v12415_v30  ;;  %v14707_v24 = vld [vmem:[#allocation44_spill] sm:$0xff] }
 0xad4   :  { %v3606_v51 = vmul.f32 0.25, %v3580_v26  ;;  %3645 = vmax.xlane.f32.xlu0 %v12523_v20  ;;  %3647 = vmax.xlane.f32.xlu1 %v12519_v8  ;;  %vm14708_vm13 = vcmp.gt.f32.partialorder %v14707_v24, 0.0  ;;  %v14711_v58 = vld [vmem:[#allocation48_spill] sm:$0xff] }
 0xad5   :  { %v3605_v40 = vmul.f32 0.25, %v3575_v23  ;;  %v8314_v36 = vpop.f32.mrb[94].mxu0  ;;  %vm14712_vm12 = vcmp.gt.f32.partialorder %v14711_v58, 0.0 }
 0xad6   :  { %v3590_v32 = vadd.f32 %v8314_v36, %v3335_v37  ;;  %v3584_v38 = vpop.f32.mrb[95].mxu0  ;;  %v12537_v14 = vsel %vm14708_vm13, %v3606_v51, -1e+30  ;;  %v14713_v36 = vld [vmem:[#allocation49_spill] sm:$0xff] }
 0xad7   :  { %v3585_v29 = vadd.f32 %v3584_v38, %v3334_v4  ;;  %v12541_v26 = vsel %vm14710_vm10, %v3605_v40, -1e+30  ;;  %vm14714_vm15 = vcmp.gt.f32.partialorder %v14713_v36, 0.0 }
 0xad8   :  { %v3608_v16 = vmul.f32 0.25, %v3590_v32  ;;  %3649 = vmax.xlane.f32.xlu0 %v12541_v26  ;;  %3651 = vmax.xlane.f32.xlu1 %v12537_v14 }
 0xad9   :  { %v3607_v30 = vmul.f32 0.25, %v3585_v29  ;;  %v8405_v37 = vpop.f32.mrb[96].mxu0 }
 0xada   :  { %v4443_v23 = vadd.f32 %v8405_v37, %v12546_v52  ;;  %v4437_v51 = vpop.f32.mrb[97].mxu0  ;;  %v12553_v4 = vsel %vm14712_vm12, %v3608_v16, -1e+30 }
 0xadb   :  { %v4438_v40 = vadd.f32 %v12546_v52, %v4437_v51  ;;  %v12558_v38 = vsel %vm14714_vm15, %v3607_v30, -1e+30 }
 0xadc   :  { %3653 = vmax.xlane.f32.xlu0 %v12558_v38  ;;  %3655 = vmax.xlane.f32.xlu1 %v12553_v4 }
 0xadd   :  { %v12562_v32 = vpack.i.bf16 %v4443_v23, %v4438_v40  ;;  %v8408_v29 = vpop.f32.mrb[98].mxu0 }
 0xade   :  { %v4453_v37 = vadd.f32 %v8408_v29, %v12546_v52  ;;  %v4447_v3 = vpop.f32.mrb[99].mxu0 }
 0xadf   :  { %v4448_v58 = vadd.f32 %v12546_v52, %v4447_v3 }
 0xae1   :  { %v12566_v16 = vpack.i.bf16 %v4453_v37, %v4448_v58  ;;  %v8411_v24 = vpop.f32.mrb[100].mxu0 }
 0xae2   :  { %v4463_v51 = vadd.f32 %v8411_v24, %v12546_v52  ;;  %v4457_v36 = vpop.f32.mrb[101].mxu0 }
 0xae3   :  { %v4458_v30 = vadd.f32 %v12546_v52, %v4457_v36 }
 0xae5   :  { %v12570_v61 = vpack.i.bf16 %v4463_v51, %v4458_v30  ;;  %v8414_v5 = vpop.f32.mrb[102].mxu0 }
 0xae6   :  { %v4473_v23 = vadd.f32 %v8414_v5, %v12546_v52  ;;  %v4467_v40 = vpop.f32.mrb[103].mxu0 }
 0xae7   :  { %v4468_v35 = vadd.f32 %v12546_v52, %v4467_v40 }
 0xae9   :  { %v12574_v29 = vpack.i.bf16 %v4473_v23, %v4468_v35  ;;  %v8417_v56 = vpop.f32.mrb[104].mxu0 }
 0xaea   :  { %v4483_v3 = vadd.f32 %v8417_v56, %v12546_v52  ;;  %v4477_v58 = vpop.f32.mrb[105].mxu0 }
 0xaeb   :  { %v4478_v37 = vadd.f32 %v12546_v52, %v4477_v58 }
 0xaed   :  { %v12578_v24 = vpack.i.bf16 %v4483_v3, %v4478_v37  ;;  %v8420_v49 = vpop.f32.mrb[106].mxu0  ;;  %9455 = vrot.lane.b32.xlu1 %v12193_v31, %s10122_s26 }
 0xaee   :  { %v4493_v36 = vadd.f32 %v8420_v49, %v12546_v52  ;;  %v4487_v5 = vpop.f32.mrb[107].mxu0 }
 0xaef   :  { %v4488_v51 = vadd.f32 %v12546_v52, %v4487_v5 }
 0xaf1   :  { %v12584_v30 = vpack.i.bf16 %v4493_v36, %v4488_v51  ;;  %v8423_v35 = vpop.f32.mrb[108].mxu0 }
 0xaf2   :  { %v4503_v23 = vadd.f32 %v8423_v35, %v12546_v52  ;;  %v4497_v56 = vpop.f32.mrb[109].mxu0  ;;  %9450 = vrot.lane.b32.xlu0 %v12187_v0, %s10122_s26 }
 0xaf3   :  { %v4498_v40 = vadd.f32 %v12546_v52, %v4497_v56 }
 0xaf5   :  { %v12590_v3 = vpack.i.bf16 %v4503_v23, %v4498_v40  ;;  %v8426_v58 = vpop.f32.mrb[110].mxu0 }
 0xaf6   :  { %v4513_v31 = vadd.f32 %v8426_v58, %v12546_v52  ;;  %v4507_v49 = vpop.f32.mrb[111].mxu0 }
 0xaf7   :  { %v4508_v37 = vadd.f32 %v12546_v52, %v4507_v49 }
 0xaf9   :  { %v12594_v5 = vpack.i.bf16 %v4513_v31, %v4508_v37 }
 0xb4c   :  { %v3628_v36 = vpop.xlane.xlu0 %3627 }
 0xb4d   :  { %v3658_v51 = vsub.f32 %v12431_v11, %v3628_v36  ;;  %v3626_v35 = vpop.xlane.xlu1 %3625 }
 0xb4e   :  { %v3657_v42 = vsub.f32 %v12436_v18, %v3626_v35 }
 0xb4f   :  { %v3675_v17 = vmul.f32 1.442695, %v3658_v51 }
 0xb50   :  { %v3673_v0 = vmul.f32 1.442695, %v3657_v42 }
 0xb51   :  { %9759 = vpow2.f32 %v3675_v17  ;;  %v3630_v56 = vpop.xlane.xlu0 %3629  ;;  %v3632_v23 = vpop.xlane.xlu1 %3631 }
 0xb52   :  { %9761 = vpow2.f32 %v3673_v0  ;;  %v3659_v40 = vsub.f32 %v12451_v39, %v3630_v56  ;;  %v3660_v58 = vsub.f32 %v12447_v53, %v3632_v23  ;;  %v10002_v53 = vld [vmem:[%s14221_s2 + $0x8] sm:$0xff] }
 0xb54   :  { %v3679_v59 = vmul.f32 1.442695, %v3660_v58  ;;  %v3677_v49 = vmul.f32 1.442695, %v3659_v40 }
 0xb55   :  { %v3634_v31 = vpop.xlane.xlu0 %3633  ;;  %v3636_v37 = vpop.xlane.xlu1 %3635 }
 0xb56   :  { %v3661_v41 = vsub.f32 %v12469_v62, %v3634_v31  ;;  %v3662_v11 = vsub.f32 %v12465_v22, %v3636_v37  ;;  %9763 = vpow2.f32 %v3679_v59  ;;  %v10004_v31 = vld [vmem:[%s14221_s2 + $0x18] sm:$0xff] }
 0xb57   :  { %9765 = vpow2.f32 %v3677_v49 }
 0xb58   :  { %v3683_v18 = vmul.f32 1.442695, %v3662_v11  ;;  %v3681_v42 = vmul.f32 1.442695, %v3661_v41  ;;  %v10003_v41 = vld [vmem:[%s14221_s2] sm:$0xff] }
 0xb59   :  { %v3638_v17 = vpop.xlane.xlu0 %3637  ;;  %v3640_v36 = vpop.xlane.xlu1 %3639 }
 0xb5a   :  { %v3664_v51 = vsub.f32 %v12483_v12, %v3640_v36  ;;  %9767 = vpow2.f32 %v3683_v18  ;;  %v3663_v22 = vsub.f32 %v12487_v1, %v3638_v17 }
 0xb5b   :  { %v9760_v35 = vpop.eup %9759  ;;  %9769 = vpow2.f32 %v3681_v42 }
 0xb5c   :  { %v9762_v39 = vpop.eup %9761  ;;  %v12606_v0 = vmul.f32 %v10002_v53, %v9760_v35  ;;  %v3687_v59 = vmul.f32 1.442695, %v3664_v51  ;;  %v3685_v40 = vmul.f32 1.442695, %v3663_v22 }
 0xb5d   :  { %v3642_v62 = vpop.xlane.xlu0 %3641  ;;  %v12609_v56 = vpop.xlane.xlu1 %3643  ;;  %v12614_v12 = vmul.f32 %v10003_v41, %v9762_v39  ;;  %v10006_v39 = vld [vmem:[%s14221_s2 + $0x28] sm:$0xff] }
 0xb5e   :  { %3723 = vadd.xlane.f32.xlu0 %v12606_v0  ;;  %9771 = vpow2.f32 %v3687_v59  ;;  %v3665_v58 = vsub.f32 %v12505_v21, %v3642_v62  ;;  %v10005_v21 = vld [vmem:[%s14221_s2 + $0x10] sm:$0xff] }
 0xb5f   :  { %3721 = vadd.xlane.f32.xlu1 %v12614_v12  ;;  %9773 = vpow2.f32 %v3685_v40 }
 0xb60   :  { %v9764_v23 = vpop.eup %9763  ;;  %v3689_v42 = vmul.f32 1.442695, %v3665_v58 }
 0xb61   :  { %v3646_v1 = vpop.xlane.xlu0 %3645  ;;  %v3648_v49 = vpop.xlane.xlu1 %3647  ;;  %v12622_v37 = vmul.f32 %v10004_v31, %v9764_v23  ;;  %v10007_v23 = vld [vmem:[%s14221_s2 + $0x20] sm:$0xff] }
 0xb62   :  { %v9766_v11 = vpop.eup %9765  ;;  %v3668_v17 = vsub.f32 %v12519_v8, %v3648_v49  ;;  %9775 = vpow2.f32 %v3689_v42  ;;  %v3667_v8 = vsub.f32 %v12523_v20, %v3646_v1  ;;  %v10008_v20 = vld [vmem:[%s14221_s2 + $0x38] sm:$0xff] }
 0xb63   :  { %3727 = vadd.xlane.f32.xlu1 %v12622_v37  ;;  %v12631_v35 = vmul.f32 %v10005_v21, %v9766_v11 }
 0xb64   :  { %v9768_v18 = vpop.eup %9767  ;;  %v3695_v59 = vmul.f32 1.442695, %v3668_v17  ;;  %v3693_v49 = vmul.f32 1.442695, %v3667_v8  ;;  %v10009_v8 = vld [vmem:[%s14221_s2 + $0x30] sm:$0xff] }
 0xb65   :  { %v3650_v36 = vpop.xlane.xlu0 %3649  ;;  %v12626_v51 = vpop.xlane.xlu1 %3651  ;;  %v12636_v53 = vmul.f32 %v10006_v39, %v9768_v18 }
 0xb66   :  { %v9770_v22 = vpop.eup %9769  ;;  %9777 = vpow2.f32 %v3695_v59 }
 0xb67   :  { %3725 = vadd.xlane.f32.xlu1 %v12631_v35  ;;  %3731 = vadd.xlane.f32.xlu0 %v12636_v53  ;;  %v12644_v40 = vmul.f32 %v10007_v23, %v9770_v22  ;;  %9779 = vpow2.f32 %v3693_v49 }
 0xb68   :  { %v9772_v58 = vpop.eup %9771 }
 0xb69   :  { %v3654_v62 = vpop.xlane.xlu0 %3653  ;;  %v3656_v41 = vpop.xlane.xlu1 %3655  ;;  %v12650_v1 = vmul.f32 %v10008_v20, %v9772_v58  ;;  %v10010_v58 = vld [vmem:[%s14221_s2 + $0x40] sm:$0xff]  ;;  %v10012_v20 = vld [vmem:[%s14221_s2 + $0x50] sm:$0xff] }
 0xb6a   :  { %v9774_v17 = vpop.eup %9773 }
 0xb6b   :  { %3729 = vadd.xlane.f32.xlu1 %v12644_v40  ;;  %v12656_v59 = vmul.f32 %v10009_v8, %v9774_v17  ;;  %v3669_v8 = vsub.f32 %v12541_v26, %v3650_v36 }
 0xb6d   :  { %v9451_v31 = vpop.permute.xlu0 %9450  ;;  %v9456_v11 = vpop.permute.xlu1 %9455 }
 0xb6e   :  { %v9453_v18 = vunpack.i.h.bf16 %v9451_v31  ;;  %v9452_v42 = vunpack.i.l.bf16 %v9451_v31  ;;  %v9458_v21 = vunpack.i.h.bf16 %v9456_v11  ;;  %v9457_v39 = vunpack.i.l.bf16 %v9456_v11  ;;  %v9776_v31 = vpop.eup %9775 }
 0xb6f   :  { %3735 = vadd.xlane.f32.xlu1 %v12650_v1  ;;  %v12662_v11 = vmul.f32 %v10010_v58, %v9776_v31  ;;  %v3671_v31 = vsub.f32 %v12558_v38, %v3654_v62  ;;  %v3672_v58 = vsub.f32 %v12553_v4, %v3656_v41  ;;  %v10014_v4 = vld [vmem:[%s14221_s2 + $0x60] sm:$0xff]  ;;  %v10015_v41 = vld [vmem:[%s14221_s2 + $0x70] sm:$0xff] }
 0xb70   :  { %v8990_v22 = vpack.c.bf16 %v9453_v18, %v9452_v42  ;;  %v8994_v23 = vpack.c.bf16 %v9458_v21, %v9457_v39  ;;  %v9778_v49 = vpop.eup %9777  ;;  %v10011_v18 = vld [vmem:[%s14221_s2 + $0x58] sm:$0xff]  ;;  %v3666_v39 = vsub.f32 %v12501_v7, %v12609_v56  ;;  %v10013_v7 = vld [vmem:[%s14221_s2 + $0x48] sm:$0xff] }
 0xb71   :  { %v12668_v42 = vmul.f32 %v10011_v18, %v9778_v49  ;;  %v9780_v21 = vpop.eup %9779  ;;  %v3703_v49 = vmul.f32 1.442695, %v3672_v58 }
 0xb72   :  { %8991 = vmatprep.subr.bf16.mxu1 %v8990_v22  ;;  %v12676_v17 = vmul.f32 %v10012_v20, %v9780_v21 }
 0xb73   :  { %8993 = vmatpush3.bf16.msra.mxu1 %v8990_v22  ;;  %3733 = vadd.xlane.f32.xlu1 %v12656_v59  ;;  %v3691_v22 = vmul.f32 1.442695, %v3666_v39 }
 0xb74   :  { %8995 = vmatprep.subr.bf16.mxu1 %v8994_v23 }
 0xb75   :  { %9781 = vpow2.f32 %v3691_v22  ;;  %v10017_v22 = vld [vmem:[%s14221_s2 + $0x68] sm:$0xff] }
 0xb77   :  { %8997 = vmatpush3.bf16.msra.mxu1 %v8994_v23  ;;  %3737 = vadd.xlane.f32.xlu1 %v12662_v11  ;;  %v3697_v23 = vmul.f32 1.442695, %v3669_v8 }
 0xb79   :  { %9783 = vpow2.f32 %v3697_v23 }
 0xb7b   :  { %3743 = vadd.xlane.f32.xlu1 %v12668_v42 }
 0xb7d   :  { %9460 = vrot.lane.b32.xlu0 %v12199_v45, %s10122_s26  ;;  %v3701_v45 = vmul.f32 1.442695, %v3671_v31 }
 0xb7f   :  { %3741 = vadd.xlane.f32.xlu1 %v12676_v17  ;;  %9785 = vpow2.f32 %v3701_v45  ;;  %v9782_v18 = vpop.eup %9781 }
 0xb80   :  { %9787 = vpow2.f32 %v3703_v49  ;;  %v12689_v26 = vmul.f32 %v10013_v7, %v9782_v18 }
 0xb83   :  { %v9784_v56 = vpop.eup %9783 }
 0xb84   :  { %v12697_v38 = vmul.f32 %v10014_v4, %v9784_v56 }
 0xb89   :  { %v9786_v36 = vpop.eup %9785 }
 0xb8a   :  { %v12703_v21 = vmul.f32 %v10015_v41, %v9786_v36  ;;  %v9788_v20 = vpop.eup %9787 }
 0xb90   :  { %9465 = vrot.lane.b32.xlu1 %v12205_v2, %s10122_s26  ;;  %v3670_v2 = vsub.f32 %v12537_v14, %v12626_v51  ;;  %v10016_v14 = vld [vmem:[%s14221_s2 + $0x78] sm:$0xff] }
 0xb91   :  { %v12709_v51 = vmul.f32 %v10016_v14, %v9788_v20 }
 0xb92   :  { %v3699_v62 = vmul.f32 1.442695, %v3670_v2 }
 0xb94   :  { %9789 = vpow2.f32 %v3699_v62 }
 0xb9c   :  { %3739 = vadd.xlane.f32.xlu0 %v12689_v26 }
 0xb9e   :  { %v9790_v39 = vpop.eup %9789 }
 0xb9f   :  { %v12715_v8 = vmul.f32 %v10017_v22, %v9790_v39 }
 0xba0   :  { %3745 = vadd.xlane.f32.xlu0 %v12697_v38 }
 0xba4   :  { %3749 = vadd.xlane.f32.xlu0 %v12703_v21 }
 0xba8   :  { %3751 = vadd.xlane.f32.xlu0 %v12709_v51 }
 0xbb4   :  { %3747 = vadd.xlane.f32.xlu1 %v12715_v8 }
 0xbbe   :  { %9470 = vrot.lane.b32.xlu0 %v12562_v32, %s10121_s0 }
 0xbc2   :  { %9480 = vrot.lane.b32.xlu0 %v12570_v61, %s10121_s0 }
 0xbc5   :  { %9475 = vrot.lane.b32.xlu1 %v12566_v16, %s10121_s0 }
 0xbc6   :  { %9485 = vrot.lane.b32.xlu0 %v12574_v29, %s10121_s0 }
 0xbc9   :  { %9500 = vrot.lane.b32.xlu1 %v12590_v3, %s10121_s0 }
 0xbca   :  { %9490 = vrot.lane.b32.xlu0 %v12578_v24, %s10121_s0 }
 0xbcd   :  { %9515 = vrot.lane.b32.xlu1 %v12566_v16, %s10122_s26 }
 0xbce   :  { %9495 = vrot.lane.b32.xlu0 %v12584_v30, %s10121_s0 }
 0xbd1   :  { %9520 = vrot.lane.b32.xlu1 %v12570_v61, %s10122_s26 }
 0xbd2   :  { %9505 = vrot.lane.b32.xlu0 %v12594_v5, %s10121_s0 }
 0xbd5   :  { %9530 = vrot.lane.b32.xlu1 %v12578_v24, %s10122_s26 }
 0xbd6   :  { %9510 = vrot.lane.b32.xlu0 %v12562_v32, %s10122_s26 }
 0xbd9   :  { %9535 = vrot.lane.b32.xlu1 %v12584_v30, %s10122_s26 }
 0xbda   :  { %9525 = vrot.lane.b32.xlu0 %v12574_v29, %s10122_s26 }
 0xbdd   :  { %9545 = vrot.lane.b32.xlu1 %v12594_v5, %s10122_s26 }
 0xbde   :  { %9540 = vrot.lane.b32.xlu0 %v12590_v3, %s10122_s26 }
 0xbeb   :  { %v3724_v24 = vpop.xlane.xlu0 %3723 }
 0xbec   :  { %v3722_v61 = vpop.xlane.xlu1 %3721  ;;  %vm3754_vm10 = vcmp.gt.f32.partialorder %v3724_v24, 0.0 }
 0xbed   :  { %vm3753_vm13 = vcmp.gt.f32.partialorder %v3722_v61, 0.0  ;;  %v3770_v2 = vsel %vm3754_vm10, %v3724_v24, 1.0 }
 0xbee   :  { %v3769_v16 = vsel %vm3753_vm13, %v3722_v61, 1.0 }
 0xbef   :  { %9791 = vrcp.f32 %v3769_v16 }
 0xbf0   :  { %v3728_v23 = vpop.xlane.xlu1 %3727  ;;  %9793 = vrcp.f32 %v3770_v2 }
 0xbf1   :  { %vm3756_vm15 = vcmp.gt.f32.partialorder %v3728_v23, 0.0 }
 0xbf2   :  { %v3772_v62 = vsel %vm3756_vm15, %v3728_v23, 1.0 }
 0xbf4   :  { %v3732_v31 = vpop.xlane.xlu0 %3731  ;;  %v3726_v32 = vpop.xlane.xlu1 %3725 }
 0xbf5   :  { %vm3755_vm12 = vcmp.gt.f32.partialorder %v3726_v32, 0.0  ;;  %vm3758_vm9 = vcmp.gt.f32.partialorder %v3732_v31, 0.0 }
 0xbf6   :  { %v3771_v4 = vsel %vm3755_vm12, %v3726_v32, 1.0  ;;  %v3774_v20 = vsel %vm3758_vm9, %v3732_v31, 1.0 }
 0xbf7   :  { %9795 = vrcp.f32 %v3771_v4 }
 0xbf8   :  { %v9461_v58 = vpop.permute.xlu0 %9460  ;;  %v3730_v30 = vpop.xlane.xlu1 %3729  ;;  %9797 = vrcp.f32 %v3772_v62 }
 0xbf9   :  { %v9792_v45 = vpop.eup %9791  ;;  %v9463_v49 = vunpack.i.h.bf16 %v9461_v58  ;;  %v9462_v18 = vunpack.i.l.bf16 %v9461_v58  ;;  %vm3757_vm13 = vcmp.gt.f32.partialorder %v3730_v30, 0.0 }
 0xbfa   :  { %v12751_v29 = vmul.f32 %v9792_v45, %v12614_v12  ;;  %v3773_v12 = vsel %vm3757_vm13, %v3730_v30, 1.0  ;;  %v9794_v32 = vpop.eup %9793 }
 0xbfb   :  { %v8998_v5 = vpack.c.bf16 %v9463_v49, %v9462_v18  ;;  %9799 = vrcp.f32 %v3773_v12  ;;  %v12755_v31 = vmul.f32 %v9794_v32, %v12606_v0 }
 0xbfc   :  { %8347 = vmatprep.mubr.f32.mxu1 %v12751_v29  ;;  %v3736_v3 = vpop.xlane.xlu1 %3735  ;;  %9801 = vrcp.f32 %v3774_v20 }
 0xbfd   :  { %8999 = vmatprep.subr.bf16.mxu1 %v8998_v5  ;;  %vm3760_vm7 = vcmp.gt.f32.partialorder %v3736_v3, 0.0 }
 0xbfe   :  { %9001 = vmatpush3.bf16.msra.mxu1 %v8998_v5  ;;  %v3776_v16 = vsel %vm3760_vm7, %v3736_v3, 1.0 }
 0xc00   :  { %v3734_v7 = vpop.xlane.xlu1 %3733 }
 0xc01   :  { %vm3759_vm8 = vcmp.gt.f32.partialorder %v3734_v7, 0.0  ;;  %v9796_v45 = vpop.eup %9795 }
 0xc02   :  { %v3775_v14 = vsel %vm3759_vm8, %v3734_v7, 1.0  ;;  %v9798_v58 = vpop.eup %9797  ;;  %v12759_v30 = vmul.f32 %v9796_v45, %v12631_v35 }
 0xc03   :  { %9803 = vrcp.f32 %v3775_v14  ;;  %v12765_v18 = vmul.f32 %v9798_v58, %v12622_v37 }
 0xc04   :  { %v3738_v56 = vpop.xlane.xlu1 %3737  ;;  %9805 = vrcp.f32 %v3776_v16 }
 0xc05   :  { %vm3761_vm6 = vcmp.gt.f32.partialorder %v3738_v56, 0.0  ;;  %v9800_v49 = vpop.eup %9799 }
 0xc06   :  { %v3777_v23 = vsel %vm3761_vm6, %v3738_v56, 1.0  ;;  %v9802_v5 = vpop.eup %9801  ;;  %v12768_v0 = vmul.f32 %v9800_v49, %v12644_v40 }
 0xc07   :  { %9807 = vrcp.f32 %v3777_v23  ;;  %v12773_v35 = vmul.f32 %v9802_v5, %v12636_v53 }
 0xc08   :  { %v3744_v36 = vpop.xlane.xlu1 %3743 }
 0xc09   :  { %14715 = vst [vmem:[#allocation108_spill] sm:$0xff] %v12773_v35  ;;  %vm3764_vm7 = vcmp.gt.f32.partialorder %v3744_v36, 0.0 }
 0xc0a   :  { %v3780_v2 = vsel %vm3764_vm7, %v3744_v36, 1.0 }
 0xc0c   :  { %v3742_v41 = vpop.xlane.xlu1 %3741 }
 0xc0d   :  { %v9804_v3 = vpop.eup %9803  ;;  %vm3763_vm6 = vcmp.gt.f32.partialorder %v3742_v41, 0.0 }
 0xc0e   :  { %v9806_v7 = vpop.eup %9805  ;;  %v12776_v56 = vmul.f32 %v9804_v3, %v12656_v59  ;;  %v3779_v53 = vsel %vm3763_vm6, %v3742_v41, 1.0 }
 0xc0f   :  { %v12781_v37 = vmul.f32 %v9806_v7, %v12650_v1  ;;  %9809 = vrcp.f32 %v3779_v53 }
 0xc10   :  { %v9466_v39 = vpop.permute.xlu1 %9465  ;;  %14716 = vst [vmem:[#allocation107_spill] sm:$0xff] %v12776_v56 }
 0xc11   :  { %v9468_v22 = vunpack.i.h.bf16 %v9466_v39  ;;  %v9467_v61 = vunpack.i.l.bf16 %v9466_v39  ;;  %14717 = vst [vmem:[#allocation9_spill] sm:$0xff] %v12781_v37 }
 0xc13   :  { %v9002_v24 = vpack.c.bf16 %v9468_v22, %v9467_v61 }
 0xc15   :  { %9003 = vmatprep.subr.bf16.mxu1 %v9002_v24 }
 0xc16   :  { %9005 = vmatpush3.bf16.msra.mxu1 %v9002_v24 }
 0xc17   :  { %9007 = vmatprep.subr.bf16.mxu1 %v12297_v63 }
 0xc19   :  { %8348 = vmatmul.mubr.f32.vlgmr.msra.gmra.mrb[80].mxu1 %v12755_v31 }
 0xc1a   :  { %8350 = vmatprep.mubr.f32.mxu1 %v12759_v30  ;;  %9009 = vmatpush3.bf16.msra.mxu1 %v12297_v63  ;;  %v9808_v63 = vpop.eup %9807 }
 0xc1b   :  { %v12784_v40 = vmul.f32 %v9808_v63, %v12662_v11  ;;  %v9810_v12 = vpop.eup %9809 }
 0xc1c   :  { %v12792_v41 = vmul.f32 %v9810_v12, %v12676_v17 }
 0xc1d   :  { %8351 = vmatmul.mubr.f32.gmra.mrb[82].mxu1 %v12765_v18  ;;  %14718 = vst [vmem:[#allocation10_spill] sm:$0xff] %v12784_v40 }
 0xc1e   :  { %8353 = vmatprep.mubr.f32.mxu1 %v12768_v0  ;;  %14720 = vst [vmem:[#allocation12_spill] sm:$0xff] %v12792_v41 }
 0xc21   :  { %8354 = vmatmul.mubr.f32.gmra.mrb[84].mxu1 %v12773_v35 }
 0xc22   :  { %8356 = vmatprep.mubr.f32.mxu1 %v12776_v56 }
 0xc25   :  { %8357 = vmatmul.mubr.f32.gmra.mrb[86].mxu1 %v12781_v37 }
 0xc26   :  { %8359 = vmatprep.mubr.f32.mxu1 %v12784_v40 }
 0xc29   :  { %v3740_v59 = vpop.xlane.xlu0 %3739 }
 0xc2a   :  { %vm3762_vm8 = vcmp.gt.f32.partialorder %v3740_v59, 0.0 }
 0xc2b   :  { %v3778_v4 = vsel %vm3762_vm8, %v3740_v59, 1.0 }
 0xc2c   :  { %9811 = vrcp.f32 %v3778_v4 }
 0xc2d   :  { %v3746_v62 = vpop.xlane.xlu0 %3745  ;;  %9813 = vrcp.f32 %v3780_v2 }
 0xc2e   :  { %vm3765_vm9 = vcmp.gt.f32.partialorder %v3746_v62, 0.0 }
 0xc2f   :  { %v3781_v1 = vsel %vm3765_vm9, %v3746_v62, 1.0 }
 0xc30   :  { %9815 = vrcp.f32 %v3781_v1 }
 0xc31   :  { %v3750_v11 = vpop.xlane.xlu0 %3749 }
 0xc32   :  { %vm3767_vm10 = vcmp.gt.f32.partialorder %v3750_v11, 0.0 }
 0xc33   :  { %v3783_v17 = vsel %vm3767_vm10, %v3750_v11, 1.0 }
 0xc34   :  { %9817 = vrcp.f32 %v3783_v17 }
 0xc35   :  { %v3752_v20 = vpop.xlane.xlu0 %3751 }
 0xc36   :  { %v9812_v14 = vpop.eup %9811  ;;  %vm3768_vm12 = vcmp.gt.f32.partialorder %v3752_v20, 0.0 }
 0xc37   :  { %v12789_v39 = vmul.f32 %v9812_v14, %v12689_v26  ;;  %v9814_v22 = vpop.eup %9813 }
 0xc38   :  { %v12797_v32 = vmul.f32 %v9814_v22, %v12668_v42 }
 0xc39   :  { %14719 = vst [vmem:[#allocation8_spill] sm:$0xff] %v12789_v39  ;;  %v9471_v36 = vpop.permute.xlu0 %9470  ;;  %8360 = vmatmul.mubr.f32.gmra.mrb[88].mxu1 %v12789_v39 }
 0xc3a   :  { %v9816_v61 = vpop.eup %9815  ;;  %v9473_v16 = vunpack.i.h.bf16 %v9471_v36  ;;  %v9472_v24 = vunpack.i.l.bf16 %v9471_v36  ;;  %8362 = vmatprep.mubr.f32.mxu1 %v12792_v41  ;;  %14721 = vst [vmem:[#allocation11_spill] sm:$0xff] %v12797_v32 }
 0xc3b   :  { %v12800_v23 = vmul.f32 %v9816_v61, %v12697_v38  ;;  %v3784_v38 = vsel %vm3768_vm12, %v3752_v20, 1.0 }
 0xc3c   :  { %v9014_v26 = vpack.c.bf16 %v9473_v16, %v9472_v24 }
 0xc3d   :  { %14722 = vst [vmem:[#allocation14_spill] sm:$0xff] %v12800_v23  ;;  %v12802_v45 = vpop.permute.xlu0 %9480  ;;  %8363 = vmatmul.mubr.f32.gmra.mrb[90].mxu1 %v12797_v32  ;;  %v14785_v32 = vld [vmem:[#allocation61_spill] sm:$0xff] }
 0xc3e   :  { %8365 = vmatprep.mubr.f32.mxu1 %v12800_v23  ;;  %9016 = vmatprep.subr.msk.bf16.mxu1 %vm10482_vm1, %v9014_v26  ;;  %v9818_v53 = vpop.eup %9817  ;;  %vm14786_vm6 = vcmp.gt.f32.partialorder %v14785_v32, 0.0 }
 0xc3f   :  { %v12822_v11 = vmul.f32 %v9818_v53, %v12703_v21 }
 0xc41   :  { %v12808_v58 = vpop.permute.xlu0 %9485  ;;  %v3748_v42 = vpop.xlane.xlu1 %3747  ;;  %14724 = vst [vmem:[#allocation16_spill] sm:$0xff] %v12822_v11 }
 0xc42   :  { %vm3766_vm15 = vcmp.gt.f32.partialorder %v3748_v42, 0.0 }
 0xc43   :  { %v3782_v49 = vsel %vm3766_vm15, %v3748_v42, 1.0 }
 0xc44   :  { %9819 = vrcp.f32 %v3782_v49 }
 0xc45   :  { %v12810_v5 = vpop.permute.xlu0 %9490  ;;  %v9476_v3 = vpop.permute.xlu1 %9475  ;;  %9821 = vrcp.f32 %v3784_v38  ;;  %v14726_v38 = vmax.f32 %v11845_v55, 0.0  ;;  %v14728_v55 = vmax.f32 %v11853_v25, 0.0  ;;  %v14730_v25 = vmax.f32 %v11874_v6, 0.0 }
 0xc46   :  { %v9477_v17 = vunpack.i.l.bf16 %v9476_v3 }
 0xc49   :  { %v12812_v7 = vpop.permute.xlu0 %9495  ;;  %v12814_v63 = vpop.permute.xlu1 %9500 }
 0xc4d   :  { %v12816_v59 = vpop.permute.xlu0 %9505  ;;  %v9516_v2 = vpop.permute.xlu1 %9515 }
 0xc4e   :  { %v9820_v4 = vpop.eup %9819  ;;  %v9518_v20 = vunpack.i.h.bf16 %v9516_v2  ;;  %v9517_v14 = vunpack.i.l.bf16 %v9516_v2 }
 0xc4f   :  { %v12819_v62 = vmul.f32 %v9820_v4, %v12715_v8  ;;  %v9822_v1 = vpop.eup %9821  ;;  %v9478_v8 = vunpack.i.h.bf16 %v9476_v3 }
 0xc50   :  { %v12827_v16 = vmul.f32 %v9822_v1, %v12709_v51  ;;  %v9066_v49 = vpack.c.bf16 %v9518_v20, %v9517_v14  ;;  %v14727_v51 = vmax.f32 %v11842_v43, 0.0  ;;  %v9483_v20 = vunpack.i.h.bf16 %v12802_v45 }
 0xc51   :  { %14723 = vst [vmem:[#allocation13_spill] sm:$0xff] %v12819_v62  ;;  %v9511_v12 = vpop.permute.xlu0 %9510  ;;  %8366 = vmatmul.mubr.f32.gmra.mrb[92].mxu1 %v12819_v62  ;;  %v9521_v61 = vpop.permute.xlu1 %9520  ;;  %v9020_v2 = vpack.c.bf16 %v9478_v8, %v9477_v17  ;;  %v9482_v43 = vunpack.i.l.bf16 %v12802_v45  ;;  %v14729_v14 = vmax.f32 %v11850_v15, 0.0  ;;  %v14731_v8 = vmax.f32 %v11871_v19, 0.0 }
 0xc52   :  { %v9513_v22 = vunpack.i.h.bf16 %v9511_v12  ;;  %v9512_v36 = vunpack.i.l.bf16 %v9511_v12  ;;  %8368 = vmatprep.mubr.f32.mxu1 %v12822_v11  ;;  %14725 = vst [vmem:[#allocation15_spill] sm:$0xff] %v12827_v16  ;;  %v9523_v21 = vunpack.i.h.bf16 %v9521_v61  ;;  %v9522_v42 = vunpack.i.l.bf16 %v9521_v61 }
 0xc53   :  { %v14732_v15 = vmax.f32 %v11961_v46, 0.0  ;;  %v9488_v19 = vunpack.i.h.bf16 %v12808_v58  ;;  %v14734_v46 = vmax.f32 %v11973_v13, 0.0 }
 0xc54   :  { %v9062_v24 = vpack.c.bf16 %v9513_v22, %v9512_v36  ;;  %v9070_v12 = vpack.c.bf16 %v9523_v21, %v9522_v42  ;;  %v9487_v42 = vunpack.i.l.bf16 %v12808_v58 }
 0xc55   :  { %8369 = vmatmul.mubr.f32.gmra.mrb[94].mxu1 %v12827_v16  ;;  %v9526_v53 = vpop.permute.xlu0 %9525  ;;  %v9531_v4 = vpop.permute.xlu1 %9530 }
 0xc56   :  { %8375 = vmatprep.mubr.msk.f32.mxu1 %vm173_vm0, %v14726_v38  ;;  %9063 = vmatprep.subr.bf16.mxu0 %v9062_v24  ;;  %v9528_v3 = vunpack.i.h.bf16 %v9526_v53  ;;  %v9527_v1 = vunpack.i.l.bf16 %v9526_v53  ;;  %v9533_v22 = vunpack.i.h.bf16 %v9531_v4  ;;  %v14733_v38 = vmax.f32 %v11955_v33, 0.0 }
 0xc57   :  { %9065 = vmatpush3.bf16.msra.mxu0 %v9062_v24  ;;  %v9026_v24 = vpack.c.bf16 %v9483_v20, %v9482_v43  ;;  %v14736_v33 = vmax.f32 %v11988_v44, 0.0  ;;  %v14738_v20 = vmax.f32 %v12014_v50, 0.0  ;;  %v9497_v50 = vunpack.i.l.bf16 %v12812_v7 }
 0xc58   :  { %9067 = vmatprep.subr.bf16.mxu0 %v9066_v49  ;;  %v9074_v36 = vpack.c.bf16 %v9528_v3, %v9527_v1  ;;  %v14735_v3 = vmax.f32 %v11969_v48, 0.0  ;;  %v9492_v48 = vunpack.i.l.bf16 %v12810_v5 }
 0xc59   :  { %8376 = vmatmul.mubr.msk.f32.vlgmr.msra.gmra.mrb[96].mxu1 %vm173_vm0, %v14727_v51  ;;  %v9536_v61 = vpop.permute.xlu1 %9535  ;;  %v9541_v21 = vpop.permute.xlu0 %9540  ;;  %v9032_v51 = vpack.c.bf16 %v9488_v19, %v9487_v42 }
 0xc5a   :  { %9019 = vmatpush3.bf16.xpose.msk.msra.mxu1 %vm10482_vm1, %v9014_v26  ;;  %8378 = vmatprep.mubr.msk.f32.mxu1 %vm173_vm0, %v14728_v55  ;;  %v9532_v26 = vunpack.i.l.bf16 %v9531_v4  ;;  %v9538_v45 = vunpack.i.h.bf16 %v9536_v61  ;;  %v9537_v17 = vunpack.i.l.bf16 %v9536_v61  ;;  %v9542_v53 = vunpack.i.l.bf16 %v9541_v21 }
 0xc5b   :  { %9022 = vmatprep.subr.msk.bf16.mxu1 %vm10482_vm1, %v9020_v2  ;;  %9069 = vmatpush3.bf16.msra.mxu0 %v9066_v49  ;;  %v9543_v49 = vunpack.i.h.bf16 %v9541_v21  ;;  %v9493_v55 = vunpack.i.h.bf16 %v12810_v5  ;;  %v14740_v5 = vld [vmem:[#allocation102_spill] sm:$0xff]  ;;  %v9502_v61 = vunpack.i.l.bf16 %v12814_v63 }
 0xc5c   :  { %9071 = vmatprep.subr.bf16.mxu0 %v9070_v12  ;;  %v9078_v6 = vpack.c.bf16 %v9533_v22, %v9532_v26  ;;  %v14741_v22 = vmax.f32 %v14740_v5, 0.0  ;;  %v14742_v26 = vld [vmem:[#allocation101_spill] sm:$0xff] }
 0xc5d   :  { %8379 = vmatmul.mubr.msk.f32.gmra.mrb[98].mxu1 %vm173_vm0, %v14729_v14  ;;  %v9546_v4 = vpop.permute.xlu1 %9545  ;;  %v9086_v13 = vpack.c.bf16 %v9543_v49, %v9542_v53  ;;  %v9038_v43 = vpack.c.bf16 %v9493_v55, %v9492_v48  ;;  %v14739_v14 = vmax.f32 %v12008_v9, 0.0 }
 0xc5e   :  { %8381 = vmatprep.mubr.msk.f32.mxu1 %vm173_vm0, %v14730_v25  ;;  %v9548_v58 = vunpack.i.h.bf16 %v9546_v4  ;;  %v9547_v1 = vunpack.i.l.bf16 %v9546_v4  ;;  %v14743_v25 = vmax.f32 %v14742_v26, 0.0 }
 0xc5f   :  { %9073 = vmatpush3.bf16.msra.mxu0 %v9070_v12  ;;  %v14737_v12 = vmax.f32 %v11985_v54, 0.0  ;;  %v9498_v54 = vunpack.i.h.bf16 %v12812_v7  ;;  %v9508_v7 = vunpack.i.h.bf16 %v12816_v59 }
 0xc60   :  { %9075 = vmatprep.subr.bf16.mxu0 %v9074_v36  ;;  %v9090_v44 = vpack.c.bf16 %v9548_v58, %v9547_v1 }
 0xc61   :  { %8382 = vmatmul.mubr.msk.f32.gmra.mrb[100].mxu1 %vm173_vm0, %v14731_v8  ;;  %v9044_v9 = vpack.c.bf16 %v9498_v54, %v9497_v50  ;;  %v9507_v8 = vunpack.i.l.bf16 %v12816_v59 }
 0xc62   :  { %9025 = vmatpush3.bf16.xpose.msk.msra.mxu1 %vm10482_vm1, %v9020_v2  ;;  %8384 = vmatprep.mubr.msk.f32.mxu1 %vm173_vm0, %v14732_v15  ;;  %v9082_v2 = vpack.c.bf16 %v9538_v45, %v9537_v17 }
 0xc63   :  { %9028 = vmatprep.subr.msk.bf16.mxu1 %vm10482_vm1, %v9026_v24  ;;  %9077 = vmatpush3.bf16.msra.mxu0 %v9074_v36  ;;  %v9503_v36 = vunpack.i.h.bf16 %v12814_v63  ;;  %v9056_v45 = vpack.c.bf16 %v9508_v7, %v9507_v8 }
 0xc64   :  { %9079 = vmatprep.subr.bf16.mxu0 %v9078_v6 }
 0xc65   :  { %8385 = vmatmul.mubr.msk.f32.gmra.mrb[102].mxu1 %vm173_vm0, %v14733_v38 }
 0xc66   :  { %8387 = vmatprep.mubr.msk.f32.mxu1 %vm173_vm0, %v14734_v46 }
 0xc67   :  { %9081 = vmatpush3.bf16.msra.mxu0 %v9078_v6 }
 0xc68   :  { %9083 = vmatprep.subr.bf16.mxu0 %v9082_v2 }
 0xc69   :  { %8388 = vmatmul.mubr.msk.f32.gmra.mrb[104].mxu1 %vm173_vm0, %v14735_v3 }
 0xc6a   :  { %9031 = vmatpush3.bf16.xpose.msk.msra.mxu1 %vm10482_vm1, %v9026_v24  ;;  %8390 = vmatprep.mubr.msk.f32.mxu1 %vm173_vm0, %v14736_v33  ;;  %v9050_v24 = vpack.c.bf16 %v9503_v36, %v9502_v61 }
 0xc6b   :  { %9034 = vmatprep.subr.msk.bf16.mxu1 %vm10482_vm1, %v9032_v51  ;;  %9085 = vmatpush3.bf16.msra.mxu0 %v9082_v2 }
 0xc6c   :  { %9087 = vmatprep.subr.bf16.mxu0 %v9086_v13 }
 0xc6d   :  { %8391 = vmatmul.mubr.msk.f32.gmra.mrb[106].mxu1 %vm173_vm0, %v14737_v12 }
 0xc6e   :  { %8393 = vmatprep.mubr.msk.f32.mxu1 %vm173_vm0, %v14738_v20 }
 0xc6f   :  { %9089 = vmatpush3.bf16.msra.mxu0 %v9086_v13 }
 0xc70   :  { %9091 = vmatprep.subr.bf16.mxu0 %v9090_v44 }
 0xc71   :  { %8394 = vmatmul.mubr.msk.f32.gmra.mrb[108].mxu1 %vm173_vm0, %v14739_v14 }
 0xc72   :  { %9037 = vmatpush3.bf16.xpose.msk.msra.mxu1 %vm10482_vm1, %v9032_v51  ;;  %8396 = vmatprep.mubr.msk.f32.mxu1 %vm173_vm0, %v14741_v22 }
 0xc73   :  { %9040 = vmatprep.subr.msk.bf16.mxu1 %vm10482_vm1, %v9038_v43  ;;  %9093 = vmatpush3.bf16.msra.mxu0 %v9090_v44 }
 0xc75   :  { %8397 = vmatmul.mubr.msk.f32.gmra.mrb[110].mxu1 %vm173_vm0, %v14743_v25 }
 0xc7a   :  { %9043 = vmatpush3.bf16.xpose.msk.msra.mxu1 %vm10482_vm1, %v9038_v43 }
 0xc7b   :  { %9046 = vmatprep.subr.msk.bf16.mxu1 %vm10482_vm1, %v9044_v9 }
 0xc82   :  { %9049 = vmatpush3.bf16.xpose.msk.msra.mxu1 %vm10482_vm1, %v9044_v9 }
 0xc83   :  { %9052 = vmatprep.subr.msk.bf16.mxu1 %vm10482_vm1, %v9050_v24 }
 0xc8a   :  { %9055 = vmatpush3.bf16.xpose.msk.msra.mxu1 %vm10482_vm1, %v9050_v24 }
 0xc8b   :  { %9058 = vmatprep.subr.msk.bf16.mxu1 %vm10482_vm1, %v9056_v45 }
 0xc92   :  { %9061 = vmatpush3.bf16.xpose.msk.msra.mxu1 %vm10482_vm1, %v9056_v45 }
 0xcec   :  { %v12920_v63 = vpop.f32.mrb[80].mxu1 }
 0xced   :  { %14744 = vst [vmem:[#allocation18_spill] sm:$0xff] %v12920_v63  ;;  %v12922_v17 = vpop.f32.mrb[81].mxu1 }
 0xcee   :  { %14745 = vst [vmem:[#allocation17_spill] sm:$0xff] %v12922_v17 }
 0xcf0   :  { %v12924_v15 = vpop.f32.mrb[82].mxu1 }
 0xcf1   :  { %14746 = vst [vmem:[#allocation19_spill] sm:$0xff] %v12924_v15  ;;  %v12926_v6 = vpop.f32.mrb[83].mxu1 }
 0xcf2   :  { %14747 = vst [vmem:[#allocation110_spill] sm:$0xff] %v12926_v6 }
 0xcf4   :  { %v12928_v21 = vpop.f32.mrb[84].mxu1 }
 0xcf5   :  { %14748 = vst [vmem:[#allocation21_spill] sm:$0xff] %v12928_v21  ;;  %v12930_v59 = vpop.f32.mrb[85].mxu1 }
 0xcf6   :  { %14749 = vst [vmem:[#allocation109_spill] sm:$0xff] %v12930_v59 }
 0xcf8   :  { %v12932_v19 = vpop.f32.mrb[86].mxu1 }
 0xcf9   :  { %14750 = vst [vmem:[#allocation20_spill] sm:$0xff] %v12932_v19  ;;  %v12934_v42 = vpop.f32.mrb[87].mxu1 }
 0xcfa   :  { %14751 = vst [vmem:[#allocation111_spill] sm:$0xff] %v12934_v42  ;;  %v14772_v42 = vld [vmem:[#allocation58_spill] sm:$0xff] }
 0xd0c   :  { %v12936_v38 = vpop.f32.mrb[88].mxu1 }
 0xd0d   :  { %14752 = vst [vmem:[#allocation23_spill] sm:$0xff] %v12936_v38  ;;  %v12938_v49 = vpop.f32.mrb[89].mxu1 }
 0xd0e   :  { %14753 = vst [vmem:[#allocation85_spill] sm:$0xff] %v12938_v49 }
 0xd10   :  { %v12940_v53 = vpop.f32.mrb[90].mxu1 }
 0xd11   :  { %14754 = vst [vmem:[#allocation86_spill] sm:$0xff] %v12940_v53  ;;  %v12942_v46 = vpop.f32.mrb[91].mxu1 }
 0xd12   :  { %14755 = vst [vmem:[#allocation22_spill] sm:$0xff] %v12942_v46  ;;  %v14770_v46 = vld [vmem:[#allocation60_spill] sm:$0xff] }
 0xd24   :  { %v12944_v2 = vpop.f32.mrb[92].mxu1 }
 0xd25   :  { %14756 = vst [vmem:[#allocation87_spill] sm:$0xff] %v12944_v2  ;;  %v12946_v4 = vpop.f32.mrb[93].mxu1 }
 0xd26   :  { %14757 = vst [vmem:[#allocation88_spill] sm:$0xff] %v12946_v4 }
 0xd28   :  { %v12948_v51 = vpop.f32.mrb[94].mxu1 }
 0xd29   :  { %14758 = vst [vmem:[#allocation89_spill] sm:$0xff] %v12948_v51  ;;  %v12950_v3 = vpop.f32.mrb[95].mxu1 }
 0xd2a   :  { %14759 = vst [vmem:[#allocation90_spill] sm:$0xff] %v12950_v3 }
 0xd2c   :  { %v8377_v58 = vpop.f32.mrb[96].mxu1 }
 0xd2d   :  { %v4298_v1 = vadd.f32 %v8377_v58, %v12546_v52  ;;  %v4292_v33 = vpop.f32.mrb[97].mxu1 }
 0xd2e   :  { %v4293_v13 = vadd.f32 %v12546_v52, %v4292_v33 }
 0xd2f   :  { %4523 = vperm.xlu0 %9267, %v4298_v1  }
 0xd30   :  { %v8380_v55 = vpop.f32.mrb[98].mxu1  ;;  %4518 = vperm.xlu1 %9268, %v4293_v13   ;;  %8459 = vmatprep.mubr.msk.f32.mxu1 %vm173_vm0, %v4293_v13 }
 0xd31   :  { %v4302_v48 = vpop.f32.mrb[99].mxu1  ;;  %8460 = vmatmul.mubr.msk.f32.vlgmr.msra.gmra.mrb[112].mxu1 %vm173_vm0, %v4298_v1  ;;  %v4308_v20 = vadd.f32 %v8380_v55, %v12546_v52 }
 0xd32   :  { %v4303_v12 = vadd.f32 %v12546_v52, %v4302_v48 }
 0xd33   :  { %5416 = vrot.lane.b32.xlu0 %v4298_v1, %s10123_s30 }
 0xd34   :  { %v8383_v44 = vpop.f32.mrb[100].mxu1  ;;  %5414 = vrot.lane.b32.xlu1 %v4293_v13, %s10123_s30  ;;  %8462 = vmatprep.mubr.msk.f32.mxu1 %vm173_vm0, %v4303_v12 }
 0xd35   :  { %v4312_v43 = vpop.f32.mrb[101].mxu1  ;;  %8463 = vmatmul.mubr.msk.f32.gmra.mrb[114].mxu1 %vm173_vm0, %v4308_v20  ;;  %v4318_v5 = vadd.f32 %v8383_v44, %v12546_v52 }
 0xd36   :  { %v4313_v14 = vadd.f32 %v12546_v52, %v4312_v43 }
 0xd37   :  { %4533 = vperm.xlu0 %9267, %v4308_v20  }
 0xd38   :  { %v8386_v22 = vpop.f32.mrb[102].mxu1  ;;  %4528 = vperm.xlu1 %9268, %v4303_v12   ;;  %8465 = vmatprep.mubr.msk.f32.mxu1 %vm173_vm0, %v4313_v14 }
 0xd39   :  { %v4322_v54 = vpop.f32.mrb[103].mxu1  ;;  %8466 = vmatmul.mubr.msk.f32.gmra.mrb[116].mxu1 %vm173_vm0, %v4318_v5  ;;  %v4328_v26 = vadd.f32 %v8386_v22, %v12546_v52 }
 0xd3a   :  { %v4323_v50 = vadd.f32 %v12546_v52, %v4322_v54 }
 0xd3b   :  { %5420 = vrot.lane.b32.xlu0 %v4308_v20, %s10123_s30 }
 0xd3c   :  { %v8389_v25 = vpop.f32.mrb[104].mxu1  ;;  %5418 = vrot.lane.b32.xlu1 %v4303_v12, %s10123_s30  ;;  %8468 = vmatprep.mubr.msk.f32.mxu1 %vm173_vm0, %v4323_v50  ;;  %v13007_v12 = vld [vmem:[%s14224_s5 + $0x3] ss:$0 sm:$0xff] }
 0xd3d   :  { %v4332_v9 = vpop.f32.mrb[105].mxu1  ;;  %8469 = vmatmul.mubr.msk.f32.gmra.mrb[118].mxu1 %vm173_vm0, %v4328_v26  ;;  %v12976_v61 = vadd.f32 %v8389_v25, %v12546_v52  ;;  %14760 = vst [vmem:[#allocation91_spill] sm:$0xff] %v13007_v12 }
 0xd3e   :  { %v12973_v36 = vadd.f32 %v12546_v52, %v4332_v9 }
 0xd3f   :  { %4543 = vperm.xlu0 %9267, %v4318_v5  }
 0xd40   :  { %v8392_v24 = vpop.f32.mrb[106].mxu1  ;;  %4538 = vperm.xlu1 %9268, %v4313_v14   ;;  %8471 = vmatprep.mubr.msk.f32.mxu1 %vm173_vm0, %v12973_v36 }
 0xd41   :  { %v4342_v7 = vpop.f32.mrb[107].mxu1  ;;  %8472 = vmatmul.mubr.msk.f32.gmra.mrb[120].mxu1 %vm173_vm0, %v12976_v61  ;;  %v12986_v45 = vadd.f32 %v8392_v24, %v12546_v52 }
 0xd42   :  { %v12983_v8 = vadd.f32 %v12546_v52, %v4342_v7 }
 0xd43   :  { %5424 = vrot.lane.b32.xlu0 %v4318_v5, %s10123_s30 }
 0xd44   :  { %v8395_v58 = vpop.f32.mrb[108].mxu1  ;;  %5422 = vrot.lane.b32.xlu1 %v4313_v14, %s10123_s30  ;;  %8474 = vmatprep.mubr.msk.f32.mxu1 %vm173_vm0, %v12983_v8 }
 0xd45   :  { %v4352_v1 = vpop.f32.mrb[109].mxu1  ;;  %8475 = vmatmul.mubr.msk.f32.gmra.mrb[122].mxu1 %vm173_vm0, %v12986_v45  ;;  %v12998_v13 = vadd.f32 %v8395_v58, %v12546_v52 }
 0xd46   :  { %v12995_v33 = vadd.f32 %v12546_v52, %v4352_v1 }
 0xd47   :  { %4553 = vperm.xlu0 %9267, %v4328_v26  }
 0xd48   :  { %v8398_v55 = vpop.f32.mrb[110].mxu1  ;;  %4548 = vperm.xlu1 %9268, %v4323_v50   ;;  %8477 = vmatprep.mubr.msk.f32.mxu1 %vm173_vm0, %v12995_v33 }
 0xd49   :  { %v4362_v48 = vpop.f32.mrb[111].mxu1  ;;  %8478 = vmatmul.mubr.msk.f32.gmra.mrb[124].mxu1 %vm173_vm0, %v12998_v13  ;;  %v13013_v52 = vadd.f32 %v13007_v12, %v8398_v55  ;;  %v14767_v55 = vld [vmem:[#allocation56_spill] sm:$0xff] }
 0xd4a   :  { %v13010_v20 = vadd.f32 %v13007_v12, %v4362_v48  ;;  %v14805_v12 = vld [vmem:[#allocation80_spill] sm:$0xff] }
 0xd4b   :  { %5428 = vrot.lane.b32.xlu0 %v4328_v26, %s10123_s30 }
 0xd4c   :  { %5426 = vrot.lane.b32.xlu1 %v4323_v50, %s10123_s30  ;;  %8480 = vmatprep.mubr.msk.f32.mxu1 %vm173_vm0, %v13010_v20 }
 0xd4d   :  { %8481 = vmatmul.mubr.msk.f32.gmra.mrb[126].mxu1 %vm173_vm0, %v13013_v52 }
 0xd4f   :  { %4563 = vperm.xlu0 %9267, %v12976_v61  }
 0xd50   :  { %4558 = vperm.xlu1 %9268, %v12973_v36  }
 0xd53   :  { %4573 = vperm.xlu0 %9267, %v12986_v45  }
 0xd54   :  { %4568 = vperm.xlu1 %9268, %v12983_v8  }
 0xd57   :  { %4583 = vperm.xlu0 %9267, %v12998_v13  }
 0xd58   :  { %4578 = vperm.xlu1 %9268, %v12995_v33  }
 0xd5b   :  { %4593 = vperm.xlu0 %9267, %v13013_v52  }
 0xd5c   :  { %4588 = vperm.xlu1 %9268, %v13010_v20  }
 0xdae   :  { %v4524_v44 = vpop.permute.xlu0 %4523 }
 0xdaf   :  { %v4519_v43 = vpop.permute.xlu1 %4518  ;;  %v4597_v48 = vmul.f32 %v4524_v44, %v14767_v55  ;;  %v14773_v44 = vld [vmem:[#allocation55_spill] sm:$0xff] }
 0xdb0   :  { %v4596_v51 = vmul.f32 %v4519_v43, %v14768_v28 }
 0xdb2   :  { %v13029_v14 = vpop.permute.xlu0 %5416 }
 0xdb3   :  { %14761 = vst [vmem:[#allocation92_spill] sm:$0xff] %v13029_v14  ;;  %v13031_v5 = vpop.permute.xlu1 %5414 }
 0xdb4   :  { %14762 = vst [vmem:[#allocation93_spill] sm:$0xff] %v13031_v5  ;;  %v14797_v5 = vld [vmem:[#allocation70_spill] sm:$0xff] }
 0xdb5   :  { %vm14798_vm10 = vcmp.gt.f32.partialorder %v14797_v5, 0.0 }
 0xdb6   :  { %v4534_v22 = vpop.permute.xlu0 %4533 }
 0xdb7   :  { %v4529_v54 = vpop.permute.xlu1 %4528  ;;  %v4599_v49 = vmul.f32 %v4534_v22, %v14770_v46 }
 0xdb8   :  { %v4598_v59 = vmul.f32 %v4529_v54, %v14772_v42 }
 0xdba   :  { %v13033_v50 = vpop.permute.xlu0 %5420 }
 0xdbb   :  { %14763 = vst [vmem:[#allocation94_spill] sm:$0xff] %v13033_v50  ;;  %v13035_v26 = vpop.permute.xlu1 %5418 }
 0xdbc   :  { %14764 = vst [vmem:[#allocation95_spill] sm:$0xff] %v13035_v26 }
 0xdbe   :  { %v4544_v25 = vpop.permute.xlu0 %4543 }
 0xdbf   :  { %v4539_v9 = vpop.permute.xlu1 %4538 }
 0xdc2   :  { %v13037_v24 = vpop.permute.xlu0 %5424 }
 0xdc3   :  { %14765 = vst [vmem:[#allocation96_spill] sm:$0xff] %v13037_v24  ;;  %v13039_v7 = vpop.permute.xlu1 %5422 }
 0xdc4   :  { %14766 = vst [vmem:[#allocation97_spill] sm:$0xff] %v13039_v7  ;;  %v14789_v7 = vld [vmem:[#allocation68_spill] sm:$0xff] }
 0xdc5   :  { %vm14790_vm7 = vcmp.gt.f32.partialorder %v14789_v7, 0.0 }
 0xdc6   :  { %v4554_v58 = vpop.permute.xlu0 %4553 }
 0xdc7   :  { %v4549_v1 = vpop.permute.xlu1 %4548 }
 0xdca   :  { %v13043_v4 = vpop.permute.xlu0 %5428 }
 0xdcb   :  { %14769 = vst [vmem:[#allocation98_spill] sm:$0xff] %v13043_v4  ;;  %v13046_v19 = vpop.permute.xlu1 %5426 }
 0xdcc   :  { %14771 = vst [vmem:[#allocation100_spill] sm:$0xff] %v13046_v19 }
 0xdcf   :  { %v4559_v60 = vpop.permute.xlu1 %4558 }
 0xdd3   :  { %v4569_v4 = vpop.permute.xlu1 %4568 }
 0xdd7   :  { %v4579_v50 = vpop.permute.xlu1 %4578 }
 0xe04   :  { %v8461_v2 = vpop.f32.mrb[112].mxu1 }
 0xe05   :  { %v4796_v3 = vadd.f32 %v8461_v2, %v4597_v48  ;;  %v4790_v53 = vpop.f32.mrb[113].mxu1  ;;  %v14774_v48 = vld [vmem:[#allocation47_spill] sm:$0xff] }
 0xe06   :  { %v4791_v38 = vadd.f32 %v4790_v53, %v4596_v51  ;;  %v14775_v51 = vld [vmem:[#allocation64_spill] sm:$0xff] }
 0xe07   :  { %v4870_v21 = vmul.f32 0.25, %v4796_v3  ;;  %v4601_v22 = vmul.f32 %v4544_v25, %v14775_v51 }
 0xe08   :  { %v4869_v6 = vmul.f32 0.25, %v4791_v38  ;;  %v8464_v15 = vpop.f32.mrb[114].mxu1  ;;  %v14776_v38 = vld [vmem:[#allocation62_spill] sm:$0xff] }
 0xe09   :  { %v4806_v17 = vadd.f32 %v8464_v15, %v4599_v49  ;;  %v4800_v63 = vpop.f32.mrb[115].mxu1  ;;  %v13051_v43 = vsel %vm2222_vm11, %v4870_v21, -1e+30  ;;  %v4600_v54 = vmul.f32 %v4539_v9, %v14776_v38  ;;  %v4564_v15 = vpop.permute.xlu0 %4563  ;;  %v14782_v9 = vld [vmem:[#allocation66_spill] sm:$0xff] }
 0xe0a   :  { %v4801_v2 = vadd.f32 %v4800_v63, %v4598_v59  ;;  %4903 = vmax.xlane.f32.xlu0 %v13051_v43  ;;  %v13056_v53 = vsel %vm2221_vm14, %v4869_v6, -1e+30  ;;  %v14777_v63 = vld [vmem:[#allocation59_spill] sm:$0xff]  ;;  %v14779_v6 = vld [vmem:[#allocation57_spill] sm:$0xff] }
 0xe0b   :  { %v4872_v3 = vmul.f32 0.25, %v4806_v17  ;;  %4901 = vmax.xlane.f32.xlu1 %v13056_v53  ;;  %vm14778_vm11 = vcmp.gt.f32.partialorder %v14777_v63, 0.0  ;;  %vm14780_vm14 = vcmp.gt.f32.partialorder %v14779_v6, 0.0  ;;  %v14781_v17 = vld [vmem:[#allocation67_spill] sm:$0xff] }
 0xe0c   :  { %v4871_v49 = vmul.f32 0.25, %v4801_v2  ;;  %v8467_v57 = vpop.f32.mrb[116].mxu1  ;;  %v4603_v25 = vmul.f32 %v4554_v58, %v14781_v17  ;;  %v4602_v2 = vmul.f32 %v4549_v1, %v14782_v9  ;;  %v14813_v9 = vld [vmem:[#allocation84_spill] sm:$0xff] }
 0xe0d   :  { %v4816_v21 = vadd.f32 %v8467_v57, %v4601_v22  ;;  %v4810_v47 = vpop.f32.mrb[117].mxu1  ;;  %v13063_v59 = vsel %vm14778_vm11, %v4872_v3, -1e+30  ;;  %v14783_v3 = vld [vmem:[#allocation63_spill] sm:$0xff]  ;;  %vm14806_vm11 = vcmp.gt.f32.partialorder %v14805_v12, 0.0 }
 0xe0e   :  { %v4811_v10 = vadd.f32 %v4810_v47, %v4600_v54  ;;  %v13067_v27 = vsel %vm14780_vm14, %v4871_v49, -1e+30  ;;  %vm14784_vm13 = vcmp.gt.f32.partialorder %v14783_v3, 0.0  ;;  %v4574_v54 = vpop.permute.xlu0 %4573 }
 0xe0f   :  { %v4874_v34 = vmul.f32 0.25, %v4816_v21  ;;  %4905 = vmax.xlane.f32.xlu0 %v13067_v27  ;;  %4907 = vmax.xlane.f32.xlu1 %v13063_v59  ;;  %v14787_v21 = vld [vmem:[#allocation71_spill] sm:$0xff] }
 0xe10   :  { %v4873_v57 = vmul.f32 0.25, %v4811_v10  ;;  %v8470_v22 = vpop.f32.mrb[118].mxu1  ;;  %v4605_v19 = vmul.f32 %v4564_v15, %v14787_v21  ;;  %v14788_v10 = vld [vmem:[#allocation69_spill] sm:$0xff] }
 0xe11   :  { %v4826_v16 = vadd.f32 %v8470_v22, %v4603_v25  ;;  %v4820_v62 = vpop.f32.mrb[119].mxu1  ;;  %v13075_v47 = vsel %vm14784_vm13, %v4874_v34, -1e+30  ;;  %v4604_v1 = vmul.f32 %v4559_v60, %v14788_v10  ;;  %v14794_v60 = vld [vmem:[#allocation73_spill] sm:$0xff] }
 0xe12   :  { %v4821_v49 = vadd.f32 %v4820_v62, %v4602_v2  ;;  %v13079_v58 = vsel %vm14786_vm6, %v4873_v57, -1e+30  ;;  %v14791_v57 = vld [vmem:[#allocation65_spill] sm:$0xff]  ;;  %vm14814_vm6 = vcmp.gt.f32.partialorder %v14813_v9, 0.0 }
 0xe13   :  { %v4876_v39 = vmul.f32 0.25, %v4826_v16  ;;  %4909 = vmax.xlane.f32.xlu0 %v13079_v58  ;;  %4911 = vmax.xlane.f32.xlu1 %v13075_v47  ;;  %vm14792_vm8 = vcmp.gt.f32.partialorder %v14791_v57, 0.0  ;;  %v14793_v16 = vld [vmem:[#allocation75_spill] sm:$0xff] }
 0xe14   :  { %v4875_v25 = vmul.f32 0.25, %v4821_v49  ;;  %v8473_v22 = vpop.f32.mrb[120].mxu1  ;;  %v4607_v24 = vmul.f32 %v4574_v54, %v14793_v16  ;;  %v4606_v49 = vmul.f32 %v4569_v4, %v14794_v60  ;;  %v14800_v4 = vld [vmem:[#allocation77_spill] sm:$0xff]  ;;  %v14811_v16 = vld [vmem:[#allocation82_spill] sm:$0xff] }
 0xe15   :  { %v4836_v34 = vadd.f32 %v8473_v22, %v4605_v19  ;;  %v4830_v11 = vpop.f32.mrb[121].mxu1  ;;  %v13087_v62 = vsel %vm14790_vm7, %v4876_v39, -1e+30  ;;  %v4584_v19 = vpop.permute.xlu0 %4583  ;;  %vm14812_vm13 = vcmp.gt.f32.partialorder %v14811_v16, 0.0 }
 0xe16   :  { %v4831_v2 = vadd.f32 %v4830_v11, %v4604_v1  ;;  %v13091_v15 = vsel %vm14792_vm8, %v4875_v25, -1e+30  ;;  %v14795_v11 = vld [vmem:[#allocation72_spill] sm:$0xff] }
 0xe17   :  { %v4878_v23 = vmul.f32 0.25, %v4836_v34  ;;  %4913 = vmax.xlane.f32.xlu0 %v13091_v15  ;;  %4915 = vmax.xlane.f32.xlu1 %v13087_v62  ;;  %vm14796_vm9 = vcmp.gt.f32.partialorder %v14795_v11, 0.0  ;;  %v14799_v34 = vld [vmem:[#allocation79_spill] sm:$0xff] }
 0xe18   :  { %v4877_v22 = vmul.f32 0.25, %v4831_v2  ;;  %v8476_v26 = vpop.f32.mrb[122].mxu1  ;;  %v4609_v14 = vmul.f32 %v4584_v19, %v14799_v34  ;;  %v4608_v2 = vmul.f32 %v4579_v50, %v14800_v4 }
 0xe19   :  { %v4846_v39 = vadd.f32 %v8476_v26, %v4607_v24  ;;  %v4840_v41 = vpop.f32.mrb[123].mxu1  ;;  %v13099_v1 = vsel %vm14796_vm9, %v4878_v23, -1e+30  ;;  %v14801_v23 = vld [vmem:[#allocation76_spill] sm:$0xff] }
 0xe1a   :  { %v4841_v25 = vadd.f32 %v4840_v41, %v4606_v49  ;;  %v13103_v54 = vsel %vm14798_vm10, %v4877_v22, -1e+30  ;;  %vm14802_vm12 = vcmp.gt.f32.partialorder %v14801_v23, 0.0  ;;  %v14803_v22 = vld [vmem:[#allocation74_spill] sm:$0xff] }
 0xe1b   :  { %v4880_v40 = vmul.f32 0.25, %v4846_v39  ;;  %4917 = vmax.xlane.f32.xlu0 %v13103_v54  ;;  %4919 = vmax.xlane.f32.xlu1 %v13099_v1  ;;  %vm14804_vm15 = vcmp.gt.f32.partialorder %v14803_v22, 0.0 }
 0xe1c   :  { %v4879_v26 = vmul.f32 0.25, %v4841_v25  ;;  %v8479_v24 = vpop.f32.mrb[124].mxu1 }
 0xe1d   :  { %v4856_v37 = vadd.f32 %v8479_v24, %v4609_v14  ;;  %v4850_v35 = vpop.f32.mrb[125].mxu1  ;;  %v13111_v41 = vsel %vm14802_vm12, %v4880_v40, -1e+30  ;;  %v14807_v24 = vld [vmem:[#allocation78_spill] sm:$0xff] }
 0xe1e   :  { %v4851_v49 = vadd.f32 %v4850_v35, %v4608_v2  ;;  %v13115_v56 = vsel %vm14804_vm15, %v4879_v26, -1e+30  ;;  %vm14808_vm14 = vcmp.gt.f32.partialorder %v14807_v24, 0.0  ;;  %v4594_v35 = vpop.permute.xlu0 %4593  ;;  %v14809_v2 = vld [vmem:[#allocation83_spill] sm:$0xff] }
 0xe1f   :  { %v4882_v19 = vmul.f32 0.25, %v4856_v37  ;;  %4921 = vmax.xlane.f32.xlu0 %v13115_v56  ;;  %4923 = vmax.xlane.f32.xlu1 %v13111_v41  ;;  %v4589_v37 = vpop.permute.xlu1 %4588  ;;  %v4611_v26 = vmul.f32 %v4594_v35, %v14809_v2 }
 0xe20   :  { %v4881_v39 = vmul.f32 0.25, %v4851_v49  ;;  %v8482_v50 = vpop.f32.mrb[126].mxu1  ;;  %v14810_v49 = vld [vmem:[#allocation81_spill] sm:$0xff] }
 0xe21   :  { %v4860_v25 = vpop.f32.mrb[127].mxu1  ;;  %v13121_v14 = vsel %vm14806_vm11, %v4882_v19, -1e+30  ;;  %v4610_v19 = vmul.f32 %v4589_v37, %v14810_v49  ;;  %v4866_v4 = vadd.f32 %v8482_v50, %v4611_v26 }
 0xe22   :  { %v13125_v40 = vsel %vm14808_vm14, %v4881_v39, -1e+30 }
 0xe23   :  { %4925 = vmax.xlane.f32.xlu0 %v13125_v40  ;;  %4927 = vmax.xlane.f32.xlu1 %v13121_v14  ;;  %v4861_v34 = vadd.f32 %v4860_v25, %v4610_v19  ;;  %v4884_v39 = vmul.f32 0.25, %v4866_v4 }
 0xe25   :  { %v4883_v60 = vmul.f32 0.25, %v4861_v34 }
 0xe27   :  { %v13137_v10 = vsel %vm14812_vm13, %v4883_v60, -1e+30 }
 0xe34   :  { %5430 = vrot.lane.b32.xlu1 %v12973_v36, %s10123_s30  ;;  %v13141_v36 = vsel %vm14814_vm6, %v4884_v39, -1e+30 }
 0xe39   :  { %5432 = vrot.lane.b32.xlu0 %v12976_v61, %s10123_s30 }
 0xe58   :  { %4929 = vmax.xlane.f32.xlu0 %v13137_v10  ;;  %4931 = vmax.xlane.f32.xlu1 %v13141_v36 }
 0xe97   :  { %v4904_v61 = vpop.xlane.xlu0 %4903 }
 0xe98   :  { %v4934_v35 = vsub.f32 %v13051_v43, %v4904_v61  ;;  %v4902_v37 = vpop.xlane.xlu1 %4901 }
 0xe99   :  { %v4933_v50 = vsub.f32 %v13056_v53, %v4902_v37 }
 0xe9a   :  { %v4951_v4 = vmul.f32 1.442695, %v4934_v35 }
 0xe9b   :  { %v4949_v34 = vmul.f32 1.442695, %v4933_v50 }
 0xe9c   :  { %9823 = vpow2.f32 %v4951_v4  ;;  %v4906_v25 = vpop.xlane.xlu0 %4905  ;;  %v4908_v60 = vpop.xlane.xlu1 %4907 }
 0xe9d   :  { %9825 = vpow2.f32 %v4949_v34  ;;  %v4935_v26 = vsub.f32 %v13067_v27, %v4906_v25  ;;  %v4936_v19 = vsub.f32 %v13063_v59, %v4908_v60 }
 0xe9f   :  { %v4955_v39 = vmul.f32 1.442695, %v4936_v19  ;;  %v4953_v49 = vmul.f32 1.442695, %v4935_v26 }
 0xea0   :  { %v4910_v2 = vpop.xlane.xlu0 %4909  ;;  %v4912_v38 = vpop.xlane.xlu1 %4911 }
 0xea1   :  { %v4937_v42 = vsub.f32 %v13079_v58, %v4910_v2  ;;  %v4938_v43 = vsub.f32 %v13075_v47, %v4912_v38  ;;  %9827 = vpow2.f32 %v4955_v39 }
 0xea2   :  { %9829 = vpow2.f32 %v4953_v49 }
 0xea3   :  { %v4957_v53 = vmul.f32 1.442695, %v4937_v42  ;;  %v4959_v61 = vmul.f32 1.442695, %v4938_v43 }
 0xea4   :  { %v4914_v35 = vpop.xlane.xlu0 %4913  ;;  %v4916_v37 = vpop.xlane.xlu1 %4915 }
 0xea5   :  { %9831 = vpow2.f32 %v4957_v53  ;;  %v4939_v50 = vsub.f32 %v13091_v15, %v4914_v35  ;;  %v4940_v27 = vsub.f32 %v13087_v62, %v4916_v37 }
 0xea6   :  { %v9824_v59 = vpop.eup %9823  ;;  %9833 = vpow2.f32 %v4959_v61 }
 0xea7   :  { %v9826_v4 = vpop.eup %9825  ;;  %v4963_v34 = vmul.f32 1.442695, %v4940_v27  ;;  %v13154_v25 = vmul.f32 %v9824_v59, %v14773_v44  ;;  %v4961_v58 = vmul.f32 1.442695, %v4939_v50 }
 0xea8   :  { %v4918_v38 = vpop.xlane.xlu0 %4917  ;;  %v4920_v47 = vpop.xlane.xlu1 %4919  ;;  %v13157_v42 = vmul.f32 %v9826_v4, %v14774_v48 }
 0xea9   :  { %v4941_v2 = vsub.f32 %v13103_v54, %v4918_v38  ;;  %v4942_v49 = vsub.f32 %v13099_v1, %v4920_v47  ;;  %4999 = vadd.xlane.f32.xlu0 %v13154_v25  ;;  %9835 = vpow2.f32 %v4963_v34 }
 0xeaa   :  { %4997 = vadd.xlane.f32.xlu1 %v13157_v42  ;;  %9837 = vpow2.f32 %v4961_v58 }
 0xeab   :  { %v4967_v62 = vmul.f32 1.442695, %v4942_v49  ;;  %v9828_v15 = vpop.eup %9827  ;;  %v4965_v44 = vmul.f32 1.442695, %v4941_v2 }
 0xeac   :  { %v13164_v60 = vmul.f32 %v9828_v15, %v14777_v63  ;;  %v9830_v26 = vpop.eup %9829 }
 0xead   :  { %9839 = vpow2.f32 %v4967_v62  ;;  %v13171_v54 = vmul.f32 %v9830_v26, %v14779_v6 }
 0xeae   :  { %5003 = vadd.xlane.f32.xlu1 %v13164_v60  ;;  %9841 = vpow2.f32 %v4965_v44 }
 0xeaf   :  { %v9832_v48 = vpop.eup %9831 }
 0xeb0   :  { %v13168_v1 = vmul.f32 %v9832_v48, %v14785_v32  ;;  %v9834_v19 = vpop.eup %9833 }
 0xeb1   :  { %v13176_v63 = vmul.f32 %v9834_v19, %v14783_v3  ;;  %v4924_v3 = vpop.xlane.xlu1 %4923 }
 0xeb2   :  { %5005 = vadd.xlane.f32.xlu0 %v13168_v1  ;;  %5001 = vadd.xlane.f32.xlu1 %v13171_v54 }
 0xeb3   :  { %v9836_v39 = vpop.eup %9835 }
 0xeb4   :  { %v13179_v43 = vmul.f32 %v9836_v39, %v14789_v7  ;;  %v9838_v53 = vpop.eup %9837 }
 0xeb5   :  { %v13184_v6 = vmul.f32 %v9838_v53, %v14791_v57  ;;  %v4944_v57 = vsub.f32 %v13111_v41, %v4924_v3  ;;  %v4928_v37 = vpop.xlane.xlu1 %4927 }
 0xeb6   :  { %5007 = vadd.xlane.f32.xlu1 %v13176_v63  ;;  %5011 = vadd.xlane.f32.xlu0 %v13179_v43 }
 0xeb7   :  { %v9840_v32 = vpop.eup %9839  ;;  %v4971_v27 = vmul.f32 1.442695, %v4944_v57 }
 0xeb8   :  { %v13187_v61 = vmul.f32 %v9840_v32, %v14795_v11  ;;  %v9842_v35 = vpop.eup %9841  ;;  %v4922_v11 = vpop.xlane.xlu0 %4921 }
 0xeb9   :  { %v13192_v7 = vmul.f32 %v9842_v35, %v14797_v5  ;;  %v4943_v50 = vsub.f32 %v13115_v56, %v4922_v11  ;;  %9843 = vpow2.f32 %v4971_v27  ;;  %v4946_v5 = vsub.f32 %v13121_v14, %v4928_v37  ;;  %v13202_v34 = vpop.permute.xlu1 %5430 }
 0xeba   :  { %5009 = vadd.xlane.f32.xlu1 %v13184_v6  ;;  %5015 = vadd.xlane.f32.xlu0 %v13187_v61 }
 0xebb   :  { %v4969_v4 = vmul.f32 1.442695, %v4943_v50  ;;  %v4975_v58 = vmul.f32 1.442695, %v4946_v5 }
 0xebc   :  { %v4926_v59 = vpop.xlane.xlu0 %4925 }
 0xebd   :  { %9845 = vpow2.f32 %v4969_v4 }
 0xebe   :  { %5013 = vadd.xlane.f32.xlu1 %v13192_v7  ;;  %9847 = vpow2.f32 %v4975_v58 }
 0xec0   :  { %v13205_v38 = vpop.permute.xlu0 %5432 }
 0xec3   :  { %v9844_v49 = vpop.eup %9843 }
 0xec4   :  { %v13210_v62 = vmul.f32 %v9844_v49, %v14801_v23 }
 0xec7   :  { %v9846_v15 = vpop.eup %9845 }
 0xec8   :  { %v13218_v26 = vmul.f32 %v9846_v15, %v14803_v22  ;;  %v9848_v48 = vpop.eup %9847  ;;  %v10020_v22 = vld [vmem:[%s14222_s3] sm:$0xff] }
 0xec9   :  { %v13222_v23 = vmul.f32 %v9848_v48, %v14805_v12  ;;  %v3817_v12 = vmul.f32 %v10020_v22, %v12751_v29 }
 0xecf   :  { %5434 = vrot.lane.b32.xlu1 %v12983_v8, %s10123_s30  ;;  %v4945_v8 = vsub.f32 %v13125_v40, %v4926_v59 }
 0xed0   :  { %5436 = vrot.lane.b32.xlu0 %v12986_v45, %s10123_s30 }
 0xed1   :  { %v4973_v2 = vmul.f32 1.442695, %v4945_v8 }
 0xee5   :  { %v4932_v45 = vpop.xlane.xlu1 %4931  ;;  %v4930_v56 = vpop.xlane.xlu0 %4929 }
 0xee6   :  { %v4948_v41 = vsub.f32 %v13141_v36, %v4932_v45  ;;  %v4947_v14 = vsub.f32 %v13137_v10, %v4930_v56  ;;  %v10019_v36 = vld [vmem:[%s14222_s3 + $0x8] sm:$0xff] }
 0xee7   :  { %v3818_v44 = vmul.f32 %v10019_v36, %v12755_v31 }
 0xee8   :  { %v4979_v47 = vmul.f32 1.442695, %v4948_v41  ;;  %v4977_v40 = vmul.f32 1.442695, %v4947_v14 }
 0xeea   :  { %9849 = vpow2.f32 %v4979_v47 }
 0xeeb   :  { %9851 = vpow2.f32 %v4973_v2 }
 0xeec   :  { %9853 = vpow2.f32 %v4977_v40 }
 0xeef   :  { %5019 = vadd.xlane.f32.xlu0 %v13210_v62 }
 0xef3   :  { %3835 = vadd.xlane.f32.xlu1 %v3818_v44  ;;  %5017 = vadd.xlane.f32.xlu0 %v13218_v26 }
 0xef4   :  { %v9850_v10 = vpop.eup %9849 }
 0xef5   :  { %v13225_v19 = vmul.f32 %v9850_v10, %v14813_v9  ;;  %v9852_v39 = vpop.eup %9851 }
 0xef6   :  { %v13230_v31 = vmul.f32 %v9852_v39, %v14807_v24  ;;  %v9854_v53 = vpop.eup %9853  ;;  %v10021_v24 = vld [vmem:[%s14222_s3 + $0x18] sm:$0xff] }
 0xef7   :  { %5023 = vadd.xlane.f32.xlu0 %v13222_v23  ;;  %5027 = vadd.xlane.f32.xlu1 %v13225_v19  ;;  %v13238_v9 = vmul.f32 %v9854_v53, %v14811_v16  ;;  %v3820_v32 = vmul.f32 %v10021_v24, %v12765_v18  ;;  %v10022_v16 = vld [vmem:[%s14222_s3 + $0x10] sm:$0xff] }
 0xef8   :  { %v3819_v3 = vmul.f32 %v10022_v16, %v12759_v30 }
 0xefb   :  { %5021 = vadd.xlane.f32.xlu0 %v13230_v31 }
 0xeff   :  { %3833 = vadd.xlane.f32.xlu0 %v3817_v12 }
 0xf03   :  { %5025 = vadd.xlane.f32.xlu0 %v13238_v9 }
 0xf08   :  { %5440 = vrot.lane.b32.xlu1 %v12998_v13, %s10123_s30 }
 0xf19   :  { %5438 = vrot.lane.b32.xlu0 %v12995_v33, %s10123_s30 }
 0xf2c   :  { %3839 = vadd.xlane.f32.xlu1 %v3820_v32 }
 0xf36   :  { %v5000_v29 = vpop.xlane.xlu0 %4999 }
 0xf37   :  { %vm5030_vm7 = vcmp.gt.f32.partialorder %v5000_v29, 0.0  ;;  %v4998_v35 = vpop.xlane.xlu1 %4997 }
 0xf38   :  { %v5046_v13 = vsel %vm5030_vm7, %v5000_v29, 1.0  ;;  %vm5029_vm8 = vcmp.gt.f32.partialorder %v4998_v35, 0.0  ;;  %3837 = vadd.xlane.f32.xlu0 %v3819_v3  ;;  %v14817_v3 = vld [vmem:[#allocation66_spill] sm:$0xff] }
 0xf39   :  { %9855 = vrcp.f32 %v5046_v13  ;;  %v5045_v33 = vsel %vm5029_vm8, %v4998_v35, 1.0 }
 0xf3a   :  { %9857 = vrcp.f32 %v5045_v33 }
 0xf3b   :  { %v5004_v57 = vpop.xlane.xlu1 %5003 }
 0xf3c   :  { %vm5032_vm9 = vcmp.gt.f32.partialorder %v5004_v57, 0.0 }
 0xf3d   :  { %v5048_v11 = vsel %vm5032_vm9, %v5004_v57, 1.0  ;;  %5444 = vrot.lane.b32.xlu1 %v13013_v52, %s10123_s30 }
 0xf3e   :  { %9859 = vrcp.f32 %v5048_v11 }
 0xf3f   :  { %v5006_v18 = vpop.xlane.xlu0 %5005  ;;  %v5002_v37 = vpop.xlane.xlu1 %5001 }
 0xf40   :  { %vm5033_vm10 = vcmp.gt.f32.partialorder %v5006_v18, 0.0  ;;  %vm5031_vm12 = vcmp.gt.f32.partialorder %v5002_v37, 0.0 }
 0xf41   :  { %v5049_v50 = vsel %vm5033_vm10, %v5006_v18, 1.0  ;;  %v5047_v30 = vsel %vm5031_vm12, %v5002_v37, 1.0 }
 0xf42   :  { %9861 = vrcp.f32 %v5049_v50 }
 0xf43   :  { %v9856_v27 = vpop.eup %9855  ;;  %9863 = vrcp.f32 %v5047_v30  ;;  %v5012_v4 = vpop.xlane.xlu0 %5011 }
 0xf44   :  { %v9858_v59 = vpop.eup %9857  ;;  %v5008_v5 = vpop.xlane.xlu1 %5007  ;;  %vm5036_vm15 = vcmp.gt.f32.partialorder %v5012_v4, 0.0  ;;  %v5078_v52 = vmul.f32 %v9856_v27, %v13154_v25 }
 0xf45   :  { %vm5034_vm11 = vcmp.gt.f32.partialorder %v5008_v5, 0.0  ;;  %v5077_v8 = vmul.f32 %v9858_v59, %v13157_v42  ;;  %v5052_v45 = vsel %vm5036_vm15, %v5012_v4, 1.0 }
 0xf46   :  { %v5050_v58 = vsel %vm5034_vm11, %v5008_v5, 1.0 }
 0xf47   :  { %8515 = vmatprep.mubr.f32.mxu0 %v5077_v8  ;;  %9865 = vrcp.f32 %v5050_v58  ;;  %v5016_v41 = vpop.xlane.xlu0 %5015 }
 0xf48   :  { %v5010_v47 = vpop.xlane.xlu1 %5009  ;;  %8516 = vmatmul.mubr.f32.vlgmr.msra.gmra.mrb[112].mxu0 %v5078_v52  ;;  %vm5038_vm14 = vcmp.gt.f32.partialorder %v5016_v41, 0.0  ;;  %v9860_v56 = vpop.eup %9859  ;;  %9867 = vrcp.f32 %v5052_v45 }
 0xf49   :  { %vm5035_vm13 = vcmp.gt.f32.partialorder %v5010_v47, 0.0  ;;  %v5054_v49 = vsel %vm5038_vm14, %v5016_v41, 1.0  ;;  %v5080_v36 = vmul.f32 %v9860_v56, %v13164_v60  ;;  %v14820_v56 = vld [vmem:[#allocation73_spill] sm:$0xff] }
 0xf4a   :  { %v5051_v2 = vsel %vm5035_vm13, %v5010_v47, 1.0 }
 0xf4b   :  { %9869 = vrcp.f32 %v5051_v2  ;;  %v13279_v16 = vpop.permute.xlu0 %5436 }
 0xf4c   :  { %v9862_v14 = vpop.eup %9861  ;;  %v5014_v15 = vpop.xlane.xlu1 %5013  ;;  %9871 = vrcp.f32 %v5054_v49 }
 0xf4d   :  { %v9864_v40 = vpop.eup %9863  ;;  %vm5037_vm6 = vcmp.gt.f32.partialorder %v5014_v15, 0.0  ;;  %v5081_v44 = vmul.f32 %v9862_v14, %v13168_v1  ;;  %v5094_v1 = vmul.f32 %v5078_v52, %v14767_v55  ;;  %v14819_v52 = vld [vmem:[#allocation75_spill] sm:$0xff] }
 0xf4e   :  { %v5053_v42 = vsel %vm5037_vm6, %v5014_v15, 1.0  ;;  %v5079_v25 = vmul.f32 %v9864_v40, %v13171_v54  ;;  %5442 = vrot.lane.b32.xlu0 %v13010_v20, %s10123_s30 }
 0xf4f   :  { %9873 = vrcp.f32 %v5053_v42  ;;  %v14821_v42 = vld [vmem:[#allocation79_spill] sm:$0xff] }
 0xf50   :  { %8518 = vmatprep.mubr.f32.mxu0 %v5079_v25  ;;  %v13282_v13 = vpop.permute.xlu1 %5434 }
 0xf51   :  { %8519 = vmatmul.mubr.f32.gmra.mrb[114].mxu0 %v5080_v36  ;;  %v9866_v48 = vpop.eup %9865 }
 0xf52   :  { %8521 = vmatprep.mubr.f32.mxu0 %v5081_v44  ;;  %v5082_v10 = vmul.f32 %v9866_v48, %v13176_v63  ;;  %v9868_v39 = vpop.eup %9867  ;;  %v5096_v63 = vmul.f32 %v5080_v36, %v14770_v46  ;;  %v14815_v46 = vld [vmem:[#allocation58_spill] sm:$0xff]  ;;  %v14822_v48 = vld [vmem:[#allocation77_spill] sm:$0xff] }
 0xf53   :  { %v5084_v53 = vmul.f32 %v9868_v39, %v13179_v43  ;;  %v10023_v43 = vld [vmem:[%s14222_s3 + $0x20] sm:$0xff]  ;;  %v5095_v29 = vmul.f32 %v5079_v25, %v14815_v46  ;;  %v14823_v39 = vld [vmem:[#allocation83_spill] sm:$0xff] }
 0xf54   :  { %v3821_v32 = vmul.f32 %v10023_v43, %v12768_v0  ;;  %v5496_v43 = vld [vmem:[#allocation2 + $0x48] sm:$0xff] }
 0xf55   :  { %8522 = vmatmul.mubr.f32.gmra.mrb[116].mxu0 %v5082_v10  ;;  %v9870_v22 = vpop.eup %9869 }
 0xf56   :  { %v5083_v12 = vmul.f32 %v9870_v22, %v13184_v6  ;;  %v9872_v54 = vpop.eup %9871  ;;  %v5098_v6 = vmul.f32 %v5082_v10, %v14775_v51  ;;  %v14816_v51 = vld [vmem:[#allocation62_spill] sm:$0xff] }
 0xf57   :  { %v5086_v60 = vmul.f32 %v9872_v54, %v13187_v61  ;;  %v5093_v61 = vmul.f32 %v5077_v8, %v14768_v28  ;;  %v5097_v35 = vmul.f32 %v5081_v44, %v14816_v51  ;;  %v14824_v54 = vld [vmem:[#allocation81_spill] sm:$0xff] }
 0xf58   :  { %8524 = vmatprep.mubr.f32.mxu0 %v5083_v12  ;;  %v5099_v0 = vmul.f32 %v5083_v12, %v14817_v3 }
 0xf59   :  { %v9874_v24 = vpop.eup %9873  ;;  %8525 = vmatmul.mubr.f32.gmra.mrb[118].mxu0 %v5084_v53  ;;  %v5102_v55 = vmul.f32 %v5086_v60, %v14787_v21  ;;  %v14818_v21 = vld [vmem:[#allocation69_spill] sm:$0xff] }
 0xf5a   :  { %v5085_v20 = vmul.f32 %v9874_v24, %v13192_v7  ;;  %v5100_v7 = vmul.f32 %v5084_v53, %v14781_v17 }
 0xf5c   :  { %8527 = vmatprep.mubr.f32.mxu0 %v5085_v20  ;;  %v5101_v33 = vmul.f32 %v5085_v20, %v14818_v21 }
 0xf5d   :  { %8528 = vmatmul.mubr.f32.gmra.mrb[120].mxu0 %v5086_v60 }
 0xf61   :  { %5111 = vadd.xlane.f32.xlu1 %v5094_v1  ;;  %v14825_v1 = vld [vmem:[#allocation91_spill] sm:$0xff] }
 0xf65   :  { %5115 = vadd.xlane.f32.xlu1 %v5096_v63 }
 0xf69   :  { %5119 = vadd.xlane.f32.xlu1 %v5098_v6 }
 0xf6d   :  { %3841 = vadd.xlane.f32.xlu0 %v3821_v32  ;;  %5123 = vadd.xlane.f32.xlu1 %v5100_v7 }
 0xf71   :  { %5109 = vadd.xlane.f32.xlu0 %v5093_v61  ;;  %5127 = vadd.xlane.f32.xlu1 %v5102_v55 }
 0xf75   :  { %5113 = vadd.xlane.f32.xlu0 %v5095_v29 }
 0xf79   :  { %5117 = vadd.xlane.f32.xlu0 %v5097_v35 }
 0xf7c   :  { %v5020_v17 = vpop.xlane.xlu0 %5019 }
 0xf7d   :  { %vm5040_vm7 = vcmp.gt.f32.partialorder %v5020_v17, 0.0  ;;  %5121 = vadd.xlane.f32.xlu0 %v5099_v0 }
 0xf7e   :  { %v5056_v28 = vsel %vm5040_vm7, %v5020_v17, 1.0 }
 0xf7f   :  { %9875 = vrcp.f32 %v5056_v28 }
 0xf80   :  { %v5018_v57 = vpop.xlane.xlu0 %5017  ;;  %v13285_v11 = vpop.xlane.xlu1 %3835 }
 0xf81   :  { %vm5039_vm8 = vcmp.gt.f32.partialorder %v5018_v57, 0.0  ;;  %5125 = vadd.xlane.f32.xlu0 %v5101_v33 }
 0xf82   :  { %v5055_v18 = vsel %vm5039_vm8, %v5018_v57, 1.0 }
 0xf83   :  { %9877 = vrcp.f32 %v5055_v18 }
 0xf84   :  { %v5024_v37 = vpop.xlane.xlu0 %5023  ;;  %v5028_v50 = vpop.xlane.xlu1 %5027 }
 0xf85   :  { %vm5042_vm9 = vcmp.gt.f32.partialorder %v5024_v37, 0.0  ;;  %vm5044_vm10 = vcmp.gt.f32.partialorder %v5028_v50, 0.0 }
 0xf86   :  { %v5058_v30 = vsel %vm5042_vm9, %v5024_v37, 1.0  ;;  %v5060_v27 = vsel %vm5044_vm10, %v5028_v50, 1.0 }
 0xf87   :  { %9879 = vrcp.f32 %v5058_v30 }
 0xf88   :  { %9881 = vrcp.f32 %v5060_v27  ;;  %v5022_v59 = vpop.xlane.xlu0 %5021 }
 0xf89   :  { %v9876_v4 = vpop.eup %9875  ;;  %vm5041_vm12 = vcmp.gt.f32.partialorder %v5022_v59, 0.0 }
 0xf8a   :  { %v5057_v5 = vsel %vm5041_vm12, %v5022_v59, 1.0  ;;  %v5088_v8 = vmul.f32 %v9876_v4, %v13210_v62 }
 0xf8b   :  { %9883 = vrcp.f32 %v5057_v5 }
 0xf8c   :  { %v13288_v58 = vpop.xlane.xlu0 %3833  ;;  %v5104_v45 = vmul.f32 %v5088_v8, %v14819_v52 }
 0xf8d   :  { %v9878_v41 = vpop.eup %9877 }
 0xf8e   :  { %5131 = vadd.xlane.f32.xlu1 %v5104_v45  ;;  %v5087_v47 = vmul.f32 %v9878_v41, %v13218_v26 }
 0xf90   :  { %v5026_v2 = vpop.xlane.xlu0 %5025  ;;  %8530 = vmatprep.mubr.f32.mxu0 %v5087_v47  ;;  %v5103_v49 = vmul.f32 %v5087_v47, %v14820_v56 }
 0xf91   :  { %v9880_v14 = vpop.eup %9879  ;;  %vm5043_vm15 = vcmp.gt.f32.partialorder %v5026_v2, 0.0  ;;  %8531 = vmatmul.mubr.f32.gmra.mrb[122].mxu0 %v5088_v8 }
 0xf92   :  { %v9882_v15 = vpop.eup %9881  ;;  %v5059_v40 = vsel %vm5043_vm15, %v5026_v2, 1.0  ;;  %5129 = vadd.xlane.f32.xlu0 %v5103_v49  ;;  %v5090_v62 = vmul.f32 %v9880_v14, %v13222_v23 }
 0xf93   :  { %9885 = vrcp.f32 %v5059_v40  ;;  %v5092_v36 = vmul.f32 %v9882_v15, %v13225_v19  ;;  %v13301_v19 = vpop.permute.xlu1 %5440 }
 0xf94   :  { %v5106_v25 = vmul.f32 %v5090_v62, %v14821_v42  ;;  %v13307_v20 = vpop.permute.xlu0 %5438 }
 0xf95   :  { %v9884_v44 = vpop.eup %9883  ;;  %v5108_v22 = vmul.f32 %v5092_v36, %v14823_v39  ;;  %v13358_v39 = vld [vmem:[%s14222_s3 + $0x28] sm:$0xff] }
 0xf96   :  { %5135 = vadd.xlane.f32.xlu1 %v5106_v25  ;;  %v5089_v26 = vmul.f32 %v9884_v44, %v13230_v31 }
 0xf98   :  { %8533 = vmatprep.mubr.f32.mxu0 %v5089_v26  ;;  %v5105_v10 = vmul.f32 %v5089_v26, %v14822_v48  ;;  %v10024_v26 = vld [vmem:[%s14222_s3 + $0x30] sm:$0xff] }
 0xf99   :  { %8534 = vmatmul.mubr.f32.gmra.mrb[124].mxu0 %v5090_v62  ;;  %v14826_v48 = vld [vmem:[#allocation107_spill] sm:$0xff] }
 0xf9a   :  { %5133 = vadd.xlane.f32.xlu0 %v5105_v10  ;;  %5139 = vadd.xlane.f32.xlu1 %v5108_v22  ;;  %v3823_v10 = vmul.f32 %v10024_v26, %v14826_v48  ;;  %v14827_v22 = vld [vmem:[#allocation108_spill] sm:$0xff]  ;;  %v14835_v48 = vld [vmem:[#allocation14_spill] sm:$0xff] }
 0xf9d   :  { %v9886_v12 = vpop.eup %9885 }
 0xf9e   :  { %v5091_v23 = vmul.f32 %v9886_v12, %v13238_v9  ;;  %v5495_v9 = vld [vmem:[#allocation2 + $0x40] sm:$0xff]  ;;  %v3822_v12 = vmul.f32 %v13358_v39, %v14827_v22 }
 0xf9f   :  { %v9094_v7 = vpack.c.bf16 %v5496_v43, %v5495_v9 }
 0xfa0   :  { %8536 = vmatprep.mubr.f32.mxu0 %v5091_v23  ;;  %v5107_v53 = vmul.f32 %v5091_v23, %v14824_v54 }
 0xfa1   :  { %8537 = vmatmul.mubr.f32.gmra.mrb[126].mxu0 %v5092_v36  ;;  %9099 = vmatprep.subr.bf16.mxu1 %v9094_v7 }
 0xfa2   :  { %5137 = vadd.xlane.f32.xlu0 %v5107_v53  ;;  %9095 = vmatprep.subr.bf16.mxu0 %v9094_v7 }
 0xfa3   :  { %9101 = vmatpush3.bf16.msra.mxu1 %v9094_v7  ;;  %9097 = vmatpush3.bf16.msra.mxu0 %v9094_v7 }
 0xfb9   :  { %v13303_v24 = vpop.xlane.xlu1 %3839 }
 0xfbd   :  { %v13305_v31 = vpop.permute.xlu1 %5444 }
 0xfc5   :  { %v13310_v6 = vpop.xlane.xlu0 %3837 }
 0xfc9   :  { %v13313_v32 = vpop.permute.xlu0 %5442 }
 0xfee   :  { %v5112_v60 = vpop.xlane.xlu1 %5111 }
 0xfef   :  { %v5142_v63 = vmul.f32 %v14825_v1, %v5112_v60 }
 0xff1   :  { %5223 = vrot.lane.b32.xlu1 %v5142_v63, %s10124_s9 }
 0xff2   :  { %v5116_v61 = vpop.xlane.xlu1 %5115 }
 0xff3   :  { %v5144_v3 = vmul.f32 %v14825_v1, %v5116_v61 }
 0xff6   :  { %v5120_v51 = vpop.xlane.xlu1 %5119 }
 0xff7   :  { %v5146_v21 = vmul.f32 %v14825_v1, %v5120_v51 }
 0xffa   :  { %v13315_v55 = vpop.xlane.xlu0 %3841  ;;  %v5124_v17 = vpop.xlane.xlu1 %5123 }
 0xffb   :  { %v5148_v18 = vmul.f32 %v14825_v1, %v5124_v17  ;;  %v13386_v17 = vld [vmem:[%s14222_s3 + $0x40] sm:$0xff] }
 0xffe   :  { %v5110_v46 = vpop.xlane.xlu0 %5109  ;;  %v5128_v50 = vpop.xlane.xlu1 %5127 }
 0xfff   :  { %v5141_v29 = vmul.f32 %v14825_v1, %v5110_v46  ;;  %v5150_v27 = vmul.f32 %v14825_v1, %v5128_v50  ;;  %v13377_v46 = vld [vmem:[%s14222_s3 + $0x38] sm:$0xff] }
0x1001   :  { %5221 = vrot.lane.b32.xlu0 %v5141_v29, %s10124_s9  ;;  %v14828_v29 = vld [vmem:[#allocation9_spill] sm:$0xff] }
0x1002   :  { %v5114_v35 = vpop.xlane.xlu0 %5113  ;;  %v3824_v51 = vmul.f32 %v13377_v46, %v14828_v29 }
0x1003   :  { %v5143_v0 = vmul.f32 %v14825_v1, %v5114_v35 }
0x1005   :  { %5225 = vrot.lane.b32.xlu1 %v5143_v0, %s10124_s9  ;;  %5227 = vrot.lane.b32.xlu0 %v5144_v3, %s10124_s9 }
0x1006   :  { %v5118_v28 = vpop.xlane.xlu0 %5117 }
0x1007   :  { %v5145_v33 = vmul.f32 %v14825_v1, %v5118_v28  ;;  %v14829_v28 = vld [vmem:[#allocation10_spill] sm:$0xff] }
0x1009   :  { %5229 = vrot.lane.b32.xlu1 %v5145_v33, %s10124_s9  ;;  %5231 = vrot.lane.b32.xlu0 %v5146_v21, %s10124_s9  ;;  %v3825_v21 = vmul.f32 %v13386_v17, %v14829_v28  ;;  %v14830_v33 = vld [vmem:[#allocation92_spill] sm:$0xff] }
0x100a   :  { %v5122_v57 = vpop.xlane.xlu0 %5121 }
0x100b   :  { %v5147_v37 = vmul.f32 %v14825_v1, %v5122_v57 }
0x100d   :  { %5233 = vrot.lane.b32.xlu1 %v5147_v37, %s10124_s9  ;;  %5235 = vrot.lane.b32.xlu0 %v5148_v18, %s10124_s9  ;;  %v14831_v37 = vld [vmem:[#allocation93_spill] sm:$0xff] }
0x100e   :  { %v5126_v30 = vpop.xlane.xlu0 %5125 }
0x100f   :  { %v5149_v59 = vmul.f32 %v14825_v1, %v5126_v30 }
0x1011   :  { %5237 = vrot.lane.b32.xlu1 %v5149_v59, %s10124_s9  ;;  %5239 = vrot.lane.b32.xlu0 %v5150_v27, %s10124_s9 }
0x101b   :  { %v8517_v4 = vpop.f32.mrb[112].mxu0  ;;  %v5132_v5 = vpop.xlane.xlu1 %5131 }
0x101c   :  { %v5335_v8 = vpop.f32.mrb[113].mxu0  ;;  %v5152_v52 = vmul.f32 %v14825_v1, %v5132_v5 }
0x101e   :  { %5243 = vrot.lane.b32.xlu0 %v5152_v52, %s10124_s9  ;;  %v14832_v52 = vld [vmem:[#allocation12_spill] sm:$0xff] }
0x101f   :  { %v5130_v45 = vpop.xlane.xlu0 %5129 }
0x1020   :  { %v5151_v41 = vmul.f32 %v14825_v1, %v5130_v45 }
0x1022   :  { %5241 = vrot.lane.b32.xlu1 %v5151_v41, %s10124_s9 }
0x1023   :  { %v5136_v2 = vpop.xlane.xlu1 %5135 }
0x1024   :  { %v8520_v47 = vpop.f32.mrb[114].mxu0  ;;  %v5154_v56 = vmul.f32 %v14825_v1, %v5136_v2  ;;  %v14833_v2 = vld [vmem:[#allocation94_spill] sm:$0xff] }
0x1025   :  { %v5345_v49 = vpop.f32.mrb[115].mxu0 }
0x1026   :  { %5247 = vrot.lane.b32.xlu1 %v5154_v56, %s10124_s9 }
0x1027   :  { %v5134_v15 = vpop.xlane.xlu0 %5133  ;;  %v5140_v53 = vpop.xlane.xlu1 %5139 }
0x1028   :  { %v8523_v14 = vpop.f32.mrb[116].mxu0  ;;  %v5153_v40 = vmul.f32 %v14825_v1, %v5134_v15  ;;  %v5156_v60 = vmul.f32 %v14825_v1, %v5140_v53  ;;  %v14834_v15 = vld [vmem:[#allocation95_spill] sm:$0xff]  ;;  %v14836_v53 = vld [vmem:[#allocation96_spill] sm:$0xff] }
0x1029   :  { %v5355_v62 = vpop.f32.mrb[117].mxu0 }
0x102a   :  { %5245 = vrot.lane.b32.xlu1 %v5153_v40, %s10124_s9 }
0x102c   :  { %v13343_v42 = vpop.f32.mrb[118].mxu0 }
0x102d   :  { %v13345_v25 = vpop.f32.mrb[119].mxu0 }
0x102f   :  { %v5138_v23 = vpop.xlane.xlu0 %5137 }
0x1030   :  { %v13347_v36 = vpop.f32.mrb[120].mxu0  ;;  %v5155_v54 = vmul.f32 %v14825_v1, %v5138_v23 }
0x1031   :  { %v13349_v44 = vpop.f32.mrb[121].mxu0 }
0x103d   :  { %3845 = vadd.xlane.f32.xlu0 %v3823_v10 }
0x104e   :  { %3843 = vadd.xlane.f32.xlu1 %v3822_v12 }
0x1053   :  { %5249 = vrot.lane.b32.xlu0 %v5155_v54, %s10124_s9 }
0x105f   :  { %5251 = vrot.lane.b32.xlu1 %v5156_v60, %s10124_s9 }
0x1063   :  { %v5224_v61 = vpop.permute.xlu1 %5223 }
0x1064   :  { %v13366_v63 = vpop.f32.mrb[122].mxu0  ;;  %v5341_v1 = vadd.f32 %v8517_v4, %v5224_v61  ;;  %v14837_v61 = vld [vmem:[#allocation97_spill] sm:$0xff] }
0x1065   :  { %v13368_v9 = vpop.f32.mrb[123].mxu0 }
0x1066   :  { %v5463_v57 = vadd.f32 %v14830_v33, %v5341_v1 }
0x1068   :  { %v5479_v41 = vmax.f32 %v5463_v57, 0.0  ;;  %v13428_v57 = vld [vmem:[%s14222_s3 + $0x48] sm:$0xff] }
0x106c   :  { %v13370_v43 = vpop.f32.mrb[124].mxu0 }
0x106d   :  { %v13372_v7 = vpop.f32.mrb[125].mxu0 }
0x1072   :  { %3847 = vadd.xlane.f32.xlu0 %v3824_v51 }
0x1073   :  { %v5222_v35 = vpop.permute.xlu0 %5221 }
0x1074   :  { %v5336_v3 = vadd.f32 %v5335_v8, %v5222_v35  ;;  %v13381_v0 = vpop.f32.mrb[126].mxu0  ;;  %v13397_v8 = vld [vmem:[%s14222_s3 + $0x50] sm:$0xff] }
0x1075   :  { %v13391_v18 = vpop.f32.mrb[127].mxu0  ;;  %v3827_v45 = vmul.f32 %v13397_v8, %v14832_v52  ;;  %v13419_v35 = vld [vmem:[%s14222_s3 + $0x70] sm:$0xff] }
0x1076   :  { %v5462_v50 = vadd.f32 %v14831_v37, %v5336_v3  ;;  %3849 = vadd.xlane.f32.xlu0 %v3825_v21  ;;  %v14838_v3 = vld [vmem:[#allocation16_spill] sm:$0xff] }
0x1077   :  { %v5228_v30 = vpop.permute.xlu0 %5227  ;;  %v5226_v27 = vpop.permute.xlu1 %5225  ;;  %v14839_v37 = vld [vmem:[#allocation8_spill] sm:$0xff] }
0x1078   :  { %v5478_v59 = vmax.f32 %v5462_v50, 0.0  ;;  %v5351_v4 = vadd.f32 %v8520_v47, %v5228_v30  ;;  %v5346_v5 = vadd.f32 %v5345_v49, %v5226_v27  ;;  %v13408_v49 = vld [vmem:[%s14222_s3 + $0x60] sm:$0xff]  ;;  %v3826_v50 = vmul.f32 %v13428_v57, %v14839_v37  ;;  %v14849_v37 = vld [vmem:[#allocation51_spill] sm:$0xff] }
0x1079   :  { %v3829_v10 = vmul.f32 %v13408_v49, %v14835_v48  ;;  %v14840_v30 = vld [vmem:[#allocation98_spill] sm:$0xff]  ;;  %v14843_v48 = vld [vmem:[#allocation13_spill] sm:$0xff] }
0x107a   :  { %v5465_v56 = vadd.f32 %v14833_v2, %v5351_v4  ;;  %v5464_v40 = vadd.f32 %v14834_v15, %v5346_v5  ;;  %8571 = vmatprep.mubr.msk.f32.mxu1 %vm173_vm0, %v5478_v59  ;;  %3853 = vadd.xlane.f32.xlu0 %v3827_v45  ;;  %v14841_v59 = vld [vmem:[#allocation100_spill] sm:$0xff] }
0x107b   :  { %v5232_v26 = vpop.permute.xlu0 %5231  ;;  %8572 = vmatmul.mubr.msk.f32.vlgmr.msra.gmra.mrb[128].mxu1 %vm173_vm0, %v5479_v41  ;;  %v5230_v47 = vpop.permute.xlu1 %5229  ;;  %v13441_v2 = vld [vmem:[%s14222_s3 + $0x58] sm:$0xff] }
0x107c   :  { %v5481_v22 = vmax.f32 %v5465_v56, 0.0  ;;  %v5480_v12 = vmax.f32 %v5464_v40, 0.0  ;;  %v5361_v23 = vadd.f32 %v8523_v14, %v5232_v26  ;;  %v5356_v54 = vadd.f32 %v5355_v62, %v5230_v47  ;;  %v14842_v56 = vld [vmem:[#allocation11_spill] sm:$0xff] }
0x107d   :  { %v3831_v14 = vmul.f32 %v13419_v35, %v14838_v3  ;;  %v3828_v15 = vmul.f32 %v13441_v2, %v14842_v56 }
0x107e   :  { %v5467_v60 = vadd.f32 %v14836_v53, %v5361_v23  ;;  %v5466_v29 = vadd.f32 %v14837_v61, %v5356_v54  ;;  %3857 = vadd.xlane.f32.xlu0 %v3829_v10  ;;  %8574 = vmatprep.mubr.msk.f32.mxu1 %vm173_vm0, %v5480_v12 }
0x107f   :  { %v5236_v51 = vpop.permute.xlu0 %5235  ;;  %8575 = vmatmul.mubr.msk.f32.gmra.mrb[130].mxu1 %vm173_vm0, %v5481_v22  ;;  %v5234_v1 = vpop.permute.xlu1 %5233 }
0x1080   :  { %v5483_v62 = vmax.f32 %v5467_v60, 0.0  ;;  %v5482_v28 = vmax.f32 %v5466_v29, 0.0  ;;  %v5371_v21 = vadd.f32 %v13343_v42, %v5236_v51  ;;  %v5366_v33 = vadd.f32 %v13345_v25, %v5234_v1  ;;  %v13470_v60 = vld [vmem:[%s14224_s5 + $0x2] ss:$0 sm:$0xff] }
0x1081   :  { %v3865_v61 = vmul.f32 %v13470_v60, %v13288_v58 }
0x1082   :  { %v5469_v27 = vadd.f32 %v14840_v30, %v5371_v21  ;;  %v5468_v4 = vadd.f32 %v14841_v59, %v5366_v33  ;;  %3861 = vadd.xlane.f32.xlu0 %v3831_v14  ;;  %8577 = vmatprep.mubr.msk.f32.mxu1 %vm173_vm0, %v5482_v28 }
0x1083   :  { %v5240_v5 = vpop.permute.xlu0 %5239  ;;  %3851 = vadd.xlane.f32.xlu1 %v3826_v50  ;;  %8578 = vmatmul.mubr.msk.f32.gmra.mrb[132].mxu1 %vm173_vm0, %v5483_v62  ;;  %v5238_v42 = vpop.permute.xlu1 %5237 }
0x1084   :  { %v5485_v25 = vmax.f32 %v5469_v27, 0.0  ;;  %v5484_v52 = vmax.f32 %v5468_v4, 0.0  ;;  %v5381_v45 = vadd.f32 %v13347_v36, %v5240_v5  ;;  %v5376_v41 = vadd.f32 %v13349_v44, %v5238_v42  ;;  %v13452_v44 = vld [vmem:[%s14222_s3 + $0x68] sm:$0xff] }
0x1085   :  { %v3830_v10 = vmul.f32 %v13452_v44, %v14843_v48  ;;  %v14850_v4 = vld [vmem:[#allocation54_spill] sm:$0xff] }
0x1086   :  { %v5471_v40 = vadd.f32 %v13205_v38, %v5381_v45  ;;  %v5470_v26 = vadd.f32 %v13202_v34, %v5376_v41  ;;  %8580 = vmatprep.mubr.msk.f32.mxu1 %vm173_vm0, %v5484_v52  ;;  %v13461_v34 = vld [vmem:[%s14222_s3 + $0x78] sm:$0xff]  ;;  %v14844_v38 = vld [vmem:[#allocation15_spill] sm:$0xff] }
0x1087   :  { %3855 = vadd.xlane.f32.xlu1 %v3828_v15  ;;  %8581 = vmatmul.mubr.msk.f32.gmra.mrb[134].mxu1 %vm173_vm0, %v5485_v25  ;;  %v3832_v22 = vmul.f32 %v13461_v34, %v14844_v38 }
0x1088   :  { %v5487_v36 = vmax.f32 %v5471_v40, 0.0  ;;  %v5486_v47 = vmax.f32 %v5470_v26, 0.0  ;;  %v14853_v26 = vld [vmem:[#allocation37_spill] sm:$0xff] }
0x108a   :  { %8583 = vmatprep.mubr.msk.f32.mxu1 %vm173_vm0, %v5486_v47 }
0x108b   :  { %3859 = vadd.xlane.f32.xlu1 %v3830_v10  ;;  %8584 = vmatmul.mubr.msk.f32.gmra.mrb[136].mxu1 %vm173_vm0, %v5487_v36 }
0x108f   :  { %3863 = vadd.xlane.f32.xlu1 %v3832_v22  ;;  %v14854_v22 = vld [vmem:[#allocation41_spill] sm:$0xff] }
0x1090   :  { %v5244_v12 = vpop.permute.xlu0 %5243 }
0x1091   :  { %v5391_v23 = vadd.f32 %v13366_v63, %v5244_v12 }
0x1093   :  { %v5473_v29 = vadd.f32 %v13279_v16, %v5391_v23  ;;  %v3866_v16 = vmul.f32 %v13470_v60, %v13285_v11  ;;  %v14847_v11 = vld [vmem:[#allocation33_spill] sm:$0xff] }
0x1094   :  { %v5242_v54 = vpop.permute.xlu1 %5241 }
0x1095   :  { %v5386_v53 = vadd.f32 %v13368_v9, %v5242_v54  ;;  %v5489_v63 = vmax.f32 %v5473_v29, 0.0  ;;  %v14845_v9 = vld [vmem:[#allocation35_spill] sm:$0xff] }
0x1097   :  { %v5472_v51 = vadd.f32 %v13282_v13, %v5386_v53  ;;  %v3868_v13 = vmul.f32 %v13470_v60, %v13303_v24  ;;  %v14848_v24 = vld [vmem:[#allocation25_spill] sm:$0xff] }
0x1098   :  { %3945 = vrot.lane.b32.xlu0 %v3865_v61, %s10124_s9  ;;  %v5248_v1 = vpop.permute.xlu1 %5247  ;;  %v14855_v53 = vld [vmem:[#allocation53_spill] sm:$0xff] }
0x1099   :  { %v5488_v3 = vmax.f32 %v5472_v51, 0.0  ;;  %v5401_v14 = vadd.f32 %v13370_v43, %v5248_v1  ;;  %v14856_v51 = vld [vmem:[#allocation103_spill] sm:$0xff] }
0x109b   :  { %8586 = vmatprep.mubr.msk.f32.mxu1 %vm173_vm0, %v5488_v3  ;;  %v5475_v28 = vadd.f32 %v13301_v19, %v5401_v14  ;;  %v3867_v19 = vmul.f32 %v13470_v60, %v13310_v6  ;;  %v14857_v14 = vld [vmem:[#allocation43_spill] sm:$0xff] }
0x109c   :  { %4140 = vrot.lane.b32.xlu0 %v14845_v9, %s10123_s30  ;;  %8587 = vmatmul.mubr.msk.f32.gmra.mrb[138].mxu1 %vm173_vm0, %v5489_v63  ;;  %v5246_v62 = vpop.permute.xlu1 %5245 }
0x109d   :  { %v5396_v58 = vadd.f32 %v13372_v7, %v5246_v62  ;;  %v5491_v33 = vmax.f32 %v5475_v28, 0.0  ;;  %v14846_v7 = vld [vmem:[#allocation50_spill] sm:$0xff]  ;;  %v14860_v28 = vld [vmem:[#allocation17_spill] sm:$0xff] }
0x109f   :  { %v5474_v43 = vadd.f32 %v13307_v20, %v5396_v58  ;;  %v3869_v20 = vmul.f32 %v13470_v60, %v13315_v55  ;;  %v14858_v58 = vld [vmem:[#allocation18_spill] sm:$0xff] }
0x10a0   :  { %3951 = vrot.lane.b32.xlu0 %v3868_v13, %s10124_s9  ;;  %3947 = vrot.lane.b32.xlu1 %v3866_v16, %s10124_s9  ;;  %v14859_v13 = vld [vmem:[#allocation105_spill] sm:$0xff] }
0x10a1   :  { %v5490_v21 = vmax.f32 %v5474_v43, 0.0 }
0x10a3   :  { %8589 = vmatprep.mubr.msk.f32.mxu1 %vm173_vm0, %v5490_v21 }
0x10a4   :  { %4144 = vrot.lane.b32.xlu0 %v14846_v7, %s10123_s30  ;;  %4138 = vrot.lane.b32.xlu1 %v14847_v11, %s10123_s30 }
0x10a5   :  { %8590 = vmatmul.mubr.msk.f32.gmra.mrb[140].mxu1 %vm173_vm0, %v5491_v33 }
0x10a8   :  { %3949 = vrot.lane.b32.xlu1 %v3867_v19, %s10124_s9 }
0x10ac   :  { %4142 = vrot.lane.b32.xlu1 %v14848_v24, %s10123_s30  ;;  %v14861_v24 = vld [vmem:[#allocation104_spill] sm:$0xff] }
0x10b0   :  { %3953 = vrot.lane.b32.xlu1 %v3869_v20, %s10124_s9 }
0x10b4   :  { %4146 = vrot.lane.b32.xlu1 %v14849_v37, %s10123_s30 }
0x10ca   :  { %v3846_v50 = vpop.xlane.xlu0 %3845 }
0x10cb   :  { %v3871_v30 = vmul.f32 %v13470_v60, %v3846_v50 }
0x10cd   :  { %3957 = vrot.lane.b32.xlu1 %v3871_v30, %s10124_s9 }
0x10ce   :  { %v5250_v27 = vpop.permute.xlu0 %5249 }
0x10cf   :  { %v5406_v6 = vadd.f32 %v13391_v18, %v5250_v27  ;;  %v14851_v18 = vld [vmem:[#allocation52_spill] sm:$0xff]  ;;  %v14862_v27 = vld [vmem:[#allocation19_spill] sm:$0xff] }
0x10d1   :  { %v5476_v59 = vadd.f32 %v13313_v32, %v5406_v6  ;;  %4150 = vrot.lane.b32.xlu1 %v14850_v4, %s10123_s30 }
0x10d3   :  { %v5492_v5 = vmax.f32 %v5476_v59, 0.0  ;;  %v14863_v59 = vld [vmem:[#allocation110_spill] sm:$0xff] }
0x10d5   :  { %8592 = vmatprep.mubr.msk.f32.mxu1 %vm173_vm0, %v5492_v5 }
0x10db   :  { %v3844_v55 = vpop.xlane.xlu1 %3843 }
0x10dc   :  { %v3870_v42 = vmul.f32 %v13470_v60, %v3844_v55 }
0x10de   :  { %3955 = vrot.lane.b32.xlu0 %v3870_v42, %s10124_s9 }
0x10df   :  { %v5252_v25 = vpop.permute.xlu1 %5251 }
0x10e0   :  { %v5411_v52 = vadd.f32 %v13381_v0, %v5252_v25  ;;  %v14852_v0 = vld [vmem:[#allocation39_spill] sm:$0xff] }
0x10e2   :  { %v5477_v45 = vadd.f32 %v13305_v31, %v5411_v52  ;;  %4148 = vrot.lane.b32.xlu0 %v14851_v18, %s10123_s30  ;;  %v14864_v52 = vld [vmem:[#allocation106_spill] sm:$0xff]  ;;  %v14865_v18 = vld [vmem:[#allocation109_spill] sm:$0xff] }
0x10e4   :  { %v5493_v32 = vmax.f32 %v5477_v45, 0.0 }
0x10e6   :  { %8593 = vmatmul.mubr.msk.f32.gmra.mrb[142].mxu1 %vm173_vm0, %v5493_v32 }
0x10ff   :  { %v3848_v41 = vpop.xlane.xlu0 %3847 }
0x1100   :  { %v3872_v56 = vmul.f32 %v13470_v60, %v3848_v41 }
0x1102   :  { %3959 = vrot.lane.b32.xlu0 %v3872_v56, %s10124_s9 }
0x1103   :  { %v3850_v15 = vpop.xlane.xlu0 %3849 }
0x1104   :  { %v3873_v40 = vmul.f32 %v13470_v60, %v3850_v15 }
0x1106   :  { %3961 = vrot.lane.b32.xlu1 %v3873_v40, %s10124_s9  ;;  %4152 = vrot.lane.b32.xlu0 %v14852_v0, %s10123_s30  ;;  %v13570_v0 = vld [vmem:[%s14224_s5 + $0x4] ss:$0 sm:$0xff] }
0x1107   :  { %v3854_v31 = vpop.xlane.xlu0 %3853 }
0x1108   :  { %v3875_v47 = vmul.f32 %v13470_v60, %v3854_v31 }
0x110a   :  { %4154 = vrot.lane.b32.xlu1 %v14853_v26, %s10123_s30 }
0x110b   :  { %v3858_v36 = vpop.xlane.xlu0 %3857 }
0x110c   :  { %v3877_v12 = vmul.f32 %v13470_v60, %v3858_v36 }
0x110e   :  { %3965 = vrot.lane.b32.xlu1 %v3875_v47, %s10124_s9 }
0x110f   :  { %v3862_v10 = vpop.xlane.xlu0 %3861 }
0x1110   :  { %v3852_v48 = vpop.xlane.xlu1 %3851  ;;  %v3879_v1 = vmul.f32 %v13470_v60, %v3862_v10 }
0x1111   :  { %v3874_v38 = vmul.f32 %v13470_v60, %v3852_v48 }
0x1112   :  { %4158 = vrot.lane.b32.xlu1 %v14854_v22, %s10123_s30 }
0x1113   :  { %3963 = vrot.lane.b32.xlu0 %v3874_v38, %s10124_s9  ;;  %v3946_v54 = vpop.permute.xlu0 %3945  ;;  %v14866_v38 = vld [vmem:[#allocation111_spill] sm:$0xff] }
0x1114   :  { %v3856_v23 = vpop.xlane.xlu1 %3855  ;;  %v4060_v43 = vadd.f32 %v14860_v28, %v3946_v54  ;;  %v14867_v54 = vld [vmem:[#allocation21_spill] sm:$0xff] }
0x1115   :  { %v3876_v29 = vmul.f32 %v13470_v60, %v3856_v23 }
0x1116   :  { %3969 = vrot.lane.b32.xlu1 %v3877_v12, %s10124_s9 }
0x1117   :  { %4156 = vrot.lane.b32.xlu0 %v14855_v53, %s10123_s30  ;;  %v4141_v63 = vpop.permute.xlu0 %4140 }
0x1118   :  { %v3860_v61 = vpop.xlane.xlu1 %3859 }
0x1119   :  { %v3878_v62 = vmul.f32 %v13470_v60, %v3860_v61 }
0x111a   :  { %4162 = vrot.lane.b32.xlu1 %v14856_v51, %s10123_s30 }
0x111b   :  { %3967 = vrot.lane.b32.xlu0 %v3876_v29, %s10124_s9  ;;  %v3952_v21 = vpop.permute.xlu0 %3951 }
0x111c   :  { %v3864_v3 = vpop.xlane.xlu1 %3863  ;;  %v4075_v6 = vadd.f32 %v14862_v27, %v3952_v21 }
0x111d   :  { %v3880_v50 = vmul.f32 %v13470_v60, %v3864_v3 }
0x111e   :  { %3973 = vrot.lane.b32.xlu1 %v3879_v1, %s10124_s9 }
0x111f   :  { %4160 = vrot.lane.b32.xlu0 %v14857_v14, %s10123_s30  ;;  %v4145_v30 = vpop.permute.xlu0 %4144 }
0x1120   :  { %v3948_v9 = vpop.permute.xlu1 %3947  ;;  %v4189_v5 = vadd.f32 %v4145_v30, %v4075_v6 }
0x1121   :  { %v4065_v16 = vadd.f32 %v14858_v58, %v3948_v9 }
0x1122   :  { %4166 = vrot.lane.b32.xlu1 %v14859_v13, %s10123_s30  ;;  %v4205_v45 = vmax.f32 %v4189_v5, 0.0 }
0x1123   :  { %3971 = vrot.lane.b32.xlu0 %v3878_v62, %s10124_s9  ;;  %v4187_v33 = vadd.f32 %v4141_v63, %v4065_v16 }
0x1124   :  { %v4139_v7 = vpop.permute.xlu1 %4138 }
0x1125   :  { %v4186_v11 = vadd.f32 %v4139_v7, %v4060_v43  ;;  %v4203_v20 = vmax.f32 %v4187_v33, 0.0 }
0x1127   :  { %v4202_v19 = vmax.f32 %v4186_v11, 0.0  ;;  %4164 = vrot.lane.b32.xlu0 %v14861_v24, %s10123_s30 }
0x1128   :  { %v3950_v37 = vpop.permute.xlu1 %3949 }
0x1129   :  { %8543 = vmatprep.mubr.msk.f32.mxu0 %vm173_vm0, %v4202_v19  ;;  %v4070_v4 = vadd.f32 %v14863_v59, %v3950_v37 }
0x112a   :  { %8544 = vmatmul.mubr.msk.f32.vlgmr.msra.gmra.mrb[128].mxu0 %vm173_vm0, %v4203_v20 }
0x112b   :  { %3975 = vrot.lane.b32.xlu0 %v3880_v50, %s10124_s9 }
0x112c   :  { %v4143_v55 = vpop.permute.xlu1 %4142 }
0x112d   :  { %v4188_v42 = vadd.f32 %v4143_v55, %v4070_v4 }
0x112f   :  { %v4204_v25 = vmax.f32 %v4188_v42, 0.0  ;;  %4168 = vrot.lane.b32.xlu0 %v14864_v52, %s10123_s30  ;;  %v14868_v42 = vld [vmem:[#allocation20_spill] sm:$0xff] }
0x1130   :  { %v3954_v60 = vpop.permute.xlu1 %3953 }
0x1131   :  { %8546 = vmatprep.mubr.msk.f32.mxu0 %vm173_vm0, %v4204_v25  ;;  %v4080_v32 = vadd.f32 %v14865_v18, %v3954_v60 }
0x1132   :  { %8547 = vmatmul.mubr.msk.f32.gmra.mrb[130].mxu0 %vm173_vm0, %v4205_v45 }
0x1134   :  { %v4147_v41 = vpop.permute.xlu1 %4146 }
0x1135   :  { %v4190_v56 = vadd.f32 %v4147_v41, %v4080_v32 }
0x1137   :  { %v4206_v15 = vmax.f32 %v4190_v56, 0.0 }
0x1139   :  { %8549 = vmatprep.mubr.msk.f32.mxu0 %vm173_vm0, %v4206_v15 }
0x113f   :  { %v3958_v40 = vpop.permute.xlu1 %3957 }
0x1140   :  { %v4090_v22 = vadd.f32 %v14866_v38, %v3958_v40 }
0x1143   :  { %v4151_v10 = vpop.permute.xlu1 %4150 }
0x1144   :  { %v4192_v51 = vadd.f32 %v4151_v10, %v4090_v22 }
0x1146   :  { %v4208_v13 = vmax.f32 %v4192_v51, 0.0 }
0x114e   :  { %v8573_v31 = vpop.f32.mrb[128].mxu1 }
0x114f   :  { %v5815_v26 = vadd.f32 %v8573_v31, %v13570_v0  ;;  %v5809_v36 = vpop.f32.mrb[129].mxu1  ;;  %v14869_v31 = vld [vmem:[#allocation85_spill] sm:$0xff] }
0x1150   :  { %v5810_v47 = vadd.f32 %v13570_v0, %v5809_v36  ;;  %v3956_v48 = vpop.permute.xlu0 %3955 }
0x1151   :  { %v4085_v53 = vadd.f32 %v14867_v54, %v3956_v48 }
0x1152   :  { %v13575_v12 = vpack.i.bf16 %v5815_v26, %v5810_v47  ;;  %v8576_v23 = vpop.f32.mrb[130].mxu1 }
0x1153   :  { %v5825_v61 = vadd.f32 %v8576_v23, %v13570_v0  ;;  %v5819_v29 = vpop.f32.mrb[131].mxu1  ;;  %v14870_v23 = vld [vmem:[#allocation22_spill] sm:$0xff] }
0x1154   :  { %v5820_v1 = vadd.f32 %v13570_v0, %v5819_v29  ;;  %9550 = vrot.lane.b32.xlu1 %v13575_v12, %s10121_s0  ;;  %v4149_v3 = vpop.permute.xlu0 %4148 }
0x1155   :  { %v4191_v63 = vadd.f32 %v4149_v3, %v4085_v53  ;;  %v14871_v53 = vld [vmem:[#allocation23_spill] sm:$0xff] }
0x1156   :  { %v13582_v14 = vpack.i.bf16 %v5825_v61, %v5820_v1  ;;  %v8579_v9 = vpop.f32.mrb[132].mxu1 }
0x1157   :  { %v4207_v62 = vmax.f32 %v4191_v63, 0.0  ;;  %v5835_v58 = vadd.f32 %v8579_v9, %v13570_v0  ;;  %v5829_v16 = vpop.f32.mrb[133].mxu1 }
0x1158   :  { %v5830_v28 = vadd.f32 %v13570_v0, %v5829_v16  ;;  %9555 = vrot.lane.b32.xlu0 %v13582_v14, %s10121_s0  ;;  %v14872_v16 = vld [vmem:[#allocation88_spill] sm:$0xff] }
0x1159   :  { %8550 = vmatmul.mubr.msk.f32.gmra.mrb[132].mxu0 %vm173_vm0, %v4207_v62 }
0x115a   :  { %v13589_v43 = vpack.i.bf16 %v5835_v58, %v5830_v28  ;;  %8552 = vmatprep.mubr.msk.f32.mxu0 %vm173_vm0, %v4208_v13  ;;  %v8582_v21 = vpop.f32.mrb[134].mxu1  ;;  %v14873_v28 = vld [vmem:[#allocation86_spill] sm:$0xff] }
0x115b   :  { %v5845_v33 = vadd.f32 %v8582_v21, %v13570_v0  ;;  %v5839_v7 = vpop.f32.mrb[135].mxu1 }
0x115c   :  { %v5840_v11 = vadd.f32 %v13570_v0, %v5839_v7  ;;  %9560 = vrot.lane.b32.xlu1 %v13589_v43, %s10121_s0 }
0x115e   :  { %v13596_v19 = vpack.i.bf16 %v5845_v33, %v5840_v11  ;;  %v8585_v24 = vpop.f32.mrb[136].mxu1 }
0x115f   :  { %v5855_v20 = vadd.f32 %v8585_v24, %v13570_v0  ;;  %v5849_v37 = vpop.f32.mrb[137].mxu1 }
0x1160   :  { %v5850_v50 = vadd.f32 %v13570_v0, %v5849_v37  ;;  %9565 = vrot.lane.b32.xlu0 %v13596_v19, %s10121_s0 }
0x1162   :  { %v13602_v30 = vpack.i.bf16 %v5855_v20, %v5850_v50 }
0x1164   :  { %9570 = vrot.lane.b32.xlu1 %v13602_v30, %s10121_s0 }
0x116f   :  { %v8588_v27 = vpop.f32.mrb[138].mxu1 }
0x1170   :  { %v5865_v6 = vadd.f32 %v8588_v27, %v13570_v0  ;;  %v5859_v59 = vpop.f32.mrb[139].mxu1 }
0x1171   :  { %v5860_v4 = vadd.f32 %v13570_v0, %v5859_v59 }
0x1173   :  { %v13608_v5 = vpack.i.bf16 %v5865_v6, %v5860_v4  ;;  %v14874_v6 = vld [vmem:[#allocation90_spill] sm:$0xff]  ;;  %v14875_v4 = vld [vmem:[#allocation87_spill] sm:$0xff] }
0x1174   :  { %v3960_v55 = vpop.permute.xlu0 %3959 }
0x1175   :  { %9575 = vrot.lane.b32.xlu0 %v13608_v5, %s10121_s0  ;;  %v4095_v25 = vadd.f32 %v14868_v42, %v3960_v55 }
0x1178   :  { %v8591_v52 = vpop.f32.mrb[140].mxu1  ;;  %v4153_v45 = vpop.permute.xlu0 %4152 }
0x1179   :  { %v5875_v60 = vadd.f32 %v8591_v52, %v13570_v0  ;;  %v5869_v18 = vpop.f32.mrb[141].mxu1  ;;  %v4193_v32 = vadd.f32 %v4153_v45, %v4095_v25  ;;  %v3962_v41 = vpop.permute.xlu1 %3961 }
0x117a   :  { %v5870_v56 = vadd.f32 %v13570_v0, %v5869_v18  ;;  %v4100_v26 = vadd.f32 %v14869_v31, %v3962_v41 }
0x117b   :  { %v4209_v15 = vmax.f32 %v4193_v32, 0.0  ;;  %v14876_v32 = vld [vmem:[#allocation89_spill] sm:$0xff] }
0x117c   :  { %v13615_v40 = vpack.i.bf16 %v5875_v60, %v5870_v56 }
0x117d   :  { %v4155_v36 = vpop.permute.xlu1 %4154  ;;  %8553 = vmatmul.mubr.msk.f32.gmra.mrb[134].mxu0 %vm173_vm0, %v4209_v15 }
0x117e   :  { %v4194_v47 = vadd.f32 %v4155_v36, %v4100_v26  ;;  %9580 = vrot.lane.b32.xlu1 %v13615_v40, %s10121_s0 }
0x1180   :  { %v4210_v48 = vmax.f32 %v4194_v47, 0.0 }
0x1181   :  { %v3966_v10 = vpop.permute.xlu1 %3965 }
0x1182   :  { %8555 = vmatprep.mubr.msk.f32.mxu0 %vm173_vm0, %v4210_v48  ;;  %v4110_v54 = vadd.f32 %v14870_v23, %v3966_v10 }
0x1185   :  { %v4159_v38 = vpop.permute.xlu1 %4158  ;;  %v3964_v22 = vpop.permute.xlu0 %3963 }
0x1186   :  { %v4105_v61 = vadd.f32 %v14871_v53, %v3964_v22  ;;  %v4196_v29 = vadd.f32 %v4159_v38, %v4110_v54 }
0x1188   :  { %v4212_v9 = vmax.f32 %v4196_v29, 0.0 }
0x1189   :  { %v3970_v51 = vpop.permute.xlu1 %3969  ;;  %v4157_v1 = vpop.permute.xlu0 %4156 }
0x118a   :  { %v4195_v3 = vadd.f32 %v4157_v1, %v4105_v61  ;;  %v4120_v13 = vadd.f32 %v14872_v16, %v3970_v51 }
0x118c   :  { %v4211_v63 = vmax.f32 %v4195_v3, 0.0 }
0x118d   :  { %v4163_v62 = vpop.permute.xlu1 %4162  ;;  %v3968_v58 = vpop.permute.xlu0 %3967 }
0x118e   :  { %8556 = vmatmul.mubr.msk.f32.gmra.mrb[136].mxu0 %vm173_vm0, %v4211_v63  ;;  %v4115_v21 = vadd.f32 %v14873_v28, %v3968_v58  ;;  %v4198_v33 = vadd.f32 %v4163_v62, %v4120_v13 }
0x118f   :  { %8558 = vmatprep.mubr.msk.f32.mxu0 %vm173_vm0, %v4212_v9 }
0x1190   :  { %v4214_v37 = vmax.f32 %v4198_v33, 0.0 }
0x1191   :  { %v3974_v7 = vpop.permute.xlu1 %3973  ;;  %v4161_v11 = vpop.permute.xlu0 %4160 }
0x1192   :  { %v4197_v24 = vadd.f32 %v4161_v11, %v4115_v21  ;;  %v4130_v59 = vadd.f32 %v14874_v6, %v3974_v7 }
0x1194   :  { %v4213_v20 = vmax.f32 %v4197_v24, 0.0 }
0x1195   :  { %v3972_v50 = vpop.permute.xlu0 %3971  ;;  %v4167_v27 = vpop.permute.xlu1 %4166 }
0x1196   :  { %8559 = vmatmul.mubr.msk.f32.gmra.mrb[138].mxu0 %vm173_vm0, %v4213_v20  ;;  %v4125_v55 = vadd.f32 %v14875_v4, %v3972_v50  ;;  %v4200_v42 = vadd.f32 %v4167_v27, %v4130_v59 }
0x1197   :  { %8561 = vmatprep.mubr.msk.f32.mxu0 %vm173_vm0, %v4214_v37 }
0x1198   :  { %v4216_v60 = vmax.f32 %v4200_v42, 0.0 }
0x1199   :  { %v4165_v25 = vpop.permute.xlu0 %4164 }
0x119a   :  { %v4199_v52 = vadd.f32 %v4165_v25, %v4125_v55 }
0x119c   :  { %v4215_v45 = vmax.f32 %v4199_v52, 0.0 }
0x119d   :  { %v3976_v18 = vpop.permute.xlu0 %3975 }
0x119e   :  { %8562 = vmatmul.mubr.msk.f32.gmra.mrb[140].mxu0 %vm173_vm0, %v4215_v45  ;;  %v4135_v41 = vadd.f32 %v14876_v32, %v3976_v18 }
0x119f   :  { %8564 = vmatprep.mubr.msk.f32.mxu0 %vm173_vm0, %v4216_v60 }
0x11a1   :  { %v4169_v56 = vpop.permute.xlu0 %4168 }
0x11a2   :  { %v4201_v15 = vadd.f32 %v4169_v56, %v4135_v41 }
0x11a4   :  { %v4217_v31 = vmax.f32 %v4201_v15, 0.0 }
0x11a6   :  { %8565 = vmatmul.mubr.msk.f32.gmra.mrb[142].mxu0 %vm173_vm0, %v4217_v31 }
0x11b9   :  { %v8594_v26 = vpop.f32.mrb[142].mxu1 }
0x11ba   :  { %v5885_v36 = vadd.f32 %v8594_v26, %v13570_v0  ;;  %v5879_v47 = vpop.f32.mrb[143].mxu1 }
0x11bb   :  { %v5880_v48 = vadd.f32 %v13570_v0, %v5879_v47 }
0x11bd   :  { %v13638_v10 = vpack.i.bf16 %v5885_v36, %v5880_v48 }
0x11bf   :  { %9585 = vrot.lane.b32.xlu0 %v13638_v10, %s10121_s0 }
0x11c6   :  { %v9551_v38 = vpop.permute.xlu1 %9550 }
0x11c7   :  { %v9553_v22 = vunpack.i.h.bf16 %v9551_v38  ;;  %v9552_v23 = vunpack.i.l.bf16 %v9551_v38 }
0x11c9   :  { %v9102_v54 = vpack.c.bf16 %v9553_v22, %v9552_v23 }
0x11ca   :  { %v9556_v53 = vpop.permute.xlu0 %9555 }
0x11cb   :  { %v9558_v61 = vunpack.i.h.bf16 %v9556_v53  ;;  %v9557_v29 = vunpack.i.l.bf16 %v9556_v53  ;;  %9104 = vmatprep.subr.msk.bf16.mxu0 %vm10482_vm1, %v9102_v54 }
0x11cc   :  { %9107 = vmatpush3.bf16.xpose.msk.msra.mxu0 %vm10482_vm1, %v9102_v54 }
0x11cd   :  { %v9108_v1 = vpack.c.bf16 %v9558_v61, %v9557_v29 }
0x11ce   :  { %v9561_v3 = vpop.permute.xlu1 %9560 }
0x11cf   :  { %v9563_v63 = vunpack.i.h.bf16 %v9561_v3  ;;  %v9562_v9 = vunpack.i.l.bf16 %v9561_v3  ;;  %9110 = vmatprep.subr.msk.bf16.mxu0 %vm10482_vm1, %v9108_v1 }
0x11d1   :  { %v9114_v62 = vpack.c.bf16 %v9563_v63, %v9562_v9 }
0x11d2   :  { %v9566_v58 = vpop.permute.xlu0 %9565 }
0x11d3   :  { %v9568_v16 = vunpack.i.h.bf16 %v9566_v58  ;;  %v9567_v13 = vunpack.i.l.bf16 %v9566_v58 }
0x11d4   :  { %9113 = vmatpush3.bf16.xpose.msk.msra.mxu0 %vm10482_vm1, %v9108_v1 }
0x11d5   :  { %9116 = vmatprep.subr.msk.bf16.mxu0 %vm10482_vm1, %v9114_v62  ;;  %v9120_v28 = vpack.c.bf16 %v9568_v16, %v9567_v13 }
0x11d6   :  { %v9571_v21 = vpop.permute.xlu1 %9570 }
0x11d7   :  { %v9573_v33 = vunpack.i.h.bf16 %v9571_v21  ;;  %v9572_v7 = vunpack.i.l.bf16 %v9571_v21 }
0x11d9   :  { %v9126_v11 = vpack.c.bf16 %v9573_v33, %v9572_v7 }
0x11dc   :  { %9119 = vmatpush3.bf16.xpose.msk.msra.mxu0 %vm10482_vm1, %v9114_v62 }
0x11dd   :  { %9122 = vmatprep.subr.msk.bf16.mxu0 %vm10482_vm1, %v9120_v28 }
0x11e4   :  { %9125 = vmatpush3.bf16.xpose.msk.msra.mxu0 %vm10482_vm1, %v9120_v28 }
0x11e5   :  { %9128 = vmatprep.subr.msk.bf16.mxu0 %vm10482_vm1, %v9126_v11 }
0x11e7   :  { %v9576_v24 = vpop.permute.xlu0 %9575 }
0x11e8   :  { %v9578_v20 = vunpack.i.h.bf16 %v9576_v24  ;;  %v9577_v37 = vunpack.i.l.bf16 %v9576_v24 }
0x11ea   :  { %v9132_v50 = vpack.c.bf16 %v9578_v20, %v9577_v37 }
0x11ec   :  { %9131 = vmatpush3.bf16.xpose.msk.msra.mxu0 %vm10482_vm1, %v9126_v11 }
0x11ed   :  { %9134 = vmatprep.subr.msk.bf16.mxu0 %vm10482_vm1, %v9132_v50 }
0x11f0   :  { %v9581_v27 = vpop.permute.xlu1 %9580 }
0x11f1   :  { %v9583_v6 = vunpack.i.h.bf16 %v9581_v27  ;;  %v9582_v59 = vunpack.i.l.bf16 %v9581_v27 }
0x11f3   :  { %v9138_v4 = vpack.c.bf16 %v9583_v6, %v9582_v59 }
0x11f4   :  { %9137 = vmatpush3.bf16.xpose.msk.msra.mxu0 %vm10482_vm1, %v9132_v50 }
0x11f5   :  { %9140 = vmatprep.subr.msk.bf16.mxu0 %vm10482_vm1, %v9138_v4 }
0x11fc   :  { %9143 = vmatpush3.bf16.xpose.msk.msra.mxu0 %vm10482_vm1, %v9138_v4 }
0x11fd   :  { %v8545_v55 = vpop.f32.mrb[128].mxu0 }
0x11fe   :  { %v13671_v42 = vadd.f32 %v8545_v55, %v13570_v0  ;;  %v5616_v25 = vpop.f32.mrb[129].mxu0 }
0x11ff   :  { %v13674_v52 = vadd.f32 %v13570_v0, %v5616_v25 }
0x1200   :  { %5895 = vperm.xlu0 %9267, %v13671_v42  }
0x1201   :  { %5890 = vperm.xlu1 %9268, %v13674_v52   ;;  %8627 = vmatprep.mubr.msk.f32.mxu0 %vm173_vm0, %v13674_v52 }
0x1205   :  { %v8548_v45 = vpop.f32.mrb[130].mxu0 }
0x1206   :  { %v13681_v60 = vadd.f32 %v8548_v45, %v13570_v0  ;;  %v5626_v18 = vpop.f32.mrb[131].mxu0 }
0x1207   :  { %v13684_v32 = vadd.f32 %v13570_v0, %v5626_v18 }
0x1208   :  { %5905 = vperm.xlu0 %9267, %v13681_v60  }
0x1209   :  { %5900 = vperm.xlu1 %9268, %v13684_v32  }
0x122c   :  { %v8551_v41 = vpop.f32.mrb[132].mxu0 }
0x122d   :  { %v13689_v56 = vadd.f32 %v8551_v41, %v13570_v0  ;;  %v5636_v15 = vpop.f32.mrb[133].mxu0 }
0x122e   :  { %v13692_v31 = vadd.f32 %v13570_v0, %v5636_v15 }
0x122f   :  { %5915 = vperm.xlu0 %9267, %v13689_v56  }
0x1230   :  { %5910 = vperm.xlu1 %9268, %v13692_v31  }
0x1231   :  { %v9586_v26 = vpop.permute.xlu0 %9585 }
0x1232   :  { %v9588_v36 = vunpack.i.h.bf16 %v9586_v26  ;;  %v9587_v47 = vunpack.i.l.bf16 %v9586_v26 }
0x1234   :  { %v9144_v48 = vpack.c.bf16 %v9588_v36, %v9587_v47 }
0x1236   :  { %9146 = vmatprep.subr.msk.bf16.mxu0 %vm10482_vm1, %v9144_v48 }
0x1237   :  { %9149 = vmatpush3.bf16.xpose.msk.msra.mxu0 %vm10482_vm1, %v9144_v48 }
0x123e   :  { %8628 = vmatmul.mubr.msk.f32.vlgmr.msra.gmra.mrb[144].mxu0 %vm173_vm0, %v13671_v42 }
0x123f   :  { %8630 = vmatprep.mubr.msk.f32.mxu0 %vm173_vm0, %v13684_v32 }
0x1242   :  { %8631 = vmatmul.mubr.msk.f32.gmra.mrb[146].mxu0 %vm173_vm0, %v13681_v60 }
0x1243   :  { %8633 = vmatprep.mubr.msk.f32.mxu0 %vm173_vm0, %v13692_v31 }
0x1246   :  { %8634 = vmatmul.mubr.msk.f32.gmra.mrb[148].mxu0 %vm173_vm0, %v13689_v56 }
0x1250   :  { %v8554_v38 = vpop.f32.mrb[134].mxu0 }
0x1251   :  { %v13711_v22 = vadd.f32 %v8554_v38, %v13570_v0  ;;  %v5646_v23 = vpop.f32.mrb[135].mxu0 }
0x1252   :  { %v13714_v54 = vadd.f32 %v13570_v0, %v5646_v23 }
0x1253   :  { %5925 = vperm.xlu0 %9267, %v13711_v22  }
0x1254   :  { %5920 = vperm.xlu1 %9268, %v13714_v54   ;;  %8636 = vmatprep.mubr.msk.f32.mxu0 %vm173_vm0, %v13714_v54 }
0x1255   :  { %8637 = vmatmul.mubr.msk.f32.gmra.mrb[150].mxu0 %vm173_vm0, %v13711_v22 }
0x1261   :  { %v8557_v53 = vpop.f32.mrb[136].mxu0 }
0x1262   :  { %v13723_v61 = vadd.f32 %v8557_v53, %v13570_v0  ;;  %v5656_v29 = vpop.f32.mrb[137].mxu0 }
0x1263   :  { %v13726_v1 = vadd.f32 %v13570_v0, %v5656_v29 }
0x1264   :  { %5935 = vperm.xlu0 %9267, %v13723_v61  }
0x1265   :  { %5930 = vperm.xlu1 %9268, %v13726_v1   ;;  %8639 = vmatprep.mubr.msk.f32.mxu0 %vm173_vm0, %v13726_v1 }
0x1266   :  { %8640 = vmatmul.mubr.msk.f32.gmra.mrb[152].mxu0 %vm173_vm0, %v13723_v61 }
0x1269   :  { %v8560_v3 = vpop.f32.mrb[138].mxu0 }
0x126a   :  { %v13735_v63 = vadd.f32 %v8560_v3, %v13570_v0  ;;  %v5666_v9 = vpop.f32.mrb[139].mxu0 }
0x126b   :  { %v13738_v62 = vadd.f32 %v13570_v0, %v5666_v9 }
0x126c   :  { %5945 = vperm.xlu0 %9267, %v13735_v63  }
0x126d   :  { %5940 = vperm.xlu1 %9268, %v13738_v62   ;;  %8642 = vmatprep.mubr.msk.f32.mxu0 %vm173_vm0, %v13738_v62 }
0x126e   :  { %8643 = vmatmul.mubr.msk.f32.gmra.mrb[154].mxu0 %vm173_vm0, %v13735_v63 }
0x1271   :  { %v8563_v58 = vpop.f32.mrb[140].mxu0 }
0x1272   :  { %v13747_v16 = vadd.f32 %v8563_v58, %v13570_v0  ;;  %v5676_v13 = vpop.f32.mrb[141].mxu0  ;;  %v13799_v58 = vld [vmem:[%s14222_s3 + $0x8] sm:$0xff] }
0x1273   :  { %v13750_v28 = vadd.f32 %v13570_v0, %v5676_v13 }
0x1274   :  { %5955 = vperm.xlu0 %9267, %v13747_v16  }
0x1275   :  { %5950 = vperm.xlu1 %9268, %v13750_v28   ;;  %8645 = vmatprep.mubr.msk.f32.mxu0 %vm173_vm0, %v13750_v28 }
0x1276   :  { %8646 = vmatmul.mubr.msk.f32.gmra.mrb[156].mxu0 %vm173_vm0, %v13747_v16 }
0x1279   :  { %v8566_v21 = vpop.f32.mrb[142].mxu0 }
0x127a   :  { %v13759_v33 = vadd.f32 %v8566_v21, %v13570_v0  ;;  %v5686_v7 = vpop.f32.mrb[143].mxu0  ;;  %v13805_v21 = vld [vmem:[%s14222_s3] sm:$0xff] }
0x127b   :  { %v13762_v11 = vadd.f32 %v13570_v0, %v5686_v7 }
0x127c   :  { %5965 = vperm.xlu0 %9267, %v13759_v33  }
0x127d   :  { %5960 = vperm.xlu1 %9268, %v13762_v11   ;;  %8648 = vmatprep.mubr.msk.f32.mxu0 %vm173_vm0, %v13762_v11 }
0x127e   :  { %8649 = vmatmul.mubr.msk.f32.gmra.mrb[158].mxu0 %vm173_vm0, %v13759_v33 }
0x127f   :  { %v5896_v0 = vpop.permute.xlu0 %5895 }
0x1280   :  { %9590 = vrot.lane.b32.xlu0 %v13575_v12, %s10122_s26  ;;  %v5891_v24 = vpop.permute.xlu1 %5890  ;;  %v5969_v13 = vmul.f32 %v13799_v58, %v5896_v0  ;;  %v13817_v0 = vld [vmem:[%s14222_s3 + $0x10] sm:$0xff] }
0x1281   :  { %9595 = vrot.lane.b32.xlu1 %v13582_v14, %s10122_s26  ;;  %v5968_v7 = vmul.f32 %v13805_v21, %v5891_v24 }
0x1285   :  { %9600 = vrot.lane.b32.xlu1 %v13589_v43, %s10122_s26 }
0x1287   :  { %v5906_v20 = vpop.permute.xlu0 %5905 }
0x1288   :  { %v5901_v37 = vpop.permute.xlu1 %5900 }
0x12ae   :  { %v5916_v50 = vpop.permute.xlu0 %5915 }
0x12af   :  { %v5911_v27 = vpop.permute.xlu1 %5910 }
0x12d2   :  { %v13776_v6 = vpop.permute.xlu0 %5925 }
0x12d3   :  { %v13778_v59 = vpop.permute.xlu1 %5920 }
0x12e3   :  { %v13780_v4 = vpop.permute.xlu0 %5935 }
0x12e4   :  { %v13782_v55 = vpop.permute.xlu1 %5930 }
0x12eb   :  { %v13784_v12 = vpop.permute.xlu0 %5945 }
0x12ec   :  { %v13786_v14 = vpop.permute.xlu1 %5940 }
0x12f3   :  { %v13788_v25 = vpop.permute.xlu0 %5955 }
0x12f4   :  { %v13790_v43 = vpop.permute.xlu1 %5950 }
0x12fb   :  { %v13792_v45 = vpop.permute.xlu0 %5965 }
0x12fc   :  { %v13794_v18 = vpop.permute.xlu1 %5960 }
0x12ff   :  { %v9591_v41 = vpop.permute.xlu0 %9590 }
0x1300   :  { %v9593_v15 = vunpack.i.h.bf16 %v9591_v41  ;;  %v9592_v26 = vunpack.i.l.bf16 %v9591_v41  ;;  %v9596_v36 = vpop.permute.xlu1 %9595 }
0x1301   :  { %v9598_v47 = vunpack.i.h.bf16 %v9596_v36  ;;  %v9597_v48 = vunpack.i.l.bf16 %v9596_v36 }
0x1302   :  { %v9150_v38 = vpack.c.bf16 %v9593_v15, %v9592_v26 }
0x1303   :  { %v9154_v23 = vpack.c.bf16 %v9598_v47, %v9597_v48  ;;  %v13811_v47 = vld [vmem:[%s14222_s3 + $0x18] sm:$0xff] }
0x1304   :  { %9151 = vmatprep.subr.bf16.mxu1 %v9150_v38  ;;  %v9601_v53 = vpop.permute.xlu1 %9600  ;;  %v5971_v48 = vmul.f32 %v13811_v47, %v5906_v20 }
0x1305   :  { %v9603_v29 = vunpack.i.h.bf16 %v9601_v53  ;;  %v9602_v3 = vunpack.i.l.bf16 %v9601_v53  ;;  %9153 = vmatpush3.bf16.msra.mxu1 %v9150_v38 }
0x1306   :  { %9155 = vmatprep.subr.bf16.mxu1 %v9154_v23 }
0x1307   :  { %v9158_v9 = vpack.c.bf16 %v9603_v29, %v9602_v3 }
0x1309   :  { %9157 = vmatpush3.bf16.msra.mxu1 %v9154_v23  ;;  %v5970_v23 = vmul.f32 %v13817_v0, %v5901_v37  ;;  %v13834_v37 = vld [vmem:[%s14222_s3 + $0x20] sm:$0xff] }
0x130a   :  { %9159 = vmatprep.subr.bf16.mxu1 %v9158_v9 }
0x130d   :  { %9161 = vmatpush3.bf16.msra.mxu1 %v9158_v9 }
0x1311   :  { %v8629_v41 = vpop.f32.mrb[144].mxu0 }
0x1312   :  { %v6168_v15 = vadd.f32 %v8629_v41, %v5969_v13  ;;  %v6162_v26 = vpop.f32.mrb[145].mxu0 }
0x1313   :  { %v6163_v36 = vadd.f32 %v6162_v26, %v5968_v7 }
0x1314   :  { %v6242_v38 = vmul.f32 0.25, %v6168_v15  ;;  %v5973_v15 = vmul.f32 %v13358_v39, %v5916_v50 }
0x1315   :  { %v6241_v24 = vmul.f32 0.25, %v6163_v36  ;;  %v8632_v53 = vpop.f32.mrb[146].mxu0  ;;  %v5972_v36 = vmul.f32 %v13834_v37, %v5911_v27  ;;  %v14882_v27 = vld [vmem:[#allocation30_spill] sm:$0xff] }
0x1316   :  { %v6178_v29 = vadd.f32 %v8632_v53, %v5971_v48  ;;  %v6172_v3 = vpop.f32.mrb[147].mxu0  ;;  %v13822_v13 = vsel %vm930_vm2, %v6242_v38, -1e+30  ;;  %vm14883_vm2 = vcmp.gt.f32.partialorder %v14882_v27, 0.0 }
0x1317   :  { %v6173_v7 = vadd.f32 %v6172_v3, %v5970_v23  ;;  %6275 = vmax.xlane.f32.xlu0 %v13822_v13  ;;  %v13827_v41 = vsel %vm929_vm3, %v6241_v24, -1e+30 }
0x1318   :  { %v6244_v26 = vmul.f32 0.25, %v6178_v29  ;;  %6273 = vmax.xlane.f32.xlu1 %v13827_v41 }
0x1319   :  { %v6243_v48 = vmul.f32 0.25, %v6173_v7  ;;  %v8635_v38 = vpop.f32.mrb[148].mxu0 }
0x131a   :  { %v6188_v23 = vadd.f32 %v8635_v38, %v5973_v15  ;;  %v6182_v53 = vpop.f32.mrb[149].mxu0  ;;  %v13839_v24 = vsel %vm932_vm4, %v6244_v26, -1e+30  ;;  %v14884_v15 = vld [vmem:[#allocation31_spill] sm:$0xff]  ;;  %v5975_v26 = vmul.f32 %v13377_v46, %v13776_v6  ;;  %v14888_v46 = vld [vmem:[#allocation34_spill] sm:$0xff] }
0x131b   :  { %v6183_v9 = vadd.f32 %v6182_v53, %v5972_v36  ;;  %v13843_v50 = vsel %vm931_vm5, %v6243_v48, -1e+30  ;;  %vm14885_vm3 = vcmp.gt.f32.partialorder %v14884_v15, 0.0  ;;  %v13862_v36 = vld [vmem:[%s14222_s3 + $0x30] sm:$0xff]  ;;  %vm14889_vm5 = vcmp.gt.f32.partialorder %v14888_v46, 0.0 }
0x131c   :  { %v6246_v29 = vmul.f32 0.25, %v6188_v23  ;;  %6277 = vmax.xlane.f32.xlu0 %v13843_v50  ;;  %6279 = vmax.xlane.f32.xlu1 %v13839_v24  ;;  %v5974_v48 = vmul.f32 %v13862_v36, %v13778_v59  ;;  %v5977_v59 = vmul.f32 %v13428_v57, %v13780_v4  ;;  %v5976_v15 = vmul.f32 %v13386_v17, %v13782_v55 }
0x131d   :  { %v6245_v20 = vmul.f32 0.25, %v6183_v9  ;;  %v5979_v57 = vmul.f32 %v13441_v2, %v13784_v12  ;;  %v5978_v17 = vmul.f32 %v13397_v8, %v13786_v14  ;;  %v5981_v12 = vmul.f32 %v13452_v44, %v13788_v25 }
0x131e   :  { %v13849_v7 = vsel %vm14883_vm2, %v6246_v29, -1e+30  ;;  %v5980_v8 = vmul.f32 %v13408_v49, %v13790_v43  ;;  %v5983_v25 = vmul.f32 %v13461_v34, %v13792_v45  ;;  %v5982_v49 = vmul.f32 %v13419_v35, %v13794_v18  ;;  %v14902_v45 = vld [vmem:[#allocation49_spill] sm:$0xff]  ;;  %v14904_v35 = vld [vmem:[#allocation48_spill] sm:$0xff] }
0x131f   :  { %v13853_v38 = vsel %vm14885_vm3, %v6245_v20, -1e+30  ;;  %v14886_v20 = vld [vmem:[#allocation32_spill] sm:$0xff]  ;;  %vm14903_vm9 = vcmp.gt.f32.partialorder %v14902_v45, 0.0  ;;  %vm14905_vm10 = vcmp.gt.f32.partialorder %v14904_v35, 0.0 }
0x1320   :  { %6281 = vmax.xlane.f32.xlu0 %v13853_v38  ;;  %6283 = vmax.xlane.f32.xlu1 %v13849_v7  ;;  %vm14887_vm4 = vcmp.gt.f32.partialorder %v14886_v20, 0.0 }
0x1328   :  { %v8638_v23 = vpop.f32.mrb[150].mxu0 }
0x1329   :  { %v6198_v53 = vadd.f32 %v8638_v23, %v5975_v26  ;;  %v6192_v3 = vpop.f32.mrb[151].mxu0 }
0x132a   :  { %v6193_v9 = vadd.f32 %v6192_v3, %v5974_v48 }
0x132b   :  { %v6248_v39 = vmul.f32 0.25, %v6198_v53 }
0x132c   :  { %v6247_v29 = vmul.f32 0.25, %v6193_v9 }
0x132d   :  { %v13868_v27 = vsel %vm14887_vm4, %v6248_v39, -1e+30  ;;  %v14890_v39 = vld [vmem:[#allocation36_spill] sm:$0xff] }
0x132e   :  { %6287 = vmax.xlane.f32.xlu1 %v13868_v27  ;;  %v13873_v6 = vsel %vm14889_vm5, %v6247_v29, -1e+30  ;;  %vm14891_vm11 = vcmp.gt.f32.partialorder %v14890_v39, 0.0  ;;  %v14892_v29 = vld [vmem:[#allocation38_spill] sm:$0xff] }
0x132f   :  { %6285 = vmax.xlane.f32.xlu0 %v13873_v6  ;;  %vm14893_vm14 = vcmp.gt.f32.partialorder %v14892_v29, 0.0 }
0x1339   :  { %v8641_v26 = vpop.f32.mrb[152].mxu0 }
0x133a   :  { %v6208_v48 = vadd.f32 %v8641_v26, %v5977_v59  ;;  %v6202_v23 = vpop.f32.mrb[153].mxu0 }
0x133b   :  { %v6203_v53 = vadd.f32 %v6202_v23, %v5976_v15  ;;  %v14894_v23 = vld [vmem:[#allocation40_spill] sm:$0xff] }
0x133c   :  { %v6250_v3 = vmul.f32 0.25, %v6208_v48  ;;  %vm14895_vm13 = vcmp.gt.f32.partialorder %v14894_v23, 0.0 }
0x133d   :  { %v6249_v9 = vmul.f32 0.25, %v6203_v53 }
0x133e   :  { %v13882_v20 = vsel %vm14891_vm11, %v6250_v3, -1e+30  ;;  %v14896_v3 = vld [vmem:[#allocation42_spill] sm:$0xff] }
0x133f   :  { %6291 = vmax.xlane.f32.xlu1 %v13882_v20  ;;  %v13887_v46 = vsel %vm14893_vm14, %v6249_v9, -1e+30  ;;  %vm14897_vm6 = vcmp.gt.f32.partialorder %v14896_v3, 0.0 }
0x1340   :  { %6289 = vmax.xlane.f32.xlu0 %v13887_v46 }
0x1341   :  { %v8644_v4 = vpop.f32.mrb[154].mxu0 }
0x1342   :  { %v6218_v55 = vadd.f32 %v8644_v4, %v5979_v57  ;;  %v6212_v59 = vpop.f32.mrb[155].mxu0  ;;  %v14898_v4 = vld [vmem:[#allocation44_spill] sm:$0xff] }
0x1343   :  { %v6213_v15 = vadd.f32 %v6212_v59, %v5978_v17  ;;  %vm14899_vm7 = vcmp.gt.f32.partialorder %v14898_v4, 0.0  ;;  %v14900_v59 = vld [vmem:[#allocation46_spill] sm:$0xff] }
0x1344   :  { %v6252_v26 = vmul.f32 0.25, %v6218_v55  ;;  %vm14901_vm8 = vcmp.gt.f32.partialorder %v14900_v59, 0.0 }
0x1345   :  { %v6251_v48 = vmul.f32 0.25, %v6213_v15 }
0x1346   :  { %v13896_v53 = vsel %vm14895_vm13, %v6252_v26, -1e+30 }
0x1347   :  { %6295 = vmax.xlane.f32.xlu1 %v13896_v53  ;;  %v13901_v2 = vsel %vm14897_vm6, %v6251_v48, -1e+30 }
0x1348   :  { %6293 = vmax.xlane.f32.xlu0 %v13901_v2 }
0x1349   :  { %v8647_v14 = vpop.f32.mrb[156].mxu0 }
0x134a   :  { %v6228_v9 = vadd.f32 %v8647_v14, %v5981_v12  ;;  %v6222_v39 = vpop.f32.mrb[157].mxu0 }
0x134b   :  { %v6223_v29 = vadd.f32 %v6222_v39, %v5980_v8 }
0x134c   :  { %v6254_v57 = vmul.f32 0.25, %v6228_v9 }
0x134d   :  { %v6253_v17 = vmul.f32 0.25, %v6223_v29 }
0x134e   :  { %v13910_v55 = vsel %vm14899_vm7, %v6254_v57, -1e+30 }
0x134f   :  { %6299 = vmax.xlane.f32.xlu1 %v13910_v55  ;;  %v13915_v44 = vsel %vm14901_vm8, %v6253_v17, -1e+30 }
0x1350   :  { %6297 = vmax.xlane.f32.xlu0 %v13915_v44 }
0x1351   :  { %v8650_v43 = vpop.f32.mrb[158].mxu0 }
0x1352   :  { %v6238_v15 = vadd.f32 %v8650_v43, %v5983_v25  ;;  %v6232_v26 = vpop.f32.mrb[159].mxu0 }
0x1353   :  { %v6233_v48 = vadd.f32 %v6232_v26, %v5982_v49 }
0x1354   :  { %v6256_v34 = vmul.f32 0.25, %v6238_v15 }
0x1355   :  { %v6255_v23 = vmul.f32 0.25, %v6233_v48 }
0x1356   :  { %v13935_v18 = vsel %vm14905_vm10, %v6256_v34, -1e+30 }
0x1357   :  { %v13930_v3 = vsel %vm14903_vm9, %v6255_v23, -1e+30  ;;  %v10044_v23 = vld [vmem:[%s14221_s2 + $0x18] sm:$0xff] }
0x1360   :  { %9610 = vrot.lane.b32.xlu1 %v13602_v30, %s10122_s26 }
0x1364   :  { %9615 = vrot.lane.b32.xlu1 %v13608_v5, %s10122_s26 }
0x1366   :  { %9605 = vrot.lane.b32.xlu0 %v13596_v19, %s10122_s26 }
0x1385   :  { %6301 = vmax.xlane.f32.xlu0 %v13930_v3 }
0x1388   :  { %6303 = vmax.xlane.f32.xlu1 %v13935_v18 }
0x13a4   :  { %v6276_v30 = vpop.xlane.xlu0 %6275 }
0x13a5   :  { %v6306_v5 = vsub.f32 %v13822_v13, %v6276_v30  ;;  %v6274_v12 = vpop.xlane.xlu1 %6273 }
0x13a6   :  { %v6305_v19 = vsub.f32 %v13827_v41, %v6274_v12  ;;  %v10045_v12 = vld [vmem:[%s14221_s2 + $0x20] sm:$0xff] }
0x13a7   :  { %v6323_v8 = vmul.f32 1.442695, %v6306_v5 }
0x13a8   :  { %v6321_v14 = vmul.f32 1.442695, %v6305_v19 }
0x13a9   :  { %9887 = vpow2.f32 %v6323_v8  ;;  %v6278_v9 = vpop.xlane.xlu0 %6277  ;;  %v6280_v39 = vpop.xlane.xlu1 %6279  ;;  %v10046_v8 = vld [vmem:[%s14221_s2 + $0x10] sm:$0xff] }
0x13aa   :  { %9889 = vpow2.f32 %v6321_v14  ;;  %v6307_v29 = vsub.f32 %v13843_v50, %v6278_v9  ;;  %v6308_v57 = vsub.f32 %v13839_v24, %v6280_v39  ;;  %v10042_v50 = vld [vmem:[%s14221_s2 + $0x8] sm:$0xff] }
0x13ac   :  { %v6327_v17 = vmul.f32 1.442695, %v6308_v57  ;;  %v6325_v4 = vmul.f32 1.442695, %v6307_v29 }
0x13ad   :  { %v6282_v59 = vpop.xlane.xlu0 %6281  ;;  %v6284_v25 = vpop.xlane.xlu1 %6283 }
0x13ae   :  { %v6309_v49 = vsub.f32 %v13853_v38, %v6282_v59  ;;  %v6310_v13 = vsub.f32 %v13849_v7, %v6284_v25  ;;  %9891 = vpow2.f32 %v6327_v17  ;;  %v10043_v38 = vld [vmem:[%s14221_s2] sm:$0xff]  ;;  %v10048_v17 = vld [vmem:[%s14221_s2 + $0x30] sm:$0xff] }
0x13af   :  { %9893 = vpow2.f32 %v6325_v4 }
0x13b0   :  { %v6329_v41 = vmul.f32 1.442695, %v6309_v49  ;;  %v6331_v43 = vmul.f32 1.442695, %v6310_v13 }
0x13b2   :  { %9895 = vpow2.f32 %v6329_v41 }
0x13b3   :  { %v9888_v15 = vpop.eup %9887  ;;  %9897 = vpow2.f32 %v6331_v43 }
0x13b4   :  { %v9890_v26 = vpop.eup %9889  ;;  %v13947_v24 = vmul.f32 %v10042_v50, %v9888_v15 }
0x13b5   :  { %v13952_v48 = vmul.f32 %v10043_v38, %v9890_v26 }
0x13b6   :  { %6371 = vadd.xlane.f32.xlu0 %v13947_v24 }
0x13b7   :  { %6369 = vadd.xlane.f32.xlu1 %v13952_v48 }
0x13b8   :  { %v9892_v7 = vpop.eup %9891 }
0x13b9   :  { %v13959_v34 = vmul.f32 %v10044_v23, %v9892_v7  ;;  %v9894_v45 = vpop.eup %9893 }
0x13ba   :  { %v13971_v14 = vmul.f32 %v10046_v8, %v9894_v45 }
0x13bb   :  { %6375 = vadd.xlane.f32.xlu1 %v13959_v34  ;;  %v6288_v59 = vpop.xlane.xlu1 %6287 }
0x13bc   :  { %v9896_v35 = vpop.eup %9895  ;;  %v6286_v30 = vpop.xlane.xlu0 %6285  ;;  %v6312_v15 = vsub.f32 %v13868_v27, %v6288_v59 }
0x13bd   :  { %v6311_v5 = vsub.f32 %v13873_v6, %v6286_v30  ;;  %v13966_v19 = vmul.f32 %v10045_v12, %v9896_v35  ;;  %v9898_v9 = vpop.eup %9897  ;;  %v10047_v6 = vld [vmem:[%s14221_s2 + $0x28] sm:$0xff] }
0x13be   :  { %v13978_v29 = vmul.f32 %v10047_v6, %v9898_v9  ;;  %v6335_v38 = vmul.f32 1.442695, %v6312_v15 }
0x13bf   :  { %v6333_v39 = vmul.f32 1.442695, %v6311_v5  ;;  %6377 = vadd.xlane.f32.xlu0 %v13966_v19  ;;  %6373 = vadd.xlane.f32.xlu1 %v13971_v14 }
0x13c1   :  { %9899 = vpow2.f32 %v6333_v39 }
0x13c2   :  { %9901 = vpow2.f32 %v6335_v38 }
0x13c3   :  { %6379 = vadd.xlane.f32.xlu1 %v13978_v29 }
0x13cb   :  { %v9900_v57 = vpop.eup %9899 }
0x13cc   :  { %v13984_v4 = vmul.f32 %v10048_v17, %v9900_v57  ;;  %v6292_v25 = vpop.xlane.xlu1 %6291 }
0x13cd   :  { %v6290_v49 = vpop.xlane.xlu0 %6289  ;;  %v6314_v7 = vsub.f32 %v13882_v20, %v6292_v25 }
0x13ce   :  { %6381 = vadd.xlane.f32.xlu1 %v13984_v4  ;;  %v6313_v17 = vsub.f32 %v13887_v46, %v6290_v49 }
0x13cf   :  { %v6339_v8 = vmul.f32 1.442695, %v6314_v7 }
0x13d1   :  { %9903 = vpow2.f32 %v6339_v8 }
0x13d4   :  { %v6296_v13 = vpop.xlane.xlu1 %6295 }
0x13d5   :  { %9620 = vrot.lane.b32.xlu0 %v13615_v40, %s10122_s26  ;;  %v6294_v41 = vpop.xlane.xlu0 %6293 }
0x13d6   :  { %v6315_v9 = vsub.f32 %v13901_v2, %v6294_v41  ;;  %v9902_v2 = vpop.eup %9901  ;;  %v6337_v41 = vmul.f32 1.442695, %v6313_v17 }
0x13d8   :  { %v6341_v20 = vmul.f32 1.442695, %v6315_v9 }
0x13da   :  { %9905 = vpow2.f32 %v6341_v20 }
0x13db   :  { %v9904_v38 = vpop.eup %9903 }
0x13dc   :  { %v6300_v43 = vpop.xlane.xlu1 %6299 }
0x13dd   :  { %v6298_v26 = vpop.xlane.xlu0 %6297  ;;  %v6318_v15 = vsub.f32 %v13910_v55, %v6300_v43  ;;  %v10051_v43 = vld [vmem:[%s14221_s2 + $0x50] sm:$0xff] }
0x13de   :  { %v6317_v25 = vsub.f32 %v13915_v44, %v6298_v26  ;;  %v10050_v44 = vld [vmem:[%s14221_s2 + $0x48] sm:$0xff] }
0x13df   :  { %9625 = vrot.lane.b32.xlu1 %v13638_v10, %s10122_s26  ;;  %v6316_v10 = vsub.f32 %v13896_v53, %v6296_v13  ;;  %v10049_v53 = vld [vmem:[%s14221_s2 + $0x38] sm:$0xff]  ;;  %v6347_v46 = vmul.f32 1.442695, %v6318_v15  ;;  %v14007_v49 = vmul.f32 %v10050_v44, %v9904_v38 }
0x13e0   :  { %v9611_v50 = vpop.permute.xlu1 %9610  ;;  %v14001_v13 = vmul.f32 %v10049_v53, %v9902_v2  ;;  %v10056_v2 = vld [vmem:[%s14221_s2 + $0x70] sm:$0xff] }
0x13e1   :  { %v9606_v23 = vpop.permute.xlu0 %9605  ;;  %v9613_v45 = vunpack.i.h.bf16 %v9611_v50  ;;  %v9612_v35 = vunpack.i.l.bf16 %v9611_v50  ;;  %v6343_v59 = vmul.f32 1.442695, %v6316_v10  ;;  %v6345_v50 = vmul.f32 1.442695, %v6317_v25 }
0x13e2   :  { %v9608_v30 = vunpack.i.h.bf16 %v9606_v23  ;;  %v9607_v5 = vunpack.i.l.bf16 %v9606_v23 }
0x13e3   :  { %v9166_v27 = vpack.c.bf16 %v9613_v45, %v9612_v35  ;;  %9907 = vpow2.f32 %v6343_v59  ;;  %v10052_v45 = vld [vmem:[%s14221_s2 + $0x58] sm:$0xff] }
0x13e4   :  { %v9162_v12 = vpack.c.bf16 %v9608_v30, %v9607_v5  ;;  %v9616_v40 = vpop.permute.xlu1 %9615  ;;  %9909 = vpow2.f32 %v6337_v41  ;;  %v9906_v55 = vpop.eup %9905  ;;  %v10053_v5 = vld [vmem:[%s14221_s2 + $0x40] sm:$0xff] }
0x13e5   :  { %v9618_v39 = vunpack.i.h.bf16 %v9616_v40  ;;  %v9617_v6 = vunpack.i.l.bf16 %v9616_v40  ;;  %9911 = vpow2.f32 %v6345_v50  ;;  %v14013_v26 = vmul.f32 %v10051_v43, %v9906_v55  ;;  %v10054_v40 = vld [vmem:[%s14221_s2 + $0x60] sm:$0xff] }
0x13e6   :  { %9163 = vmatprep.subr.bf16.mxu1 %v9162_v12  ;;  %9913 = vpow2.f32 %v6347_v46 }
0x13e7   :  { %9165 = vmatpush3.bf16.msra.mxu1 %v9162_v12  ;;  %v9170_v57 = vpack.c.bf16 %v9618_v39, %v9617_v6 }
0x13e8   :  { %9167 = vmatprep.subr.bf16.mxu1 %v9166_v27 }
0x13eb   :  { %9169 = vmatpush3.bf16.msra.mxu1 %v9166_v27  ;;  %v10055_v27 = vld [vmem:[%s14221_s2 + $0x68] sm:$0xff] }
0x13ec   :  { %9171 = vmatprep.subr.bf16.mxu1 %v9170_v57 }
0x13ed   :  { %v9908_v7 = vpop.eup %9907 }
0x13ee   :  { %v9910_v23 = vpop.eup %9909  ;;  %v14019_v35 = vmul.f32 %v10052_v45, %v9908_v7 }
0x13ef   :  { %9173 = vmatpush3.bf16.msra.mxu1 %v9170_v57  ;;  %v9912_v30 = vpop.eup %9911  ;;  %v14025_v12 = vmul.f32 %v10053_v5, %v9910_v23 }
0x13f0   :  { %v14030_v8 = vmul.f32 %v10054_v40, %v9912_v30  ;;  %v9914_v9 = vpop.eup %9913 }
0x13f1   :  { %v14037_v39 = vmul.f32 %v10055_v27, %v9914_v9 }
0x13f4   :  { %6383 = vadd.xlane.f32.xlu0 %v14001_v13 }
0x13f8   :  { %6387 = vadd.xlane.f32.xlu0 %v14007_v49 }
0x13fc   :  { %6389 = vadd.xlane.f32.xlu0 %v14013_v26 }
0x1400   :  { %6391 = vadd.xlane.f32.xlu0 %v14019_v35 }
0x1403   :  { %6385 = vadd.xlane.f32.xlu1 %v14025_v12 }
0x1404   :  { %6393 = vadd.xlane.f32.xlu0 %v14030_v8 }
0x1408   :  { %6395 = vadd.xlane.f32.xlu0 %v14037_v39 }
0x1412   :  { %v6302_v6 = vpop.xlane.xlu0 %6301 }
0x1413   :  { %v6319_v10 = vsub.f32 %v13930_v3, %v6302_v6  ;;  %v10057_v3 = vld [vmem:[%s14221_s2 + $0x78] sm:$0xff] }
0x1415   :  { %v6349_v20 = vmul.f32 1.442695, %v6319_v10  ;;  %v6304_v57 = vpop.xlane.xlu1 %6303 }
0x1416   :  { %v6320_v17 = vsub.f32 %v13935_v18, %v6304_v57 }
0x1417   :  { %9915 = vpow2.f32 %v6349_v20 }
0x1418   :  { %v6351_v59 = vmul.f32 1.442695, %v6320_v17 }
0x141a   :  { %9917 = vpow2.f32 %v6351_v59 }
0x1421   :  { %v9916_v25 = vpop.eup %9915 }
0x1422   :  { %v14045_v41 = vmul.f32 %v10056_v2, %v9916_v25 }
0x1424   :  { %v9918_v15 = vpop.eup %9917  ;;  %6397 = vadd.xlane.f32.xlu0 %v14045_v41 }
0x1425   :  { %v14051_v50 = vmul.f32 %v10057_v3, %v9918_v15 }
0x1427   :  { %6399 = vadd.xlane.f32.xlu1 %v14051_v50 }
0x1443   :  { %v6372_v18 = vpop.xlane.xlu0 %6371 }
0x1444   :  { %vm6402_vm12 = vcmp.gt.f32.partialorder %v6372_v18, 0.0  ;;  %v6370_v53 = vpop.xlane.xlu1 %6369 }
0x1445   :  { %v6418_v38 = vsel %vm6402_vm12, %v6372_v18, 1.0  ;;  %vm6401_vm15 = vcmp.gt.f32.partialorder %v6370_v53, 0.0 }
0x1446   :  { %9919 = vrcp.f32 %v6418_v38  ;;  %v6417_v46 = vsel %vm6401_vm15, %v6370_v53, 1.0 }
0x1447   :  { %9921 = vrcp.f32 %v6417_v46 }
0x1448   :  { %v6376_v44 = vpop.xlane.xlu1 %6375 }
0x1449   :  { %vm6404_vm2 = vcmp.gt.f32.partialorder %v6376_v44, 0.0 }
0x144a   :  { %v6420_v55 = vsel %vm6404_vm2, %v6376_v44, 1.0  ;;  %vm10126_vm2 = vmmov 0  }
0x144b   :  { %9923 = vrcp.f32 %v6420_v55 }
0x144c   :  { %v6378_v43 = vpop.xlane.xlu0 %6377  ;;  %v6374_v7 = vpop.xlane.xlu1 %6373 }
0x144d   :  { %vm6405_vm3 = vcmp.gt.f32.partialorder %v6378_v43, 0.0  ;;  %vm6403_vm4 = vcmp.gt.f32.partialorder %v6374_v7, 0.0 }
0x144e   :  { %v6421_v23 = vsel %vm6405_vm3, %v6378_v43, 1.0  ;;  %v6419_v45 = vsel %vm6403_vm4, %v6374_v7, 1.0 }
0x144f   :  { %9925 = vrcp.f32 %v6421_v23 }
0x1450   :  { %v9920_v30 = vpop.eup %9919  ;;  %9927 = vrcp.f32 %v6419_v45  ;;  %v9621_v5 = vpop.permute.xlu0 %9620 }
0x1451   :  { %v9922_v40 = vpop.eup %9921  ;;  %v9623_v9 = vunpack.i.h.bf16 %v9621_v5  ;;  %v9622_v27 = vunpack.i.l.bf16 %v9621_v5  ;;  %v6380_v6 = vpop.xlane.xlu1 %6379  ;;  %v6450_v10 = vmul.f32 %v9920_v30, %v13947_v24 }
0x1452   :  { %vm6406_vm5 = vcmp.gt.f32.partialorder %v6380_v6, 0.0  ;;  %v6449_v20 = vmul.f32 %v9922_v40, %v13952_v48 }
0x1453   :  { %v9174_v57 = vpack.c.bf16 %v9623_v9, %v9622_v27  ;;  %v6422_v17 = vsel %vm6406_vm5, %v6380_v6, 1.0  ;;  %v6466_v59 = vmul.f32 %v13799_v58, %v6450_v10 }
0x1454   :  { %9929 = vrcp.f32 %v6422_v17  ;;  %8683 = vmatprep.mubr.f32.mxu1 %v6449_v20  ;;  %v6465_v25 = vmul.f32 %v13805_v21, %v6449_v20 }
0x1455   :  { %6483 = vadd.xlane.f32.xlu1 %v6466_v59  ;;  %9175 = vmatprep.subr.bf16.mxu1 %v9174_v57  ;;  %v9924_v2 = vpop.eup %9923 }
0x1456   :  { %6481 = vadd.xlane.f32.xlu0 %v6465_v25  ;;  %9177 = vmatpush3.bf16.msra.mxu1 %v9174_v57  ;;  %v6452_v15 = vmul.f32 %v9924_v2, %v13959_v34  ;;  %v10059_v57 = vld [vmem:[%s14222_s3 + $0x38] sm:$0xff] }
0x1458   :  { %v6468_v24 = vmul.f32 %v13811_v47, %v6452_v15 }
0x1459   :  { %v9926_v3 = vpop.eup %9925 }
0x145a   :  { %v9928_v18 = vpop.eup %9927  ;;  %6487 = vadd.xlane.f32.xlu1 %v6468_v24  ;;  %v6453_v21 = vmul.f32 %v9926_v3, %v13966_v19  ;;  %v10060_v3 = vld [vmem:[%s14222_s3 + $0x48] sm:$0xff] }
0x145b   :  { %v6382_v48 = vpop.xlane.xlu1 %6381  ;;  %v6451_v53 = vmul.f32 %v9928_v18, %v13971_v14  ;;  %v10058_v14 = vld [vmem:[%s14222_s3 + $0x28] sm:$0xff] }
0x145c   :  { %vm6407_vm11 = vcmp.gt.f32.partialorder %v6382_v48, 0.0  ;;  %v6469_v47 = vmul.f32 %v13834_v37, %v6453_v21 }
0x145d   :  { %v6423_v58 = vsel %vm6407_vm11, %v6382_v48, 1.0  ;;  %v6467_v38 = vmul.f32 %v13817_v0, %v6451_v53 }
0x145e   :  { %v9930_v46 = vpop.eup %9929  ;;  %9931 = vrcp.f32 %v6423_v58 }
0x145f   :  { %6485 = vadd.xlane.f32.xlu0 %v6467_v38  ;;  %v9626_v44 = vpop.permute.xlu1 %9625  ;;  %v6454_v34 = vmul.f32 %v9930_v46, %v13978_v29 }
0x1460   :  { %v9628_v55 = vunpack.i.h.bf16 %v9626_v44  ;;  %v9627_v43 = vunpack.i.l.bf16 %v9626_v44  ;;  %v10062_v44 = vld [vmem:[%s14222_s3 + $0x40] sm:$0xff] }
0x1461   :  { %v6470_v7 = vmul.f32 %v10058_v14, %v6454_v34 }
0x1462   :  { %v9178_v23 = vpack.c.bf16 %v9628_v55, %v9627_v43 }
0x1463   :  { %6489 = vadd.xlane.f32.xlu0 %v6469_v47  ;;  %6491 = vadd.xlane.f32.xlu1 %v6470_v7 }
0x1464   :  { %9179 = vmatprep.subr.bf16.mxu1 %v9178_v23 }
0x1465   :  { %9181 = vmatpush3.bf16.msra.mxu1 %v9178_v23  ;;  %v10064_v23 = vld [vmem:[%s14222_s3 + $0x68] sm:$0xff] }
0x1468   :  { %v9932_v0 = vpop.eup %9931  ;;  %8684 = vmatmul.mubr.f32.vlgmr.msra.gmra.mrb[144].mxu1 %v6450_v10 }
0x1469   :  { %8686 = vmatprep.mubr.f32.mxu1 %v6451_v53  ;;  %v6455_v19 = vmul.f32 %v9932_v0, %v13984_v4 }
0x146b   :  { %v6471_v29 = vmul.f32 %v13862_v36, %v6455_v19 }
0x146c   :  { %8687 = vmatmul.mubr.f32.gmra.mrb[146].mxu1 %v6452_v15 }
0x146d   :  { %6493 = vadd.xlane.f32.xlu0 %v6471_v29  ;;  %8689 = vmatprep.mubr.f32.mxu1 %v6453_v21 }
0x1470   :  { %8690 = vmatmul.mubr.f32.gmra.mrb[148].mxu1 %v6454_v34 }
0x1471   :  { %8692 = vmatprep.mubr.f32.mxu1 %v6455_v19 }
0x1481   :  { %v6384_v37 = vpop.xlane.xlu0 %6383 }
0x1482   :  { %vm6408_vm14 = vcmp.gt.f32.partialorder %v6384_v37, 0.0 }
0x1483   :  { %v6424_v45 = vsel %vm6408_vm14, %v6384_v37, 1.0 }
0x1484   :  { %9933 = vrcp.f32 %v6424_v45 }
0x1485   :  { %v6388_v30 = vpop.xlane.xlu0 %6387 }
0x1486   :  { %vm6410_vm13 = vcmp.gt.f32.partialorder %v6388_v30, 0.0 }
0x1487   :  { %v6426_v5 = vsel %vm6410_vm13, %v6388_v30, 1.0 }
0x1488   :  { %9935 = vrcp.f32 %v6426_v5 }
0x1489   :  { %v6390_v40 = vpop.xlane.xlu0 %6389 }
0x148a   :  { %vm6411_vm6 = vcmp.gt.f32.partialorder %v6390_v40, 0.0 }
0x148b   :  { %v6427_v4 = vsel %vm6411_vm6, %v6390_v40, 1.0  ;;  %v10066_v40 = vld [vmem:[%s14222_s3 + $0x70] sm:$0xff] }
0x148d   :  { %v6392_v9 = vpop.xlane.xlu0 %6391 }
0x148e   :  { %v9934_v27 = vpop.eup %9933  ;;  %vm6412_vm7 = vcmp.gt.f32.partialorder %v6392_v9, 0.0 }
0x148f   :  { %v6428_v36 = vsel %vm6412_vm7, %v6392_v9, 1.0  ;;  %v6456_v6 = vmul.f32 %v9934_v27, %v14001_v13 }
0x1490   :  { %9937 = vrcp.f32 %v6428_v36  ;;  %v6386_v10 = vpop.xlane.xlu1 %6385 }
0x1491   :  { %vm6409_vm8 = vcmp.gt.f32.partialorder %v6386_v10, 0.0  ;;  %v6394_v20 = vpop.xlane.xlu0 %6393  ;;  %8693 = vmatmul.mubr.f32.gmra.mrb[150].mxu1 %v6456_v6  ;;  %v6472_v17 = vmul.f32 %v10059_v57, %v6456_v6  ;;  %9939 = vrcp.f32 %v6427_v4  ;;  %v10067_v4 = vld [vmem:[%s14222_s3 + $0x78] sm:$0xff]  ;;  %v10125_v57 = vmov 0.0|0.0  }
0x1492   :  { %v9936_v59 = vpop.eup %9935  ;;  %v6425_v25 = vsel %vm6409_vm8, %v6386_v10, 1.0  ;;  %vm6413_vm9 = vcmp.gt.f32.partialorder %v6394_v20, 0.0  ;;  %9182 = vmatprep.subr.bf16.mxu1 %v10125_v57 }
0x1493   :  { %9941 = vrcp.f32 %v6425_v25  ;;  %6495 = vadd.xlane.f32.xlu1 %v6472_v17  ;;  %v6458_v2 = vmul.f32 %v9936_v59, %v14007_v49  ;;  %v6429_v15 = vsel %vm6413_vm9, %v6394_v20, 1.0  ;;  %v10061_v49 = vld [vmem:[%s14222_s3 + $0x58] sm:$0xff] }
0x1494   :  { %9943 = vrcp.f32 %v6429_v15 }
0x1495   :  { %v6396_v13 = vpop.xlane.xlu0 %6395  ;;  %v6474_v24 = vmul.f32 %v10060_v3, %v6458_v2 }
0x1496   :  { %vm6414_vm10 = vcmp.gt.f32.partialorder %v6396_v13, 0.0 }
0x1497   :  { %v6430_v18 = vsel %vm6414_vm10, %v6396_v13, 1.0  ;;  %6499 = vadd.xlane.f32.xlu1 %v6474_v24 }
0x1498   :  { %9945 = vrcp.f32 %v6430_v18 }
0x149a   :  { %v9938_v48 = vpop.eup %9937 }
0x149b   :  { %v6460_v53 = vmul.f32 %v9938_v48, %v14019_v35  ;;  %v9940_v58 = vpop.eup %9939 }
0x149c   :  { %v6459_v55 = vmul.f32 %v9940_v58, %v14013_v26 }
0x149d   :  { %v9942_v38 = vpop.eup %9941  ;;  %v6476_v21 = vmul.f32 %v10061_v49, %v6460_v53 }
0x149e   :  { %v6457_v46 = vmul.f32 %v9942_v38, %v14025_v12  ;;  %v9944_v43 = vpop.eup %9943  ;;  %v10063_v12 = vld [vmem:[%s14222_s3 + $0x50] sm:$0xff] }
0x149f   :  { %6503 = vadd.xlane.f32.xlu1 %v6476_v21  ;;  %v6475_v14 = vmul.f32 %v10063_v12, %v6459_v55  ;;  %v6461_v7 = vmul.f32 %v9944_v43, %v14030_v8 }
0x14a0   :  { %8695 = vmatprep.mubr.f32.mxu1 %v6457_v46  ;;  %v6473_v34 = vmul.f32 %v10062_v44, %v6457_v46 }
0x14a1   :  { %8696 = vmatmul.mubr.f32.gmra.mrb[152].mxu1 %v6458_v2 }
0x14a2   :  { %v9946_v35 = vpop.eup %9945  ;;  %6497 = vadd.xlane.f32.xlu0 %v6473_v34  ;;  %8698 = vmatprep.mubr.f32.mxu1 %v6459_v55 }
0x14a3   :  { %v6462_v47 = vmul.f32 %v9946_v35, %v14037_v39  ;;  %v10065_v39 = vld [vmem:[%s14222_s3 + $0x60] sm:$0xff] }
0x14a4   :  { %v6477_v0 = vmul.f32 %v10065_v39, %v6461_v7  ;;  %v10128_v39 = vmov 16  }
0x14a5   :  { %8699 = vmatmul.mubr.f32.gmra.mrb[154].mxu1 %v6460_v53  ;;  %v6478_v26 = vmul.f32 %v10064_v23, %v6462_v47  ;;  %9629 = vset.pattern.permute.xlu1 %v10128_v39 }
0x14a6   :  { %6501 = vadd.xlane.f32.xlu0 %v6475_v14  ;;  %8701 = vmatprep.mubr.f32.mxu1 %v6461_v7 }
0x14a7   :  { %6507 = vadd.xlane.f32.xlu1 %v6478_v26  ;;  %v14179_v26 = vld [vmem:[%s14224_s5 + $0x5] sm:$0x1]  ;;  %9630 = vset.pattern.permute.xlu0 %v10128_v39 }
0x14a9   :  { %8702 = vmatmul.mubr.f32.gmra.mrb[156].mxu1 %v6462_v47 }
0x14aa   :  { %6505 = vadd.xlane.f32.xlu0 %v6477_v0 }
0x14b1   :  { %v6398_v19 = vpop.xlane.xlu0 %6397 }
0x14b2   :  { %vm6415_vm12 = vcmp.gt.f32.partialorder %v6398_v19, 0.0 }
0x14b3   :  { %v6431_v29 = vsel %vm6415_vm12, %v6398_v19, 1.0 }
0x14b4   :  { %9947 = vrcp.f32 %v6431_v29  ;;  %v6400_v8 = vpop.xlane.xlu1 %6399 }
0x14b5   :  { %vm6416_vm15 = vcmp.gt.f32.partialorder %v6400_v8, 0.0 }
0x14b6   :  { %v6432_v37 = vsel %vm6416_vm15, %v6400_v8, 1.0 }
0x14b7   :  { %9949 = vrcp.f32 %v6432_v37 }
0x14be   :  { %v9948_v45 = vpop.eup %9947 }
0x14bf   :  { %v6463_v30 = vmul.f32 %v9948_v45, %v14045_v41  ;;  %v14109_v41 = vld [vmem:[%s14224_s5 + $0x4] ss:$0 sm:$0xff]  ;;  %s10129_s5 = smov [#allocation5]  }
0x14c1   :  { %v9950_v5 = vpop.eup %9949  ;;  %8704 = vmatprep.mubr.f32.mxu1 %v6463_v30  ;;  %v6479_v9 = vmul.f32 %v10066_v40, %v6463_v30 }
0x14c2   :  { %v6464_v27 = vmul.f32 %v9950_v5, %v14051_v50 }
0x14c3   :  { %6509 = vadd.xlane.f32.xlu0 %v6479_v9 }
0x14c4   :  { %8705 = vmatmul.mubr.f32.gmra.mrb[158].mxu1 %v6464_v27  ;;  %v6480_v36 = vmul.f32 %v10067_v4, %v6464_v27 }
0x14c6   :  { %6511 = vadd.xlane.f32.xlu1 %v6480_v36 }
0x14e2   :  { %v6484_v6 = vpop.xlane.xlu1 %6483 }
0x14e3   :  { %v6514_v10 = vmul.f32 %v14109_v41, %v6484_v6  ;;  %v6482_v20 = vpop.xlane.xlu0 %6481 }
0x14e4   :  { %v6513_v50 = vmul.f32 %v14109_v41, %v6482_v20 }
0x14e5   :  { %6595 = vrot.lane.b32.xlu1 %v6514_v10, %s10124_s9 }
0x14e6   :  { %6593 = vrot.lane.b32.xlu0 %v6513_v50, %s10124_s9 }
0x14e7   :  { %v6488_v17 = vpop.xlane.xlu1 %6487 }
0x14e8   :  { %v6516_v59 = vmul.f32 %v14109_v41, %v6488_v17 }
0x14e9   :  { %6786 = vrot.lane.b32.xlu1 %v13674_v52, %s10123_s30 }
0x14ea   :  { %6788 = vrot.lane.b32.xlu0 %v13671_v42, %s10123_s30 }
0x14ec   :  { %v6486_v25 = vpop.xlane.xlu0 %6485 }
0x14ed   :  { %v6515_v2 = vmul.f32 %v14109_v41, %v6486_v25 }
0x14ee   :  { %6599 = vrot.lane.b32.xlu0 %v6516_v59, %s10124_s9 }
0x14ef   :  { %6597 = vrot.lane.b32.xlu1 %v6515_v2, %s10124_s9 }
0x14f0   :  { %v6492_v15 = vpop.xlane.xlu1 %6491  ;;  %v6490_v13 = vpop.xlane.xlu0 %6489 }
0x14f1   :  { %v6518_v52 = vmul.f32 %v14109_v41, %v6492_v15  ;;  %v6517_v42 = vmul.f32 %v14109_v41, %v6490_v13 }
0x14f2   :  { %6792 = vrot.lane.b32.xlu0 %v13681_v60, %s10123_s30 }
0x14f3   :  { %6790 = vrot.lane.b32.xlu1 %v13684_v32, %s10123_s30 }
0x14f6   :  { %6603 = vrot.lane.b32.xlu0 %v6518_v52, %s10124_s9 }
0x14f7   :  { %6601 = vrot.lane.b32.xlu1 %v6517_v42, %s10124_s9 }
0x14fa   :  { %v6494_v3 = vpop.xlane.xlu0 %6493  ;;  %6796 = vrot.lane.b32.xlu0 %v13689_v56, %s10123_s30 }
0x14fb   :  { %v6519_v24 = vmul.f32 %v14109_v41, %v6494_v3  ;;  %6794 = vrot.lane.b32.xlu1 %v13692_v31, %s10123_s30 }
0x14ff   :  { %6605 = vrot.lane.b32.xlu1 %v6519_v24, %s10124_s9 }
0x1503   :  { %6798 = vrot.lane.b32.xlu1 %v13714_v54, %s10123_s30 }
0x1520   :  { %v6496_v60 = vpop.xlane.xlu1 %6495 }
0x1521   :  { %v6520_v32 = vmul.f32 %v14109_v41, %v6496_v60 }
0x1523   :  { %6607 = vrot.lane.b32.xlu0 %v6520_v32, %s10124_s9 }
0x1524   :  { %v6500_v18 = vpop.xlane.xlu1 %6499 }
0x1525   :  { %v6522_v56 = vmul.f32 %v14109_v41, %v6500_v18 }
0x1527   :  { %6800 = vrot.lane.b32.xlu0 %v13711_v22, %s10123_s30 }
0x152b   :  { %6611 = vrot.lane.b32.xlu0 %v6522_v56, %s10124_s9 }
0x152c   :  { %v6504_v48 = vpop.xlane.xlu1 %6503 }
0x152d   :  { %v6524_v53 = vmul.f32 %v14109_v41, %v6504_v48 }
0x152f   :  { %v6498_v31 = vpop.xlane.xlu0 %6497  ;;  %6804 = vrot.lane.b32.xlu0 %v13723_v61, %s10123_s30 }
0x1530   :  { %v6521_v54 = vmul.f32 %v14109_v41, %v6498_v31 }
0x1532   :  { %6609 = vrot.lane.b32.xlu1 %v6521_v54, %s10124_s9 }
0x1533   :  { %6615 = vrot.lane.b32.xlu0 %v6524_v53, %s10124_s9  ;;  %v6502_v58 = vpop.xlane.xlu0 %6501 }
0x1534   :  { %v6508_v38 = vpop.xlane.xlu1 %6507  ;;  %v6523_v22 = vmul.f32 %v14109_v41, %v6502_v58 }
0x1535   :  { %v6526_v61 = vmul.f32 %v14109_v41, %v6508_v38 }
0x1536   :  { %6802 = vrot.lane.b32.xlu1 %v13726_v1, %s10123_s30 }
0x1537   :  { %6808 = vrot.lane.b32.xlu0 %v13735_v63, %s10123_s30  ;;  %v6506_v46 = vpop.xlane.xlu0 %6505 }
0x1538   :  { %v6525_v63 = vmul.f32 %v14109_v41, %v6506_v46 }
0x153a   :  { %6613 = vrot.lane.b32.xlu1 %v6523_v22, %s10124_s9 }
0x153b   :  { %6619 = vrot.lane.b32.xlu0 %v6526_v61, %s10124_s9  ;;  %v8685_v49 = vpop.f32.mrb[144].mxu1 }
0x153c   :  { %v6707_v21 = vpop.f32.mrb[145].mxu1 }
0x153e   :  { %6806 = vrot.lane.b32.xlu1 %v13738_v62, %s10123_s30 }
0x153f   :  { %6812 = vrot.lane.b32.xlu0 %v13747_v16, %s10123_s30  ;;  %v8688_v1 = vpop.f32.mrb[146].mxu1  ;;  %v10127_v16 = vmov 0.0  }
0x1540   :  { %v6717_v44 = vpop.f32.mrb[147].mxu1  ;;  %8739 = vmatprep.mubr.msk.f32.mxu1 %vm10126_vm2, %v10127_v16 }
0x1542   :  { %6617 = vrot.lane.b32.xlu1 %v6525_v63, %s10124_s9 }
0x1543   :  { %v8691_v34 = vpop.f32.mrb[148].mxu1 }
0x1544   :  { %v6727_v55 = vpop.f32.mrb[149].mxu1 }
0x1546   :  { %6810 = vrot.lane.b32.xlu1 %v13750_v28, %s10123_s30 }
0x1550   :  { %v6510_v43 = vpop.xlane.xlu0 %6509 }
0x1551   :  { %v6527_v35 = vmul.f32 %v14109_v41, %v6510_v43 }
0x1553   :  { %6621 = vrot.lane.b32.xlu1 %v6527_v35, %s10124_s9  ;;  %v6512_v62 = vpop.xlane.xlu1 %6511 }
0x1554   :  { %v6528_v47 = vmul.f32 %v14109_v41, %v6512_v62 }
0x1556   :  { %6623 = vrot.lane.b32.xlu0 %v6528_v47, %s10124_s9 }
0x1557   :  { %6814 = vrot.lane.b32.xlu1 %v13762_v11, %s10123_s30  ;;  %v6596_v12 = vpop.permute.xlu1 %6595 }
0x1558   :  { %v6594_v14 = vpop.permute.xlu0 %6593  ;;  %v6713_v28 = vadd.f32 %v8685_v49, %v6596_v12 }
0x1559   :  { %v6708_v7 = vadd.f32 %v6707_v21, %v6594_v14 }
0x155a   :  { %6816 = vrot.lane.b32.xlu0 %v13759_v33, %s10123_s30  ;;  %s6999_s30 = sshll.u32 %s10129_s5, 4  ;;  %s7000_s30 = int_to_ptr.vmem [resolvable:$true] %s6999_s30 }
0x155b   :  { %v6787_v23 = vpop.permute.xlu1 %6786  ;;  %6869 = vperm.xlu1 %9629, %v14179_v26   ;;  %s10091_s9 = scalar_lea.vmem %s7000_s30, 16  ;;  %s10095_s25 = scalar_lea.vmem %s7000_s30, 32 }
0x155c   :  { %v6834_v0 = vadd.f32 %v6787_v23, %v6708_v7  ;;  %v6789_v19 = vpop.permute.xlu0 %6788  ;;  %p10092_p8 = scmp.ne.s32.totalorder %s7000_s30, %s10091_s9  ;;  %p10096_p9 = scmp.lt.s32.totalorder %s7000_s30, %s7000_s30 }
0x155d   :  { %v6835_v11 = vadd.f32 %v6789_v19, %v6713_v28  ;;  %p10097_p10 = scmp.lt.s32.totalorder %s10095_s25, %s10091_s9 }
0x155e   :  { %v6850_v29 = vmax.f32 %v6834_v0, 0.0 }
0x155f   :  { %v6851_v8 = vmax.f32 %v6835_v11, 0.0  ;;  %p10098_p11 = por %p10097_p10, %p10096_p9 }
0x1560   :  { %v6600_v37 = vpop.permute.xlu0 %6599 }
0x1561   :  { %v9183_v45 = vpack.c.bf16 %v6851_v8, %v6850_v29  ;;  %v6598_v33 = vpop.permute.xlu1 %6597  ;;  %v6723_v30 = vadd.f32 %v8688_v1, %v6600_v37  ;;  %p10099_p12 = pnand %p10098_p11, %p10092_p8 }
0x1562   :  { %v6718_v5 = vadd.f32 %v6717_v44, %v6598_v33 }
0x1563   :  { %9185 = vmatpush3.bf16.xpose.msk.msra.mxu1 %vm10482_vm1, %v9183_v45 }
0x1564   :  { %v6793_v40 = vpop.permute.xlu0 %6792  ;;  %v8694_v9 = vpop.f32.mrb[150].mxu1  ;;  %9186 = vmatprep.subr.bf16.mxu1 %v10125_v57 }
0x1565   :  { %v6837_v27 = vadd.f32 %v6793_v40, %v6723_v30  ;;  %v6791_v4 = vpop.permute.xlu1 %6790  ;;  %v6737_v36 = vpop.f32.mrb[151].mxu1 }
0x1566   :  { %v6836_v6 = vadd.f32 %v6791_v4, %v6718_v5 }
0x1567   :  { %v6853_v41 = vmax.f32 %v6837_v27, 0.0 }
0x1568   :  { %v6852_v10 = vmax.f32 %v6836_v6, 0.0  ;;  %v6604_v20 = vpop.permute.xlu0 %6603 }
0x1569   :  { %v6602_v50 = vpop.permute.xlu1 %6601  ;;  %v6733_v59 = vadd.f32 %v8691_v34, %v6604_v20 }
0x156a   :  { %v9187_v17 = vpack.c.bf16 %v6853_v41, %v6852_v10  ;;  %v6728_v25 = vadd.f32 %v6727_v55, %v6602_v50 }
0x156c   :  { %9189 = vmatpush3.bf16.xpose.msk.msra.mxu1 %vm10482_vm1, %v9187_v17  ;;  %v6797_v2 = vpop.permute.xlu0 %6796 }
0x156d   :  { %v6839_v15 = vadd.f32 %v6797_v2, %v6733_v59  ;;  %v6795_v13 = vpop.permute.xlu1 %6794  ;;  %9190 = vmatprep.subr.bf16.mxu1 %v10125_v57 }
0x156e   :  { %v6838_v52 = vadd.f32 %v6795_v13, %v6728_v25 }
0x156f   :  { %v6855_v42 = vmax.f32 %v6839_v15, 0.0 }
0x1570   :  { %v6854_v3 = vmax.f32 %v6838_v52, 0.0 }
0x1571   :  { %v6606_v54 = vpop.permute.xlu1 %6605 }
0x1572   :  { %v9191_v24 = vpack.c.bf16 %v6855_v42, %v6854_v3  ;;  %v6738_v38 = vadd.f32 %v6737_v36, %v6606_v54 }
0x1574   :  { %9193 = vmatpush3.bf16.xpose.msk.msra.mxu1 %vm10482_vm1, %v9191_v24  ;;  %v8697_v60 = vpop.f32.mrb[152].mxu1 }
0x1575   :  { %v6747_v32 = vpop.f32.mrb[153].mxu1  ;;  %9194 = vmatprep.subr.bf16.mxu1 %v10125_v57  ;;  %v6799_v53 = vpop.permute.xlu1 %6798 }
0x1576   :  { %v6840_v61 = vadd.f32 %v6799_v53, %v6738_v38 }
0x1578   :  { %v8700_v18 = vpop.f32.mrb[154].mxu1  ;;  %v6856_v63 = vmax.f32 %v6840_v61, 0.0 }
0x1579   :  { %v6757_v56 = vpop.f32.mrb[155].mxu1 }
0x157c   :  { %v8703_v48 = vpop.f32.mrb[156].mxu1 }
0x157d   :  { %v6767_v31 = vpop.f32.mrb[157].mxu1 }
0x1595   :  { %v6608_v58 = vpop.permute.xlu0 %6607 }
0x1596   :  { %v6743_v49 = vadd.f32 %v8694_v9, %v6608_v58 }
0x1597   :  { %v8706_v22 = vpop.f32.mrb[158].mxu1 }
0x1598   :  { %v6777_v21 = vpop.f32.mrb[159].mxu1 }
0x1599   :  { %v6801_v46 = vpop.permute.xlu0 %6800 }
0x159a   :  { %v6841_v1 = vadd.f32 %v6801_v46, %v6743_v49 }
0x159c   :  { %v6857_v44 = vmax.f32 %v6841_v1, 0.0 }
0x159d   :  { %v6612_v34 = vpop.permute.xlu0 %6611 }
0x159e   :  { %v9195_v55 = vpack.c.bf16 %v6857_v44, %v6856_v63  ;;  %v6753_v62 = vadd.f32 %v8697_v60, %v6612_v34 }
0x15a0   :  { %9197 = vmatpush3.bf16.xpose.msk.msra.mxu1 %vm10482_vm1, %v9195_v55 }
0x15a1   :  { %v6805_v43 = vpop.permute.xlu0 %6804  ;;  %9198 = vmatprep.subr.bf16.mxu1 %v10125_v57 }
0x15a2   :  { %v6843_v16 = vadd.f32 %v6805_v43, %v6753_v62 }
0x15a4   :  { %v6610_v35 = vpop.permute.xlu1 %6609  ;;  %v6859_v23 = vmax.f32 %v6843_v16, 0.0 }
0x15a5   :  { %v6616_v47 = vpop.permute.xlu0 %6615  ;;  %v6748_v12 = vadd.f32 %v6747_v32, %v6610_v35 }
0x15a6   :  { %v6763_v19 = vadd.f32 %v8700_v18, %v6616_v47 }
0x15a8   :  { %v6803_v14 = vpop.permute.xlu1 %6802 }
0x15a9   :  { %v6842_v7 = vadd.f32 %v6803_v14, %v6748_v12  ;;  %v6809_v28 = vpop.permute.xlu0 %6808 }
0x15aa   :  { %v6845_v8 = vadd.f32 %v6809_v28, %v6763_v19 }
0x15ab   :  { %v6858_v39 = vmax.f32 %v6842_v7, 0.0 }
0x15ac   :  { %v6614_v0 = vpop.permute.xlu1 %6613  ;;  %v6861_v30 = vmax.f32 %v6845_v8, 0.0 }
0x15ad   :  { %v9199_v11 = vpack.c.bf16 %v6859_v23, %v6858_v39  ;;  %v6620_v29 = vpop.permute.xlu0 %6619  ;;  %v6758_v37 = vadd.f32 %v6757_v56, %v6614_v0 }
0x15ae   :  { %v6773_v27 = vadd.f32 %v8703_v48, %v6620_v29 }
0x15af   :  { %9201 = vmatpush3.bf16.xpose.msk.msra.mxu1 %vm10482_vm1, %v9199_v11 }
0x15b0   :  { %v6807_v45 = vpop.permute.xlu1 %6806  ;;  %9202 = vmatprep.subr.bf16.mxu1 %v10125_v57 }
0x15b1   :  { %v6844_v33 = vadd.f32 %v6807_v45, %v6758_v37  ;;  %v6813_v40 = vpop.permute.xlu0 %6812 }
0x15b2   :  { %v6847_v36 = vadd.f32 %v6813_v40, %v6773_v27 }
0x15b3   :  { %v6860_v5 = vmax.f32 %v6844_v33, 0.0 }
0x15b4   :  { %v6618_v9 = vpop.permute.xlu1 %6617  ;;  %v6863_v20 = vmax.f32 %v6847_v36, 0.0 }
0x15b5   :  { %v9203_v4 = vpack.c.bf16 %v6861_v30, %v6860_v5  ;;  %v6768_v6 = vadd.f32 %v6767_v31, %v6618_v9 }
0x15b7   :  { %9205 = vmatpush3.bf16.xpose.msk.msra.mxu1 %vm10482_vm1, %v9203_v4 }
0x15b8   :  { %v6811_v41 = vpop.permute.xlu1 %6810  ;;  %9206 = vmatprep.subr.bf16.mxu1 %v10125_v57 }
0x15b9   :  { %v6846_v10 = vadd.f32 %v6811_v41, %v6768_v6 }
0x15bb   :  { %v6862_v50 = vmax.f32 %v6846_v10, 0.0 }
0x15bd   :  { %v9207_v17 = vpack.c.bf16 %v6863_v20, %v6862_v50 }
0x15bf   :  { %9209 = vmatpush3.bf16.xpose.msk.msra.mxu1 %vm10482_vm1, %v9207_v17 }
0x15c0   :  { %9210 = vmatprep.subr.bf16.mxu1 %v10125_v57 }
0x15c5   :  { %v6622_v59 = vpop.permute.xlu1 %6621 }
0x15c6   :  { %v6778_v2 = vadd.f32 %v6777_v21, %v6622_v59 }
0x15c8   :  { %v6624_v25 = vpop.permute.xlu0 %6623 }
0x15c9   :  { %v6815_v15 = vpop.permute.xlu1 %6814  ;;  %v6783_v13 = vadd.f32 %v8706_v22, %v6624_v25 }
0x15ca   :  { %v6848_v52 = vadd.f32 %v6815_v15, %v6778_v2 }
0x15cc   :  { %v6817_v42 = vpop.permute.xlu0 %6816  ;;  %v6864_v24 = vmax.f32 %v6848_v52, 0.0 }
0x15cd   :  { %v6849_v3 = vadd.f32 %v6817_v42, %v6783_v13 }
0x15cf   :  { %v6865_v60 = vmax.f32 %v6849_v3, 0.0 }
0x15d1   :  { %v9211_v32 = vpack.c.bf16 %v6865_v60, %v6864_v24 }
0x15d3   :  { %9213 = vmatpush3.bf16.xpose.msk.msra.mxu1 %vm10482_vm1, %v9211_v32 }
0x15da   :  { %8740 = vmatmul.mubr.msk.f32.vlgmr.msra.gmra.mrb[160].mxu1 %vm173_vm0, %v14179_v26  ;;  %v6870_v18 = vpop.permute.xlu1 %6869 }
0x16ad   :  { %v6988_v57 = vpop.f32.mrb[160].mxu1 }
0x16ae   :  { %v6989_v56 = vadd.f32 %v6988_v57, %v6870_v18  ;;  %v8741_v48 = vpop.f32.mrb[161].mxu1 }
0x16b0   :  { %6992 = vst [vmem:[#allocation5] sm:$0x1] %v6989_v56 }
0x16b1   :  { %10102 = shalt.err (!%p10099_p12)
}
0x16b2   :  { %s10103_s2 = scalar_lea.hbm %s14225_s6, 16 }
0x16b3   :  { %p10104_p13 = scmp.ne.s32.totalorder %s14225_s6, %s10103_s2  ;;  %p10107_p0 = scmp.lt.u32.totalorder %s10103_s2, %s14225_s6 }
0x16b5   :  { %p10109_p1 = pnand %p10107_p0, %p10104_p13 }
0x16b7   :  { %10112 = shalt.err (!%p10109_p1)
}
0x16b8   :  { %7002 = dma.vmem_to_hbm [thread:$0]  %s7000_s30, 16, %s14225_s6, [#allocation4]  }
0x16b9   :  { %10115 = dma.done.wait [#allocation4], 16  }
0x16ba   :  { %10116 = vsyncadd [#allocation4], 4294967280 }
0x16bb   :  { %7006 = vsyncpa [#allocation3], 1 }
0x16bc   :  { %7007 = vsyncpa [#allocation4], 1 }

</bundles_post_ra>
